<compile_context>
chip_gen: v7x
topology: tpu7x:2x2x1
jax: 0.10.0
libtpu: 0.0.40
codegen_flags: <defaults>
</compile_context>

<pallas_src>
import numpy as np
import jax
import jax.numpy as jnp
from jax import lax
from jax.experimental import pallas as pl
from jax.experimental.pallas import tpu as pltpu


_BN = 128                    # batch (lane) block: multiple of 128 keeps tiles dense
_IN_FEATS = 2 * 14 * 14      # 392 = flattened (C,H,W) input features per sample
_C1_ROWS = 9 * 512           # 4608 conv1 rows: (pool-window offset, pooled pos, ch)


# ----------------------------------------------------------------------------
# Fused kernel: conv1 -> pool3/3+relu -> conv2 -> pool2/2+relu
#               -> fc1(+relu, padded 200->256) -> fc2(+relu) -> tanh
# Layout: batch on lanes (bn wide), features on sublanes.
# ----------------------------------------------------------------------------
def _parallel_net_kernel(x_ref, w1_ref, b1_ref, w2_ref, b2_ref,
                         fw1_ref, fb1_ref, fw2_ref, fb2_ref,
                         out_ref, p1_ref):
    """One batch block of size BN.

    x_ref  : (392, BN)   flattened input, batch on lanes (matmul dtype)
    w1_ref : (4608, 392) conv1 zero-scattered; row m = (i*3+j)*512 + ph*128 +
                         pw*32 + o is conv1 channel o at spatial (3ph+i, 3pw+j)
    b1_ref : (512, 1)    conv1 bias tiled to the pooled (ph, pw, o) layout
    w2_ref : (256, 512)  conv2 zero-scattered; row f = (oh*2+ow)*64 + c is
                         conv2 channel c at output position (oh, ow)
    b2_ref : (256, 1)
    fw1_ref: (256, 64)   fc1 weight, output-padded 200 -> 256
    fb1_ref: (256, 1)
    fw2_ref: (8, 256)    fc2 weight in row 0, rows 1..7 zero (tile-aligned M)
    fb2_ref: (1, 1)
    out_ref: (1, BN)     lane-dense output row
    p1_ref : VMEM scratch (512, BN) f32, pooled+relu'd conv1 activations
    """
    f32 = jnp.float32
    x = x_ref[...]                                        # loaded once, reused 9x

    # ---- conv1 + maxpool(3,3): 9 max-folded M-chunks of one MXU matmul -----
    p1_ref[...] = jnp.dot(w1_ref[0:512, :], x, preferred_element_type=f32)
    for t in range(1, 9):
        c = jnp.dot(w1_ref[t * 512:(t + 1) * 512, :], x,
                    preferred_element_type=f32)
        p1_ref[...] = jnp.maximum(p1_ref[...], c)
    # bias is per-channel (constant inside each pool window) -> add after max
    p1 = jnp.maximum(p1_ref[...] + b1_ref[...], 0.0)      # (512, BN) f32

    # ---- conv2 + maxpool(2,2): ONE K=512 MXU matmul, then 4-way chunk max --
    c2 = jnp.dot(w2_ref[...], p1.astype(w2_ref.dtype),
                 preferred_element_type=f32) + b2_ref[...]          # (256, BN)
    p2 = jnp.maximum(jnp.maximum(c2[0:64, :], c2[64:128, :]),
                     jnp.maximum(c2[128:192, :], c2[192:256, :]))
    p2 = jnp.maximum(p2, 0.0)                             # (64, BN) == x.view(-1, 64)

    # ---- fc1 (64 -> 200, padded to 256) + ReLU (MXU) ------------------------
    h = jnp.dot(fw1_ref[...], p2.astype(fw1_ref.dtype),
                preferred_element_type=f32) + fb1_ref[...]          # (256, BN)
    h = jnp.maximum(h, 0.0)

    # ---- fc2 (200 -> 1) + ReLU + tanh ---------------------------------------
    o8 = jnp.dot(fw2_ref[...], h.astype(fw2_ref.dtype),
                 preferred_element_type=f32)                        # (8, BN)
    o = o8[0:1, :] + fb2_ref[...]
    out_ref[...] = jnp.tanh(jnp.maximum(o, 0.0)).astype(out_ref.dtype)


# ----------------------------------------------------------------------------
# Parameter preprocessing (hoisted out of the forward path; done ONCE, numpy)
# ----------------------------------------------------------------------------
def prepare_params(params, matmul_dtype=jnp.bfloat16):
    """Relayout PyTorch-shaped params for the fused kernel.

    matmul_dtype: bf16 by default on every TPU generation (MXU-native, f32
    accumulation inside the kernel).  Pass jnp.float32 for bit-level checks.
    """
    w1, b1, w2, b2, fw1, fb1, fw2, fb2 = [np.asarray(p, np.float32) for p in params]

    # conv1 -> zero-scattered (4608, 392); row m computes conv1 channel o at
    # spatial (3*ph+i, 3*pw+j); column k = cin*196 + h*14 + w indexes the
    # flattened (2,14,14) input.
    i_, j_, ph_, pw_, o_, ci_, ki_, kj_ = [a.ravel() for a in np.meshgrid(
        np.arange(3), np.arange(3), np.arange(4), np.arange(4),
        np.arange(32), np.arange(2), np.arange(3), np.arange(3), indexing="ij")]
    rows = (i_ * 3 + j_) * 512 + ph_ * 128 + pw_ * 32 + o_
    cols = ci_ * 196 + (3 * ph_ + i_ + ki_) * 14 + (3 * pw_ + j_ + kj_)
    w1_big = np.zeros((_C1_ROWS, _IN_FEATS), np.float32)
    w1_big[rows, cols] = w1[o_, ci_, ki_, kj_]
    b1_col = np.tile(b1, 16).reshape(512, 1)              # index = ph*128+pw*32+o

    # conv2 -> zero-scattered (256, 512); row f = (oh*2+ow)*64 + c2,
    # column p = ph*128 + pw*32 + c1 indexes the pooled conv1 activations.
    oh_, ow_, c2_, c1_, ki_, kj_ = [a.ravel() for a in np.meshgrid(
        np.arange(2), np.arange(2), np.arange(64), np.arange(32),
        np.arange(3), np.arange(3), indexing="ij")]
    rows = (oh_ * 2 + ow_) * 64 + c2_
    cols = (oh_ + ki_) * 128 + (ow_ + kj_) * 32 + c1_
    w2_big = np.zeros((256, 512), np.float32)
    w2_big[rows, cols] = w2[c2_, c1_, ki_, kj_]
    b2_col = np.tile(b2, 4).reshape(256, 1)                # index = pos*64 + c2

    # fc1 / fc2 with the fc1 output dim padded 200 -> 256 (zero rows are exact
    # no-ops through ReLU and the zero fc2 columns).
    fw1_pad = np.zeros((256, 64), np.float32)
    fw1_pad[:200, :] = fw1
    fb1_col = np.zeros((256, 1), np.float32)
    fb1_col[:200, 0] = fb1
    fw2_pad = np.zeros((8, 256), np.float32)               # tile-aligned M for MXU
    fw2_pad[0, :200] = fw2.reshape(200)
    fb2_11 = fb2.reshape(1, 1)

    md = matmul_dtype
    return (jnp.asarray(w1_big, dtype=md),
            jnp.asarray(b1_col, dtype=jnp.float32),
            jnp.asarray(w2_big, dtype=md),
            jnp.asarray(b2_col, dtype=jnp.float32),
            jnp.asarray(fw1_pad, dtype=md),
            jnp.asarray(fb1_col, dtype=jnp.float32),
            jnp.asarray(fw2_pad, dtype=md),
            jnp.asarray(fb2_11, dtype=jnp.float32))


# ----------------------------------------------------------------------------
# Forward pass: ONE pallas_call, batch blocks on a "parallel" grid axis
# ----------------------------------------------------------------------------
def parallel_net_forward(x_nchw, prepared):
    w1b, b1c, w2b, b2c, fw1p, fb1c, fw2p, fb2c = prepared
    n = x_nchw.shape[0]
    assert x_nchw.shape[1:] == (2, 14, 14), "Parallel_Net expects (N, 2, 14, 14)"

    bn = _BN
    n_pad = ((n + bn - 1) // bn) * bn
    # Flatten to (features, batch) with batch on the lane axis; zero-pad the
    # batch so every grid step works on a full, dense 128-lane block.
    xt = x_nchw.reshape(n, _IN_FEATS).T.astype(w1b.dtype)
    xt = jnp.pad(xt, ((0, 0), (0, n_pad - n)))
    grid = (n_pad // bn,)

    in_specs = [
        pl.BlockSpec((_IN_FEATS, bn), lambda b: (0, b)),       # input batch block
        pl.BlockSpec((_C1_ROWS, _IN_FEATS), lambda b: (0, 0)),  # conv1+pool3 matrix
        pl.BlockSpec((512, 1), lambda b: (0, 0)),               # conv1 bias
        pl.BlockSpec((256, 512), lambda b: (0, 0)),             # conv2+pool2 matrix
        pl.BlockSpec((256, 1), lambda b: (0, 0)),               # conv2 bias
        pl.BlockSpec((256, 64), lambda b: (0, 0)),              # fc1 weight (padded)
        pl.BlockSpec((256, 1), lambda b: (0, 0)),               # fc1 bias
        pl.BlockSpec((8, 256), lambda b: (0, 0)),               # fc2 weight rows
        pl.BlockSpec((1, 1), lambda b: (0, 0)),                 # fc2 bias
    ]
    out_specs = pl.BlockSpec((1, bn), lambda b: (0, b))         # lane-dense output

    out_row = pl.pallas_call(
        _parallel_net_kernel,
        out_shape=jax.ShapeDtypeStruct((1, n_pad), jnp.float32),
        grid_spec=pltpu.PrefetchScalarGridSpec(
            num_scalar_prefetch=0,
            grid=grid,
            in_specs=in_specs,
            out_specs=out_specs,
            scratch_shapes=[pltpu.VMEM((512, bn), jnp.float32)],
        ),
        compiler_params=pltpu.CompilerParams(
            dimension_semantics=("parallel",),
            vmem_limit_bytes=32 * 1024 * 1024,
        ),
    )(xt, w1b, b1c, w2b, b2c, fw1p, fb1c, fw2p, fb2c)

    return out_row[0, :n].reshape(n, 1).astype(x_nchw.dtype)


# ----------------------------------------------------------------------------
# Pure-JAX reference (correctness sanity check only)
# ----------------------------------------------------------------------------
def _reference_forward(x_nchw, params):
    w1, b1, w2, b2, fw1, fb1, fw2, fb2 = params
    dn = ("NCHW", "OIHW", "NCHW")
    hi = lax.Precision.HIGHEST
    y = lax.conv_general_dilated(x_nchw, w1, (1, 1), "VALID",
                                 dimension_numbers=dn, precision=hi)
    y = y + b1[None, :, None, None]
    y = lax.reduce_window(y, -jnp.inf, lax.max, (1, 1, 3, 3), (1, 1, 3, 3), "VALID")
    y = jnp.maximum(y, 0.0)
    y = lax.conv_general_dilated(y, w2, (1, 1), "VALID",
                                 dimension_numbers=dn, precision=hi)
    y = y + b2[None, :, None, None]
    y = lax.reduce_window(y, -jnp.inf, lax.max, (1, 1, 2, 2), (1, 1, 2, 2), "VALID")
    y = jnp.maximum(y, 0.0).reshape(-1, 64)
    y = jnp.maximum(jnp.dot(y, fw1.T, precision=hi) + fb1, 0.0)
    y = jnp.maximum(jnp.dot(y, fw2.T, precision=hi) + fb2, 0.0)
    return jnp.tanh(y)


# ----------------------------------------------------------------------------
# Deterministic parameter init (PyTorch-shaped tensors)
# ----------------------------------------------------------------------------
def init_params():
    ks = jax.random.split(jax.random.PRNGKey(0), 8)
    f32 = jnp.float32
    w1 = 0.10 * jax.random.normal(ks[0], (32, 2, 3, 3), f32)    # conv1.weight
    b1 = 0.05 * jax.random.normal(ks[1], (32,), f32)            # conv1.bias
    w2 = 0.05 * jax.random.normal(ks[2], (64, 32, 3, 3), f32)   # conv2.weight
    b2 = 0.05 * jax.random.normal(ks[3], (64,), f32)            # conv2.bias
    fw1 = 0.05 * jax.random.normal(ks[4], (200, 64), f32)       # fc1.weight
    fb1 = 0.05 * jax.random.normal(ks[5], (200,), f32)          # fc1.bias
    fw2 = 0.05 * jax.random.normal(ks[6], (1, 200), f32)        # fc2.weight
    fb2 = 0.05 * jax.random.normal(ks[7], (1,), f32)            # fc2.bias
    return (w1, b1, w2, b2, fw1, fb1, fw2, fb2)


if __name__ == "__main__":
    # 14x14 spatial / 2 channels is what x.view(-1, 64) after conv+pool implies.
    params = init_params()
    prepared = prepare_params(params)        # bf16 matmul operands, relaid once

    fwd = jax.jit(parallel_net_forward)

    # Main check: batch 256 -> two 128-wide grid steps (uses both v7x TCs).
    x = jax.random.normal(jax.random.PRNGKey(0), (256, 2, 14, 14), jnp.float32)
    out = jax.block_until_ready(fwd(x, prepared))
    assert out.shape == (256, 1) and out.dtype == jnp.float32
    assert bool(jnp.all(jnp.isfinite(out)))
    assert bool(jnp.all(out >= 0.0)) and bool(jnp.all(out < 1.0))
    ref = _reference_forward(x, params)
    assert bool(jnp.allclose(out, ref, atol=2e-2, rtol=2e-2)), \
        float(jnp.max(jnp.abs(out - ref)))

    # Ragged batch: N=3 is zero-padded up to one full 128-lane block.
    xs = jax.random.normal(jax.random.PRNGKey(1), (3, 2, 14, 14), jnp.float32)
    outs = jax.block_until_ready(fwd(xs, prepared))
    refs = _reference_forward(xs, params)
    assert outs.shape == (3, 1)
    assert bool(jnp.allclose(outs, refs, atol=2e-2, rtol=2e-2))

    print("KERNEL_OK")
</pallas_src>

<mosaic_0001>
module attributes {stable_mosaic.version = 11 : i64} {
  func.func @_parallel_net_kernel(%arg0: i32, %arg1: memref<392x128xbf16, #tpu.memory_space<vmem>>, %arg2: memref<4608x392xbf16, #tpu.memory_space<vmem>>, %arg3: memref<512x1xf32, #tpu.memory_space<vmem>>, %arg4: memref<256x512xbf16, #tpu.memory_space<vmem>>, %arg5: memref<256x1xf32, #tpu.memory_space<vmem>>, %arg6: memref<256x64xbf16, #tpu.memory_space<vmem>>, %arg7: memref<256x1xf32, #tpu.memory_space<vmem>>, %arg8: memref<8x256xbf16, #tpu.memory_space<vmem>>, %arg9: memref<1x1xf32, #tpu.memory_space<vmem>>, %arg10: memref<1x128xf32, #tpu.memory_space<vmem>>, %arg11: memref<512x128xf32, #tpu.memory_space<vmem>>) attributes {dimension_semantics = [#tpu.dimension_semantics<parallel>], iteration_bounds = array<i64: 2>, scalar_prefetch = 0 : i64, scratch_operands = 1 : i64, tpu.core_type = #tpu.core_type<tc>, window_params = [{transform_indices = @transform_0, window_bounds = array<i64: 392, 128>}, {pipeline_mode = #tpu.pipeline_mode<synchronous>, transform_indices = @transform_1, window_bounds = array<i64: 4608, 392>}, {pipeline_mode = #tpu.pipeline_mode<synchronous>, transform_indices = @transform_2, window_bounds = array<i64: 512, 1>}, {pipeline_mode = #tpu.pipeline_mode<synchronous>, transform_indices = @transform_3, window_bounds = array<i64: 256, 512>}, {pipeline_mode = #tpu.pipeline_mode<synchronous>, transform_indices = @transform_4, window_bounds = array<i64: 256, 1>}, {pipeline_mode = #tpu.pipeline_mode<synchronous>, transform_indices = @transform_5, window_bounds = array<i64: 256, 64>}, {pipeline_mode = #tpu.pipeline_mode<synchronous>, transform_indices = @transform_6, window_bounds = array<i64: 256, 1>}, {pipeline_mode = #tpu.pipeline_mode<synchronous>, transform_indices = @transform_7, window_bounds = array<i64: 8, 256>}, {pipeline_mode = #tpu.pipeline_mode<synchronous>, transform_indices = @transform_8, window_bounds = array<i64: 1, 1>}, {transform_indices = @transform_9, window_bounds = array<i64: 1, 128>}]} {
    %c0 = arith.constant 0 : index
    %c0_0 = arith.constant 0 : index
    %0 = vector.load %arg1[%c0, %c0_0] : memref<392x128xbf16, #tpu.memory_space<vmem>>, vector<392x128xbf16>
    %c0_1 = arith.constant 0 : index
    %c0_2 = arith.constant 0 : index
    %1 = vector.load %arg2[%c0_1, %c0_2] : memref<4608x392xbf16, #tpu.memory_space<vmem>>, vector<512x392xbf16>
    %cst = arith.constant dense<0.000000e+00> : vector<512x128xf32>
    %2 = tpu.matmul %1, %0, %cst {dimension_numbers = #tpu.dot_dimension_numbers<[1], [0], [0], [1], [0, 0, 1, 1], [], []>} : vector<512x392xbf16>, vector<392x128xbf16>, vector<512x128xf32> -> vector<512x128xf32>
    %c0_3 = arith.constant 0 : index
    %c0_4 = arith.constant 0 : index
    %3 = vector.load %arg11[%c0_3, %c0_4] : memref<512x128xf32, #tpu.memory_space<vmem>>, vector<512x128xf32>
    tpu.vector_store %arg11[%c0_3, %c0_4], %2 {strides = array<i32>} : memref<512x128xf32, #tpu.memory_space<vmem>>, vector<512x128xf32>,
    %c512 = arith.constant 512 : index
    %c0_5 = arith.constant 0 : index
    %4 = vector.load %arg2[%c512, %c0_5] : memref<4608x392xbf16, #tpu.memory_space<vmem>>, vector<512x392xbf16>
    %cst_6 = arith.constant dense<0.000000e+00> : vector<512x128xf32>
    %5 = tpu.matmul %4, %0, %cst_6 {dimension_numbers = #tpu.dot_dimension_numbers<[1], [0], [0], [1], [0, 0, 1, 1], [], []>} : vector<512x392xbf16>, vector<392x128xbf16>, vector<512x128xf32> -> vector<512x128xf32>
    %c0_7 = arith.constant 0 : index
    %c0_8 = arith.constant 0 : index
    %6 = vector.load %arg11[%c0_7, %c0_8] : memref<512x128xf32, #tpu.memory_space<vmem>>, vector<512x128xf32>
    %7 = arith.maximumf %6, %5 : vector<512x128xf32>
    %c0_9 = arith.constant 0 : index
    %c0_10 = arith.constant 0 : index
    %8 = vector.load %arg11[%c0_9, %c0_10] : memref<512x128xf32, #tpu.memory_space<vmem>>, vector<512x128xf32>
    tpu.vector_store %arg11[%c0_9, %c0_10], %7 {strides = array<i32>} : memref<512x128xf32, #tpu.memory_space<vmem>>, vector<512x128xf32>,
    %c1024 = arith.constant 1024 : index
    %c0_11 = arith.constant 0 : index
    %9 = vector.load %arg2[%c1024, %c0_11] : memref<4608x392xbf16, #tpu.memory_space<vmem>>, vector<512x392xbf16>
    %cst_12 = arith.constant dense<0.000000e+00> : vector<512x128xf32>
    %10 = tpu.matmul %9, %0, %cst_12 {dimension_numbers = #tpu.dot_dimension_numbers<[1], [0], [0], [1], [0, 0, 1, 1], [], []>} : vector<512x392xbf16>, vector<392x128xbf16>, vector<512x128xf32> -> vector<512x128xf32>
    %c0_13 = arith.constant 0 : index
    %c0_14 = arith.constant 0 : index
    %11 = vector.load %arg11[%c0_13, %c0_14] : memref<512x128xf32, #tpu.memory_space<vmem>>, vector<512x128xf32>
    %12 = arith.maximumf %11, %10 : vector<512x128xf32>
    %c0_15 = arith.constant 0 : index
    %c0_16 = arith.constant 0 : index
    %13 = vector.load %arg11[%c0_15, %c0_16] : memref<512x128xf32, #tpu.memory_space<vmem>>, vector<512x128xf32>
    tpu.vector_store %arg11[%c0_15, %c0_16], %12 {strides = array<i32>} : memref<512x128xf32, #tpu.memory_space<vmem>>, vector<512x128xf32>,
    %c1536 = arith.constant 1536 : index
    %c0_17 = arith.constant 0 : index
    %14 = vector.load %arg2[%c1536, %c0_17] : memref<4608x392xbf16, #tpu.memory_space<vmem>>, vector<512x392xbf16>
    %cst_18 = arith.constant dense<0.000000e+00> : vector<512x128xf32>
    %15 = tpu.matmul %14, %0, %cst_18 {dimension_numbers = #tpu.dot_dimension_numbers<[1], [0], [0], [1], [0, 0, 1, 1], [], []>} : vector<512x392xbf16>, vector<392x128xbf16>, vector<512x128xf32> -> vector<512x128xf32>
    %c0_19 = arith.constant 0 : index
    %c0_20 = arith.constant 0 : index
    %16 = vector.load %arg11[%c0_19, %c0_20] : memref<512x128xf32, #tpu.memory_space<vmem>>, vector<512x128xf32>
    %17 = arith.maximumf %16, %15 : vector<512x128xf32>
    %c0_21 = arith.constant 0 : index
    %c0_22 = arith.constant 0 : index
    %18 = vector.load %arg11[%c0_21, %c0_22] : memref<512x128xf32, #tpu.memory_space<vmem>>, vector<512x128xf32>
    tpu.vector_store %arg11[%c0_21, %c0_22], %17 {strides = array<i32>} : memref<512x128xf32, #tpu.memory_space<vmem>>, vector<512x128xf32>,
    %c2048 = arith.constant 2048 : index
    %c0_23 = arith.constant 0 : index
    %19 = vector.load %arg2[%c2048, %c0_23] : memref<4608x392xbf16, #tpu.memory_space<vmem>>, vector<512x392xbf16>
    %cst_24 = arith.constant dense<0.000000e+00> : vector<512x128xf32>
    %20 = tpu.matmul %19, %0, %cst_24 {dimension_numbers = #tpu.dot_dimension_numbers<[1], [0], [0], [1], [0, 0, 1, 1], [], []>} : vector<512x392xbf16>, vector<392x128xbf16>, vector<512x128xf32> -> vector<512x128xf32>
    %c0_25 = arith.constant 0 : index
    %c0_26 = arith.constant 0 : index
    %21 = vector.load %arg11[%c0_25, %c0_26] : memref<512x128xf32, #tpu.memory_space<vmem>>, vector<512x128xf32>
    %22 = arith.maximumf %21, %20 : vector<512x128xf32>
    %c0_27 = arith.constant 0 : index
    %c0_28 = arith.constant 0 : index
    %23 = vector.load %arg11[%c0_27, %c0_28] : memref<512x128xf32, #tpu.memory_space<vmem>>, vector<512x128xf32>
    tpu.vector_store %arg11[%c0_27, %c0_28], %22 {strides = array<i32>} : memref<512x128xf32, #tpu.memory_space<vmem>>, vector<512x128xf32>,
    %c2560 = arith.constant 2560 : index
    %c0_29 = arith.constant 0 : index
    %24 = vector.load %arg2[%c2560, %c0_29] : memref<4608x392xbf16, #tpu.memory_space<vmem>>, vector<512x392xbf16>
    %cst_30 = arith.constant dense<0.000000e+00> : vector<512x128xf32>
    %25 = tpu.matmul %24, %0, %cst_30 {dimension_numbers = #tpu.dot_dimension_numbers<[1], [0], [0], [1], [0, 0, 1, 1], [], []>} : vector<512x392xbf16>, vector<392x128xbf16>, vector<512x128xf32> -> vector<512x128xf32>
    %c0_31 = arith.constant 0 : index
    %c0_32 = arith.constant 0 : index
    %26 = vector.load %arg11[%c0_31, %c0_32] : memref<512x128xf32, #tpu.memory_space<vmem>>, vector<512x128xf32>
    %27 = arith.maximumf %26, %25 : vector<512x128xf32>
    %c0_33 = arith.constant 0 : index
    %c0_34 = arith.constant 0 : index
    %28 = vector.load %arg11[%c0_33, %c0_34] : memref<512x128xf32, #tpu.memory_space<vmem>>, vector<512x128xf32>
    tpu.vector_store %arg11[%c0_33, %c0_34], %27 {strides = array<i32>} : memref<512x128xf32, #tpu.memory_space<vmem>>, vector<512x128xf32>,
    %c3072 = arith.constant 3072 : index
    %c0_35 = arith.constant 0 : index
    %29 = vector.load %arg2[%c3072, %c0_35] : memref<4608x392xbf16, #tpu.memory_space<vmem>>, vector<512x392xbf16>
    %cst_36 = arith.constant dense<0.000000e+00> : vector<512x128xf32>
    %30 = tpu.matmul %29, %0, %cst_36 {dimension_numbers = #tpu.dot_dimension_numbers<[1], [0], [0], [1], [0, 0, 1, 1], [], []>} : vector<512x392xbf16>, vector<392x128xbf16>, vector<512x128xf32> -> vector<512x128xf32>
    %c0_37 = arith.constant 0 : index
    %c0_38 = arith.constant 0 : index
    %31 = vector.load %arg11[%c0_37, %c0_38] : memref<512x128xf32, #tpu.memory_space<vmem>>, vector<512x128xf32>
    %32 = arith.maximumf %31, %30 : vector<512x128xf32>
    %c0_39 = arith.constant 0 : index
    %c0_40 = arith.constant 0 : index
    %33 = vector.load %arg11[%c0_39, %c0_40] : memref<512x128xf32, #tpu.memory_space<vmem>>, vector<512x128xf32>
    tpu.vector_store %arg11[%c0_39, %c0_40], %32 {strides = array<i32>} : memref<512x128xf32, #tpu.memory_space<vmem>>, vector<512x128xf32>,
    %c3584 = arith.constant 3584 : index
    %c0_41 = arith.constant 0 : index
    %34 = vector.load %arg2[%c3584, %c0_41] : memref<4608x392xbf16, #tpu.memory_space<vmem>>, vector<512x392xbf16>
    %cst_42 = arith.constant dense<0.000000e+00> : vector<512x128xf32>
    %35 = tpu.matmul %34, %0, %cst_42 {dimension_numbers = #tpu.dot_dimension_numbers<[1], [0], [0], [1], [0, 0, 1, 1], [], []>} : vector<512x392xbf16>, vector<392x128xbf16>, vector<512x128xf32> -> vector<512x128xf32>
    %c0_43 = arith.constant 0 : index
    %c0_44 = arith.constant 0 : index
    %36 = vector.load %arg11[%c0_43, %c0_44] : memref<512x128xf32, #tpu.memory_space<vmem>>, vector<512x128xf32>
    %37 = arith.maximumf %36, %35 : vector<512x128xf32>
    %c0_45 = arith.constant 0 : index
    %c0_46 = arith.constant 0 : index
    %38 = vector.load %arg11[%c0_45, %c0_46] : memref<512x128xf32, #tpu.memory_space<vmem>>, vector<512x128xf32>
    tpu.vector_store %arg11[%c0_45, %c0_46], %37 {strides = array<i32>} : memref<512x128xf32, #tpu.memory_space<vmem>>, vector<512x128xf32>,
    %c4096 = arith.constant 4096 : index
    %c0_47 = arith.constant 0 : index
    %39 = vector.load %arg2[%c4096, %c0_47] : memref<4608x392xbf16, #tpu.memory_space<vmem>>, vector<512x392xbf16>
    %cst_48 = arith.constant dense<0.000000e+00> : vector<512x128xf32>
    %40 = tpu.matmul %39, %0, %cst_48 {dimension_numbers = #tpu.dot_dimension_numbers<[1], [0], [0], [1], [0, 0, 1, 1], [], []>} : vector<512x392xbf16>, vector<392x128xbf16>, vector<512x128xf32> -> vector<512x128xf32>
    %c0_49 = arith.constant 0 : index
    %c0_50 = arith.constant 0 : index
    %41 = vector.load %arg11[%c0_49, %c0_50] : memref<512x128xf32, #tpu.memory_space<vmem>>, vector<512x128xf32>
    %42 = arith.maximumf %41, %40 : vector<512x128xf32>
    %c0_51 = arith.constant 0 : index
    %c0_52 = arith.constant 0 : index
    %43 = vector.load %arg11[%c0_51, %c0_52] : memref<512x128xf32, #tpu.memory_space<vmem>>, vector<512x128xf32>
    tpu.vector_store %arg11[%c0_51, %c0_52], %42 {strides = array<i32>} : memref<512x128xf32, #tpu.memory_space<vmem>>, vector<512x128xf32>,
    %c0_53 = arith.constant 0 : index
    %c0_54 = arith.constant 0 : index
    %44 = vector.load %arg11[%c0_53, %c0_54] : memref<512x128xf32, #tpu.memory_space<vmem>>, vector<512x128xf32>
    %c0_55 = arith.constant 0 : index
    %c0_56 = arith.constant 0 : index
    %45 = vector.load %arg3[%c0_55, %c0_56] : memref<512x1xf32, #tpu.memory_space<vmem>>, vector<512x1xf32>
    %46 = vector.broadcast %45 : vector<512x1xf32> to vector<512x128xf32>
    %47 = arith.addf %44, %46 : vector<512x128xf32>
    %cst_57 = arith.constant 0.000000e+00 : f32
    %48 = vector.broadcast %cst_57 : f32 to vector<512x128xf32>
    %49 = arith.maximumf %47, %48 : vector<512x128xf32>
    %c0_58 = arith.constant 0 : index
    %c0_59 = arith.constant 0 : index
    %50 = vector.load %arg4[%c0_58, %c0_59] : memref<256x512xbf16, #tpu.memory_space<vmem>>, vector<256x512xbf16>
    %51 = arith.truncf %49 : vector<512x128xf32> to vector<512x128xbf16>
    %cst_60 = arith.constant dense<0.000000e+00> : vector<256x128xf32>
    %52 = tpu.matmul %50, %51, %cst_60 {dimension_numbers = #tpu.dot_dimension_numbers<[1], [0], [0], [1], [0, 0, 1, 1], [], []>} : vector<256x512xbf16>, vector<512x128xbf16>, vector<256x128xf32> -> vector<256x128xf32>
    %c0_61 = arith.constant 0 : index
    %c0_62 = arith.constant 0 : index
    %53 = vector.load %arg5[%c0_61, %c0_62] : memref<256x1xf32, #tpu.memory_space<vmem>>, vector<256x1xf32>
    %54 = vector.broadcast %53 : vector<256x1xf32> to vector<256x128xf32>
    %55 = arith.addf %52, %54 : vector<256x128xf32>
    %56 = vector.extract_strided_slice %55 {offsets = [0, 0], sizes = [64, 128], strides = [1, 1]} : vector<256x128xf32> to vector<64x128xf32>
    %57 = vector.extract_strided_slice %55 {offsets = [64, 0], sizes = [64, 128], strides = [1, 1]} : vector<256x128xf32> to vector<64x128xf32>
    %58 = arith.maximumf %56, %57 : vector<64x128xf32>
    %59 = vector.extract_strided_slice %55 {offsets = [128, 0], sizes = [64, 128], strides = [1, 1]} : vector<256x128xf32> to vector<64x128xf32>
    %60 = vector.extract_strided_slice %55 {offsets = [192, 0], sizes = [64, 128], strides = [1, 1]} : vector<256x128xf32> to vector<64x128xf32>
    %61 = arith.maximumf %59, %60 : vector<64x128xf32>
    %62 = arith.maximumf %58, %61 : vector<64x128xf32>
    %cst_63 = arith.constant 0.000000e+00 : f32
    %63 = vector.broadcast %cst_63 : f32 to vector<64x128xf32>
    %64 = arith.maximumf %62, %63 : vector<64x128xf32>
    %c0_64 = arith.constant 0 : index
    %c0_65 = arith.constant 0 : index
    %65 = vector.load %arg6[%c0_64, %c0_65] : memref<256x64xbf16, #tpu.memory_space<vmem>>, vector<256x64xbf16>
    %66 = arith.truncf %64 : vector<64x128xf32> to vector<64x128xbf16>
    %cst_66 = arith.constant dense<0.000000e+00> : vector<256x128xf32>
    %67 = tpu.matmul %65, %66, %cst_66 {dimension_numbers = #tpu.dot_dimension_numbers<[1], [0], [0], [1], [0, 0, 1, 1], [], []>} : vector<256x64xbf16>, vector<64x128xbf16>, vector<256x128xf32> -> vector<256x128xf32>
    %c0_67 = arith.constant 0 : index
    %c0_68 = arith.constant 0 : index
    %68 = vector.load %arg7[%c0_67, %c0_68] : memref<256x1xf32, #tpu.memory_space<vmem>>, vector<256x1xf32>
    %69 = vector.broadcast %68 : vector<256x1xf32> to vector<256x128xf32>
    %70 = arith.addf %67, %69 : vector<256x128xf32>
    %cst_69 = arith.constant 0.000000e+00 : f32
    %71 = vector.broadcast %cst_69 : f32 to vector<256x128xf32>
    %72 = arith.maximumf %70, %71 : vector<256x128xf32>
    %c0_70 = arith.constant 0 : index
    %c0_71 = arith.constant 0 : index
    %73 = vector.load %arg8[%c0_70, %c0_71] : memref<8x256xbf16, #tpu.memory_space<vmem>>, vector<8x256xbf16>
    %74 = arith.truncf %72 : vector<256x128xf32> to vector<256x128xbf16>
    %cst_72 = arith.constant dense<0.000000e+00> : vector<8x128xf32>
    %75 = tpu.matmul %73, %74, %cst_72 {dimension_numbers = #tpu.dot_dimension_numbers<[1], [0], [0], [1], [0, 0, 1, 1], [], []>} : vector<8x256xbf16>, vector<256x128xbf16>, vector<8x128xf32> -> vector<8x128xf32>
    %76 = vector.extract_strided_slice %75 {offsets = [0, 0], sizes = [1, 128], strides = [1, 1]} : vector<8x128xf32> to vector<1x128xf32>
    %c0_73 = arith.constant 0 : index
    %c0_74 = arith.constant 0 : index
    %77 = vector.load %arg9[%c0_73, %c0_74] : memref<1x1xf32, #tpu.memory_space<vmem>>, vector<1x1xf32>
    %78 = vector.broadcast %77 : vector<1x1xf32> to vector<1x128xf32>
    %79 = arith.addf %76, %78 : vector<1x128xf32>
    %cst_75 = arith.constant 0.000000e+00 : f32
    %80 = vector.broadcast %cst_75 : f32 to vector<1x128xf32>
    %81 = arith.maximumf %79, %80 : vector<1x128xf32>
    %82 = math.tanh %81 : vector<1x128xf32>
    %c0_76 = arith.constant 0 : index
    %c0_77 = arith.constant 0 : index
    %83 = vector.load %arg10[%c0_76, %c0_77] : memref<1x128xf32, #tpu.memory_space<vmem>>, vector<1x128xf32>
    tpu.vector_store %arg10[%c0_76, %c0_77], %82 {strides = array<i32>} : memref<1x128xf32, #tpu.memory_space<vmem>>, vector<1x128xf32>,
    return
  }
  func.func @transform_0(%arg0: i32) -> (i32, i32) {
    %c0_i32 = arith.constant 0 : i32
    %c0_i32_0 = arith.constant 0 : i32
    return %c0_i32, %arg0 : i32, i32
  }
  func.func @transform_1(%arg0: i32) -> (i32, i32) {
    %c0_i32 = arith.constant 0 : i32
    %c0_i32_0 = arith.constant 0 : i32
    %c0_i32_1 = arith.constant 0 : i32
    return %c0_i32, %c0_i32_0 : i32, i32
  }
  func.func @transform_2(%arg0: i32) -> (i32, i32) {
    %c0_i32 = arith.constant 0 : i32
    %c0_i32_0 = arith.constant 0 : i32
    %c0_i32_1 = arith.constant 0 : i32
    return %c0_i32, %c0_i32_0 : i32, i32
  }
  func.func @transform_3(%arg0: i32) -> (i32, i32) {
    %c0_i32 = arith.constant 0 : i32
    %c0_i32_0 = arith.constant 0 : i32
    %c0_i32_1 = arith.constant 0 : i32
    return %c0_i32, %c0_i32_0 : i32, i32
  }
  func.func @transform_4(%arg0: i32) -> (i32, i32) {
    %c0_i32 = arith.constant 0 : i32
    %c0_i32_0 = arith.constant 0 : i32
    %c0_i32_1 = arith.constant 0 : i32
    return %c0_i32, %c0_i32_0 : i32, i32
  }
  func.func @transform_5(%arg0: i32) -> (i32, i32) {
    %c0_i32 = arith.constant 0 : i32
    %c0_i32_0 = arith.constant 0 : i32
    %c0_i32_1 = arith.constant 0 : i32
    return %c0_i32, %c0_i32_0 : i32, i32
  }
  func.func @transform_6(%arg0: i32) -> (i32, i32) {
    %c0_i32 = arith.constant 0 : i32
    %c0_i32_0 = arith.constant 0 : i32
    %c0_i32_1 = arith.constant 0 : i32
    return %c0_i32, %c0_i32_0 : i32, i32
  }
  func.func @transform_7(%arg0: i32) -> (i32, i32) {
    %c0_i32 = arith.constant 0 : i32
    %c0_i32_0 = arith.constant 0 : i32
    %c0_i32_1 = arith.constant 0 : i32
    return %c0_i32, %c0_i32_0 : i32, i32
  }
  func.func @transform_8(%arg0: i32) -> (i32, i32) {
    %c0_i32 = arith.constant 0 : i32
    %c0_i32_0 = arith.constant 0 : i32
    %c0_i32_1 = arith.constant 0 : i32
    return %c0_i32, %c0_i32_0 : i32, i32
  }
  func.func @transform_9(%arg0: i32) -> (i32, i32) {
    %c0_i32 = arith.constant 0 : i32
    %c0_i32_0 = arith.constant 0 : i32
    return %c0_i32, %arg0 : i32, i32
  }
}

</mosaic_0001>

<bundles_post_ra>
// kernel: parallel_net_forward.1
= control target key start
LH: loop header
LB: loop body
LE: loop exit
PB: predicated region body
PF: predicated region fallthrough
CT: control target
= control target key end

     0   :  { %s30699_s0 = inlined_call_operand.vmem [shape: bf16[392,256], index: 0, kind: input, shape index: {}]   ;;  %s30700_s1 = inlined_call_operand.vmem [shape: bf16[4608,392], index: 1, kind: input, shape index: {}]   ;;  %s30701_s2 = inlined_call_operand.vmem [shape: f32[512,1], index: 2, kind: input, shape index: {}]   ;;  %s30702_s3 = inlined_call_operand.vmem [shape: bf16[256,512], index: 3, kind: input, shape index: {}]   ;;  %s30703_s4 = inlined_call_operand.vmem [shape: f32[256,1], index: 4, kind: input, shape index: {}]   ;;  %s30704_s5 = inlined_call_operand.vmem [shape: bf16[256,64], index: 5, kind: input, shape index: {}]   ;;  %s30705_s6 = inlined_call_operand.vmem [shape: f32[256,1], index: 6, kind: input, shape index: {}]   ;;  %s30706_s7 = inlined_call_operand.vmem [shape: bf16[8,256], index: 7, kind: input, shape index: {}]   ;;  %s30707_s8 = inlined_call_operand.<no memory space> [shape: f32[1,1], index: 8, kind: input, shape index: {}]   ;;  %s30708_s9 = inlined_call_operand.hbm [shape: f32[1,256], index: 9, kind: output, shape index: {}]  }
   0x1   :  { %v14_v0 = vstv %s30707_s8 }
   0x2   :  { %15 = vst [vmem:[#allocation3] sm:$0x1] %v14_v0 }
   0x3   :  { %16 = vsyncpa [#allocation6], 0 }
   0x4   :  { %18 = vsyncpa [#allocation6 + $0x1], 0  ;;  %s22454_s11 = smov 0   ;;  %s22456_s12 = smov 0  }
   0x5   :  { %s22458_s13 = smov 0   ;;  %s22460_s14 = smov 0  }
   0x6 LB: > { %s17296_s8 = sadd.s32 4294967295, %s22397_s14   ;;  %s17297_s15 = sadd.s32 4294967294, %s22397_s14   ;;  %s22397_s14 = sphi %s22460_s14, %s32154_s14   ;;  %s22393_s13 = sphi %s22458_s13, %s32153_s13   ;;  %s22389_s12 = sphi %s22456_s12, %s32152_s12   ;;  %s22385_s11 = sphi %s22454_s11, %s32151_s11  }
   0x7   : > { %s22477_s16 = sadd.s32 1, %s22397_s14   ;;  %s31_s17 = sadd.s32 1, %s22393_s13 }
   0x8   : > { %s28_s18 = ssub.s32 %s22397_s14, %s22477_s16  ;;  %p38_p0 = scmp.ne.s32.totalorder %s22393_s13, %s22389_s12 }
   0x9   : > { %p29_p1 = scmp.eq.s32.totalorder %s28_s18, 0  ;;  %p39_p2 = scmp.eq.s32.totalorder %s22397_s14, 0 }
   0xa   : > { %p236_p3 = scmp.eq.s32.totalorder %s17296_s8, 1  ;;  %p241_p4 = scmp.ne.s32.totalorder %s22389_s12, %s22385_s11 }
   0xb   : > { %s22490_s19 = scalar_select %p29_p1, %s22393_s13, %s31_s17  }
   0xc   : > { %p40_p5 = por %p39_p2, %p38_p0  ;;  %p22492_p6 = por %p236_p3, %p38_p0 }
   0xd   : > { %p242_p7 = scmp.eq.s32.totalorder %s17297_s15, 1  ;;  %p17299_p9 = scmp.ge.s32.totalorder %s22397_s14, 2 }
   0xf   : > { %p22496_p8 = por %p242_p7, %p241_p4  ;;  %282 = sbr.rel (%p17299_p9) target bundleno = 59 (0x3b), region = 48 }
  0x16   : > { %285 = sbr.rel (!%p40_p5) target bundleno = 59 (0x3b), region = 52  ;;  %s287_s22 = sand.u32 (%p40_p5), 1, %s22393_s13  }
  0x17   : > { %s17300_s23 = sshll.u32 (%p40_p5), %s22397_s14, 2  ;;  %s20318_s24 = smul.u32 (%p40_p5), 196, %s287_s22 }
  0x18   : > { %s22508_s27 = scalar_lea.vmem (%p40_p5), %s30699_s0, %s17300_s23 }
  0x19   : > { %v307_v1 = vld [vmem:[%s22508_s27] sm:$0xf] (%p40_p5)  ;;  %v309_v2 = vld [vmem:[%s22508_s27 + $0x8] sm:$0xf] (%p40_p5)  ;;  %v311_v3 = vld [vmem:[%s22508_s27 + $0x10] sm:$0xf] (%p40_p5) }
  0x1a   : > { %v313_v4 = vld [vmem:[%s22508_s27 + $0x18] sm:$0xf] (%p40_p5)  ;;  %v315_v5 = vld [vmem:[%s22508_s27 + $0x20] sm:$0xf] (%p40_p5)  ;;  %s22515_s28 = scalar_lea.vmem (%p40_p5), [#allocation4], %s20318_s24 }
  0x1b   : > { %308 = vst [vmem:[%s22515_s28] sm:$0xf] (%p40_p5), %v307_v1  ;;  %310 = vst [vmem:[%s22515_s28 + $0x4] sm:$0xf] (%p40_p5), %v309_v2  ;;  %v317_v6 = vld [vmem:[%s22508_s27 + $0x28] sm:$0xf] (%p40_p5) }
  0x1c   : > { %312 = vst [vmem:[%s22515_s28 + $0x8] sm:$0xf] (%p40_p5), %v311_v3  ;;  %314 = vst [vmem:[%s22515_s28 + $0xc] sm:$0xf] (%p40_p5), %v313_v4  ;;  %v319_v7 = vld [vmem:[%s22508_s27 + $0x30] sm:$0xf] (%p40_p5) }
  0x1d   : > { %316 = vst [vmem:[%s22515_s28 + $0x10] sm:$0xf] %v315_v5  ;;  %v321_v8 = vld [vmem:[%s22508_s27 + $0x38] sm:$0xf]  ;;  %318 = vst [vmem:[%s22515_s28 + $0x14] sm:$0xf] %v317_v6 }
  0x1e   : > { %320 = vst [vmem:[%s22515_s28 + $0x18] sm:$0xf] %v319_v7  ;;  %322 = vst [vmem:[%s22515_s28 + $0x1c] sm:$0xf] %v321_v8  ;;  %v323_v9 = vld [vmem:[%s22508_s27 + $0x40] sm:$0xf] }
  0x1f   : > { %v325_v10 = vld [vmem:[%s22508_s27 + $0x48] sm:$0xf]  ;;  %v327_v11 = vld [vmem:[%s22508_s27 + $0x50] sm:$0xf]  ;;  %324 = vst [vmem:[%s22515_s28 + $0x20] sm:$0xf] %v323_v9 }
  0x20   : > { %326 = vst [vmem:[%s22515_s28 + $0x24] sm:$0xf] %v325_v10  ;;  %328 = vst [vmem:[%s22515_s28 + $0x28] sm:$0xf] %v327_v11  ;;  %v329_v12 = vld [vmem:[%s22508_s27 + $0x58] sm:$0xf] }
  0x21   : > { %v331_v13 = vld [vmem:[%s22508_s27 + $0x60] sm:$0xf]  ;;  %v333_v14 = vld [vmem:[%s22508_s27 + $0x68] sm:$0xf]  ;;  %330 = vst [vmem:[%s22515_s28 + $0x2c] sm:$0xf] %v329_v12 }
  0x22   : > { %332 = vst [vmem:[%s22515_s28 + $0x30] sm:$0xf] %v331_v13  ;;  %334 = vst [vmem:[%s22515_s28 + $0x34] sm:$0xf] %v333_v14  ;;  %v335_v15 = vld [vmem:[%s22508_s27 + $0x70] sm:$0xf] }
  0x23   : > { %v337_v16 = vld [vmem:[%s22508_s27 + $0x78] sm:$0xf]  ;;  %v339_v17 = vld [vmem:[%s22508_s27 + $0x80] sm:$0xf]  ;;  %336 = vst [vmem:[%s22515_s28 + $0x38] sm:$0xf] %v335_v15 }
  0x24   : > { %338 = vst [vmem:[%s22515_s28 + $0x3c] sm:$0xf] %v337_v16  ;;  %340 = vst [vmem:[%s22515_s28 + $0x40] sm:$0xf] %v339_v17  ;;  %v341_v18 = vld [vmem:[%s22508_s27 + $0x88] sm:$0xf] }
  0x25   : > { %v343_v19 = vld [vmem:[%s22508_s27 + $0x90] sm:$0xf]  ;;  %v345_v20 = vld [vmem:[%s22508_s27 + $0x98] sm:$0xf]  ;;  %342 = vst [vmem:[%s22515_s28 + $0x44] sm:$0xf] %v341_v18 }
  0x26   : > { %344 = vst [vmem:[%s22515_s28 + $0x48] sm:$0xf] %v343_v19  ;;  %346 = vst [vmem:[%s22515_s28 + $0x4c] sm:$0xf] %v345_v20  ;;  %v347_v21 = vld [vmem:[%s22508_s27 + $0xa0] sm:$0xf] }
  0x27   : > { %v349_v22 = vld [vmem:[%s22508_s27 + $0xa8] sm:$0xf]  ;;  %v351_v23 = vld [vmem:[%s22508_s27 + $0xb0] sm:$0xf]  ;;  %348 = vst [vmem:[%s22515_s28 + $0x50] sm:$0xf] %v347_v21 }
  0x28   : > { %350 = vst [vmem:[%s22515_s28 + $0x54] sm:$0xf] %v349_v22  ;;  %352 = vst [vmem:[%s22515_s28 + $0x58] sm:$0xf] %v351_v23  ;;  %v353_v24 = vld [vmem:[%s22508_s27 + $0xb8] sm:$0xf] }
  0x29   : > { %v355_v25 = vld [vmem:[%s22508_s27 + $0xc0] sm:$0xf]  ;;  %v357_v26 = vld [vmem:[%s22508_s27 + $0xc8] sm:$0xf]  ;;  %354 = vst [vmem:[%s22515_s28 + $0x5c] sm:$0xf] %v353_v24 }
  0x2a   : > { %356 = vst [vmem:[%s22515_s28 + $0x60] sm:$0xf] %v355_v25  ;;  %358 = vst [vmem:[%s22515_s28 + $0x64] sm:$0xf] %v357_v26  ;;  %v359_v27 = vld [vmem:[%s22508_s27 + $0xd0] sm:$0xf] }
  0x2b   : > { %v361_v28 = vld [vmem:[%s22508_s27 + $0xd8] sm:$0xf]  ;;  %v363_v29 = vld [vmem:[%s22508_s27 + $0xe0] sm:$0xf]  ;;  %360 = vst [vmem:[%s22515_s28 + $0x68] sm:$0xf] %v359_v27 }
  0x2c   : > { %362 = vst [vmem:[%s22515_s28 + $0x6c] sm:$0xf] %v361_v28  ;;  %364 = vst [vmem:[%s22515_s28 + $0x70] sm:$0xf] %v363_v29  ;;  %v365_v30 = vld [vmem:[%s22508_s27 + $0xe8] sm:$0xf] }
  0x2d   : > { %v367_v31 = vld [vmem:[%s22508_s27 + $0xf0] sm:$0xf]  ;;  %v369_v32 = vld [vmem:[%s22508_s27 + $0xf8] sm:$0xf]  ;;  %366 = vst [vmem:[%s22515_s28 + $0x74] sm:$0xf] %v365_v30 }
  0x2e   : > { %368 = vst [vmem:[%s22515_s28 + $0x78] sm:$0xf] %v367_v31  ;;  %370 = vst [vmem:[%s22515_s28 + $0x7c] sm:$0xf] %v369_v32  ;;  %v371_v33 = vld [vmem:[%s22508_s27 + $0x100] sm:$0xf] }
  0x2f   : > { %v373_v34 = vld [vmem:[%s22508_s27 + $0x108] sm:$0xf]  ;;  %v375_v35 = vld [vmem:[%s22508_s27 + $0x110] sm:$0xf]  ;;  %372 = vst [vmem:[%s22515_s28 + $0x80] sm:$0xf] %v371_v33 }
  0x30   : > { %374 = vst [vmem:[%s22515_s28 + $0x84] sm:$0xf] %v373_v34  ;;  %376 = vst [vmem:[%s22515_s28 + $0x88] sm:$0xf] %v375_v35  ;;  %v377_v36 = vld [vmem:[%s22508_s27 + $0x118] sm:$0xf] }
  0x31   : > { %v379_v37 = vld [vmem:[%s22508_s27 + $0x120] sm:$0xf]  ;;  %v381_v38 = vld [vmem:[%s22508_s27 + $0x128] sm:$0xf]  ;;  %378 = vst [vmem:[%s22515_s28 + $0x8c] sm:$0xf] %v377_v36 }
  0x32   : > { %380 = vst [vmem:[%s22515_s28 + $0x90] sm:$0xf] %v379_v37  ;;  %382 = vst [vmem:[%s22515_s28 + $0x94] sm:$0xf] %v381_v38  ;;  %v383_v39 = vld [vmem:[%s22508_s27 + $0x130] sm:$0xf] }
  0x33   : > { %v385_v40 = vld [vmem:[%s22508_s27 + $0x138] sm:$0xf]  ;;  %v387_v41 = vld [vmem:[%s22508_s27 + $0x140] sm:$0xf]  ;;  %384 = vst [vmem:[%s22515_s28 + $0x98] sm:$0xf] %v383_v39 }
  0x34   : > { %386 = vst [vmem:[%s22515_s28 + $0x9c] sm:$0xf] %v385_v40  ;;  %388 = vst [vmem:[%s22515_s28 + $0xa0] sm:$0xf] %v387_v41  ;;  %v389_v42 = vld [vmem:[%s22508_s27 + $0x148] sm:$0xf] }
  0x35   : > { %v391_v43 = vld [vmem:[%s22508_s27 + $0x150] sm:$0xf]  ;;  %v393_v44 = vld [vmem:[%s22508_s27 + $0x158] sm:$0xf]  ;;  %390 = vst [vmem:[%s22515_s28 + $0xa4] sm:$0xf] %v389_v42 }
  0x36   : > { %392 = vst [vmem:[%s22515_s28 + $0xa8] sm:$0xf] %v391_v43  ;;  %394 = vst [vmem:[%s22515_s28 + $0xac] sm:$0xf] %v393_v44  ;;  %v395_v45 = vld [vmem:[%s22508_s27 + $0x160] sm:$0xf] }
  0x37   : > { %v397_v46 = vld [vmem:[%s22508_s27 + $0x168] sm:$0xf]  ;;  %v399_v47 = vld [vmem:[%s22508_s27 + $0x170] sm:$0xf]  ;;  %396 = vst [vmem:[%s22515_s28 + $0xb0] sm:$0xf] %v395_v45 }
  0x38   : > { %398 = vst [vmem:[%s22515_s28 + $0xb4] sm:$0xf] %v397_v46  ;;  %400 = vst [vmem:[%s22515_s28 + $0xb8] sm:$0xf] %v399_v47  ;;  %v401_v48 = vld [vmem:[%s22508_s27 + $0x178] sm:$0xf] }
  0x39   : > { %v403_v49 = vld [vmem:[%s22508_s27 + $0x180] sm:$0xf]  ;;  %402 = vst [vmem:[%s22515_s28 + $0xbc] sm:$0xf] %v401_v48 }
  0x3a   : > { %404 = vst [vmem:[%s22515_s28 + $0xc0] sm:$0xf] %v403_v49 }
  0x3b PF: > { %p17301_p10 = scmp.ge.s32.totalorder %s22397_s14, 1  ;;  %p524_p11 = scmp.lt.s32.totalorder %s22397_s14, 3 }
  0x3d   : > { %p525_p12 = pnand %p17301_p10, %p524_p11 }
  0x3f   : > { %528 = sbr.rel (%p525_p12) target bundleno = 3692 (0xe6c), region = 93 }
  0x46   : > { %s22613_s29 = sand.u32 1, %s22389_s12   ;;  %vm1498_vm0 = vcmask 64512   ;;  %v30709_v50 = vmov 0   ;;  %v20382_v51 = vld [vmem:[%s30700_s1 + $0x26c] ss:$16 sps:$4 sm:$0xff]   ;;  %vm1595_vm1 = vcmask 1043456  }
  0x47   : > { %1599 = vmatprep.subr.bf16.mxu0 %v30709_v50  ;;  %19174 = vmatprep.subr.bf16.mxu1 %v30709_v50  ;;  %s20319_s30 = smul.u32 196, %s22613_s29  ;;  %v20401_v4 = vld [vmem:[%s30700_s1 + $0x4] ss:$16 sps:$4 sm:$0xff]   ;;  %v20380_v8 = vld [vmem:[%s30700_s1 + $0x268] ss:$16 sps:$4 sm:$0xff]   ;;  %vm16903_vm2 = vcmask 523264  }
  0x48   : > { %20360 = vset.pattern.permute.xlu0 %v30709_v50  ;;  %20361 = vset.pattern.permute.xlu1 %v30709_v50  ;;  %v20385_v10 = vld [vmem:[%s30700_s1 + $0x28c] ss:$16 sps:$4 sm:$0xff]   ;;  %v20387_v12 = vld [vmem:[%s30700_s1 + $0x288] ss:$16 sps:$4 sm:$0xff]   ;;  %v20399_v23 = vld [vmem:[%s30700_s1] ss:$16 sps:$4 sm:$0xff]  }
  0x49   : > { %17474 = vmatprep.mubr.msk.bf16.mxu1 %vm1498_vm0, %v20382_v51  ;;  %s22624_s17 = scalar_lea.vmem [#allocation4], %s20319_s30  ;;  %1631 = vmatprep.mubr.bf16.mxu0 %v20401_v4  ;;  %v20390_v14 = vld [vmem:[%s30700_s1 + $0x2ac] ss:$16 sps:$4 sm:$0xff]   ;;  %v20392_v16 = vld [vmem:[%s30700_s1 + $0x2a8] ss:$16 sps:$4 sm:$0xff]   ;;  %s18865_s15 = sshll.u32 %s17296_s8, 4 }
  0x4a   : > { %v22627_v52 = vld [vmem:[%s22624_s17] sm:$0xff]   ;;  %v22634_v54 = vld [vmem:[%s22624_s17 + $0x8] sm:$0xff]   ;;  %v22644_v56 = vld [vmem:[%s22624_s17 + $0x10] sm:$0xff]   ;;  %s564_s18 = scalar_lea.vmem [#allocation5], %s22613_s29  ;;  %s30655_s24 = scalar_lea.hbm %s30708_s9, %s18865_s15 }
  0x4b   : > { %v22630_v53 = vld [vmem:[%s22624_s17 + $0x80] sm:$0xff]   ;;  %1600 = vmatpush1.bf16.msra.mxu0 %v22627_v52  ;;  %v22639_v55 = vld [vmem:[%s22624_s17 + $0x88] sm:$0xff]   ;;  %v22649_v57 = vld [vmem:[%s22624_s17 + $0x90] sm:$0xff]   ;;  %s17236_s22 = sshll.u32 %s564_s18, 4  ;;  %s17224_s25 = scalar_lea.sflag [#allocation6], %s22613_s29  ;;  %s30657_s22 = int_to_ptr.vmem [resolvable:$true] %s17236_s22 }
  0x4c   : > { %19183 = vmatpush1.bf16.msra.mxu1 %v22630_v53  ;;  %1601 = vmatprep.subr.bf16.mxu0 %v30709_v50  ;;  %v22654_v58 = vld [vmem:[%s22624_s17 + $0x18] sm:$0xff]   ;;  %v22664_v60 = vld [vmem:[%s22624_s17 + $0x20] sm:$0xff]   ;;  %v22674_v62 = vld [vmem:[%s22624_s17 + $0x28] sm:$0xff]   ;;  %s22335_s26 = scalar_lea.vmem %s30657_s22, 16  ;;  %s22400_s8 = smov [#allocation5]  }
  0x4d   : > { %19175 = vmatprep.subr.bf16.mxu1 %v30709_v50  ;;  %v22659_v59 = vld [vmem:[%s22624_s17 + $0x98] sm:$0xff]   ;;  %v22669_v61 = vld [vmem:[%s22624_s17 + $0xa0] sm:$0xff]   ;;  %v22679_v63 = vld [vmem:[%s22624_s17 + $0xa8] sm:$0xff]   ;;  %p22336_p13 = scmp.ne.s32.totalorder %s30657_s22, %s22335_s26  ;;  %s22339_s27 = sshll.u32 %s22400_s8, 4  ;;  %s22340_s27 = int_to_ptr.vmem [resolvable:$false] %s22339_s27 }
  0x4e   : > { %v22684_v0 = vld [vmem:[%s22624_s17 + $0x30] sm:$0xff]   ;;  %v22694_v2 = vld [vmem:[%s22624_s17 + $0x38] sm:$0xff]   ;;  %v20379_v5 = vld [vmem:[%s22624_s17 + $0xc0] ss:$0 sps:$4 sm:$0xff]   ;;  %s22341_s28 = scalar_lea.vmem %s22340_s27, 32  ;;  %p22342_p2 = scmp.lt.s32.totalorder %s30657_s22, %s22340_s27 }
  0x4f   : > { %1602 = vmatpush1.bf16.msra.mxu0 %v22634_v54  ;;  %v22689_v1 = vld [vmem:[%s22624_s17 + $0xb0] sm:$0xff]   ;;  %v22699_v3 = vld [vmem:[%s22624_s17 + $0xb8] sm:$0xff]   ;;  %v22708_v6 = vld [vmem:[%s22624_s17 + $0x40] sm:$0xff]   ;;  %v22713_v7 = vsel %vm1595_vm1, %v20379_v5, 0  ;;  %p22337_p0 = pnand %p22336_p13, %p22492_p6  ;;  %p22343_p3 = scmp.lt.s32.totalorder %s22341_s28, %s22335_s26 }
  0x50   : > { %19184 = vmatpush1.bf16.msra.mxu1 %v22639_v55  ;;  %1603 = vmatprep.subr.bf16.mxu0 %v30709_v50  ;;  %31078 = vst [vmem:[#allocation8_spill] sm:$0xff] %v22713_v7  ;;  %v22720_v9 = vld [vmem:[%s22624_s17 + $0x48] sm:$0xff]   ;;  %v22730_v11 = vld [vmem:[%s22624_s17 + $0x50] sm:$0xff]   ;;  %v22741_v13 = vld [vmem:[%s22624_s17 + $0x58] sm:$0xff]  }
  0x51   : > { %19176 = vmatprep.subr.bf16.mxu1 %v30709_v50  ;;  %v22751_v15 = vld [vmem:[%s22624_s17 + $0x60] sm:$0xff]   ;;  %v22762_v17 = vld [vmem:[%s22624_s17 + $0x68] sm:$0xff]   ;;  %v22772_v19 = vld [vmem:[%s22624_s17 + $0x70] sm:$0xff]   ;;  %p22338_p1 = pneg %p22337_p0  ;;  %p22344_p4 = por %p22343_p3, %p22342_p2 }
  0x52   : > { %v20395_v18 = vld [vmem:[%s30700_s1 + $0x2cc] ss:$16 sps:$4 sm:$0xff]   ;;  %v20397_v20 = vld [vmem:[%s30700_s1 + $0x2c8] ss:$16 sps:$4 sm:$0xff]   ;;  %v20405_v24 = vld [vmem:[%s30700_s1 + $0x24] ss:$16 sps:$4 sm:$0xff]  }
  0x53   : > { %1604 = vmatpush1.bf16.msra.mxu0 %v22644_v56  ;;  %v22783_v21 = vld [vmem:[%s22624_s17 + $0x78] sm:$0xff]   ;;  %p22345_p5 = pnand %p22344_p4, %p22338_p1 }
  0x54   : > { %19185 = vmatpush1.bf16.msra.mxu1 %v22649_v57  ;;  %1605 = vmatprep.subr.bf16.mxu0 %v30709_v50  ;;  %v20402_v22 = vld [vmem:[%s30700_s1 + $0x2ec] ss:$16 sps:$4 sm:$0xff]   ;;  %v20404_v25 = vld [vmem:[%s30700_s1 + $0x2e8] ss:$16 sps:$4 sm:$0xff]   ;;  %v20407_v27 = vld [vmem:[%s30700_s1 + $0x20] ss:$16 sps:$4 sm:$0xff]  }
  0x55   : > { %19177 = vmatprep.subr.bf16.mxu1 %v30709_v50  ;;  %v20408_v26 = vld [vmem:[%s30700_s1 + $0x30c] ss:$16 sps:$4 sm:$0xff]   ;;  %v20411_v28 = vld [vmem:[%s30700_s1 + $0x44] ss:$16 sps:$4 sm:$0xff]   ;;  %v20410_v29 = vld [vmem:[%s30700_s1 + $0x308] ss:$16 sps:$4 sm:$0xff]  }
  0x56   : > { %v20414_v30 = vld [vmem:[%s30700_s1 + $0x32c] ss:$16 sps:$4 sm:$0xff]   ;;  %v20413_v31 = vld [vmem:[%s30700_s1 + $0x40] ss:$16 sps:$4 sm:$0xff]   ;;  %v20417_v32 = vld [vmem:[%s30700_s1 + $0x64] ss:$16 sps:$4 sm:$0xff]  }
  0x57   : > { %1606 = vmatpush1.bf16.msra.mxu0 %v22654_v58  ;;  %v20416_v33 = vld [vmem:[%s30700_s1 + $0x328] ss:$16 sps:$4 sm:$0xff]   ;;  %v20420_v34 = vld [vmem:[%s30700_s1 + $0x34c] ss:$16 sps:$4 sm:$0xff]   ;;  %v20419_v35 = vld [vmem:[%s30700_s1 + $0x60] ss:$16 sps:$4 sm:$0xff]  }
  0x58   : > { %19186 = vmatpush1.bf16.msra.mxu1 %v22659_v59  ;;  %1607 = vmatprep.subr.bf16.mxu0 %v30709_v50  ;;  %v20423_v36 = vld [vmem:[%s30700_s1 + $0x84] ss:$16 sps:$4 sm:$0xff]   ;;  %v20422_v37 = vld [vmem:[%s30700_s1 + $0x348] ss:$16 sps:$4 sm:$0xff]   ;;  %v20426_v38 = vld [vmem:[%s30700_s1 + $0x36c] ss:$16 sps:$4 sm:$0xff]  }
  0x59   : > { %19178 = vmatprep.subr.bf16.mxu1 %v30709_v50  ;;  %v20425_v39 = vld [vmem:[%s30700_s1 + $0x80] ss:$16 sps:$4 sm:$0xff]   ;;  %v20429_v40 = vld [vmem:[%s30700_s1 + $0xa4] ss:$16 sps:$4 sm:$0xff]   ;;  %v20428_v41 = vld [vmem:[%s30700_s1 + $0x368] ss:$16 sps:$4 sm:$0xff]  }
  0x5a   : > { %v20432_v42 = vld [vmem:[%s30700_s1 + $0x38c] ss:$16 sps:$4 sm:$0xff]   ;;  %v20431_v43 = vld [vmem:[%s30700_s1 + $0xa0] ss:$16 sps:$4 sm:$0xff]   ;;  %v20435_v44 = vld [vmem:[%s30700_s1 + $0xc4] ss:$16 sps:$4 sm:$0xff]  }
  0x5b   : > { %1608 = vmatpush1.bf16.msra.mxu0 %v22664_v60  ;;  %v20434_v45 = vld [vmem:[%s30700_s1 + $0x388] ss:$16 sps:$4 sm:$0xff]   ;;  %v20438_v46 = vld [vmem:[%s30700_s1 + $0x3ac] ss:$16 sps:$4 sm:$0xff]   ;;  %v20437_v47 = vld [vmem:[%s30700_s1 + $0xc0] ss:$16 sps:$4 sm:$0xff]  }
  0x5c   : > { %19187 = vmatpush1.bf16.msra.mxu1 %v22669_v61  ;;  %1609 = vmatprep.subr.bf16.mxu0 %v30709_v50  ;;  %v20441_v48 = vld [vmem:[%s30700_s1 + $0xe4] ss:$16 sps:$4 sm:$0xff]   ;;  %v20440_v49 = vld [vmem:[%s30700_s1 + $0x3a8] ss:$16 sps:$4 sm:$0xff]   ;;  %v20444_v51 = vld [vmem:[%s30700_s1 + $0x3cc] ss:$16 sps:$4 sm:$0xff]  }
  0x5d   : > { %19179 = vmatprep.subr.bf16.mxu1 %v30709_v50  ;;  %v20468_v4 = vld [vmem:[%s30700_s1 + $0x444] ss:$16 sps:$4 sm:$0xff]   ;;  %v20467_v5 = vld [vmem:[%s30700_s1 + $0x160] ss:$16 sps:$4 sm:$0xff]  }
  0x5f   : > { %1610 = vmatpush1.bf16.msra.mxu0 %v22674_v62 }
  0x60   : > { %19188 = vmatpush1.bf16.msra.mxu1 %v22679_v63  ;;  %1611 = vmatprep.subr.bf16.mxu0 %v30709_v50 }
  0x61   : > { %19180 = vmatprep.subr.bf16.mxu1 %v30709_v50 }
  0x63   : > { %1612 = vmatpush1.bf16.msra.mxu0 %v22684_v0 }
  0x64   : > { %19189 = vmatpush1.bf16.msra.mxu1 %v22689_v1  ;;  %1613 = vmatprep.subr.bf16.mxu0 %v30709_v50 }
  0x65   : > { %19181 = vmatprep.subr.bf16.mxu1 %v30709_v50 }
  0x67   : > { %1614 = vmatpush1.bf16.msra.mxu0 %v22694_v2 }
  0x68   : > { %19190 = vmatpush1.bf16.msra.mxu1 %v22699_v3  ;;  %1615 = vmatprep.subr.bf16.mxu0 %v30709_v50 }
  0x69   : > { %19182 = vmatprep.subr.bf16.mxu1 %v30709_v50 }
  0x6b   : > { %1616 = vmatpush1.bf16.msra.mxu0 %v22708_v6 }
  0x6c   : > { %19191 = vmatpush1.bf16.msra.mxu1 %v22713_v7  ;;  %1617 = vmatprep.subr.bf16.mxu0 %v30709_v50 }
  0x6d   : > { %3073 = vmatprep.subr.bf16.mxu1 %v30709_v50 }
  0x6f   : > { %2073 = vmatmul.mubr.bf16.vlgmr.msra.gmra.mrb[0].mxu1 %v20380_v8  ;;  %1618 = vmatpush1.bf16.msra.mxu0 %v22720_v9  ;;  %v20471_v8 = vld [vmem:[%s30700_s1 + $0x184] ss:$16 sps:$4 sm:$0xff]  }
  0x70   : > { %1619 = vmatprep.subr.bf16.mxu0 %v30709_v50  ;;  %17475 = vmatprep.mubr.msk.bf16.mxu1 %vm1498_vm0, %v20385_v10  ;;  %v20470_v10 = vld [vmem:[%s30700_s1 + $0x440] ss:$16 sps:$4 sm:$0xff]  }
  0x71   : > { %3074 = vmatpush1.bf16.msra.mxu1 %v22627_v52  ;;  %v20443_v52 = vld [vmem:[%s30700_s1 + $0xe0] ss:$16 sps:$4 sm:$0xff]  }
  0x72   : > { %3075 = vmatprep.subr.bf16.mxu1 %v30709_v50 }
  0x73   : > { %1620 = vmatpush1.bf16.msra.mxu0 %v22730_v11 }
  0x74   : > { %1621 = vmatprep.subr.bf16.mxu0 %v30709_v50 }
  0x75   : > { %3076 = vmatpush1.bf16.msra.mxu1 %v22634_v54  ;;  %v20446_v54 = vld [vmem:[%s30700_s1 + $0x3c8] ss:$16 sps:$4 sm:$0xff]  }
  0x76   : > { %3077 = vmatprep.subr.bf16.mxu1 %v30709_v50 }
  0x77   : > { %2081 = vmatmul.mubr.bf16.gmra.mrb[4].mxu1 %v20387_v12  ;;  %1622 = vmatpush1.bf16.msra.mxu0 %v22741_v13  ;;  %v20473_v12 = vld [vmem:[%s30700_s1 + $0x180] ss:$16 sps:$4 sm:$0xff]  }
  0x78   : > { %1623 = vmatprep.subr.bf16.mxu0 %v30709_v50  ;;  %17476 = vmatprep.mubr.msk.bf16.mxu1 %vm1498_vm0, %v20390_v14  ;;  %v20477_v14 = vld [vmem:[%s30700_s1 + $0x1a4] ss:$16 sps:$4 sm:$0xff]  }
  0x79   : > { %3078 = vmatpush1.bf16.msra.mxu1 %v22644_v56  ;;  %v20449_v56 = vld [vmem:[%s30700_s1 + $0x100] ss:$16 sps:$4 sm:$0xff]  }
  0x7a   : > { %3079 = vmatprep.subr.bf16.mxu1 %v30709_v50 }
  0x7b   : > { %1624 = vmatpush1.bf16.msra.mxu0 %v22751_v15 }
  0x7c   : > { %1625 = vmatprep.subr.bf16.mxu0 %v30709_v50 }
  0x7d   : > { %3080 = vmatpush1.bf16.msra.mxu1 %v22654_v58  ;;  %v20452_v58 = vld [vmem:[%s30700_s1 + $0x3e8] ss:$16 sps:$4 sm:$0xff]  }
  0x7e   : > { %3081 = vmatprep.subr.bf16.mxu1 %v30709_v50 }
  0x7f   : > { %2089 = vmatmul.mubr.bf16.gmra.mrb[8].mxu1 %v20392_v16  ;;  %1626 = vmatpush1.bf16.msra.mxu0 %v22762_v17  ;;  %v20476_v16 = vld [vmem:[%s30700_s1 + $0x460] ss:$16 sps:$4 sm:$0xff]  }
  0x80   : > { %1627 = vmatprep.subr.bf16.mxu0 %v30709_v50  ;;  %17477 = vmatprep.mubr.msk.bf16.mxu1 %vm1498_vm0, %v20395_v18  ;;  %v20479_v18 = vld [vmem:[%s30700_s1 + $0x1a0] ss:$16 sps:$4 sm:$0xff]  }
  0x81   : > { %3082 = vmatpush1.bf16.msra.mxu1 %v22664_v60  ;;  %v20455_v60 = vld [vmem:[%s30700_s1 + $0x120] ss:$16 sps:$4 sm:$0xff]  }
  0x82   : > { %3083 = vmatprep.subr.bf16.mxu1 %v30709_v50 }
  0x83   : > { %1628 = vmatpush1.bf16.msra.mxu0 %v22772_v19 }
  0x84   : > { %1629 = vmatprep.subr.bf16.mxu0 %v30709_v50 }
  0x85   : > { %3084 = vmatpush1.bf16.msra.mxu1 %v22674_v62  ;;  %v20456_v62 = vld [vmem:[%s30700_s1 + $0x400] ss:$16 sps:$4 sm:$0xff]  }
  0x86   : > { %3085 = vmatprep.subr.bf16.mxu1 %v30709_v50 }
  0x87   : > { %2097 = vmatmul.mubr.bf16.gmra.mrb[12].mxu1 %v20397_v20  ;;  %1630 = vmatpush1.bf16.msra.mxu0 %v22783_v21  ;;  %v20483_v20 = vld [vmem:[%s30700_s1 + $0x1c4] ss:$16 sps:$4 sm:$0xff]  }
  0x88   : > { %17478 = vmatprep.mubr.msk.bf16.mxu1 %vm1498_vm0, %v20402_v22  ;;  %1888 = vmatprep.subr.bf16.mxu0 %v30709_v50  ;;  %v20482_v22 = vld [vmem:[%s30700_s1 + $0x480] ss:$16 sps:$4 sm:$0xff]  }
  0x89   : > { %3086 = vmatpush1.bf16.msra.mxu1 %v22684_v0  ;;  %v20461_v0 = vld [vmem:[%s30700_s1 + $0x140] ss:$16 sps:$4 sm:$0xff]  }
  0x8a   : > { %1632 = vmatmul.mubr.bf16.vlgmr.msra.gmra.mrb[0].mxu0 %v20399_v23  ;;  %3087 = vmatprep.subr.bf16.mxu1 %v30709_v50  ;;  %v20486_v23 = vld [vmem:[%s30700_s1 + $0x4a4] ss:$16 sps:$4 sm:$0xff]  }
  0x8b   : > { %1639 = vmatprep.mubr.bf16.mxu0 %v20405_v24  ;;  %1889 = vmatpush1.bf16.msra.mxu0 %v22630_v53  ;;  %v20447_v53 = vld [vmem:[%s30700_s1 + $0x104] ss:$16 sps:$4 sm:$0xff]   ;;  %v20485_v24 = vld [vmem:[%s30700_s1 + $0x1c0] ss:$16 sps:$4 sm:$0xff]  }
  0x8c   : > { %1890 = vmatprep.subr.bf16.mxu0 %v30709_v50 }
  0x8d   : > { %3088 = vmatpush1.bf16.msra.mxu1 %v22694_v2  ;;  %v22231_v2 = vld [vmem:[%s22624_s17 + $0x80] sm:$0xff]  }
  0x8e   : > { %3089 = vmatprep.subr.bf16.mxu1 %v30709_v50 }
  0x8f   : > { %2105 = vmatmul.mubr.bf16.gmra.mrb[16].mxu1 %v20404_v25  ;;  %1891 = vmatpush1.bf16.msra.mxu0 %v22639_v55  ;;  %v20450_v55 = vld [vmem:[%s30700_s1 + $0x3ec] ss:$16 sps:$4 sm:$0xff]  }
  0x90   : > { %17479 = vmatprep.mubr.msk.bf16.mxu1 %vm1498_vm0, %v20408_v26  ;;  %1892 = vmatprep.subr.bf16.mxu0 %v30709_v50  ;;  %v22238_v25 = vld [vmem:[%s22624_s17 + $0xb8] sm:$0xff]  }
  0x91   : > { %3090 = vmatpush1.bf16.msra.mxu1 %v22708_v6  ;;  %v22232_v6 = vld [vmem:[%s22624_s17 + $0x88] sm:$0xff]  }
  0x92   : > { %1640 = vmatmul.mubr.bf16.gmra.mrb[4].mxu0 %v20407_v27  ;;  %3091 = vmatprep.subr.bf16.mxu1 %v30709_v50  ;;  %v20489_v26 = vld [vmem:[%s30700_s1 + $0x1e4] ss:$16 sps:$4 sm:$0xff]   ;;  %v20488_v27 = vld [vmem:[%s30700_s1 + $0x4a0] ss:$16 sps:$4 sm:$0xff]  }
  0x93   : > { %1647 = vmatprep.mubr.bf16.mxu0 %v20411_v28  ;;  %1893 = vmatpush1.bf16.msra.mxu0 %v22649_v57  ;;  %v20453_v57 = vld [vmem:[%s30700_s1 + $0x124] ss:$16 sps:$4 sm:$0xff]  }
  0x94   : > { %1894 = vmatprep.subr.bf16.mxu0 %v30709_v50  ;;  %v20492_v28 = vld [vmem:[%s30700_s1 + $0x4c4] ss:$16 sps:$4 sm:$0xff]  }
  0x95   : > { %3092 = vmatpush1.bf16.msra.mxu1 %v22720_v9  ;;  %v22233_v9 = vld [vmem:[%s22624_s17 + $0x90] sm:$0xff]  }
  0x96   : > { %3093 = vmatprep.subr.bf16.mxu1 %v30709_v50 }
  0x97   : > { %2113 = vmatmul.mubr.bf16.gmra.mrb[20].mxu1 %v20410_v29  ;;  %1895 = vmatpush1.bf16.msra.mxu0 %v22659_v59  ;;  %v20458_v59 = vld [vmem:[%s30700_s1 + $0x404] ss:$16 sps:$4 sm:$0xff]   ;;  %v20491_v29 = vld [vmem:[%s30700_s1 + $0x1e0] ss:$16 sps:$4 sm:$0xff]  }
  0x98   : > { %17480 = vmatprep.mubr.msk.bf16.mxu1 %vm1498_vm0, %v20414_v30  ;;  %1896 = vmatprep.subr.bf16.mxu0 %v30709_v50  ;;  %v20495_v30 = vld [vmem:[%s30700_s1 + $0x204] ss:$16 sps:$4 sm:$0xff]  }
  0x99   : > { %3094 = vmatpush1.bf16.msra.mxu1 %v22730_v11  ;;  %v20474_v11 = vld [vmem:[%s30700_s1 + $0x464] ss:$16 sps:$4 sm:$0xff]  }
  0x9a   : > { %1648 = vmatmul.mubr.bf16.gmra.mrb[8].mxu0 %v20413_v31  ;;  %3095 = vmatprep.subr.bf16.mxu1 %v30709_v50  ;;  %v20494_v31 = vld [vmem:[%s30700_s1 + $0x4c0] ss:$16 sps:$4 sm:$0xff]  }
  0x9b   : > { %1655 = vmatprep.mubr.bf16.mxu0 %v20417_v32  ;;  %1897 = vmatpush1.bf16.msra.mxu0 %v22669_v61  ;;  %v20459_v61 = vld [vmem:[%s30700_s1 + $0x144] ss:$16 sps:$4 sm:$0xff]  }
  0x9c   : > { %1898 = vmatprep.subr.bf16.mxu0 %v30709_v50  ;;  %v20498_v32 = vld [vmem:[%s30700_s1 + $0x4e4] ss:$16 sps:$4 sm:$0xff]  }
  0x9d   : > { %3096 = vmatpush1.bf16.msra.mxu1 %v22741_v13  ;;  %v22234_v13 = vld [vmem:[%s22624_s17 + $0x98] sm:$0xff]  }
  0x9e   : > { %3097 = vmatprep.subr.bf16.mxu1 %v30709_v50 }
  0x9f   : > { %2121 = vmatmul.mubr.bf16.gmra.mrb[24].mxu1 %v20416_v33  ;;  %1899 = vmatpush1.bf16.msra.mxu0 %v22679_v63  ;;  %v20462_v63 = vld [vmem:[%s30700_s1 + $0x424] ss:$16 sps:$4 sm:$0xff]   ;;  %v20497_v33 = vld [vmem:[%s30700_s1 + $0x200] ss:$16 sps:$4 sm:$0xff]  }
  0xa0   : > { %17481 = vmatprep.mubr.msk.bf16.mxu1 %vm1498_vm0, %v20420_v34  ;;  %1900 = vmatprep.subr.bf16.mxu0 %v30709_v50  ;;  %v20501_v34 = vld [vmem:[%s30700_s1 + $0x224] ss:$16 sps:$4 sm:$0xff]  }
  0xa1   : > { %3098 = vmatpush1.bf16.msra.mxu1 %v22751_v15  ;;  %v22235_v15 = vld [vmem:[%s22624_s17 + $0xa0] sm:$0xff]  }
  0xa2   : > { %1656 = vmatmul.mubr.bf16.gmra.mrb[12].mxu0 %v20419_v35  ;;  %3099 = vmatprep.subr.bf16.mxu1 %v30709_v50  ;;  %v20500_v35 = vld [vmem:[%s30700_s1 + $0x4e0] ss:$16 sps:$4 sm:$0xff]  }
  0xa3   : > { %1663 = vmatprep.mubr.bf16.mxu0 %v20423_v36  ;;  %1901 = vmatpush1.bf16.msra.mxu0 %v22689_v1  ;;  %v20465_v1 = vld [vmem:[%s30700_s1 + $0x164] ss:$16 sps:$4 sm:$0xff]  }
  0xa4   : > { %1902 = vmatprep.subr.bf16.mxu0 %v30709_v50  ;;  %v20504_v36 = vld [vmem:[%s30700_s1 + $0x504] ss:$16 sps:$4 sm:$0xff]  }
  0xa5   : > { %3100 = vmatpush1.bf16.msra.mxu1 %v22762_v17  ;;  %v20480_v17 = vld [vmem:[%s30700_s1 + $0x484] ss:$16 sps:$4 sm:$0xff]  }
  0xa6   : > { %3101 = vmatprep.subr.bf16.mxu1 %v30709_v50 }
  0xa7   : > { %2129 = vmatmul.mubr.bf16.gmra.mrb[28].mxu1 %v20422_v37  ;;  %1903 = vmatpush1.bf16.msra.mxu0 %v22699_v3  ;;  %v20464_v3 = vld [vmem:[%s30700_s1 + $0x420] ss:$16 sps:$4 sm:$0xff]  }
  0xa8   : > { %17482 = vmatprep.mubr.msk.bf16.mxu1 %vm1498_vm0, %v20426_v38  ;;  %1904 = vmatprep.subr.bf16.mxu0 %v30709_v50  ;;  %v20503_v37 = vld [vmem:[%s30700_s1 + $0x220] ss:$16 sps:$4 sm:$0xff]   ;;  %v20507_v38 = vld [vmem:[%s30700_s1 + $0x244] ss:$16 sps:$4 sm:$0xff]  }
  0xa9   : > { %3102 = vmatpush1.bf16.msra.mxu1 %v22772_v19  ;;  %v22236_v19 = vld [vmem:[%s22624_s17 + $0xa8] sm:$0xff]  }
  0xaa   : > { %1664 = vmatmul.mubr.bf16.gmra.mrb[16].mxu0 %v20425_v39  ;;  %3103 = vmatprep.subr.bf16.mxu1 %v30709_v50  ;;  %v20506_v39 = vld [vmem:[%s30700_s1 + $0x500] ss:$16 sps:$4 sm:$0xff]  }
  0xab   : > { %1671 = vmatprep.mubr.bf16.mxu0 %v20429_v40  ;;  %1905 = vmatpush1.bf16.msra.mxu0 %v22713_v7  ;;  %v20510_v40 = vld [vmem:[%s30700_s1 + $0x524] ss:$16 sps:$4 sm:$0xff]  }
  0xac   : > { %4675 = vmatprep.subr.bf16.mxu0 %v30709_v50 }
  0xad   : > { %3104 = vmatpush1.bf16.msra.mxu1 %v22783_v21  ;;  %v22237_v21 = vld [vmem:[%s22624_s17 + $0xb0] sm:$0xff]  }
  0xae   : > { %3362 = vmatprep.subr.bf16.mxu1 %v30709_v50 }
  0xaf   : > { %2137 = vmatmul.mubr.bf16.gmra.mrb[32].mxu1 %v20428_v41  ;;  %v20509_v41 = vld [vmem:[%s30700_s1 + $0x240] ss:$16 sps:$4 sm:$0xff]  }
  0xb0   : > { %17483 = vmatprep.mubr.msk.bf16.mxu1 %vm1498_vm0, %v20432_v42  ;;  %v20513_v42 = vld [vmem:[%s30700_s1 + $0x264] ss:$16 sps:$4 sm:$0xff]  }
  0xb2   : > { %1672 = vmatmul.mubr.bf16.gmra.mrb[20].mxu0 %v20431_v43  ;;  %v20512_v43 = vld [vmem:[%s30700_s1 + $0x520] ss:$16 sps:$4 sm:$0xff]  }
  0xb3   : > { %1679 = vmatprep.mubr.bf16.mxu0 %v20435_v44  ;;  %v20516_v44 = vld [vmem:[%s30700_s1 + $0x544] ss:$16 sps:$4 sm:$0xff]  }
  0xb7   : > { %2145 = vmatmul.mubr.bf16.gmra.mrb[36].mxu1 %v20434_v45  ;;  %v20515_v45 = vld [vmem:[%s30700_s1 + $0x260] ss:$16 sps:$4 sm:$0xff]  }
  0xb8   : > { %17484 = vmatprep.mubr.msk.bf16.mxu1 %vm1498_vm0, %v20438_v46  ;;  %v20519_v46 = vld [vmem:[%s30700_s1 + $0x284] ss:$16 sps:$4 sm:$0xff]  }
  0xba   : > { %1680 = vmatmul.mubr.bf16.gmra.mrb[24].mxu0 %v20437_v47  ;;  %v20518_v47 = vld [vmem:[%s30700_s1 + $0x540] ss:$16 sps:$4 sm:$0xff]  }
  0xbb   : > { %1687 = vmatprep.mubr.bf16.mxu0 %v20441_v48  ;;  %v20522_v48 = vld [vmem:[%s30700_s1 + $0x564] ss:$16 sps:$4 sm:$0xff]  }
  0xbf   : > { %2153 = vmatmul.mubr.bf16.gmra.mrb[40].mxu1 %v20440_v49  ;;  %v20521_v49 = vld [vmem:[%s30700_s1 + $0x280] ss:$16 sps:$4 sm:$0xff]  }
  0xc0   : > { %17485 = vmatprep.mubr.msk.bf16.mxu1 %vm1498_vm0, %v20444_v51  ;;  %v20525_v51 = vld [vmem:[%s30700_s1 + $0x2a4] ss:$16 sps:$4 sm:$0xff]  }
  0xc2   : > { %1688 = vmatmul.mubr.bf16.gmra.mrb[28].mxu0 %v20443_v52  ;;  %v20524_v52 = vld [vmem:[%s30700_s1 + $0x560] ss:$16 sps:$4 sm:$0xff]  }
  0xc3   : > { %1695 = vmatprep.mubr.bf16.mxu0 %v20447_v53  ;;  %v20528_v53 = vld [vmem:[%s30700_s1 + $0x584] ss:$16 sps:$4 sm:$0xff]  }
  0xc7   : > { %2161 = vmatmul.mubr.bf16.gmra.mrb[44].mxu1 %v20446_v54  ;;  %v20527_v54 = vld [vmem:[%s30700_s1 + $0x2a0] ss:$16 sps:$4 sm:$0xff]  }
  0xc8   : > { %17486 = vmatprep.mubr.msk.bf16.mxu1 %vm1498_vm0, %v20450_v55  ;;  %v20531_v55 = vld [vmem:[%s30700_s1 + $0x2c4] ss:$16 sps:$4 sm:$0xff]  }
  0xca   : > { %1696 = vmatmul.mubr.bf16.gmra.mrb[32].mxu0 %v20449_v56  ;;  %v20530_v56 = vld [vmem:[%s30700_s1 + $0x580] ss:$16 sps:$4 sm:$0xff]  }
  0xcb   : > { %1703 = vmatprep.mubr.bf16.mxu0 %v20453_v57  ;;  %v20534_v57 = vld [vmem:[%s30700_s1 + $0x5a4] ss:$16 sps:$4 sm:$0xff]  }
  0xcf   : > { %2169 = vmatmul.mubr.bf16.gmra.mrb[48].mxu1 %v20452_v58  ;;  %v20533_v58 = vld [vmem:[%s30700_s1 + $0x2c0] ss:$16 sps:$4 sm:$0xff]  }
  0xd0   : > { %3105 = vmatprep.mubr.bf16.mxu1 %v20458_v59  ;;  %v20537_v59 = vld [vmem:[%s30700_s1 + $0x2e4] ss:$16 sps:$4 sm:$0xff]  }
  0xd2   : > { %1704 = vmatmul.mubr.bf16.gmra.mrb[36].mxu0 %v20455_v60  ;;  %v20536_v60 = vld [vmem:[%s30700_s1 + $0x5a0] ss:$16 sps:$4 sm:$0xff]  }
  0xd3   : > { %1711 = vmatprep.mubr.bf16.mxu0 %v20459_v61  ;;  %v20540_v61 = vld [vmem:[%s30700_s1 + $0x5c4] ss:$16 sps:$4 sm:$0xff]  }
  0xd7   : > { %3106 = vmatmul.mubr.bf16.vlgmr.msra.gmra.mrb[52].mxu1 %v20456_v62  ;;  %v20539_v62 = vld [vmem:[%s30700_s1 + $0x2e0] ss:$16 sps:$4 sm:$0xff]  }
  0xd8   : > { %3113 = vmatprep.mubr.bf16.mxu1 %v20462_v63  ;;  %3363 = vmatpush1.bf16.msra.mxu1 %v22231_v2  ;;  %v20543_v63 = vld [vmem:[%s30700_s1 + $0x304] ss:$16 sps:$4 sm:$0xff]   ;;  %v20545_v2 = vld [vmem:[%s30700_s1 + $0x300] ss:$16 sps:$4 sm:$0xff]  }
  0xd9   : > { %3364 = vmatprep.subr.bf16.mxu1 %v30709_v50 }
  0xda   : > { %1712 = vmatmul.mubr.bf16.gmra.mrb[40].mxu0 %v20461_v0  ;;  %v20542_v0 = vld [vmem:[%s30700_s1 + $0x5c0] ss:$16 sps:$4 sm:$0xff]  }
  0xdb   : > { %1719 = vmatprep.mubr.bf16.mxu0 %v20465_v1  ;;  %v20546_v1 = vld [vmem:[%s30700_s1 + $0x5e4] ss:$16 sps:$4 sm:$0xff]  }
  0xdc   : > { %3365 = vmatpush1.bf16.msra.mxu1 %v22232_v6  ;;  %v20551_v6 = vld [vmem:[%s30700_s1 + $0x320] ss:$16 sps:$4 sm:$0xff]  }
  0xdd   : > { %3366 = vmatprep.subr.bf16.mxu1 %v30709_v50 }
  0xdf   : > { %3114 = vmatmul.mubr.bf16.gmra.mrb[56].mxu1 %v20464_v3  ;;  %v20549_v3 = vld [vmem:[%s30700_s1 + $0x324] ss:$16 sps:$4 sm:$0xff]  }
  0xe0   : > { %3121 = vmatprep.mubr.bf16.mxu1 %v20468_v4  ;;  %3367 = vmatpush1.bf16.msra.mxu1 %v22233_v9  ;;  %v20548_v4 = vld [vmem:[%s30700_s1 + $0x5e0] ss:$16 sps:$4 sm:$0xff]  }
  0xe1   : > { %3368 = vmatprep.subr.bf16.mxu1 %v30709_v50  ;;  %v20554_v9 = vld [vmem:[%s30700_s1 + $0x600] ss:$16 sps:$4 sm:$0xff]  }
  0xe2   : > { %1720 = vmatmul.mubr.bf16.gmra.mrb[44].mxu0 %v20467_v5  ;;  %v20552_v5 = vld [vmem:[%s30700_s1 + $0x604] ss:$16 sps:$4 sm:$0xff]  }
  0xe3   : > { %1727 = vmatprep.mubr.bf16.mxu0 %v20471_v8  ;;  %v20555_v8 = vld [vmem:[%s30700_s1 + $0x344] ss:$16 sps:$4 sm:$0xff]  }
  0xe4   : > { %3369 = vmatpush1.bf16.msra.mxu1 %v22234_v13  ;;  %v20560_v13 = vld [vmem:[%s30700_s1 + $0x620] ss:$16 sps:$4 sm:$0xff]  }
  0xe5   : > { %3370 = vmatprep.subr.bf16.mxu1 %v30709_v50 }
  0xe7   : > { %3122 = vmatmul.mubr.bf16.gmra.mrb[60].mxu1 %v20470_v10  ;;  %v20558_v10 = vld [vmem:[%s30700_s1 + $0x624] ss:$16 sps:$4 sm:$0xff]  }
  0xe8   : > { %3129 = vmatprep.mubr.bf16.mxu1 %v20474_v11  ;;  %3371 = vmatpush1.bf16.msra.mxu1 %v22235_v15  ;;  %v20557_v11 = vld [vmem:[%s30700_s1 + $0x340] ss:$16 sps:$4 sm:$0xff]  }
  0xe9   : > { %3372 = vmatprep.subr.bf16.mxu1 %v30709_v50  ;;  %v20563_v15 = vld [vmem:[%s30700_s1 + $0x360] ss:$16 sps:$4 sm:$0xff]  }
  0xea   : > { %1728 = vmatmul.mubr.bf16.gmra.mrb[48].mxu0 %v20473_v12  ;;  %v20561_v12 = vld [vmem:[%s30700_s1 + $0x364] ss:$16 sps:$4 sm:$0xff]  }
  0xeb   : > { %1735 = vmatprep.mubr.bf16.mxu0 %v20477_v14  ;;  %v20564_v14 = vld [vmem:[%s30700_s1 + $0x644] ss:$16 sps:$4 sm:$0xff]  }
  0xec   : > { %3373 = vmatpush1.bf16.msra.mxu1 %v22236_v19  ;;  %v20569_v19 = vld [vmem:[%s30700_s1 + $0x380] ss:$16 sps:$4 sm:$0xff]  }
  0xed   : > { %3374 = vmatprep.subr.bf16.mxu1 %v30709_v50 }
  0xef   : > { %3130 = vmatmul.mubr.bf16.gmra.mrb[64].mxu1 %v20476_v16  ;;  %v20567_v16 = vld [vmem:[%s30700_s1 + $0x384] ss:$16 sps:$4 sm:$0xff]  }
  0xf0   : > { %3137 = vmatprep.mubr.bf16.mxu1 %v20480_v17  ;;  %3375 = vmatpush1.bf16.msra.mxu1 %v22237_v21  ;;  %v20566_v17 = vld [vmem:[%s30700_s1 + $0x640] ss:$16 sps:$4 sm:$0xff]  }
  0xf1   : > { %3376 = vmatprep.subr.bf16.mxu1 %v30709_v50  ;;  %v20572_v21 = vld [vmem:[%s30700_s1 + $0x660] ss:$16 sps:$4 sm:$0xff]  }
  0xf2   : > { %1736 = vmatmul.mubr.bf16.gmra.mrb[52].mxu0 %v20479_v18  ;;  %v20570_v18 = vld [vmem:[%s30700_s1 + $0x664] ss:$16 sps:$4 sm:$0xff]  }
  0xf3   : > { %1743 = vmatprep.mubr.bf16.mxu0 %v20483_v20  ;;  %v20573_v20 = vld [vmem:[%s30700_s1 + $0x3a4] ss:$16 sps:$4 sm:$0xff]  }
  0xf4   : > { %3377 = vmatpush1.bf16.msra.mxu1 %v22238_v25  ;;  %v20578_v25 = vld [vmem:[%s30700_s1 + $0x680] ss:$16 sps:$4 sm:$0xff]  }
  0xf5   : > { %3378 = vmatprep.subr.bf16.mxu1 %v30709_v50 }
  0xf7   : > { %3138 = vmatmul.mubr.bf16.gmra.mrb[68].mxu1 %v20482_v22  ;;  %v20576_v22 = vld [vmem:[%s30700_s1 + $0x684] ss:$16 sps:$4 sm:$0xff]  }
  0xf8   : > { %3145 = vmatprep.mubr.bf16.mxu1 %v20486_v23  ;;  %3379 = vmatpush1.bf16.msra.mxu1 %v22713_v7  ;;  %v20575_v23 = vld [vmem:[%s30700_s1 + $0x3a0] ss:$16 sps:$4 sm:$0xff]  }
  0xf9   : > { %6277 = vmatprep.subr.bf16.mxu1 %v30709_v50 }
  0xfa   : > { %1744 = vmatmul.mubr.bf16.gmra.mrb[56].mxu0 %v20485_v24  ;;  %v20579_v24 = vld [vmem:[%s30700_s1 + $0x3c4] ss:$16 sps:$4 sm:$0xff]  }
  0xfb   : > { %1751 = vmatprep.mubr.bf16.mxu0 %v20489_v26  ;;  %v20581_v26 = vld [vmem:[%s30700_s1 + $0x3c0] ss:$16 sps:$4 sm:$0xff]  }
  0xff   : > { %3146 = vmatmul.mubr.bf16.gmra.mrb[72].mxu1 %v20488_v27  ;;  %v20582_v27 = vld [vmem:[%s30700_s1 + $0x6a4] ss:$16 sps:$4 sm:$0xff]  }
 0x100   : > { %3153 = vmatprep.mubr.bf16.mxu1 %v20492_v28  ;;  %v20585_v28 = vld [vmem:[%s30700_s1 + $0x3e4] ss:$16 sps:$4 sm:$0xff]  }
 0x102   : > { %1752 = vmatmul.mubr.bf16.gmra.mrb[60].mxu0 %v20491_v29 }
 0x103   : > { %1759 = vmatprep.mubr.bf16.mxu0 %v20495_v30 }
 0x107   : > { %3154 = vmatmul.mubr.bf16.gmra.mrb[76].mxu1 %v20494_v31 }
 0x108   : > { %3161 = vmatprep.mubr.bf16.mxu1 %v20498_v32 }
 0x10a   : > { %1760 = vmatmul.mubr.bf16.gmra.mrb[64].mxu0 %v20497_v33  ;;  %v20584_v33 = vld [vmem:[%s30700_s1 + $0x6a0] ss:$16 sps:$4 sm:$0xff]  }
 0x10b   : > { %1767 = vmatprep.mubr.bf16.mxu0 %v20501_v34  ;;  %v20587_v34 = vld [vmem:[%s30700_s1 + $0x3e0] ss:$16 sps:$4 sm:$0xff]  }
 0x10f   : > { %3162 = vmatmul.mubr.bf16.gmra.mrb[80].mxu1 %v20500_v35  ;;  %v20588_v35 = vld [vmem:[%s30700_s1 + $0x6c4] ss:$16 sps:$4 sm:$0xff]  }
 0x110   : > { %3169 = vmatprep.mubr.bf16.mxu1 %v20504_v36  ;;  %v20593_v36 = vld [vmem:[%s30700_s1 + $0xc] ss:$16 sps:$4 sm:$0xff]  }
 0x112   : > { %1768 = vmatmul.mubr.bf16.gmra.mrb[68].mxu0 %v20503_v37 }
 0x113   : > { %1775 = vmatprep.mubr.bf16.mxu0 %v20507_v38 }
 0x117   : > { %3170 = vmatmul.mubr.bf16.gmra.mrb[84].mxu1 %v20506_v39 }
 0x118   : > { %3177 = vmatprep.mubr.bf16.mxu1 %v20510_v40 }
 0x11a   : > { %1776 = vmatmul.mubr.bf16.gmra.mrb[72].mxu0 %v20509_v41  ;;  %v20590_v41 = vld [vmem:[%s30700_s1 + $0x6c0] ss:$16 sps:$4 sm:$0xff]  }
 0x11b   : > { %1783 = vmatprep.mubr.bf16.mxu0 %v20513_v42  ;;  %v20591_v42 = vld [vmem:[%s30700_s1 + $0x8] ss:$16 sps:$4 sm:$0xff]  }
 0x11f   : > { %3178 = vmatmul.mubr.bf16.gmra.mrb[88].mxu1 %v20512_v43  ;;  %v20594_v43 = vld [vmem:[%s30700_s1 + $0x6e4] ss:$16 sps:$4 sm:$0xff]  }
 0x120   : > { %3185 = vmatprep.mubr.bf16.mxu1 %v20516_v44  ;;  %v20597_v44 = vld [vmem:[%s30700_s1 + $0x2c] ss:$16 sps:$4 sm:$0xff]  }
 0x122   : > { %1784 = vmatmul.mubr.bf16.gmra.mrb[76].mxu0 %v20515_v45 }
 0x123   : > { %1791 = vmatprep.mubr.bf16.mxu0 %v20519_v46 }
 0x127   : > { %3186 = vmatmul.mubr.bf16.gmra.mrb[92].mxu1 %v20518_v47 }
 0x128   : > { %3193 = vmatprep.mubr.bf16.mxu1 %v20522_v48 }
 0x12a   : > { %1792 = vmatmul.mubr.bf16.gmra.mrb[80].mxu0 %v20521_v49  ;;  %v20596_v49 = vld [vmem:[%s30700_s1 + $0x6e0] ss:$16 sps:$4 sm:$0xff]  }
 0x12b   : > { %1799 = vmatprep.mubr.bf16.mxu0 %v20525_v51  ;;  %v23266_v51 = vld [vmem:[%s22624_s17] sm:$0xff]  }
 0x12f   : > { %3194 = vmatmul.mubr.bf16.gmra.mrb[96].mxu1 %v20524_v52  ;;  %v20599_v52 = vld [vmem:[%s30700_s1 + $0x28] ss:$16 sps:$4 sm:$0xff]  }
 0x130   : > { %3201 = vmatprep.mubr.bf16.mxu1 %v20528_v53  ;;  %v20600_v53 = vld [vmem:[%s30700_s1 + $0x704] ss:$16 sps:$4 sm:$0xff]  }
 0x132   : > { %1800 = vmatmul.mubr.bf16.gmra.mrb[84].mxu0 %v20527_v54  ;;  %v20603_v54 = vld [vmem:[%s30700_s1 + $0x4c] ss:$16 sps:$4 sm:$0xff]  }
 0x133   : > { %1807 = vmatprep.mubr.bf16.mxu0 %v20531_v55 }
 0x137   : > { %3202 = vmatmul.mubr.bf16.gmra.mrb[100].mxu1 %v20530_v56 }
 0x138   : > { %3209 = vmatprep.mubr.bf16.mxu1 %v20534_v57  ;;  %v23282_v57 = vld [vmem:[%s22624_s17 + $0x8] sm:$0xff]  }
 0x13a   : > { %1808 = vmatmul.mubr.bf16.gmra.mrb[88].mxu0 %v20533_v58 }
 0x13b   : > { %1815 = vmatprep.mubr.bf16.mxu0 %v20537_v59 }
 0x13f   : > { %3210 = vmatmul.mubr.bf16.gmra.mrb[104].mxu1 %v20536_v60  ;;  %v20602_v60 = vld [vmem:[%s30700_s1 + $0x700] ss:$16 sps:$4 sm:$0xff]  }
 0x140   : > { %3217 = vmatprep.mubr.bf16.mxu1 %v20540_v61  ;;  %v23293_v61 = vld [vmem:[%s22624_s17 + $0x10] sm:$0xff]  }
 0x142   : > { %1816 = vmatmul.mubr.bf16.gmra.mrb[92].mxu0 %v20539_v62  ;;  %v23224_v29 = vpop.f32.mrb[0].mxu1  ;;  %v20605_v62 = vld [vmem:[%s30700_s1 + $0x48] ss:$16 sps:$4 sm:$0xff]  }
 0x143   : > { %1823 = vmatprep.mubr.bf16.mxu0 %v20543_v63  ;;  %v2076_v30 = vpop.f32.mrb[1].mxu1  ;;  %v20606_v63 = vld [vmem:[%s30700_s1 + $0x724] ss:$16 sps:$4 sm:$0xff]  }
 0x144   : > { %v23226_v31 = vpop.f32.mrb[2].mxu1  ;;  %v20623_v30 = vld [vmem:[%s30700_s1 + $0xa8] ss:$16 sps:$4 sm:$0xff]  }
 0x145   : > { %v2079_v32 = vpop.f32.mrb[3].mxu1 }
 0x146   : > { %v20624_v32 = vld [vmem:[%s30700_s1 + $0x784] ss:$16 sps:$4 sm:$0xff]  }
 0x147   : > { %3218 = vmatmul.mubr.bf16.gmra.mrb[108].mxu1 %v20542_v0  ;;  %v20609_v0 = vld [vmem:[%s30700_s1 + $0x6c] ss:$16 sps:$4 sm:$0xff]  }
 0x148   : > { %3225 = vmatprep.mubr.bf16.mxu1 %v20546_v1 }
 0x14a   : > { %1824 = vmatmul.mubr.bf16.gmra.mrb[96].mxu0 %v20545_v2  ;;  %v23240_v37 = vpop.f32.mrb[4].mxu1 }
 0x14b   : > { %1831 = vmatprep.mubr.bf16.mxu0 %v20549_v3  ;;  %v2084_v38 = vpop.f32.mrb[5].mxu1  ;;  %v23309_v3 = vld [vmem:[%s22624_s17 + $0x18] sm:$0xff]  }
 0x14c   : > { %v23242_v39 = vpop.f32.mrb[6].mxu1 }
 0x14d   : > { %v2087_v40 = vpop.f32.mrb[7].mxu1 }
 0x14f   : > { %3226 = vmatmul.mubr.bf16.gmra.mrb[112].mxu1 %v20548_v4 }
 0x150   : > { %3233 = vmatprep.mubr.bf16.mxu1 %v20552_v5 }
 0x152   : > { %1832 = vmatmul.mubr.bf16.gmra.mrb[100].mxu0 %v20551_v6  ;;  %v23257_v45 = vpop.f32.mrb[8].mxu1  ;;  %v20608_v6 = vld [vmem:[%s30700_s1 + $0x720] ss:$16 sps:$4 sm:$0xff]  }
 0x153   : > { %1839 = vmatprep.mubr.bf16.mxu0 %v20555_v8  ;;  %v2092_v46 = vpop.f32.mrb[9].mxu1  ;;  %v23320_v8 = vld [vmem:[%s22624_s17 + $0x20] sm:$0xff]  }
 0x154   : > { %v23259_v47 = vpop.f32.mrb[10].mxu1  ;;  %v20633_v46 = vld [vmem:[%s30700_s1 + $0xec] ss:$16 sps:$4 sm:$0xff]  }
 0x155   : > { %v2095_v48 = vpop.f32.mrb[11].mxu1 }
 0x157   : > { %3234 = vmatmul.mubr.bf16.gmra.mrb[116].mxu1 %v20554_v9  ;;  %v20611_v9 = vld [vmem:[%s30700_s1 + $0x68] ss:$16 sps:$4 sm:$0xff]  }
 0x158   : > { %3241 = vmatprep.mubr.bf16.mxu1 %v20558_v10  ;;  %v20612_v10 = vld [vmem:[%s30700_s1 + $0x744] ss:$16 sps:$4 sm:$0xff]  }
 0x15a   : > { %1840 = vmatmul.mubr.bf16.gmra.mrb[104].mxu0 %v20557_v11  ;;  %v23279_v55 = vpop.f32.mrb[12].mxu1  ;;  %v20615_v11 = vld [vmem:[%s30700_s1 + $0x8c] ss:$16 sps:$4 sm:$0xff]  }
 0x15b   : > { %1847 = vmatprep.mubr.bf16.mxu0 %v20561_v12  ;;  %v2100_v56 = vpop.f32.mrb[13].mxu1 }
 0x15c   : > { %v23285_v58 = vpop.f32.mrb[14].mxu1  ;;  %v20632_v56 = vld [vmem:[%s30700_s1 + $0x7a0] ss:$16 sps:$4 sm:$0xff]  }
 0x15d   : > { %v2103_v59 = vpop.f32.mrb[15].mxu1 }
 0x15e   : > { %v23428_v59 = vld [vmem:[%s22624_s17 + $0x60] sm:$0xff]  }
 0x15f   : > { %3242 = vmatmul.mubr.bf16.gmra.mrb[120].mxu1 %v20560_v13 }
 0x160   : > { %3249 = vmatprep.mubr.bf16.mxu1 %v20564_v14  ;;  %v23336_v14 = vld [vmem:[%s22624_s17 + $0x28] sm:$0xff]  }
 0x162   : > { %1848 = vmatmul.mubr.bf16.gmra.mrb[108].mxu0 %v20563_v15  ;;  %v23306_v1 = vpop.f32.mrb[16].mxu1 }
 0x163   : > { %1855 = vmatprep.mubr.bf16.mxu0 %v20567_v16  ;;  %v2108_v2 = vpop.f32.mrb[17].mxu1 }
 0x164   : > { %v23312_v4 = vpop.f32.mrb[18].mxu1 }
 0x165   : > { %v2111_v5 = vpop.f32.mrb[19].mxu1 }
 0x166   : > { %v23444_v5 = vld [vmem:[%s22624_s17 + $0x68] sm:$0xff]  }
 0x167   : > { %3250 = vmatmul.mubr.bf16.gmra.mrb[124].mxu1 %v20566_v17  ;;  %v20614_v17 = vld [vmem:[%s30700_s1 + $0x740] ss:$16 sps:$4 sm:$0xff]  }
 0x168   : > { %3257 = vmatprep.mubr.bf16.mxu1 %v20570_v18  ;;  %v23347_v18 = vld [vmem:[%s22624_s17 + $0x30] sm:$0xff]  }
 0x16a   : > { %1856 = vmatmul.mubr.bf16.gmra.mrb[112].mxu0 %v20569_v19  ;;  %v23333_v12 = vpop.f32.mrb[20].mxu1  ;;  %v20617_v19 = vld [vmem:[%s30700_s1 + $0x88] ss:$16 sps:$4 sm:$0xff]  }
 0x16b   : > { %1863 = vmatprep.mubr.bf16.mxu0 %v20573_v20  ;;  %v2116_v13 = vpop.f32.mrb[21].mxu1  ;;  %v20618_v20 = vld [vmem:[%s30700_s1 + $0x764] ss:$16 sps:$4 sm:$0xff]  }
 0x16c   : > { %v23339_v15 = vpop.f32.mrb[22].mxu1  ;;  %v20641_v13 = vld [vmem:[%s30700_s1 + $0x108] ss:$16 sps:$4 sm:$0xff]  }
 0x16d   : > { %v2119_v16 = vpop.f32.mrb[23].mxu1 }
 0x16e   : > { %v20642_v16 = vld [vmem:[%s30700_s1 + $0x7e4] ss:$16 sps:$4 sm:$0xff]  }
 0x16f   : > { %3258 = vmatmul.mubr.bf16.gmra.mrb[128].mxu1 %v20572_v21  ;;  %v20621_v21 = vld [vmem:[%s30700_s1 + $0xac] ss:$16 sps:$4 sm:$0xff]  }
 0x170   : > { %3265 = vmatprep.mubr.bf16.mxu1 %v20576_v22 }
 0x172   : > { %1864 = vmatmul.mubr.bf16.gmra.mrb[116].mxu0 %v20575_v23  ;;  %v23360_v22 = vpop.f32.mrb[24].mxu1 }
 0x173   : > { %1871 = vmatprep.mubr.bf16.mxu0 %v20579_v24  ;;  %v2124_v23 = vpop.f32.mrb[25].mxu1  ;;  %v23363_v24 = vld [vmem:[%s22624_s17 + $0x38] sm:$0xff]  }
 0x177   : > { %3266 = vmatmul.mubr.bf16.gmra.mrb[132].mxu1 %v20578_v25  ;;  %v23366_v25 = vpop.f32.mrb[26].mxu1 }
 0x178   : > { %3273 = vmatprep.mubr.bf16.mxu1 %v20582_v27  ;;  %v20620_v27 = vld [vmem:[%s30700_s1 + $0x760] ss:$16 sps:$4 sm:$0xff]  }
 0x17a   : > { %1872 = vmatmul.mubr.bf16.gmra.mrb[120].mxu0 %v20581_v26  ;;  %v2127_v26 = vpop.f32.mrb[27].mxu1 }
 0x17b   : > { %1879 = vmatprep.mubr.bf16.mxu0 %v20585_v28  ;;  %v23374_v28 = vld [vmem:[%s22624_s17 + $0x40] sm:$0xff]  }
 0x17f   : > { %3274 = vmatmul.mubr.bf16.gmra.mrb[136].mxu1 %v20584_v33  ;;  %v20627_v33 = vld [vmem:[%s30700_s1 + $0xcc] ss:$16 sps:$4 sm:$0xff]  }
 0x180   : > { %3281 = vmatprep.mubr.bf16.mxu1 %v20588_v35 }
 0x182   : > { %1880 = vmatmul.mubr.bf16.gmra.mrb[124].mxu0 %v20587_v34  ;;  %v23387_v34 = vpop.f32.mrb[28].mxu1 }
 0x183   : > { %17455 = vmatprep.mubr.msk.bf16.mxu0 %vm1498_vm0, %v20593_v36  ;;  %v2132_v35 = vpop.f32.mrb[29].mxu1  ;;  %v23390_v36 = vld [vmem:[%s22624_s17 + $0x48] sm:$0xff]  }
 0x184   : > { %v23393_v38 = vpop.f32.mrb[30].mxu1 }
 0x185   : > { %v2135_v40 = vpop.f32.mrb[31].mxu1 }
 0x186   : > { %v23414_v48 = vpop.f32.mrb[32].mxu1 }
 0x187   : > { %3282 = vmatmul.mubr.bf16.gmra.mrb[140].mxu1 %v20590_v41  ;;  %v20626_v41 = vld [vmem:[%s30700_s1 + $0x780] ss:$16 sps:$4 sm:$0xff]  }
 0x188   : > { %3289 = vmatprep.mubr.bf16.mxu1 %v20594_v43  ;;  %v20629_v43 = vld [vmem:[%s30700_s1 + $0xc8] ss:$16 sps:$4 sm:$0xff]  }
 0x18a   : > { %1921 = vmatmul.mubr.bf16.vlgmr.msra.gmra.mrb[0].mxu0 %v20591_v42  ;;  %v23401_v42 = vld [vmem:[%s22624_s17 + $0x50] sm:$0xff]  }
 0x18b   : > { %17456 = vmatprep.mubr.msk.bf16.mxu0 %vm1498_vm0, %v20597_v44  ;;  %4676 = vmatpush1.bf16.msra.mxu0 %v23266_v51  ;;  %v20630_v44 = vld [vmem:[%s30700_s1 + $0x7a4] ss:$16 sps:$4 sm:$0xff]  }
 0x18c   : > { %4677 = vmatprep.subr.bf16.mxu0 %v30709_v50 }
 0x18f   : > { %3290 = vmatmul.mubr.bf16.gmra.mrb[144].mxu1 %v20596_v49  ;;  %4678 = vmatpush1.bf16.msra.mxu0 %v23282_v57  ;;  %v2140_v49 = vpop.f32.mrb[33].mxu1 }
 0x190   : > { %3297 = vmatprep.mubr.bf16.mxu1 %v20600_v53  ;;  %4679 = vmatprep.subr.bf16.mxu0 %v30709_v50  ;;  %v23420_v53 = vpop.f32.mrb[34].mxu1  ;;  %v20654_v49 = vld [vmem:[%s30700_s1 + $0x42c] ss:$16 sps:$4 sm:$0xff]  }
 0x192   : > { %1929 = vmatmul.mubr.bf16.gmra.mrb[4].mxu0 %v20599_v52  ;;  %v23417_v52 = vld [vmem:[%s22624_s17 + $0x58] sm:$0xff]  }
 0x193   : > { %17457 = vmatprep.mubr.msk.bf16.mxu0 %vm1498_vm0, %v20603_v54  ;;  %4680 = vmatpush1.bf16.msra.mxu0 %v23293_v61  ;;  %v2143_v54 = vpop.f32.mrb[35].mxu1 }
 0x194   : > { %4681 = vmatprep.subr.bf16.mxu0 %v30709_v50  ;;  %v20657_v54 = vld [vmem:[%s30700_s1 + $0x16c] ss:$16 sps:$4 sm:$0xff]  }
 0x197   : > { %3298 = vmatmul.mubr.bf16.gmra.mrb[148].mxu1 %v20602_v60  ;;  %4682 = vmatpush1.bf16.msra.mxu0 %v23309_v3  ;;  %v20635_v60 = vld [vmem:[%s30700_s1 + $0xe8] ss:$16 sps:$4 sm:$0xff]  }
 0x198   : > { %3305 = vmatprep.mubr.bf16.mxu1 %v20606_v63  ;;  %4683 = vmatprep.subr.bf16.mxu0 %v30709_v50  ;;  %v20639_v63 = vld [vmem:[%s30700_s1 + $0x10c] ss:$16 sps:$4 sm:$0xff]  }
 0x19a   : > { %1937 = vmatmul.mubr.bf16.gmra.mrb[8].mxu0 %v20605_v62  ;;  %v20636_v62 = vld [vmem:[%s30700_s1 + $0x7c4] ss:$16 sps:$4 sm:$0xff]  }
 0x19b   : > { %17458 = vmatprep.mubr.msk.bf16.mxu0 %vm1498_vm0, %v20609_v0  ;;  %4684 = vmatpush1.bf16.msra.mxu0 %v23320_v8  ;;  %v23441_v0 = vpop.f32.mrb[36].mxu1 }
 0x19c   : > { %4685 = vmatprep.subr.bf16.mxu0 %v30709_v50  ;;  %v2148_v2 = vpop.f32.mrb[37].mxu1 }
 0x19d   : > { %v20656_v2 = vld [vmem:[%s30700_s1 + $0x428] ss:$16 sps:$4 sm:$0xff]  }
 0x19f   : > { %3306 = vmatmul.mubr.bf16.gmra.mrb[152].mxu1 %v20608_v6  ;;  %4686 = vmatpush1.bf16.msra.mxu0 %v23336_v14  ;;  %v23447_v6 = vpop.f32.mrb[38].mxu1 }
 0x1a0   : > { %3313 = vmatprep.mubr.bf16.mxu1 %v20612_v10  ;;  %4687 = vmatprep.subr.bf16.mxu0 %v30709_v50  ;;  %v20638_v10 = vld [vmem:[%s30700_s1 + $0x7c0] ss:$16 sps:$4 sm:$0xff]  }
 0x1a2   : > { %1945 = vmatmul.mubr.bf16.gmra.mrb[12].mxu0 %v20611_v9  ;;  %v2151_v9 = vpop.f32.mrb[39].mxu1 }
 0x1a3   : > { %17459 = vmatprep.mubr.msk.bf16.mxu0 %vm1498_vm0, %v20615_v11  ;;  %4688 = vmatpush1.bf16.msra.mxu0 %v23347_v18  ;;  %v23455_v11 = vld [vmem:[%s22624_s17 + $0x70] sm:$0xff]  }
 0x1a4   : > { %4689 = vmatprep.subr.bf16.mxu0 %v30709_v50  ;;  %v20659_v9 = vld [vmem:[%s30700_s1 + $0x168] ss:$16 sps:$4 sm:$0xff]  }
 0x1a7   : > { %3314 = vmatmul.mubr.bf16.gmra.mrb[156].mxu1 %v20614_v17  ;;  %4690 = vmatpush1.bf16.msra.mxu0 %v23363_v24  ;;  %v20645_v17 = vld [vmem:[%s30700_s1 + $0x12c] ss:$16 sps:$4 sm:$0xff]  }
 0x1a8   : > { %3321 = vmatprep.mubr.bf16.mxu1 %v20618_v20  ;;  %4691 = vmatprep.subr.bf16.mxu0 %v30709_v50 }
 0x1aa   : > { %1953 = vmatmul.mubr.bf16.gmra.mrb[16].mxu0 %v20617_v19  ;;  %v23468_v19 = vpop.f32.mrb[40].mxu1 }
 0x1ab   : > { %17460 = vmatprep.mubr.msk.bf16.mxu0 %vm1498_vm0, %v20621_v21  ;;  %4692 = vmatpush1.bf16.msra.mxu0 %v23374_v28  ;;  %v2156_v20 = vpop.f32.mrb[41].mxu1  ;;  %v23471_v21 = vld [vmem:[%s22624_s17 + $0x78] sm:$0xff]  }
 0x1ac   : > { %4693 = vmatprep.subr.bf16.mxu0 %v30709_v50  ;;  %v23474_v23 = vpop.f32.mrb[42].mxu1  ;;  %v20672_v20 = vld [vmem:[%s30700_s1 + $0x48c] ss:$16 sps:$4 sm:$0xff]  }
 0x1ad   : > { %v2159_v26 = vpop.f32.mrb[43].mxu1 }
 0x1ae   : > { %v23490_v35 = vpop.f32.mrb[44].mxu1  ;;  %v20674_v26 = vld [vmem:[%s30700_s1 + $0x488] ss:$16 sps:$4 sm:$0xff]  }
 0x1af   : > { %3322 = vmatmul.mubr.bf16.gmra.mrb[160].mxu1 %v20620_v27  ;;  %4694 = vmatpush1.bf16.msra.mxu0 %v23390_v36  ;;  %v20644_v27 = vld [vmem:[%s30700_s1 + $0x7e0] ss:$16 sps:$4 sm:$0xff]   ;;  %v2164_v40 = vpop.f32.mrb[45].mxu1 }
 0x1b0   : > { %3329 = vmatprep.mubr.bf16.mxu1 %v20624_v32  ;;  %4695 = vmatprep.subr.bf16.mxu0 %v30709_v50  ;;  %v20650_v32 = vld [vmem:[%s30700_s1 + $0x40c] ss:$16 sps:$4 sm:$0xff]  }
 0x1b2   : > { %1961 = vmatmul.mubr.bf16.gmra.mrb[20].mxu0 %v20623_v30  ;;  %v20647_v30 = vld [vmem:[%s30700_s1 + $0x128] ss:$16 sps:$4 sm:$0xff]  }
 0x1b3   : > { %17461 = vmatprep.mubr.msk.bf16.mxu0 %vm1498_vm0, %v20627_v33  ;;  %4696 = vmatpush1.bf16.msra.mxu0 %v23401_v42  ;;  %v20651_v33 = vld [vmem:[%s30700_s1 + $0x14c] ss:$16 sps:$4 sm:$0xff]  }
 0x1b4   : > { %4697 = vmatprep.subr.bf16.mxu0 %v30709_v50 }
 0x1b7   : > { %3330 = vmatmul.mubr.bf16.gmra.mrb[164].mxu1 %v20626_v41  ;;  %4698 = vmatpush1.bf16.msra.mxu0 %v23417_v52  ;;  %v23492_v41 = vpop.f32.mrb[46].mxu1 }
 0x1b8   : > { %3337 = vmatprep.mubr.bf16.mxu1 %v20630_v44  ;;  %4699 = vmatprep.subr.bf16.mxu0 %v30709_v50  ;;  %v20648_v44 = vld [vmem:[%s30700_s1 + $0x408] ss:$16 sps:$4 sm:$0xff]  }
 0x1ba   : > { %1969 = vmatmul.mubr.bf16.gmra.mrb[24].mxu0 %v20629_v43  ;;  %v2167_v43 = vpop.f32.mrb[47].mxu1 }
 0x1bb   : > { %17462 = vmatprep.mubr.msk.bf16.mxu0 %vm1498_vm0, %v20633_v46  ;;  %4700 = vmatpush1.bf16.msra.mxu0 %v23428_v59  ;;  %v20653_v46 = vld [vmem:[%s30700_s1 + $0x148] ss:$16 sps:$4 sm:$0xff]  }
 0x1bc   : > { %4701 = vmatprep.subr.bf16.mxu0 %v30709_v50 }
 0x1bf   : > { %3338 = vmatmul.mubr.bf16.gmra.mrb[168].mxu1 %v20632_v56  ;;  %4702 = vmatpush1.bf16.msra.mxu0 %v23444_v5  ;;  %v23508_v56 = vpop.f32.mrb[48].mxu1 }
 0x1c0   : > { %3345 = vmatprep.mubr.bf16.mxu1 %v20636_v62  ;;  %4703 = vmatprep.subr.bf16.mxu0 %v30709_v50 }
 0x1c2   : > { %1977 = vmatmul.mubr.bf16.gmra.mrb[28].mxu0 %v20635_v60  ;;  %v2172_v60 = vpop.f32.mrb[49].mxu1 }
 0x1c3   : > { %17463 = vmatprep.mubr.msk.bf16.mxu0 %vm1498_vm0, %v20639_v63  ;;  %4704 = vmatpush1.bf16.msra.mxu0 %v23455_v11  ;;  %v23510_v62 = vpop.f32.mrb[50].mxu1 }
 0x1c4   : > { %4705 = vmatprep.subr.bf16.mxu0 %v30709_v50  ;;  %v2175_v63 = vpop.f32.mrb[51].mxu1 }
 0x1c7   : > { %3346 = vmatmul.mubr.bf16.gmra.mrb[172].mxu1 %v20638_v10  ;;  %4706 = vmatpush1.bf16.msra.mxu0 %v23471_v21  ;;  %v20660_v10 = vld [vmem:[%s30700_s1 + $0x44c] ss:$16 sps:$4 sm:$0xff]  }
 0x1c8   : > { %3353 = vmatprep.mubr.bf16.mxu1 %v20642_v16  ;;  %4964 = vmatprep.subr.bf16.mxu0 %v30709_v50  ;;  %v20666_v16 = vld [vmem:[%s30700_s1 + $0x46c] ss:$16 sps:$4 sm:$0xff]  }
 0x1ca   : > { %1985 = vmatmul.mubr.bf16.gmra.mrb[32].mxu0 %v20641_v13  ;;  %v20662_v13 = vld [vmem:[%s30700_s1 + $0x448] ss:$16 sps:$4 sm:$0xff]  }
 0x1cb   : > { %17464 = vmatprep.mubr.msk.bf16.mxu0 %vm1498_vm0, %v20645_v17  ;;  %v20668_v17 = vld [vmem:[%s30700_s1 + $0x468] ss:$16 sps:$4 sm:$0xff]  }
 0x1cf   : > { %3354 = vmatmul.mubr.bf16.gmra.mrb[176].mxu1 %v20644_v27  ;;  %v20678_v27 = vld [vmem:[%s30700_s1 + $0x4ac] ss:$16 sps:$4 sm:$0xff]  }
 0x1d0   : > { %17615 = vmatprep.mubr.msk.bf16.mxu1 %vm1498_vm0, %v20650_v32 }
 0x1d2   : > { %1993 = vmatmul.mubr.bf16.gmra.mrb[36].mxu0 %v20647_v30  ;;  %v20681_v30 = vld [vmem:[%s30700_s1 + $0x1ec] ss:$16 sps:$4 sm:$0xff]  }
 0x1d3   : > { %17465 = vmatprep.mubr.msk.bf16.mxu0 %vm1498_vm0, %v20651_v33 }
 0x1d7   : > { %3395 = vmatmul.mubr.bf16.vlgmr.msra.gmra.mrb[52].mxu1 %v20648_v44 }
 0x1d8   : > { %17616 = vmatprep.mubr.msk.bf16.mxu1 %vm1498_vm0, %v20654_v49  ;;  %6278 = vmatpush1.bf16.msra.mxu1 %v23266_v51  ;;  %v20663_v51 = vld [vmem:[%s30700_s1 + $0x18c] ss:$16 sps:$4 sm:$0xff]  }
 0x1d9   : > { %6279 = vmatprep.subr.bf16.mxu1 %v30709_v50 }
 0x1da   : > { %2001 = vmatmul.mubr.bf16.gmra.mrb[40].mxu0 %v20653_v46  ;;  %v20687_v46 = vld [vmem:[%s30700_s1 + $0x20c] ss:$16 sps:$4 sm:$0xff]  }
 0x1db   : > { %17466 = vmatprep.mubr.msk.bf16.mxu0 %vm1498_vm0, %v20657_v54 }
 0x1dc   : > { %6280 = vmatpush1.bf16.msra.mxu1 %v23282_v57  ;;  %v20665_v57 = vld [vmem:[%s30700_s1 + $0x188] ss:$16 sps:$4 sm:$0xff]  }
 0x1dd   : > { %6281 = vmatprep.subr.bf16.mxu1 %v30709_v50 }
 0x1df   : > { %3403 = vmatmul.mubr.bf16.gmra.mrb[56].mxu1 %v20656_v2 }
 0x1e0   : > { %17617 = vmatprep.mubr.msk.bf16.mxu1 %vm1498_vm0, %v20660_v10  ;;  %6282 = vmatpush1.bf16.msra.mxu1 %v23293_v61  ;;  %v20669_v61 = vld [vmem:[%s30700_s1 + $0x1ac] ss:$16 sps:$4 sm:$0xff]  }
 0x1e1   : > { %6283 = vmatprep.subr.bf16.mxu1 %v30709_v50 }
 0x1e2   : > { %2009 = vmatmul.mubr.bf16.gmra.mrb[44].mxu0 %v20659_v9  ;;  %v20693_v9 = vld [vmem:[%s30700_s1 + $0x22c] ss:$16 sps:$4 sm:$0xff]  }
 0x1e3   : > { %17467 = vmatprep.mubr.msk.bf16.mxu0 %vm1498_vm0, %v20663_v51 }
 0x1e4   : > { %6284 = vmatpush1.bf16.msra.mxu1 %v23309_v3  ;;  %v20671_v3 = vld [vmem:[%s30700_s1 + $0x1a8] ss:$16 sps:$4 sm:$0xff]  }
 0x1e5   : > { %6285 = vmatprep.subr.bf16.mxu1 %v30709_v50 }
 0x1e7   : > { %3411 = vmatmul.mubr.bf16.gmra.mrb[60].mxu1 %v20662_v13 }
 0x1e8   : > { %17618 = vmatprep.mubr.msk.bf16.mxu1 %vm1498_vm0, %v20666_v16  ;;  %6286 = vmatpush1.bf16.msra.mxu1 %v23320_v8  ;;  %v20675_v8 = vld [vmem:[%s30700_s1 + $0x1cc] ss:$16 sps:$4 sm:$0xff]  }
 0x1e9   : > { %6287 = vmatprep.subr.bf16.mxu1 %v30709_v50 }
 0x1ea   : > { %2017 = vmatmul.mubr.bf16.gmra.mrb[48].mxu0 %v20665_v57 }
 0x1eb   : > { %17468 = vmatprep.mubr.msk.bf16.mxu0 %vm1498_vm0, %v20669_v61  ;;  %v20699_v61 = vld [vmem:[%s30700_s1 + $0x24c] ss:$16 sps:$4 sm:$0xff]  }
 0x1ec   : > { %6288 = vmatpush1.bf16.msra.mxu1 %v23336_v14  ;;  %v20677_v14 = vld [vmem:[%s30700_s1 + $0x1c8] ss:$16 sps:$4 sm:$0xff]  }
 0x1ed   : > { %6289 = vmatprep.subr.bf16.mxu1 %v30709_v50 }
 0x1ef   : > { %3419 = vmatmul.mubr.bf16.gmra.mrb[64].mxu1 %v20668_v17 }
 0x1f0   : > { %17619 = vmatprep.mubr.msk.bf16.mxu1 %vm1498_vm0, %v20672_v20  ;;  %6290 = vmatpush1.bf16.msra.mxu1 %v23347_v18 }
 0x1f1   : > { %6291 = vmatprep.subr.bf16.mxu1 %v30709_v50 }
 0x1f2   : > { %2025 = vmatmul.mubr.bf16.gmra.mrb[52].mxu0 %v20671_v3 }
 0x1f3   : > { %17469 = vmatprep.mubr.msk.bf16.mxu0 %vm1498_vm0, %v20675_v8 }
 0x1f4   : > { %6292 = vmatpush1.bf16.msra.mxu1 %v23363_v24  ;;  %v20680_v24 = vld [vmem:[%s30700_s1 + $0x4a8] ss:$16 sps:$4 sm:$0xff]  }
 0x1f5   : > { %v1785_v18 = vpop.f32.mrb[76].mxu0  ;;  %6293 = vmatprep.subr.bf16.mxu1 %v30709_v50 }
 0x1f6   : > { %v23585_v32 = vadd.f32 %v23224_v29, %v1785_v18  ;;  %v1787_v33 = vpop.f32.mrb[77].mxu0  ;;  %v20683_v29 = vld [vmem:[%s30700_s1 + $0x1e8] ss:$16 sps:$4 sm:$0xff]  }
 0x1f7   : > { %3427 = vmatmul.mubr.bf16.gmra.mrb[68].mxu1 %v20674_v26  ;;  %v1788_v40 = vpop.f32.mrb[78].mxu0 }
 0x1f8   : > { %31079 = vst [vmem:[#allocation9_spill] sm:$0xff] %v23585_v32  ;;  %v23588_v43 = vadd.f32 %v23226_v31, %v1788_v40  ;;  %v1790_v44 = vpop.f32.mrb[79].mxu0  ;;  %17620 = vmatprep.mubr.msk.bf16.mxu1 %vm1498_vm0, %v20678_v27  ;;  %6294 = vmatpush1.bf16.msra.mxu1 %v23374_v28  ;;  %v20684_v31 = vld [vmem:[%s30700_s1 + $0x4cc] ss:$16 sps:$4 sm:$0xff]  }
 0x1f9   : > { %6295 = vmatprep.subr.bf16.mxu1 %v30709_v50  ;;  %v20708_v44 = vld [vmem:[%s30700_s1 + $0x54c] ss:$16 sps:$4 sm:$0xff]  }
 0x1fa   : > { %31080 = vst [vmem:[#allocation10_spill] sm:$0xff] %v23588_v43  ;;  %2033 = vmatmul.mubr.bf16.gmra.mrb[56].mxu0 %v20677_v14  ;;  %v20707_v14 = vld [vmem:[%s30700_s1 + $0x804] ss:$16 sps:$4 sm:$0xff]  }
 0x1fb   : > { %17470 = vmatprep.mubr.msk.bf16.mxu0 %vm1498_vm0, %v20681_v30  ;;  %v24561_v32 = vld [vmem:[%s22624_s17 + $0x48] sm:$0xff]  }
 0x1fc   : > { %6296 = vmatpush1.bf16.msra.mxu1 %v23390_v36  ;;  %v20686_v36 = vld [vmem:[%s30700_s1 + $0x4c8] ss:$16 sps:$4 sm:$0xff]  }
 0x1fd   : > { %v1793_v28 = vpop.f32.mrb[80].mxu0  ;;  %6297 = vmatprep.subr.bf16.mxu1 %v30709_v50 }
 0x1fe   : > { %v23609_v49 = vadd.f32 %v23240_v37, %v1793_v28  ;;  %v1795_v54 = vpop.f32.mrb[81].mxu0  ;;  %v20689_v37 = vld [vmem:[%s30700_s1 + $0x208] ss:$16 sps:$4 sm:$0xff]  }
 0x1ff   : > { %3435 = vmatmul.mubr.bf16.gmra.mrb[72].mxu1 %v20680_v24  ;;  %v1796_v60 = vpop.f32.mrb[82].mxu0  ;;  %v20711_v24 = vld [vmem:[%s30700_s1 + $0x824] ss:$16 sps:$4 sm:$0xff]  }
 0x200   : > { %31081 = vst [vmem:[#allocation11_spill] sm:$0xff] %v23609_v49  ;;  %v23612_v63 = vadd.f32 %v23242_v39, %v1796_v60  ;;  %v1798_v2 = vpop.f32.mrb[83].mxu0  ;;  %17621 = vmatprep.mubr.msk.bf16.mxu1 %vm1498_vm0, %v20684_v31  ;;  %6298 = vmatpush1.bf16.msra.mxu1 %v23401_v42  ;;  %v20690_v39 = vld [vmem:[%s30700_s1 + $0x4ec] ss:$16 sps:$4 sm:$0xff]   ;;  %v20710_v60 = vld [vmem:[%s30700_s1 + $0x548] ss:$16 sps:$4 sm:$0xff]  }
 0x201   : > { %6299 = vmatprep.subr.bf16.mxu1 %v30709_v50  ;;  %v23710_v2 = vld [vmem:[%s22624_s17 + $0x80] sm:$0xff]   ;;  %v24592_v49 = vld [vmem:[%s22624_s17 + $0x58] sm:$0xff]  }
 0x202   : > { %31082 = vst [vmem:[#allocation12_spill] sm:$0xff] %v23612_v63  ;;  %2041 = vmatmul.mubr.bf16.gmra.mrb[60].mxu0 %v20683_v29 }
 0x203   : > { %17471 = vmatprep.mubr.msk.bf16.mxu0 %vm1498_vm0, %v20687_v46 }
 0x204   : > { %6300 = vmatpush1.bf16.msra.mxu1 %v23417_v52  ;;  %v20692_v52 = vld [vmem:[%s30700_s1 + $0x4e8] ss:$16 sps:$4 sm:$0xff]  }
 0x205   : > { %v1801_v42 = vpop.f32.mrb[84].mxu0  ;;  %6301 = vmatprep.subr.bf16.mxu1 %v30709_v50 }
 0x206   : > { %v23633_v10 = vadd.f32 %v23257_v45, %v1801_v42  ;;  %v1803_v51 = vpop.f32.mrb[85].mxu0  ;;  %v20695_v45 = vld [vmem:[%s30700_s1 + $0x228] ss:$16 sps:$4 sm:$0xff]  }
 0x207   : > { %3443 = vmatmul.mubr.bf16.gmra.mrb[76].mxu1 %v20686_v36  ;;  %v1804_v13 = vpop.f32.mrb[86].mxu0  ;;  %v23727_v51 = vld [vmem:[%s22624_s17 + $0x88] sm:$0xff]  }
 0x208   : > { %31083 = vst [vmem:[#allocation13_spill] sm:$0xff] %v23633_v10  ;;  %v23636_v57 = vadd.f32 %v23259_v47, %v1804_v13  ;;  %v1806_v16 = vpop.f32.mrb[87].mxu0  ;;  %17622 = vmatprep.mubr.msk.bf16.mxu1 %vm1498_vm0, %v20690_v39  ;;  %6302 = vmatpush1.bf16.msra.mxu1 %v23428_v59  ;;  %v20696_v47 = vld [vmem:[%s30700_s1 + $0x50c] ss:$16 sps:$4 sm:$0xff]  }
 0x209   : > { %6303 = vmatprep.subr.bf16.mxu1 %v30709_v50  ;;  %v24623_v10 = vld [vmem:[%s22624_s17 + $0x68] sm:$0xff]  }
 0x20a   : > { %31084 = vst [vmem:[#allocation14_spill] sm:$0xff] %v23636_v57  ;;  %2049 = vmatmul.mubr.bf16.gmra.mrb[64].mxu0 %v20689_v37  ;;  %v20717_v37 = vld [vmem:[%s30700_s1 + $0x844] ss:$16 sps:$4 sm:$0xff]  }
 0x20b   : > { %17472 = vmatprep.mubr.msk.bf16.mxu0 %vm1498_vm0, %v20693_v9 }
 0x20c   : > { %6304 = vmatpush1.bf16.msra.mxu1 %v23444_v5  ;;  %v20698_v5 = vld [vmem:[%s30700_s1 + $0x508] ss:$16 sps:$4 sm:$0xff]  }
 0x20d   : > { %v1809_v59 = vpop.f32.mrb[88].mxu0  ;;  %6305 = vmatprep.subr.bf16.mxu1 %v30709_v50 }
 0x20e   : > { %v23657_v17 = vadd.f32 %v23279_v55, %v1809_v59  ;;  %v1811_v3 = vpop.f32.mrb[89].mxu0  ;;  %v20701_v55 = vld [vmem:[%s30700_s1 + $0x248] ss:$16 sps:$4 sm:$0xff]   ;;  %v20723_v59 = vld [vmem:[%s30700_s1 + $0x864] ss:$16 sps:$4 sm:$0xff]  }
 0x20f   : > { %3451 = vmatmul.mubr.bf16.gmra.mrb[80].mxu1 %v20692_v52  ;;  %v1812_v20 = vpop.f32.mrb[90].mxu0  ;;  %v23739_v52 = vld [vmem:[%s22624_s17 + $0x90] sm:$0xff]  }
 0x210   : > { %31085 = vst [vmem:[#allocation15_spill] sm:$0xff] %v23657_v17  ;;  %v23660_v8 = vadd.f32 %v23285_v58, %v1812_v20  ;;  %v1814_v26 = vpop.f32.mrb[91].mxu0  ;;  %17623 = vmatprep.mubr.msk.bf16.mxu1 %vm1498_vm0, %v20696_v47  ;;  %6306 = vmatpush1.bf16.msra.mxu1 %v23455_v11  ;;  %v20702_v58 = vld [vmem:[%s30700_s1 + $0x52c] ss:$16 sps:$4 sm:$0xff]  }
 0x211   : > { %6307 = vmatprep.subr.bf16.mxu1 %v30709_v50  ;;  %v23756_v26 = vld [vmem:[%s22624_s17 + $0x98] sm:$0xff]  }
 0x212   : > { %31086 = vst [vmem:[#allocation16_spill] sm:$0xff] %v23660_v8  ;;  %2057 = vmatmul.mubr.bf16.gmra.mrb[68].mxu0 %v20695_v45  ;;  %v20720_v45 = vld [vmem:[%s30700_s1 + $0x58c] ss:$16 sps:$4 sm:$0xff]  }
 0x213   : > { %17473 = vmatprep.mubr.msk.bf16.mxu0 %vm1498_vm0, %v20699_v61  ;;  %v24654_v17 = vld [vmem:[%s22624_s17 + $0x78] sm:$0xff]  }
 0x214   : > { %6308 = vmatpush1.bf16.msra.mxu1 %v23471_v21  ;;  %v20704_v21 = vld [vmem:[%s30700_s1 + $0x528] ss:$16 sps:$4 sm:$0xff]  }
 0x215   : > { %v1817_v11 = vpop.f32.mrb[92].mxu0  ;;  %6566 = vmatprep.subr.bf16.mxu1 %v30709_v50 }
 0x216   : > { %v23681_v27 = vadd.f32 %v23306_v1, %v1817_v11  ;;  %v1819_v18 = vpop.f32.mrb[93].mxu0  ;;  %v20705_v1 = vld [vmem:[%s30700_s1 + $0x800] ss:$16 sps:$4 sm:$0xff]   ;;  %v20726_v11 = vld [vmem:[%s30700_s1 + $0x5ac] ss:$16 sps:$4 sm:$0xff]  }
 0x217   : > { %3459 = vmatmul.mubr.bf16.gmra.mrb[84].mxu1 %v20698_v5  ;;  %v1820_v30 = vpop.f32.mrb[94].mxu0  ;;  %v20729_v18 = vld [vmem:[%s30700_s1 + $0x884] ss:$16 sps:$4 sm:$0xff]  }
 0x218   : > { %31087 = vst [vmem:[#allocation17_spill] sm:$0xff] %v23681_v27  ;;  %v23684_v33 = vadd.f32 %v23312_v4, %v1820_v30  ;;  %v1822_v40 = vpop.f32.mrb[95].mxu0  ;;  %17624 = vmatprep.mubr.msk.bf16.mxu1 %vm1498_vm0, %v20702_v58  ;;  %v23768_v58 = vld [vmem:[%s22624_s17 + $0xa0] sm:$0xff]  }
 0x21a   : > { %2065 = vmatmul.mubr.bf16.gmra.mrb[72].mxu0 %v20701_v55 }
 0x21b   : > { %4707 = vmatprep.mubr.bf16.mxu0 %v20707_v14 }
 0x21d   : > { %v1825_v4 = vpop.f32.mrb[96].mxu0 }
 0x21e   : > { %v23700_v29 = vadd.f32 %v23333_v12, %v1825_v4  ;;  %v1827_v31 = vpop.f32.mrb[97].mxu0  ;;  %v20713_v12 = vld [vmem:[%s30700_s1 + $0x820] ss:$16 sps:$4 sm:$0xff]  }
 0x21f   : > { %3467 = vmatmul.mubr.bf16.gmra.mrb[88].mxu1 %v20704_v21  ;;  %v1828_v28 = vpop.f32.mrb[98].mxu0  ;;  %v20732_v31 = vld [vmem:[%s30700_s1 + $0x5cc] ss:$16 sps:$4 sm:$0xff]  }
 0x220   : > { %31088 = vst [vmem:[#allocation18_spill] sm:$0xff] %v23700_v29  ;;  %v23703_v46 = vadd.f32 %v23339_v15, %v1828_v28  ;;  %v1830_v54 = vpop.f32.mrb[99].mxu0  ;;  %17625 = vmatprep.mubr.msk.bf16.mxu1 %vm1498_vm0, %v20708_v44  ;;  %v20714_v15 = vld [vmem:[%s30700_s1 + $0x56c] ss:$16 sps:$4 sm:$0xff]  }
 0x221   : > { %v20735_v54 = vld [vmem:[%s30700_s1 + $0x8a4] ss:$16 sps:$4 sm:$0xff]  }
 0x222   : > { %4708 = vmatmul.mubr.bf16.vlgmr.msra.gmra.mrb[128].mxu0 %v20705_v1  ;;  %v23785_v1 = vld [vmem:[%s22624_s17 + $0xa8] sm:$0xff]  }
 0x223   : > { %4715 = vmatprep.mubr.bf16.mxu0 %v20711_v24  ;;  %4965 = vmatpush1.bf16.msra.mxu0 %v23710_v2  ;;  %v23797_v24 = vld [vmem:[%s22624_s17 + $0xb0] sm:$0xff]  }
 0x224   : > { %4966 = vmatprep.subr.bf16.mxu0 %v30709_v50 }
 0x225   : > { %v1833_v36 = vpop.f32.mrb[100].mxu0 }
 0x226   : > { %v23724_v39 = vadd.f32 %v23360_v22, %v1833_v36  ;;  %v1835_v42 = vpop.f32.mrb[101].mxu0  ;;  %v20716_v22 = vld [vmem:[%s30700_s1 + $0x568] ss:$16 sps:$4 sm:$0xff]  }
 0x227   : > { %3475 = vmatmul.mubr.bf16.gmra.mrb[92].mxu1 %v20710_v60  ;;  %v1836_v9 = vpop.f32.mrb[102].mxu0  ;;  %4967 = vmatpush1.bf16.msra.mxu0 %v23727_v51  ;;  %v23814_v36 = vld [vmem:[%s22624_s17 + $0xb8] sm:$0xff]  }
 0x228   : > { %31089 = vst [vmem:[#allocation19_spill] sm:$0xff] %v23724_v39  ;;  %v23731_v13 = vadd.f32 %v23366_v25, %v1836_v9  ;;  %v1838_v16 = vpop.f32.mrb[103].mxu0  ;;  %17626 = vmatprep.mubr.msk.bf16.mxu1 %vm1498_vm0, %v20714_v15  ;;  %4968 = vmatprep.subr.bf16.mxu0 %v30709_v50  ;;  %v20719_v25 = vld [vmem:[%s30700_s1 + $0x840] ss:$16 sps:$4 sm:$0xff]  }
 0x229   : > { %v20737_v9 = vld [vmem:[%s30700_s1 + $0x8a0] ss:$16 sps:$4 sm:$0xff]  }
 0x22a   : > { %4716 = vmatmul.mubr.bf16.gmra.mrb[132].mxu0 %v20713_v12 }
 0x22b   : > { %4723 = vmatprep.mubr.bf16.mxu0 %v20717_v37  ;;  %4969 = vmatpush1.bf16.msra.mxu0 %v23739_v52 }
 0x22c   : > { %4970 = vmatprep.subr.bf16.mxu0 %v30709_v50 }
 0x22d   : > { %v1841_v47 = vpop.f32.mrb[104].mxu0 }
 0x22e   : > { %v23753_v61 = vadd.f32 %v23387_v34, %v1841_v47  ;;  %v1843_v3 = vpop.f32.mrb[105].mxu0  ;;  %v20722_v34 = vld [vmem:[%s30700_s1 + $0x588] ss:$16 sps:$4 sm:$0xff]  }
 0x22f   : > { %3483 = vmatmul.mubr.bf16.gmra.mrb[96].mxu1 %v20716_v22  ;;  %v1844_v20 = vpop.f32.mrb[106].mxu0  ;;  %4971 = vmatpush1.bf16.msra.mxu0 %v23756_v26  ;;  %v20741_v22 = vld [vmem:[%s30700_s1 + $0x8c4] ss:$16 sps:$4 sm:$0xff]  }
 0x230   : > { %31090 = vst [vmem:[#allocation20_spill] sm:$0xff] %v23753_v61  ;;  %v23760_v5 = vadd.f32 %v23393_v38, %v1844_v20  ;;  %v1846_v55 = vpop.f32.mrb[107].mxu0  ;;  %17627 = vmatprep.mubr.msk.bf16.mxu1 %vm1498_vm0, %v20720_v45  ;;  %4972 = vmatprep.subr.bf16.mxu0 %v30709_v50  ;;  %v20725_v38 = vld [vmem:[%s30700_s1 + $0x860] ss:$16 sps:$4 sm:$0xff]   ;;  %v20740_v20 = vld [vmem:[%s30700_s1 + $0x5e8] ss:$16 sps:$4 sm:$0xff]  }
 0x231   : > { %v20744_v55 = vld [vmem:[%s30700_s1 + $0x60c] ss:$16 sps:$4 sm:$0xff]  }
 0x232   : > { %4724 = vmatmul.mubr.bf16.gmra.mrb[136].mxu0 %v20719_v25 }
 0x233   : > { %4731 = vmatprep.mubr.bf16.mxu0 %v20723_v59  ;;  %4973 = vmatpush1.bf16.msra.mxu0 %v23768_v58 }
 0x234   : > { %4974 = vmatprep.subr.bf16.mxu0 %v30709_v50 }
 0x235   : > { %v1849_v14 = vpop.f32.mrb[108].mxu0 }
 0x236   : > { %v23782_v30 = vadd.f32 %v23414_v48, %v1849_v14  ;;  %v1851_v40 = vpop.f32.mrb[109].mxu0  ;;  %v20728_v48 = vld [vmem:[%s30700_s1 + $0x5a8] ss:$16 sps:$4 sm:$0xff]  }
 0x237   : > { %3491 = vmatmul.mubr.bf16.gmra.mrb[100].mxu1 %v20722_v34  ;;  %v1852_v21 = vpop.f32.mrb[110].mxu0  ;;  %4975 = vmatpush1.bf16.msra.mxu0 %v23785_v1 }
 0x238   : > { %31091 = vst [vmem:[#allocation21_spill] sm:$0xff] %v23782_v30  ;;  %v23789_v44 = vadd.f32 %v23420_v53, %v1852_v21  ;;  %v1854_v4 = vpop.f32.mrb[111].mxu0  ;;  %17628 = vmatprep.mubr.msk.bf16.mxu1 %vm1498_vm0, %v20726_v11  ;;  %4976 = vmatprep.subr.bf16.mxu0 %v30709_v50  ;;  %v20731_v53 = vld [vmem:[%s30700_s1 + $0x880] ss:$16 sps:$4 sm:$0xff]   ;;  %v20746_v21 = vld [vmem:[%s30700_s1 + $0x608] ss:$16 sps:$4 sm:$0xff]  }
 0x239   : > { %v20750_v4 = vld [vmem:[%s30700_s1 + $0x62c] ss:$16 sps:$4 sm:$0xff]  }
 0x23a   : > { %4732 = vmatmul.mubr.bf16.gmra.mrb[140].mxu0 %v20725_v38 }
 0x23b   : > { %4739 = vmatprep.mubr.bf16.mxu0 %v20729_v18  ;;  %4977 = vmatpush1.bf16.msra.mxu0 %v23797_v24 }
 0x23c   : > { %4978 = vmatprep.subr.bf16.mxu0 %v30709_v50 }
 0x23d   : > { %v1857_v28 = vpop.f32.mrb[112].mxu0 }
 0x23e   : > { %v23811_v60 = vadd.f32 %v23441_v0, %v1857_v28  ;;  %v1859_v12 = vpop.f32.mrb[113].mxu0  ;;  %v20734_v0 = vld [vmem:[%s30700_s1 + $0x5c8] ss:$16 sps:$4 sm:$0xff]  }
 0x23f   : > { %3499 = vmatmul.mubr.bf16.gmra.mrb[104].mxu1 %v20728_v48  ;;  %v1860_v15 = vpop.f32.mrb[114].mxu0  ;;  %4979 = vmatpush1.bf16.msra.mxu0 %v23814_v36 }
 0x240   : > { %31092 = vst [vmem:[#allocation22_spill] sm:$0xff] %v23811_v60  ;;  %v23818_v37 = vadd.f32 %v23447_v6, %v1860_v15  ;;  %v1862_v42 = vpop.f32.mrb[115].mxu0  ;;  %17629 = vmatprep.mubr.msk.bf16.mxu1 %vm1498_vm0, %v20732_v31  ;;  %4980 = vmatprep.subr.bf16.mxu0 %v30709_v50  ;;  %v20738_v6 = vld [vmem:[%s30700_s1 + $0x5ec] ss:$16 sps:$4 sm:$0xff]   ;;  %v20752_v15 = vld [vmem:[%s30700_s1 + $0x628] ss:$16 sps:$4 sm:$0xff]  }
 0x241   : > { %v20756_v42 = vld [vmem:[%s30700_s1 + $0x64c] ss:$16 sps:$4 sm:$0xff]  }
 0x242   : > { %4740 = vmatmul.mubr.bf16.gmra.mrb[144].mxu0 %v20731_v53 }
 0x243   : > { %4747 = vmatprep.mubr.bf16.mxu0 %v20735_v54  ;;  %4981 = vmatpush1.bf16.msra.mxu0 %v22713_v7 }
 0x244   : > { %7879 = vmatprep.subr.bf16.mxu0 %v30709_v50 }
 0x245   : > { %v1865_v16 = vpop.f32.mrb[116].mxu0 }
 0x246   : > { %v23837_v25 = vadd.f32 %v23468_v19, %v1865_v16  ;;  %v1867_v45 = vpop.f32.mrb[117].mxu0  ;;  %v20743_v19 = vld [vmem:[%s30700_s1 + $0x8c0] ss:$16 sps:$4 sm:$0xff]  }
 0x247   : > { %3507 = vmatmul.mubr.bf16.gmra.mrb[108].mxu1 %v20734_v0  ;;  %v1868_v47 = vpop.f32.mrb[118].mxu0  ;;  %v20761_v45 = vld [vmem:[%s30700_s1 + $0x920] ss:$16 sps:$4 sm:$0xff]  }
 0x248   : > { %31093 = vst [vmem:[#allocation23_spill] sm:$0xff] %v23837_v25  ;;  %v23840_v59 = vadd.f32 %v23474_v23, %v1868_v47  ;;  %v1870_v3 = vpop.f32.mrb[119].mxu0  ;;  %17630 = vmatprep.mubr.msk.bf16.mxu1 %vm1498_vm0, %v20738_v6  ;;  %v20747_v23 = vld [vmem:[%s30700_s1 + $0x8e4] ss:$16 sps:$4 sm:$0xff]   ;;  %v20762_v47 = vld [vmem:[%s30700_s1 + $0x66c] ss:$16 sps:$4 sm:$0xff]  }
 0x24a   : > { %4748 = vmatmul.mubr.bf16.gmra.mrb[148].mxu0 %v20737_v9 }
 0x24b   : > { %4755 = vmatprep.mubr.bf16.mxu0 %v20741_v22  ;;  %v20758_v22 = vld [vmem:[%s30700_s1 + $0x648] ss:$16 sps:$4 sm:$0xff]  }
 0x24d   : > { %v1873_v34 = vpop.f32.mrb[120].mxu0 }
 0x24e   : > { %v23856_v38 = vadd.f32 %v23490_v35, %v1873_v34  ;;  %v1875_v11 = vpop.f32.mrb[121].mxu0  ;;  %v20749_v35 = vld [vmem:[%s30700_s1 + $0x8e0] ss:$16 sps:$4 sm:$0xff]  }
 0x24f   : > { %3515 = vmatmul.mubr.bf16.gmra.mrb[112].mxu1 %v20740_v20  ;;  %v1876_v14 = vpop.f32.mrb[122].mxu0  ;;  %v20765_v20 = vld [vmem:[%s30700_s1 + $0x944] ss:$16 sps:$4 sm:$0xff]   ;;  %v20768_v11 = vld [vmem:[%s30700_s1 + $0x68c] ss:$16 sps:$4 sm:$0xff]  }
 0x250   : > { %31094 = vst [vmem:[#allocation24_spill] sm:$0xff] %v23856_v38  ;;  %v23859_v18 = vadd.f32 %v23492_v41, %v1876_v14  ;;  %v1878_v40 = vpop.f32.mrb[123].mxu0  ;;  %17631 = vmatprep.mubr.msk.bf16.mxu1 %vm1498_vm0, %v20744_v55  ;;  %v20753_v41 = vld [vmem:[%s30700_s1 + $0x904] ss:$16 sps:$4 sm:$0xff]   ;;  %v21005_v38 = vld [vmem:[%s30700_s1 + $0xa4c] ss:$16 sps:$4 sm:$0xff]  }
 0x252   : > { %4756 = vmatmul.mubr.bf16.gmra.mrb[152].mxu0 %v20743_v19 }
 0x253   : > { %4763 = vmatprep.mubr.bf16.mxu0 %v20747_v23  ;;  %v20764_v23 = vld [vmem:[%s30700_s1 + $0x668] ss:$16 sps:$4 sm:$0xff]  }
 0x255   : > { %v1881_v48 = vpop.f32.mrb[124].mxu0 }
 0x256   : > { %v23875_v53 = vadd.f32 %v23508_v56, %v1881_v48  ;;  %v1883_v31 = vpop.f32.mrb[125].mxu0  ;;  %v20755_v56 = vld [vmem:[%s30700_s1 + $0x900] ss:$16 sps:$4 sm:$0xff]  }
 0x257   : > { %3523 = vmatmul.mubr.bf16.gmra.mrb[116].mxu1 %v20746_v21  ;;  %v1884_v28 = vpop.f32.mrb[126].mxu0  ;;  %v20767_v21 = vld [vmem:[%s30700_s1 + $0x940] ss:$16 sps:$4 sm:$0xff]   ;;  %v20774_v31 = vld [vmem:[%s30700_s1 + $0x6ac] ss:$16 sps:$4 sm:$0xff]  }
 0x258   : > { %31095 = vst [vmem:[#allocation25_spill] sm:$0xff] %v23875_v53  ;;  %v23878_v54 = vadd.f32 %v23510_v62, %v1884_v28  ;;  %v1886_v12 = vpop.f32.mrb[127].mxu0  ;;  %17632 = vmatprep.mubr.msk.bf16.mxu1 %vm1498_vm0, %v20750_v4  ;;  %v20759_v62 = vld [vmem:[%s30700_s1 + $0x924] ss:$16 sps:$4 sm:$0xff]  }
 0x259   : > { %v20771_v4 = vld [vmem:[%s30700_s1 + $0x964] ss:$16 sps:$4 sm:$0xff]  }
 0x25a   : > { %31096 = vst [vmem:[#allocation26_spill] sm:$0xff] %v23878_v54  ;;  %4764 = vmatmul.mubr.bf16.gmra.mrb[156].mxu0 %v20749_v35 }
 0x25b   : > { %4771 = vmatprep.mubr.bf16.mxu0 %v20753_v41  ;;  %v20770_v41 = vld [vmem:[%s30700_s1 + $0x688] ss:$16 sps:$4 sm:$0xff]  }
 0x25d   : > { %v23890_v0 = vpop.f32.mrb[0].mxu0 }
 0x25e   : > { %31097 = vst [vmem:[#allocation27_spill] sm:$0xff] %v23890_v0  ;;  %v1924_v9 = vpop.f32.mrb[1].mxu0 }
 0x25f   : > { %3531 = vmatmul.mubr.bf16.gmra.mrb[120].mxu1 %v20752_v15  ;;  %v23895_v6 = vpop.f32.mrb[2].mxu0  ;;  %v20773_v15 = vld [vmem:[%s30700_s1 + $0x960] ss:$16 sps:$4 sm:$0xff]   ;;  %v20776_v9 = vld [vmem:[%s30700_s1 + $0x6a8] ss:$16 sps:$4 sm:$0xff]  }
 0x260   : > { %31098 = vst [vmem:[#allocation28_spill] sm:$0xff] %v23895_v6  ;;  %v1927_v16 = vpop.f32.mrb[3].mxu0  ;;  %17633 = vmatprep.mubr.msk.bf16.mxu1 %vm1498_vm0, %v20756_v42  ;;  %v20777_v42 = vld [vmem:[%s30700_s1 + $0x984] ss:$16 sps:$4 sm:$0xff]  }
 0x261   : > { %v20780_v16 = vld [vmem:[%s30700_s1 + $0x6cc] ss:$16 sps:$4 sm:$0xff]  }
 0x262   : > { %4772 = vmatmul.mubr.bf16.gmra.mrb[160].mxu0 %v20755_v56 }
 0x263   : > { %4779 = vmatprep.mubr.bf16.mxu0 %v20759_v62 }
 0x265   : > { %v23907_v3 = vpop.f32.mrb[4].mxu0 }
 0x266   : > { %31099 = vst [vmem:[#allocation29_spill] sm:$0xff] %v23907_v3  ;;  %v1932_v19 = vpop.f32.mrb[5].mxu0 }
 0x267   : > { %3539 = vmatmul.mubr.bf16.gmra.mrb[124].mxu1 %v20758_v22  ;;  %v23912_v55 = vpop.f32.mrb[6].mxu0  ;;  %v20783_v19 = vld [vmem:[%s30700_s1 + $0x9a4] ss:$16 sps:$4 sm:$0xff]  }
 0x268   : > { %31100 = vst [vmem:[#allocation30_spill] sm:$0xff] %v23912_v55  ;;  %v1935_v34 = vpop.f32.mrb[7].mxu0  ;;  %17634 = vmatprep.mubr.msk.bf16.mxu1 %vm1498_vm0, %v20762_v47  ;;  %v20779_v47 = vld [vmem:[%s30700_s1 + $0x980] ss:$16 sps:$4 sm:$0xff]  }
 0x26a   : > { %4780 = vmatmul.mubr.bf16.gmra.mrb[164].mxu0 %v20761_v45 }
 0x26b   : > { %4787 = vmatprep.mubr.bf16.mxu0 %v20765_v20 }
 0x26d   : > { %v23921_v14 = vpop.f32.mrb[8].mxu0 }
 0x26e   : > { %31101 = vst [vmem:[#allocation31_spill] sm:$0xff] %v23921_v14  ;;  %v1940_v40 = vpop.f32.mrb[9].mxu0 }
 0x26f   : > { %3547 = vmatmul.mubr.bf16.gmra.mrb[128].mxu1 %v20764_v23  ;;  %v23926_v35 = vpop.f32.mrb[10].mxu0  ;;  %v20782_v23 = vld [vmem:[%s30700_s1 + $0x6c8] ss:$16 sps:$4 sm:$0xff]  }
 0x270   : > { %31102 = vst [vmem:[#allocation32_spill] sm:$0xff] %v23926_v35  ;;  %v1943_v48 = vpop.f32.mrb[11].mxu0  ;;  %17635 = vmatprep.mubr.msk.bf16.mxu1 %vm1498_vm0, %v20768_v11  ;;  %v20786_v11 = vld [vmem:[%s30700_s1 + $0x6ec] ss:$16 sps:$4 sm:$0xff]  }
 0x272   : > { %4788 = vmatmul.mubr.bf16.gmra.mrb[168].mxu0 %v20767_v21 }
 0x273   : > { %4795 = vmatprep.mubr.bf16.mxu0 %v20771_v4  ;;  %v20785_v4 = vld [vmem:[%s30700_s1 + $0x9a0] ss:$16 sps:$4 sm:$0xff]  }
 0x275   : > { %v23938_v28 = vpop.f32.mrb[12].mxu0 }
 0x276   : > { %31103 = vst [vmem:[#allocation33_spill] sm:$0xff] %v23938_v28  ;;  %v1948_v12 = vpop.f32.mrb[13].mxu0 }
 0x277   : > { %3555 = vmatmul.mubr.bf16.gmra.mrb[132].mxu1 %v20770_v41  ;;  %v23943_v56 = vpop.f32.mrb[14].mxu0  ;;  %v20789_v41 = vld [vmem:[%s30700_s1 + $0x9c4] ss:$16 sps:$4 sm:$0xff]   ;;  %v20788_v12 = vld [vmem:[%s30700_s1 + $0x6e8] ss:$16 sps:$4 sm:$0xff]  }
 0x278   : > { %31104 = vst [vmem:[#allocation34_spill] sm:$0xff] %v23943_v56  ;;  %v1951_v62 = vpop.f32.mrb[15].mxu0  ;;  %17636 = vmatprep.mubr.msk.bf16.mxu1 %vm1498_vm0, %v20774_v31 }
 0x27a   : > { %4796 = vmatmul.mubr.bf16.gmra.mrb[172].mxu0 %v20773_v15  ;;  %v20792_v15 = vld [vmem:[%s30700_s1 + $0x70c] ss:$16 sps:$4 sm:$0xff]  }
 0x27b   : > { %4803 = vmatprep.mubr.bf16.mxu0 %v20777_v42 }
 0x27d   : > { %v23955_v22 = vpop.f32.mrb[16].mxu0 }
 0x27e   : > { %31105 = vst [vmem:[#allocation35_spill] sm:$0xff] %v23955_v22  ;;  %v1956_v45 = vpop.f32.mrb[17].mxu0 }
 0x27f   : > { %3563 = vmatmul.mubr.bf16.gmra.mrb[136].mxu1 %v20776_v9  ;;  %v23960_v20 = vpop.f32.mrb[18].mxu0  ;;  %v20791_v9 = vld [vmem:[%s30700_s1 + $0x9c0] ss:$16 sps:$4 sm:$0xff]   ;;  %v20795_v45 = vld [vmem:[%s30700_s1 + $0x9e4] ss:$16 sps:$4 sm:$0xff]  }
 0x280   : > { %31106 = vst [vmem:[#allocation36_spill] sm:$0xff] %v23960_v20  ;;  %v1959_v34 = vpop.f32.mrb[19].mxu0  ;;  %17637 = vmatprep.mubr.msk.bf16.mxu1 %vm1498_vm0, %v20780_v16 }
 0x281   : > { %v20798_v34 = vld [vmem:[%s30700_s1 + $0x72c] ss:$16 sps:$4 sm:$0xff]  }
 0x282   : > { %4804 = vmatmul.mubr.bf16.gmra.mrb[176].mxu0 %v20779_v47 }
 0x283   : > { %4811 = vmatprep.mubr.bf16.mxu0 %v20783_v19  ;;  %v20794_v19 = vld [vmem:[%s30700_s1 + $0x708] ss:$16 sps:$4 sm:$0xff]  }
 0x285   : > { %v23972_v40 = vpop.f32.mrb[20].mxu0 }
 0x286   : > { %v1964_v21 = vpop.f32.mrb[21].mxu0 }
 0x287   : > { %3571 = vmatmul.mubr.bf16.gmra.mrb[140].mxu1 %v20782_v23  ;;  %v23977_v48 = vpop.f32.mrb[22].mxu0  ;;  %v20797_v21 = vld [vmem:[%s30700_s1 + $0x9e0] ss:$16 sps:$4 sm:$0xff]  }
 0x288   : > { %31107 = vst [vmem:[#allocation37_spill] sm:$0xff] %v23977_v48  ;;  %v1967_v31 = vpop.f32.mrb[23].mxu0  ;;  %17638 = vmatprep.mubr.msk.bf16.mxu1 %vm1498_vm0, %v20786_v11 }
 0x28a   : > { %4812 = vmatmul.mubr.bf16.gmra.mrb[180].mxu0 %v20785_v4 }
 0x28b   : > { %4819 = vmatprep.mubr.bf16.mxu0 %v20789_v41  ;;  %v20801_v41 = vld [vmem:[%s30700_s1 + $0xa04] ss:$16 sps:$4 sm:$0xff]  }
 0x28d   : > { %v23989_v42 = vpop.f32.mrb[24].mxu0 }
 0x28e   : > { %v1972_v62 = vpop.f32.mrb[25].mxu0 }
 0x28f   : > { %3579 = vmatmul.mubr.bf16.gmra.mrb[144].mxu1 %v20788_v12  ;;  %v23994_v16 = vpop.f32.mrb[26].mxu0  ;;  %v20800_v12 = vld [vmem:[%s30700_s1 + $0x728] ss:$16 sps:$4 sm:$0xff]  }
 0x290   : > { %v1975_v47 = vpop.f32.mrb[27].mxu0  ;;  %17639 = vmatprep.mubr.msk.bf16.mxu1 %vm1498_vm0, %v20792_v15  ;;  %v20804_v15 = vld [vmem:[%s30700_s1 + $0x74c] ss:$16 sps:$4 sm:$0xff]  }
 0x292   : > { %4820 = vmatmul.mubr.bf16.gmra.mrb[184].mxu0 %v20791_v9 }
 0x293   : > { %4827 = vmatprep.mubr.bf16.mxu0 %v20795_v45  ;;  %v20803_v45 = vld [vmem:[%s30700_s1 + $0xa00] ss:$16 sps:$4 sm:$0xff]  }
 0x295   : > { %v24006_v23 = vpop.f32.mrb[28].mxu0 }
 0x296   : > { %v1980_v11 = vpop.f32.mrb[29].mxu0 }
 0x297   : > { %3587 = vmatmul.mubr.bf16.gmra.mrb[148].mxu1 %v20794_v19  ;;  %v24011_v4 = vpop.f32.mrb[30].mxu0  ;;  %v20807_v19 = vld [vmem:[%s30700_s1 + $0xa24] ss:$16 sps:$4 sm:$0xff]   ;;  %v20806_v11 = vld [vmem:[%s30700_s1 + $0x748] ss:$16 sps:$4 sm:$0xff]  }
 0x298   : > { %v1983_v31 = vpop.f32.mrb[31].mxu0  ;;  %17640 = vmatprep.mubr.msk.bf16.mxu1 %vm1498_vm0, %v20798_v34 }
 0x29a   : > { %4828 = vmatmul.mubr.bf16.gmra.mrb[188].mxu0 %v20797_v21  ;;  %v20810_v21 = vld [vmem:[%s30700_s1 + $0x76c] ss:$16 sps:$4 sm:$0xff]  }
 0x29b   : > { %4835 = vmatprep.mubr.bf16.mxu0 %v20801_v41 }
 0x29d   : > { %v24023_v62 = vpop.f32.mrb[32].mxu0 }
 0x29e   : > { %v1988_v9 = vpop.f32.mrb[33].mxu0 }
 0x29f   : > { %3595 = vmatmul.mubr.bf16.gmra.mrb[152].mxu1 %v20800_v12  ;;  %v24028_v47 = vpop.f32.mrb[34].mxu0  ;;  %v20809_v12 = vld [vmem:[%s30700_s1 + $0xa20] ss:$16 sps:$4 sm:$0xff]  }
 0x2a0   : > { %v1991_v34 = vpop.f32.mrb[35].mxu0  ;;  %17641 = vmatprep.mubr.msk.bf16.mxu1 %vm1498_vm0, %v20804_v15  ;;  %v20813_v15 = vld [vmem:[%s30700_s1 + $0xa44] ss:$16 sps:$4 sm:$0xff]  }
 0x2a2   : > { %4836 = vmatmul.mubr.bf16.gmra.mrb[192].mxu0 %v20803_v45 }
 0x2a3   : > { %4843 = vmatprep.mubr.bf16.mxu0 %v20807_v19 }
 0x2a5   : > { %v24040_v41 = vpop.f32.mrb[36].mxu0 }
 0x2a6   : > { %v1996_v31 = vpop.f32.mrb[37].mxu0 }
 0x2a7   : > { %3603 = vmatmul.mubr.bf16.gmra.mrb[156].mxu1 %v20806_v11  ;;  %v24045_v9 = vpop.f32.mrb[38].mxu0  ;;  %v20812_v11 = vld [vmem:[%s30700_s1 + $0x768] ss:$16 sps:$4 sm:$0xff]  }
 0x2a8   : > { %v1999_v45 = vpop.f32.mrb[39].mxu0  ;;  %17642 = vmatprep.mubr.msk.bf16.mxu1 %vm1498_vm0, %v20810_v21 }
 0x2a9   : > { %v20816_v45 = vld [vmem:[%s30700_s1 + $0x78c] ss:$16 sps:$4 sm:$0xff]  }
 0x2aa   : > { %v24051_v19 = vpop.f32.mrb[52].mxu1  ;;  %4844 = vmatmul.mubr.bf16.gmra.mrb[196].mxu0 %v20809_v12 }
 0x2ab   : > { %31108 = vst [vmem:[#allocation38_spill] sm:$0xff] %v24051_v19  ;;  %v3398_v31 = vpop.f32.mrb[53].mxu1  ;;  %4851 = vmatprep.mubr.bf16.mxu0 %v20813_v15  ;;  %v20819_v15 = vld [vmem:[%s30700_s1 + $0xa64] ss:$16 sps:$4 sm:$0xff]  }
 0x2ac   : > { %v24058_v50 = vpop.f32.mrb[54].mxu1  ;;  %v20815_v31 = vld [vmem:[%s30700_s1 + $0xa40] ss:$16 sps:$4 sm:$0xff]  }
 0x2ad   : > { %31109 = vst [vmem:[#allocation39_spill] sm:$0xff] %v24058_v50  ;;  %v24065_v54 = vpop.f32.mrb[40].mxu0  ;;  %v3401_v12 = vpop.f32.mrb[55].mxu1 }
 0x2ae   : > { %v2004_v53 = vpop.f32.mrb[41].mxu0 }
 0x2af   : > { %3611 = vmatmul.mubr.bf16.gmra.mrb[160].mxu1 %v20812_v11  ;;  %v24070_v34 = vpop.f32.mrb[42].mxu0  ;;  %v20818_v11 = vld [vmem:[%s30700_s1 + $0x788] ss:$16 sps:$4 sm:$0xff]  }
 0x2b0   : > { %v2007_v19 = vpop.f32.mrb[43].mxu0  ;;  %17643 = vmatprep.mubr.msk.bf16.mxu1 %vm1498_vm0, %v20816_v45 }
 0x2b1   : > { %v20822_v19 = vld [vmem:[%s30700_s1 + $0x7ac] ss:$16 sps:$4 sm:$0xff]  }
 0x2b2   : > { %v24076_v0 = vpop.f32.mrb[56].mxu1  ;;  %4852 = vmatmul.mubr.bf16.gmra.mrb[200].mxu0 %v20815_v31 }
 0x2b3   : > { %31110 = vst [vmem:[#allocation40_spill] sm:$0xff] %v24076_v0  ;;  %v3406_v12 = vpop.f32.mrb[57].mxu1  ;;  %4859 = vmatprep.mubr.bf16.mxu0 %v20819_v15  ;;  %v20825_v15 = vld [vmem:[%s30700_s1 + $0xa84] ss:$16 sps:$4 sm:$0xff]  }
 0x2b4   : > { %v24083_v21 = vpop.f32.mrb[58].mxu1  ;;  %v20821_v12 = vld [vmem:[%s30700_s1 + $0xa60] ss:$16 sps:$4 sm:$0xff]  }
 0x2b5   : > { %31111 = vst [vmem:[#allocation41_spill] sm:$0xff] %v24083_v21  ;;  %v24090_v50 = vpop.f32.mrb[44].mxu0  ;;  %v3409_v31 = vpop.f32.mrb[59].mxu1 }
 0x2b6   : > { %v2012_v6 = vpop.f32.mrb[45].mxu0 }
 0x2b7   : > { %3619 = vmatmul.mubr.bf16.gmra.mrb[164].mxu1 %v20818_v11  ;;  %v24095_v53 = vpop.f32.mrb[46].mxu0  ;;  %v20824_v11 = vld [vmem:[%s30700_s1 + $0x7a8] ss:$16 sps:$4 sm:$0xff]  }
 0x2b8   : > { %v2015_v0 = vpop.f32.mrb[47].mxu0  ;;  %17644 = vmatprep.mubr.msk.bf16.mxu1 %vm1498_vm0, %v20822_v19 }
 0x2b9   : > { %v20828_v0 = vld [vmem:[%s30700_s1 + $0x7cc] ss:$16 sps:$4 sm:$0xff]  }
 0x2ba   : > { %v24101_v3 = vpop.f32.mrb[60].mxu1  ;;  %4860 = vmatmul.mubr.bf16.gmra.mrb[204].mxu0 %v20821_v12 }
 0x2bb   : > { %31112 = vst [vmem:[#allocation42_spill] sm:$0xff] %v24101_v3  ;;  %v3414_v31 = vpop.f32.mrb[61].mxu1  ;;  %4867 = vmatprep.mubr.bf16.mxu0 %v20825_v15  ;;  %v20831_v15 = vld [vmem:[%s30700_s1 + $0xaa4] ss:$16 sps:$4 sm:$0xff]  }
 0x2bc   : > { %v24108_v45 = vpop.f32.mrb[62].mxu1  ;;  %v20827_v31 = vld [vmem:[%s30700_s1 + $0xa80] ss:$16 sps:$4 sm:$0xff]  }
 0x2bd   : > { %31113 = vst [vmem:[#allocation43_spill] sm:$0xff] %v24108_v45  ;;  %v24115_v21 = vpop.f32.mrb[48].mxu0  ;;  %v3417_v12 = vpop.f32.mrb[63].mxu1 }
 0x2be   : > { %v2020_v55 = vpop.f32.mrb[49].mxu0 }
 0x2bf   : > { %3627 = vmatmul.mubr.bf16.gmra.mrb[168].mxu1 %v20824_v11  ;;  %v24120_v6 = vpop.f32.mrb[50].mxu0  ;;  %v20830_v11 = vld [vmem:[%s30700_s1 + $0x7c8] ss:$16 sps:$4 sm:$0xff]  }
 0x2c0   : > { %v2023_v3 = vpop.f32.mrb[51].mxu0  ;;  %17645 = vmatprep.mubr.msk.bf16.mxu1 %vm1498_vm0, %v20828_v0 }
 0x2c1   : > { %v20834_v3 = vld [vmem:[%s30700_s1 + $0x7ec] ss:$16 sps:$4 sm:$0xff]  }
 0x2c2   : > { %v24126_v14 = vpop.f32.mrb[64].mxu1  ;;  %4868 = vmatmul.mubr.bf16.gmra.mrb[208].mxu0 %v20827_v31 }
 0x2c3   : > { %31114 = vst [vmem:[#allocation44_spill] sm:$0xff] %v24126_v14  ;;  %v3422_v12 = vpop.f32.mrb[65].mxu1  ;;  %4875 = vmatprep.mubr.bf16.mxu0 %v20831_v15  ;;  %v20837_v15 = vld [vmem:[%s30700_s1 + $0xac4] ss:$16 sps:$4 sm:$0xff]  }
 0x2c4   : > { %v24133_v19 = vpop.f32.mrb[66].mxu1  ;;  %v20833_v12 = vld [vmem:[%s30700_s1 + $0xaa0] ss:$16 sps:$4 sm:$0xff]  }
 0x2c5   : > { %31115 = vst [vmem:[#allocation45_spill] sm:$0xff] %v24133_v19  ;;  %v24140_v45 = vpop.f32.mrb[52].mxu0  ;;  %v3425_v31 = vpop.f32.mrb[67].mxu1 }
 0x2c6   : > { %v2028_v35 = vpop.f32.mrb[53].mxu0 }
 0x2c7   : > { %3635 = vmatmul.mubr.bf16.gmra.mrb[172].mxu1 %v20830_v11  ;;  %v24145_v55 = vpop.f32.mrb[54].mxu0  ;;  %v20836_v11 = vld [vmem:[%s30700_s1 + $0x7e8] ss:$16 sps:$4 sm:$0xff]  }
 0x2c8   : > { %v2031_v14 = vpop.f32.mrb[55].mxu0  ;;  %17646 = vmatprep.mubr.msk.bf16.mxu1 %vm1498_vm0, %v20834_v3  ;;  %v20840_v3 = vld [vmem:[%s30700_s1 + $0xc00] ss:$16 sps:$4 sm:$0xff]  }
 0x2c9   : > { %v20842_v14 = vld [vmem:[%s30700_s1 + $0xc04] ss:$16 sps:$4 sm:$0xff]  }
 0x2ca   : > { %v24151_v28 = vpop.f32.mrb[68].mxu1  ;;  %4876 = vmatmul.mubr.bf16.gmra.mrb[212].mxu0 %v20833_v12 }
 0x2cb   : > { %31116 = vst [vmem:[#allocation46_spill] sm:$0xff] %v24151_v28  ;;  %v3430_v31 = vpop.f32.mrb[69].mxu1  ;;  %4883 = vmatprep.mubr.bf16.mxu0 %v20837_v15  ;;  %v20843_v15 = vld [vmem:[%s30700_s1 + $0xae4] ss:$16 sps:$4 sm:$0xff]  }
 0x2cc   : > { %v24158_v0 = vpop.f32.mrb[70].mxu1  ;;  %v20839_v31 = vld [vmem:[%s30700_s1 + $0xac0] ss:$16 sps:$4 sm:$0xff]  }
 0x2cd   : > { %31117 = vst [vmem:[#allocation47_spill] sm:$0xff] %v24158_v0  ;;  %v24165_v19 = vpop.f32.mrb[56].mxu0  ;;  %v3433_v12 = vpop.f32.mrb[71].mxu1  ;;  %v20846_v0 = vld [vmem:[%s30700_s1 + $0xc24] ss:$16 sps:$4 sm:$0xff]  }
 0x2ce   : > { %31118 = vst [vmem:[#allocation48_spill] sm:$0xff] %v24165_v19  ;;  %v2036_v56 = vpop.f32.mrb[57].mxu0 }
 0x2cf   : > { %3643 = vmatmul.mubr.bf16.gmra.mrb[176].mxu1 %v20836_v11  ;;  %v24170_v35 = vpop.f32.mrb[58].mxu0 }
 0x2d0   : > { %v2039_v28 = vpop.f32.mrb[59].mxu0  ;;  %6309 = vmatprep.mubr.bf16.mxu1 %v20842_v14 }
 0x2d1   : > { %v31123_v28 = vmov 0  }
 0x2d2   : > { %v24175_v22 = vpop.f32.mrb[72].mxu1  ;;  %4884 = vmatmul.mubr.bf16.gmra.mrb[216].mxu0 %v20839_v31 }
 0x2d3   : > { %31119 = vst [vmem:[#allocation49_spill] sm:$0xff] %v24175_v22  ;;  %v3438_v56 = vpop.f32.mrb[73].mxu1  ;;  %4891 = vmatprep.mubr.bf16.mxu0 %v20843_v15  ;;  %v20849_v15 = vld [vmem:[%s30700_s1 + $0xb04] ss:$16 sps:$4 sm:$0xff]  }
 0x2d4   : > { %v24182_v11 = vpop.f32.mrb[74].mxu1  ;;  %v20845_v56 = vld [vmem:[%s30700_s1 + $0xae0] ss:$16 sps:$4 sm:$0xff]  }
 0x2d5   : > { %31120 = vst [vmem:[#allocation50_spill] sm:$0xff] %v24182_v11  ;;  %v24189_v14 = vpop.f32.mrb[60].mxu0  ;;  %v3441_v31 = vpop.f32.mrb[75].mxu1 }
 0x2d6   : > { %31121 = vst [vmem:[#allocation51_spill] sm:$0xff] %v24189_v14  ;;  %v2044_v20 = vpop.f32.mrb[61].mxu0 }
 0x2d7   : > { %6310 = vmatmul.mubr.bf16.vlgmr.msra.gmra.mrb[180].mxu1 %v20840_v3  ;;  %v24194_v12 = vpop.f32.mrb[62].mxu0  ;;  %v20848_v3 = vld [vmem:[%s30700_s1 + $0xc20] ss:$16 sps:$4 sm:$0xff]  }
 0x2d8   : > { %31122 = vst [vmem:[#allocation52_spill] sm:$0xff] %v24194_v12  ;;  %v2047_v22 = vpop.f32.mrb[63].mxu0  ;;  %6317 = vmatprep.mubr.bf16.mxu1 %v20846_v0  ;;  %6567 = vmatpush1.bf16.msra.mxu1 %v23710_v2  ;;  %v20852_v2 = vld [vmem:[%s30700_s1 + $0xc44] ss:$16 sps:$4 sm:$0xff]  }
 0x2d9   : > { %6568 = vmatprep.subr.bf16.mxu1 %v31123_v28 }
 0x2da   : > { %v24201_v11 = vpop.f32.mrb[76].mxu1  ;;  %4892 = vmatmul.mubr.bf16.gmra.mrb[220].mxu0 %v20845_v56 }
 0x2db   : > { %31124 = vst [vmem:[#allocation53_spill] sm:$0xff] %v24201_v11  ;;  %v3446_v31 = vpop.f32.mrb[77].mxu1  ;;  %4899 = vmatprep.mubr.bf16.mxu0 %v20849_v15  ;;  %v20851_v15 = vld [vmem:[%s30700_s1 + $0xb00] ss:$16 sps:$4 sm:$0xff]  }
 0x2dc   : > { %v24208_v48 = vpop.f32.mrb[78].mxu1  ;;  %6569 = vmatpush1.bf16.msra.mxu1 %v23727_v51  ;;  %v20855_v51 = vld [vmem:[%s30700_s1 + $0xb24] ss:$16 sps:$4 sm:$0xff]  }
 0x2dd   : > { %31125 = vst [vmem:[#allocation54_spill] sm:$0xff] %v24208_v48  ;;  %v24216_v0 = vpop.f32.mrb[64].mxu0  ;;  %v3449_v56 = vpop.f32.mrb[79].mxu1  ;;  %6570 = vmatprep.subr.bf16.mxu1 %v31123_v28 }
 0x2de   : > { %31126 = vst [vmem:[#allocation55_spill] sm:$0xff] %v24216_v0  ;;  %v2052_v31 = vpop.f32.mrb[65].mxu0  ;;  %v24468_v0 = vld [vmem:[%s22624_s17 + $0x18] sm:$0xff]  }
 0x2df   : > { %6318 = vmatmul.mubr.bf16.gmra.mrb[184].mxu1 %v20848_v3  ;;  %v24222_v20 = vpop.f32.mrb[66].mxu0  ;;  %v20854_v3 = vld [vmem:[%s30700_s1 + $0xc40] ss:$16 sps:$4 sm:$0xff]  }
 0x2e0   : > { %31127 = vst [vmem:[#allocation56_spill] sm:$0xff] %v24222_v20  ;;  %v2055_v11 = vpop.f32.mrb[67].mxu0  ;;  %6325 = vmatprep.mubr.bf16.mxu1 %v20852_v2  ;;  %6571 = vmatpush1.bf16.msra.mxu1 %v23739_v52  ;;  %v20858_v52 = vld [vmem:[%s30700_s1 + $0xc64] ss:$16 sps:$4 sm:$0xff]  }
 0x2e1   : > { %6572 = vmatprep.subr.bf16.mxu1 %v31123_v28 }
 0x2e2   : > { %v24229_v56 = vpop.f32.mrb[80].mxu1  ;;  %4900 = vmatmul.mubr.bf16.gmra.mrb[224].mxu0 %v20851_v15 }
 0x2e3   : > { %31128 = vst [vmem:[#allocation57_spill] sm:$0xff] %v24229_v56  ;;  %v3454_v22 = vpop.f32.mrb[81].mxu1  ;;  %4907 = vmatprep.mubr.bf16.mxu0 %v20855_v51  ;;  %v20857_v51 = vld [vmem:[%s30700_s1 + $0xb20] ss:$16 sps:$4 sm:$0xff]  }
 0x2e4   : > { %v24236_v48 = vpop.f32.mrb[82].mxu1  ;;  %6573 = vmatpush1.bf16.msra.mxu1 %v23756_v26  ;;  %v20861_v26 = vld [vmem:[%s30700_s1 + $0xb44] ss:$16 sps:$4 sm:$0xff]  }
 0x2e5   : > { %31129 = vst [vmem:[#allocation58_spill] sm:$0xff] %v24236_v48  ;;  %v24244_v2 = vpop.f32.mrb[68].mxu0  ;;  %v3457_v15 = vpop.f32.mrb[83].mxu1  ;;  %6574 = vmatprep.subr.bf16.mxu1 %v31123_v28 }
 0x2e6   : > { %31130 = vst [vmem:[#allocation59_spill] sm:$0xff] %v24244_v2  ;;  %v2060_v22 = vpop.f32.mrb[69].mxu0  ;;  %v24499_v2 = vld [vmem:[%s22624_s17 + $0x28] sm:$0xff]  }
 0x2e7   : > { %6326 = vmatmul.mubr.bf16.gmra.mrb[188].mxu1 %v20854_v3  ;;  %v24250_v31 = vpop.f32.mrb[70].mxu0  ;;  %v20860_v3 = vld [vmem:[%s30700_s1 + $0xc60] ss:$16 sps:$4 sm:$0xff]  }
 0x2e8   : > { %31131 = vst [vmem:[#allocation60_spill] sm:$0xff] %v24250_v31  ;;  %v2063_v56 = vpop.f32.mrb[71].mxu0  ;;  %6333 = vmatprep.mubr.bf16.mxu1 %v20858_v52  ;;  %6575 = vmatpush1.bf16.msra.mxu1 %v23768_v58  ;;  %v20864_v58 = vld [vmem:[%s30700_s1 + $0xc84] ss:$16 sps:$4 sm:$0xff]  }
 0x2e9   : > { %6576 = vmatprep.subr.bf16.mxu1 %v31123_v28 }
 0x2ea   : > { %v24257_v15 = vpop.f32.mrb[84].mxu1  ;;  %4908 = vmatmul.mubr.bf16.gmra.mrb[228].mxu0 %v20857_v51 }
 0x2eb   : > { %31132 = vst [vmem:[#allocation61_spill] sm:$0xff] %v24257_v15  ;;  %v3462_v11 = vpop.f32.mrb[85].mxu1  ;;  %4915 = vmatprep.mubr.bf16.mxu0 %v20861_v26  ;;  %v20863_v26 = vld [vmem:[%s30700_s1 + $0xb40] ss:$16 sps:$4 sm:$0xff]  }
 0x2ec   : > { %v24264_v48 = vpop.f32.mrb[86].mxu1  ;;  %6577 = vmatpush1.bf16.msra.mxu1 %v23785_v1  ;;  %v20867_v1 = vld [vmem:[%s30700_s1 + $0xb64] ss:$16 sps:$4 sm:$0xff]  }
 0x2ed   : > { %31133 = vst [vmem:[#allocation62_spill] sm:$0xff] %v24264_v48  ;;  %v24272_v52 = vpop.f32.mrb[72].mxu0  ;;  %v3465_v51 = vpop.f32.mrb[87].mxu1  ;;  %6578 = vmatprep.subr.bf16.mxu1 %v31123_v28 }
 0x2ee   : > { %31134 = vst [vmem:[#allocation63_spill] sm:$0xff] %v24272_v52  ;;  %v2068_v11 = vpop.f32.mrb[73].mxu0  ;;  %v24530_v52 = vld [vmem:[%s22624_s17 + $0x38] sm:$0xff]  }
 0x2ef   : > { %6334 = vmatmul.mubr.bf16.gmra.mrb[192].mxu1 %v20860_v3  ;;  %v24278_v22 = vpop.f32.mrb[74].mxu0  ;;  %v20866_v3 = vld [vmem:[%s30700_s1 + $0xc80] ss:$16 sps:$4 sm:$0xff]  }
 0x2f0   : > { %31135 = vst [vmem:[#allocation64_spill] sm:$0xff] %v24278_v22  ;;  %v2071_v15 = vpop.f32.mrb[75].mxu0  ;;  %6341 = vmatprep.mubr.bf16.mxu1 %v20864_v58  ;;  %6579 = vmatpush1.bf16.msra.mxu1 %v23797_v24  ;;  %v20870_v24 = vld [vmem:[%s30700_s1 + $0xca4] ss:$16 sps:$4 sm:$0xff]  }
 0x2f1   : > { %6580 = vmatprep.subr.bf16.mxu1 %v31123_v28 }
 0x2f2   : > { %v24285_v51 = vpop.f32.mrb[88].mxu1  ;;  %4916 = vmatmul.mubr.bf16.gmra.mrb[232].mxu0 %v20863_v26  ;;  %v20873_v26 = vld [vmem:[%s30700_s1 + $0xb84] ss:$16 sps:$4 sm:$0xff]  }
 0x2f3   : > { %v3470_v56 = vpop.f32.mrb[89].mxu1  ;;  %4923 = vmatprep.mubr.bf16.mxu0 %v20867_v1  ;;  %v20903_v1 = vld [vmem:[%s30700_s1 + $0x82c] ss:$16 sps:$4 sm:$0xff]  }
 0x2f4   : > { %v24292_v48 = vpop.f32.mrb[90].mxu1  ;;  %6581 = vmatpush1.bf16.msra.mxu1 %v23814_v36  ;;  %v20869_v56 = vld [vmem:[%s30700_s1 + $0xb60] ss:$16 sps:$4 sm:$0xff]  }
 0x2f5   : > { %v3473_v58 = vpop.f32.mrb[91].mxu1  ;;  %6582 = vmatprep.subr.bf16.mxu1 %v31123_v28 }
 0x2f7   : > { %6342 = vmatmul.mubr.bf16.gmra.mrb[196].mxu1 %v20866_v3  ;;  %v20872_v3 = vld [vmem:[%s30700_s1 + $0xca0] ss:$16 sps:$4 sm:$0xff]  }
 0x2f8   : > { %6349 = vmatprep.mubr.bf16.mxu1 %v20870_v24  ;;  %6583 = vmatpush1.bf16.msra.mxu1 %v22713_v7  ;;  %v20876_v24 = vld [vmem:[%s30700_s1 + $0xcc4] ss:$16 sps:$4 sm:$0xff]  }
 0x2f9   : > { %9481 = vmatprep.subr.bf16.mxu1 %v31123_v28 }
 0x2fa   : > { %v24309_v36 = vpop.f32.mrb[92].mxu1  ;;  %4924 = vmatmul.mubr.bf16.gmra.mrb[236].mxu0 %v20869_v56  ;;  %v20875_v56 = vld [vmem:[%s30700_s1 + $0xb80] ss:$16 sps:$4 sm:$0xff]  }
 0x2fb   : > { %31136 = vst [vmem:[#allocation65_spill] sm:$0xff] %v24309_v36  ;;  %v3478_v58 = vpop.f32.mrb[93].mxu1  ;;  %4931 = vmatprep.mubr.bf16.mxu0 %v20873_v26 }
 0x2fc   : > { %v24316_v15 = vpop.f32.mrb[94].mxu1  ;;  %v20879_v58 = vld [vmem:[%s30700_s1 + $0xba4] ss:$16 sps:$4 sm:$0xff]  }
 0x2fd   : > { %31137 = vst [vmem:[#allocation66_spill] sm:$0xff] %v24316_v15  ;;  %v3481_v7 = vpop.f32.mrb[95].mxu1 }
 0x2fe   : > { %v20878_v7 = vld [vmem:[%s30700_s1 + $0xcc0] ss:$16 sps:$4 sm:$0xff]  }
 0x2ff   : > { %6350 = vmatmul.mubr.bf16.gmra.mrb[200].mxu1 %v20872_v3  ;;  %v20882_v3 = vld [vmem:[%s30700_s1 + $0xce4] ss:$16 sps:$4 sm:$0xff]  }
 0x300   : > { %6357 = vmatprep.mubr.bf16.mxu1 %v20876_v24 }
 0x302   : > { %v24329_v26 = vpop.f32.mrb[96].mxu1  ;;  %4932 = vmatmul.mubr.bf16.gmra.mrb[240].mxu0 %v20875_v56  ;;  %v20881_v56 = vld [vmem:[%s30700_s1 + $0xba0] ss:$16 sps:$4 sm:$0xff]  }
 0x303   : > { %31138 = vst [vmem:[#allocation67_spill] sm:$0xff] %v24329_v26  ;;  %v3486_v36 = vpop.f32.mrb[97].mxu1  ;;  %4939 = vmatprep.mubr.bf16.mxu0 %v20879_v58 }
 0x304   : > { %v24336_v11 = vpop.f32.mrb[98].mxu1  ;;  %v20885_v36 = vld [vmem:[%s30700_s1 + $0xbc4] ss:$16 sps:$4 sm:$0xff]  }
 0x305   : > { %31139 = vst [vmem:[#allocation68_spill] sm:$0xff] %v24336_v11  ;;  %v3489_v15 = vpop.f32.mrb[99].mxu1 }
 0x306   : > { %v20884_v15 = vld [vmem:[%s30700_s1 + $0xce0] ss:$16 sps:$4 sm:$0xff]  }
 0x307   : > { %6358 = vmatmul.mubr.bf16.gmra.mrb[204].mxu1 %v20878_v7  ;;  %v20888_v7 = vld [vmem:[%s30700_s1 + $0xd04] ss:$16 sps:$4 sm:$0xff]  }
 0x308   : > { %6365 = vmatprep.mubr.bf16.mxu1 %v20882_v3 }
 0x30a   : > { %v24349_v58 = vpop.f32.mrb[100].mxu1  ;;  %4940 = vmatmul.mubr.bf16.gmra.mrb[244].mxu0 %v20881_v56  ;;  %v20887_v56 = vld [vmem:[%s30700_s1 + $0xbc0] ss:$16 sps:$4 sm:$0xff]  }
 0x30b   : > { %31140 = vst [vmem:[#allocation69_spill] sm:$0xff] %v24349_v58  ;;  %v3494_v26 = vpop.f32.mrb[101].mxu1  ;;  %4947 = vmatprep.mubr.bf16.mxu0 %v20885_v36 }
 0x30c   : > { %v24356_v24 = vpop.f32.mrb[102].mxu1  ;;  %v20891_v26 = vld [vmem:[%s30700_s1 + $0xbe4] ss:$16 sps:$4 sm:$0xff]  }
 0x30d   : > { %31141 = vst [vmem:[#allocation70_spill] sm:$0xff] %v24356_v24  ;;  %v3497_v11 = vpop.f32.mrb[103].mxu1 }
 0x30e   : > { %v20890_v11 = vld [vmem:[%s30700_s1 + $0xd00] ss:$16 sps:$4 sm:$0xff]  }
 0x30f   : > { %6366 = vmatmul.mubr.bf16.gmra.mrb[208].mxu1 %v20884_v15  ;;  %v20894_v15 = vld [vmem:[%s30700_s1 + $0xd24] ss:$16 sps:$4 sm:$0xff]  }
 0x310   : > { %6373 = vmatprep.mubr.bf16.mxu1 %v20888_v7 }
 0x312   : > { %v24369_v36 = vpop.f32.mrb[104].mxu1  ;;  %4948 = vmatmul.mubr.bf16.gmra.mrb[248].mxu0 %v20887_v56  ;;  %v20893_v56 = vld [vmem:[%s30700_s1 + $0xbe0] ss:$16 sps:$4 sm:$0xff]  }
 0x313   : > { %31142 = vst [vmem:[#allocation71_spill] sm:$0xff] %v24369_v36  ;;  %v3502_v58 = vpop.f32.mrb[105].mxu1  ;;  %4955 = vmatprep.mubr.bf16.mxu0 %v20891_v26 }
 0x314   : > { %v24376_v3 = vpop.f32.mrb[106].mxu1  ;;  %v20899_v58 = vld [vmem:[%s30700_s1 + $0x80c] ss:$16 sps:$4 sm:$0xff]  }
 0x315   : > { %v3505_v24 = vpop.f32.mrb[107].mxu1 }
 0x316   : > { %v20896_v24 = vld [vmem:[%s30700_s1 + $0xd20] ss:$16 sps:$4 sm:$0xff]  }
 0x317   : > { %6374 = vmatmul.mubr.bf16.gmra.mrb[212].mxu1 %v20890_v11 }
 0x318   : > { %6381 = vmatprep.mubr.bf16.mxu1 %v20894_v15  ;;  %v20900_v15 = vld [vmem:[%s30700_s1 + $0xd44] ss:$16 sps:$4 sm:$0xff]  }
 0x31a   : > { %v24389_v26 = vpop.f32.mrb[108].mxu1  ;;  %4956 = vmatmul.mubr.bf16.gmra.mrb[252].mxu0 %v20893_v56 }
 0x31b   : > { %31143 = vst [vmem:[#allocation72_spill] sm:$0xff] %v24389_v26  ;;  %v3510_v36 = vpop.f32.mrb[109].mxu1  ;;  %17775 = vmatprep.mubr.msk.bf16.mxu0 %vm1498_vm0, %v20899_v58  ;;  %v20909_v26 = vld [vmem:[%s30700_s1 + $0x84c] ss:$16 sps:$4 sm:$0xff]  }
 0x31c   : > { %v24397_v11 = vpop.f32.mrb[110].mxu1  ;;  %v20897_v36 = vld [vmem:[%s30700_s1 + $0x808] ss:$16 sps:$4 sm:$0xff]  }
 0x31d   : > { %v3513_v7 = vpop.f32.mrb[111].mxu1 }
 0x31e   : > { %v20902_v7 = vld [vmem:[%s30700_s1 + $0xd40] ss:$16 sps:$4 sm:$0xff]  }
 0x31f   : > { %6382 = vmatmul.mubr.bf16.gmra.mrb[216].mxu1 %v20896_v24  ;;  %v24419_v24 = vld [vmem:[%s22624_s17] sm:$0xff]  }
 0x320   : > { %6389 = vmatprep.mubr.bf16.mxu1 %v20900_v15  ;;  %v20906_v15 = vld [vmem:[%s30700_s1 + $0xd64] ss:$16 sps:$4 sm:$0xff]  }
 0x322   : > { %v24410_v58 = vpop.f32.mrb[112].mxu1  ;;  %4997 = vmatmul.mubr.bf16.vlgmr.msra.gmra.mrb[128].mxu0 %v20897_v36 }
 0x323   : > { %31144 = vst [vmem:[#allocation73_spill] sm:$0xff] %v24410_v58  ;;  %v3518_v19 = vpop.f32.mrb[113].mxu1  ;;  %17776 = vmatprep.mubr.msk.bf16.mxu0 %vm1498_vm0, %v20903_v1  ;;  %7880 = vmatpush1.bf16.msra.mxu0 %v24419_v24  ;;  %v20905_v1 = vld [vmem:[%s30700_s1 + $0x828] ss:$16 sps:$4 sm:$0xff]  }
 0x324   : > { %v24422_v56 = vpop.f32.mrb[114].mxu1  ;;  %7881 = vmatprep.subr.bf16.mxu0 %v31123_v28  ;;  %v24437_v58 = vld [vmem:[%s22624_s17 + $0x8] sm:$0xff]  }
 0x325   : > { %31145 = vst [vmem:[#allocation74_spill] sm:$0xff] %v24422_v56  ;;  %v3521_v36 = vpop.f32.mrb[115].mxu1  ;;  %v24450_v56 = vld [vmem:[%s22624_s17 + $0x10] sm:$0xff]  }
 0x327   : > { %6390 = vmatmul.mubr.bf16.gmra.mrb[220].mxu1 %v20902_v7  ;;  %7882 = vmatpush1.bf16.msra.mxu0 %v24437_v58  ;;  %v20908_v7 = vld [vmem:[%s30700_s1 + $0xd60] ss:$16 sps:$4 sm:$0xff]  }
 0x328   : > { %6397 = vmatprep.mubr.bf16.mxu1 %v20906_v15  ;;  %7883 = vmatprep.subr.bf16.mxu0 %v31123_v28 }
 0x32a   : > { %v24441_v14 = vpop.f32.mrb[116].mxu1  ;;  %5005 = vmatmul.mubr.bf16.gmra.mrb[132].mxu0 %v20905_v1  ;;  %v20912_v1 = vld [vmem:[%s30700_s1 + $0xd84] ss:$16 sps:$4 sm:$0xff]  }
 0x32b   : > { %31146 = vst [vmem:[#allocation75_spill] sm:$0xff] %v24441_v14  ;;  %v3526_v19 = vpop.f32.mrb[117].mxu1  ;;  %17777 = vmatprep.mubr.msk.bf16.mxu0 %vm1498_vm0, %v20909_v26  ;;  %7884 = vmatpush1.bf16.msra.mxu0 %v24450_v56  ;;  %v20911_v26 = vld [vmem:[%s30700_s1 + $0x848] ss:$16 sps:$4 sm:$0xff]   ;;  %v20915_v14 = vld [vmem:[%s30700_s1 + $0x86c] ss:$16 sps:$4 sm:$0xff]  }
 0x32c   : > { %v24453_v15 = vpop.f32.mrb[118].mxu1  ;;  %7885 = vmatprep.subr.bf16.mxu0 %v31123_v28 }
 0x32d   : > { %31147 = vst [vmem:[#allocation76_spill] sm:$0xff] %v24453_v15  ;;  %v3529_v36 = vpop.f32.mrb[119].mxu1  ;;  %v24481_v15 = vld [vmem:[%s22624_s17 + $0x20] sm:$0xff]  }
 0x32f   : > { %6398 = vmatmul.mubr.bf16.gmra.mrb[224].mxu1 %v20908_v7  ;;  %7886 = vmatpush1.bf16.msra.mxu0 %v24468_v0  ;;  %v20914_v7 = vld [vmem:[%s30700_s1 + $0xd80] ss:$16 sps:$4 sm:$0xff]  }
 0x330   : > { %6405 = vmatprep.mubr.bf16.mxu1 %v20912_v1  ;;  %7887 = vmatprep.subr.bf16.mxu0 %v31123_v28 }
 0x332   : > { %v24472_v12 = vpop.f32.mrb[120].mxu1  ;;  %5013 = vmatmul.mubr.bf16.gmra.mrb[136].mxu0 %v20911_v26  ;;  %v20918_v26 = vld [vmem:[%s30700_s1 + $0xda4] ss:$16 sps:$4 sm:$0xff]  }
 0x333   : > { %31148 = vst [vmem:[#allocation77_spill] sm:$0xff] %v24472_v12  ;;  %v3534_v19 = vpop.f32.mrb[121].mxu1  ;;  %17778 = vmatprep.mubr.msk.bf16.mxu0 %vm1498_vm0, %v20915_v14  ;;  %7888 = vmatpush1.bf16.msra.mxu0 %v24481_v15  ;;  %v20917_v14 = vld [vmem:[%s30700_s1 + $0x868] ss:$16 sps:$4 sm:$0xff]   ;;  %v20921_v12 = vld [vmem:[%s30700_s1 + $0x88c] ss:$16 sps:$4 sm:$0xff]  }
 0x334   : > { %v24484_v1 = vpop.f32.mrb[122].mxu1  ;;  %7889 = vmatprep.subr.bf16.mxu0 %v31123_v28 }
 0x335   : > { %31149 = vst [vmem:[#allocation78_spill] sm:$0xff] %v24484_v1  ;;  %v3537_v36 = vpop.f32.mrb[123].mxu1  ;;  %v24512_v1 = vld [vmem:[%s22624_s17 + $0x30] sm:$0xff]  }
 0x337   : > { %6406 = vmatmul.mubr.bf16.gmra.mrb[228].mxu1 %v20914_v7  ;;  %7890 = vmatpush1.bf16.msra.mxu0 %v24499_v2  ;;  %v20920_v7 = vld [vmem:[%s30700_s1 + $0xda0] ss:$16 sps:$4 sm:$0xff]  }
 0x338   : > { %6413 = vmatprep.mubr.bf16.mxu1 %v20918_v26  ;;  %7891 = vmatprep.subr.bf16.mxu0 %v31123_v28 }
 0x33a   : > { %v24503_v20 = vpop.f32.mrb[124].mxu1  ;;  %5021 = vmatmul.mubr.bf16.gmra.mrb[140].mxu0 %v20917_v14  ;;  %v20924_v14 = vld [vmem:[%s30700_s1 + $0xdc4] ss:$16 sps:$4 sm:$0xff]  }
 0x33b   : > { %31150 = vst [vmem:[#allocation79_spill] sm:$0xff] %v24503_v20  ;;  %v3542_v19 = vpop.f32.mrb[125].mxu1  ;;  %17779 = vmatprep.mubr.msk.bf16.mxu0 %vm1498_vm0, %v20921_v12  ;;  %7892 = vmatpush1.bf16.msra.mxu0 %v24512_v1  ;;  %v20923_v12 = vld [vmem:[%s30700_s1 + $0x888] ss:$16 sps:$4 sm:$0xff]   ;;  %v20927_v20 = vld [vmem:[%s30700_s1 + $0x8ac] ss:$16 sps:$4 sm:$0xff]  }
 0x33c   : > { %v24515_v26 = vpop.f32.mrb[126].mxu1  ;;  %7893 = vmatprep.subr.bf16.mxu0 %v31123_v28 }
 0x33d   : > { %31151 = vst [vmem:[#allocation80_spill] sm:$0xff] %v24515_v26  ;;  %v3545_v36 = vpop.f32.mrb[127].mxu1  ;;  %v24543_v26 = vld [vmem:[%s22624_s17 + $0x40] sm:$0xff]  }
 0x33f   : > { %6414 = vmatmul.mubr.bf16.gmra.mrb[232].mxu1 %v20920_v7  ;;  %7894 = vmatpush1.bf16.msra.mxu0 %v24530_v52  ;;  %v20926_v7 = vld [vmem:[%s30700_s1 + $0xdc0] ss:$16 sps:$4 sm:$0xff]  }
 0x340   : > { %6421 = vmatprep.mubr.bf16.mxu1 %v20924_v14  ;;  %7895 = vmatprep.subr.bf16.mxu0 %v31123_v28 }
 0x342   : > { %v24534_v31 = vpop.f32.mrb[128].mxu1  ;;  %5029 = vmatmul.mubr.bf16.gmra.mrb[144].mxu0 %v20923_v12  ;;  %v20930_v12 = vld [vmem:[%s30700_s1 + $0xde4] ss:$16 sps:$4 sm:$0xff]  }
 0x343   : > { %31152 = vst [vmem:[#allocation81_spill] sm:$0xff] %v24534_v31  ;;  %v3550_v19 = vpop.f32.mrb[129].mxu1  ;;  %17780 = vmatprep.mubr.msk.bf16.mxu0 %vm1498_vm0, %v20927_v20  ;;  %7896 = vmatpush1.bf16.msra.mxu0 %v24543_v26  ;;  %v20929_v20 = vld [vmem:[%s30700_s1 + $0x8a8] ss:$16 sps:$4 sm:$0xff]   ;;  %v20933_v31 = vld [vmem:[%s30700_s1 + $0x8cc] ss:$16 sps:$4 sm:$0xff]  }
 0x344   : > { %v24546_v14 = vpop.f32.mrb[130].mxu1  ;;  %7897 = vmatprep.subr.bf16.mxu0 %v31123_v28 }
 0x345   : > { %31153 = vst [vmem:[#allocation82_spill] sm:$0xff] %v24546_v14  ;;  %v3553_v36 = vpop.f32.mrb[131].mxu1  ;;  %v24574_v14 = vld [vmem:[%s22624_s17 + $0x50] sm:$0xff]  }
 0x347   : > { %6422 = vmatmul.mubr.bf16.gmra.mrb[236].mxu1 %v20926_v7  ;;  %7898 = vmatpush1.bf16.msra.mxu0 %v24561_v32  ;;  %v20932_v7 = vld [vmem:[%s30700_s1 + $0xde0] ss:$16 sps:$4 sm:$0xff]  }
 0x348   : > { %6429 = vmatprep.mubr.bf16.mxu1 %v20930_v12  ;;  %7899 = vmatprep.subr.bf16.mxu0 %v31123_v28 }
 0x34a   : > { %v24565_v22 = vpop.f32.mrb[132].mxu1  ;;  %5037 = vmatmul.mubr.bf16.gmra.mrb[148].mxu0 %v20929_v20  ;;  %v20936_v20 = vld [vmem:[%s30700_s1 + $0xe04] ss:$16 sps:$4 sm:$0xff]  }
 0x34b   : > { %31154 = vst [vmem:[#allocation83_spill] sm:$0xff] %v24565_v22  ;;  %v3558_v19 = vpop.f32.mrb[133].mxu1  ;;  %17781 = vmatprep.mubr.msk.bf16.mxu0 %vm1498_vm0, %v20933_v31  ;;  %7900 = vmatpush1.bf16.msra.mxu0 %v24574_v14  ;;  %v20935_v31 = vld [vmem:[%s30700_s1 + $0x8c8] ss:$16 sps:$4 sm:$0xff]   ;;  %v20939_v22 = vld [vmem:[%s30700_s1 + $0x8ec] ss:$16 sps:$4 sm:$0xff]  }
 0x34c   : > { %v24577_v12 = vpop.f32.mrb[134].mxu1  ;;  %7901 = vmatprep.subr.bf16.mxu0 %v31123_v28 }
 0x34d   : > { %31155 = vst [vmem:[#allocation84_spill] sm:$0xff] %v24577_v12  ;;  %v3561_v36 = vpop.f32.mrb[135].mxu1  ;;  %v24605_v12 = vld [vmem:[%s22624_s17 + $0x60] sm:$0xff]  }
 0x34f   : > { %6430 = vmatmul.mubr.bf16.gmra.mrb[240].mxu1 %v20932_v7  ;;  %7902 = vmatpush1.bf16.msra.mxu0 %v24592_v49  ;;  %v20938_v7 = vld [vmem:[%s30700_s1 + $0xe00] ss:$16 sps:$4 sm:$0xff]  }
 0x350   : > { %6437 = vmatprep.mubr.bf16.mxu1 %v20936_v20  ;;  %7903 = vmatprep.subr.bf16.mxu0 %v31123_v28 }
 0x352   : > { %v24596_v43 = vpop.f32.mrb[136].mxu1  ;;  %5045 = vmatmul.mubr.bf16.gmra.mrb[152].mxu0 %v20935_v31  ;;  %v20942_v31 = vld [vmem:[%s30700_s1 + $0xe24] ss:$16 sps:$4 sm:$0xff]  }
 0x353   : > { %31156 = vst [vmem:[#allocation85_spill] sm:$0xff] %v24596_v43  ;;  %v3566_v19 = vpop.f32.mrb[137].mxu1  ;;  %17782 = vmatprep.mubr.msk.bf16.mxu0 %vm1498_vm0, %v20939_v22  ;;  %7904 = vmatpush1.bf16.msra.mxu0 %v24605_v12  ;;  %v20941_v22 = vld [vmem:[%s30700_s1 + $0x8e8] ss:$16 sps:$4 sm:$0xff]   ;;  %v20945_v43 = vld [vmem:[%s30700_s1 + $0x90c] ss:$16 sps:$4 sm:$0xff]  }
 0x354   : > { %v24608_v20 = vpop.f32.mrb[138].mxu1  ;;  %7905 = vmatprep.subr.bf16.mxu0 %v31123_v28 }
 0x355   : > { %31157 = vst [vmem:[#allocation86_spill] sm:$0xff] %v24608_v20  ;;  %v3569_v36 = vpop.f32.mrb[139].mxu1  ;;  %v24636_v20 = vld [vmem:[%s22624_s17 + $0x70] sm:$0xff]  }
 0x357   : > { %6438 = vmatmul.mubr.bf16.gmra.mrb[244].mxu1 %v20938_v7  ;;  %7906 = vmatpush1.bf16.msra.mxu0 %v24623_v10  ;;  %v20944_v7 = vld [vmem:[%s30700_s1 + $0xe20] ss:$16 sps:$4 sm:$0xff]  }
 0x358   : > { %6445 = vmatprep.mubr.bf16.mxu1 %v20942_v31  ;;  %7907 = vmatprep.subr.bf16.mxu0 %v31123_v28 }
 0x35a   : > { %v24627_v63 = vpop.f32.mrb[140].mxu1  ;;  %5053 = vmatmul.mubr.bf16.gmra.mrb[156].mxu0 %v20941_v22  ;;  %v20948_v22 = vld [vmem:[%s30700_s1 + $0xe44] ss:$16 sps:$4 sm:$0xff]  }
 0x35b   : > { %31158 = vst [vmem:[#allocation87_spill] sm:$0xff] %v24627_v63  ;;  %v3574_v19 = vpop.f32.mrb[141].mxu1  ;;  %17783 = vmatprep.mubr.msk.bf16.mxu0 %vm1498_vm0, %v20945_v43  ;;  %7908 = vmatpush1.bf16.msra.mxu0 %v24636_v20  ;;  %v20947_v43 = vld [vmem:[%s30700_s1 + $0x908] ss:$16 sps:$4 sm:$0xff]   ;;  %v20951_v63 = vld [vmem:[%s30700_s1 + $0x92c] ss:$16 sps:$4 sm:$0xff]  }
 0x35c   : > { %v24639_v31 = vpop.f32.mrb[142].mxu1  ;;  %7909 = vmatprep.subr.bf16.mxu0 %v31123_v28 }
 0x35d   : > { %31159 = vst [vmem:[#allocation88_spill] sm:$0xff] %v24639_v31  ;;  %v3577_v36 = vpop.f32.mrb[143].mxu1 }
 0x35e   : > { %v20957_v36 = vld [vmem:[%s30700_s1 + $0x94c] ss:$16 sps:$4 sm:$0xff]  }
 0x35f   : > { %6446 = vmatmul.mubr.bf16.gmra.mrb[248].mxu1 %v20944_v7  ;;  %7910 = vmatpush1.bf16.msra.mxu0 %v24654_v17  ;;  %v20950_v7 = vld [vmem:[%s30700_s1 + $0xe40] ss:$16 sps:$4 sm:$0xff]  }
 0x360   : > { %6453 = vmatprep.mubr.bf16.mxu1 %v20948_v22  ;;  %8168 = vmatprep.subr.bf16.mxu0 %v31123_v28  ;;  %v20956_v22 = vld [vmem:[%s30700_s1 + $0xe64] ss:$16 sps:$4 sm:$0xff]  }
 0x362   : > { %v24658_v57 = vpop.f32.mrb[144].mxu1  ;;  %5061 = vmatmul.mubr.bf16.gmra.mrb[160].mxu0 %v20947_v43 }
 0x363   : > { %31160 = vst [vmem:[#allocation89_spill] sm:$0xff] %v24658_v57  ;;  %v3582_v19 = vpop.f32.mrb[145].mxu1  ;;  %17784 = vmatprep.mubr.msk.bf16.mxu0 %vm1498_vm0, %v20951_v63  ;;  %v20963_v57 = vld [vmem:[%s30700_s1 + $0x96c] ss:$16 sps:$4 sm:$0xff]  }
 0x364   : > { %v24666_v31 = vpop.f32.mrb[146].mxu1  ;;  %v20953_v19 = vld [vmem:[%s30700_s1 + $0x928] ss:$16 sps:$4 sm:$0xff]  }
 0x365   : > { %v3585_v43 = vpop.f32.mrb[147].mxu1 }
 0x366   : > { %v20954_v43 = vld [vmem:[%s30700_s1 + $0xe60] ss:$16 sps:$4 sm:$0xff]  }
 0x367   : > { %6454 = vmatmul.mubr.bf16.gmra.mrb[252].mxu1 %v20950_v7  ;;  %v20962_v7 = vld [vmem:[%s30700_s1 + $0xe84] ss:$16 sps:$4 sm:$0xff]  }
 0x368   : > { %6461 = vmatprep.mubr.bf16.mxu1 %v20956_v22 }
 0x36a   : > { %v24679_v63 = vpop.f32.mrb[148].mxu1  ;;  %5069 = vmatmul.mubr.bf16.gmra.mrb[164].mxu0 %v20953_v19 }
 0x36b   : > { %31161 = vst [vmem:[#allocation90_spill] sm:$0xff] %v24679_v63  ;;  %v3590_v27 = vpop.f32.mrb[149].mxu1  ;;  %17785 = vmatprep.mubr.msk.bf16.mxu0 %vm1498_vm0, %v20957_v36  ;;  %v20969_v63 = vld [vmem:[%s30700_s1 + $0x98c] ss:$16 sps:$4 sm:$0xff]  }
 0x36c   : > { %v24687_v8 = vpop.f32.mrb[150].mxu1  ;;  %v20959_v27 = vld [vmem:[%s30700_s1 + $0x948] ss:$16 sps:$4 sm:$0xff]  }
 0x36d   : > { %v3593_v19 = vpop.f32.mrb[151].mxu1 }
 0x36e   : > { %v20960_v19 = vld [vmem:[%s30700_s1 + $0xe80] ss:$16 sps:$4 sm:$0xff]  }
 0x36f   : > { %6462 = vmatmul.mubr.bf16.gmra.mrb[0].mxu1 %v20954_v43  ;;  %v20968_v43 = vld [vmem:[%s30700_s1 + $0xea4] ss:$16 sps:$4 sm:$0xff]  }
 0x370   : > { %6469 = vmatprep.mubr.bf16.mxu1 %v20962_v7 }
 0x372   : > { %v24700_v36 = vpop.f32.mrb[152].mxu1  ;;  %5077 = vmatmul.mubr.bf16.gmra.mrb[168].mxu0 %v20959_v27 }
 0x373   : > { %31162 = vst [vmem:[#allocation91_spill] sm:$0xff] %v24700_v36  ;;  %v3598_v29 = vpop.f32.mrb[153].mxu1  ;;  %17786 = vmatprep.mubr.msk.bf16.mxu0 %vm1498_vm0, %v20963_v57  ;;  %v20975_v36 = vld [vmem:[%s30700_s1 + $0x9ac] ss:$16 sps:$4 sm:$0xff]  }
 0x374   : > { %v24708_v22 = vpop.f32.mrb[154].mxu1  ;;  %v20965_v29 = vld [vmem:[%s30700_s1 + $0x968] ss:$16 sps:$4 sm:$0xff]  }
 0x375   : > { %v3601_v27 = vpop.f32.mrb[155].mxu1 }
 0x376   : > { %v20966_v27 = vld [vmem:[%s30700_s1 + $0xea0] ss:$16 sps:$4 sm:$0xff]  }
 0x377   : > { %6470 = vmatmul.mubr.bf16.gmra.mrb[4].mxu1 %v20960_v19  ;;  %v20974_v19 = vld [vmem:[%s30700_s1 + $0xec4] ss:$16 sps:$4 sm:$0xff]  }
 0x378   : > { %6477 = vmatprep.mubr.bf16.mxu1 %v20968_v43 }
 0x37a   : > { %v24721_v57 = vpop.f32.mrb[156].mxu1  ;;  %5085 = vmatmul.mubr.bf16.gmra.mrb[172].mxu0 %v20965_v29 }
 0x37b   : > { %31163 = vst [vmem:[#allocation92_spill] sm:$0xff] %v24721_v57  ;;  %v3606_v39 = vpop.f32.mrb[157].mxu1  ;;  %17787 = vmatprep.mubr.msk.bf16.mxu0 %vm1498_vm0, %v20969_v63  ;;  %v20981_v57 = vld [vmem:[%s30700_s1 + $0x9cc] ss:$16 sps:$4 sm:$0xff]  }
 0x37c   : > { %v24729_v7 = vpop.f32.mrb[158].mxu1  ;;  %v20971_v39 = vld [vmem:[%s30700_s1 + $0x988] ss:$16 sps:$4 sm:$0xff]  }
 0x37d   : > { %v3609_v29 = vpop.f32.mrb[159].mxu1 }
 0x37e   : > { %v20972_v29 = vld [vmem:[%s30700_s1 + $0xec0] ss:$16 sps:$4 sm:$0xff]  }
 0x37f   : > { %6478 = vmatmul.mubr.bf16.gmra.mrb[8].mxu1 %v20966_v27  ;;  %v20980_v27 = vld [vmem:[%s30700_s1 + $0xee4] ss:$16 sps:$4 sm:$0xff]  }
 0x380   : > { %6485 = vmatprep.mubr.bf16.mxu1 %v20974_v19 }
 0x382   : > { %v24742_v63 = vpop.f32.mrb[160].mxu1  ;;  %5093 = vmatmul.mubr.bf16.gmra.mrb[176].mxu0 %v20971_v39 }
 0x383   : > { %31164 = vst [vmem:[#allocation93_spill] sm:$0xff] %v24742_v63  ;;  %v3614_v61 = vpop.f32.mrb[161].mxu1  ;;  %17788 = vmatprep.mubr.msk.bf16.mxu0 %vm1498_vm0, %v20975_v36  ;;  %v20987_v63 = vld [vmem:[%s30700_s1 + $0x9ec] ss:$16 sps:$4 sm:$0xff]  }
 0x384   : > { %v24750_v43 = vpop.f32.mrb[162].mxu1  ;;  %v20977_v61 = vld [vmem:[%s30700_s1 + $0x9a8] ss:$16 sps:$4 sm:$0xff]  }
 0x385   : > { %v3617_v39 = vpop.f32.mrb[163].mxu1 }
 0x386   : > { %v20978_v39 = vld [vmem:[%s30700_s1 + $0xee0] ss:$16 sps:$4 sm:$0xff]  }
 0x387   : > { %6486 = vmatmul.mubr.bf16.gmra.mrb[12].mxu1 %v20972_v29  ;;  %v20986_v29 = vld [vmem:[%s30700_s1 + $0xf04] ss:$16 sps:$4 sm:$0xff]  }
 0x388   : > { %6493 = vmatprep.mubr.bf16.mxu1 %v20980_v27 }
 0x38a   : > { %v24763_v36 = vpop.f32.mrb[164].mxu1  ;;  %5101 = vmatmul.mubr.bf16.gmra.mrb[180].mxu0 %v20977_v61 }
 0x38b   : > { %31165 = vst [vmem:[#allocation94_spill] sm:$0xff] %v24763_v36  ;;  %v3622_v30 = vpop.f32.mrb[165].mxu1  ;;  %17789 = vmatprep.mubr.msk.bf16.mxu0 %vm1498_vm0, %v20981_v57  ;;  %v20993_v36 = vld [vmem:[%s30700_s1 + $0xa0c] ss:$16 sps:$4 sm:$0xff]  }
 0x38c   : > { %v24771_v19 = vpop.f32.mrb[166].mxu1  ;;  %v20983_v30 = vld [vmem:[%s30700_s1 + $0x9c8] ss:$16 sps:$4 sm:$0xff]  }
 0x38d   : > { %v3625_v61 = vpop.f32.mrb[167].mxu1 }
 0x38e   : > { %v20984_v61 = vld [vmem:[%s30700_s1 + $0xf00] ss:$16 sps:$4 sm:$0xff]  }
 0x38f   : > { %6494 = vmatmul.mubr.bf16.gmra.mrb[16].mxu1 %v20978_v39  ;;  %v20992_v39 = vld [vmem:[%s30700_s1 + $0xf24] ss:$16 sps:$4 sm:$0xff]  }
 0x390   : > { %6501 = vmatprep.mubr.bf16.mxu1 %v20986_v29 }
 0x392   : > { %v24784_v57 = vpop.f32.mrb[168].mxu1  ;;  %5109 = vmatmul.mubr.bf16.gmra.mrb[184].mxu0 %v20983_v30 }
 0x393   : > { %31166 = vst [vmem:[#allocation95_spill] sm:$0xff] %v24784_v57  ;;  %v3630_v60 = vpop.f32.mrb[169].mxu1  ;;  %17790 = vmatprep.mubr.msk.bf16.mxu0 %vm1498_vm0, %v20987_v63  ;;  %v20999_v57 = vld [vmem:[%s30700_s1 + $0xa2c] ss:$16 sps:$4 sm:$0xff]  }
 0x394   : > { %v24792_v27 = vpop.f32.mrb[170].mxu1  ;;  %v20989_v60 = vld [vmem:[%s30700_s1 + $0x9e8] ss:$16 sps:$4 sm:$0xff]  }
 0x395   : > { %31167 = vst [vmem:[#allocation96_spill] sm:$0xff] %v24792_v27  ;;  %v3633_v30 = vpop.f32.mrb[171].mxu1 }
 0x396   : > { %v20990_v30 = vld [vmem:[%s30700_s1 + $0xf20] ss:$16 sps:$4 sm:$0xff]  }
 0x397   : > { %6502 = vmatmul.mubr.bf16.gmra.mrb[20].mxu1 %v20984_v61  ;;  %v20998_v61 = vld [vmem:[%s30700_s1 + $0xf44] ss:$16 sps:$4 sm:$0xff]  }
 0x398   : > { %6509 = vmatprep.mubr.bf16.mxu1 %v20992_v39 }
 0x39a   : > { %v24805_v63 = vpop.f32.mrb[172].mxu1  ;;  %5117 = vmatmul.mubr.bf16.gmra.mrb[188].mxu0 %v20989_v60 }
 0x39b   : > { %31168 = vst [vmem:[#allocation97_spill] sm:$0xff] %v24805_v63  ;;  %v3638_v25 = vpop.f32.mrb[173].mxu1  ;;  %17791 = vmatprep.mubr.msk.bf16.mxu0 %vm1498_vm0, %v20993_v36  ;;  %v25233_v63 = vld [vmem:[%s22624_s17 + $0xa8] sm:$0xff]  }
 0x39c   : > { %v24813_v29 = vpop.f32.mrb[174].mxu1  ;;  %v20995_v25 = vld [vmem:[%s30700_s1 + $0xa08] ss:$16 sps:$4 sm:$0xff]  }
 0x39d   : > { %31169 = vst [vmem:[#allocation98_spill] sm:$0xff] %v24813_v29  ;;  %v3641_v60 = vpop.f32.mrb[175].mxu1 }
 0x39e   : > { %v20996_v60 = vld [vmem:[%s30700_s1 + $0xf40] ss:$16 sps:$4 sm:$0xff]  }
 0x39f   : > { %6510 = vmatmul.mubr.bf16.gmra.mrb[24].mxu1 %v20990_v30  ;;  %v21004_v30 = vld [vmem:[%s30700_s1 + $0xf64] ss:$16 sps:$4 sm:$0xff]  }
 0x3a0   : > { %6517 = vmatprep.mubr.bf16.mxu1 %v20998_v61 }
 0x3a2   : > { %v24826_v36 = vpop.f32.mrb[176].mxu1  ;;  %5125 = vmatmul.mubr.bf16.gmra.mrb[192].mxu0 %v20995_v25 }
 0x3a3   : > { %31170 = vst [vmem:[#allocation99_spill] sm:$0xff] %v24826_v36  ;;  %v3646_v27 = vpop.f32.mrb[177].mxu1  ;;  %17792 = vmatprep.mubr.msk.bf16.mxu0 %vm1498_vm0, %v20999_v57  ;;  %v21002_v57 = vld [vmem:[%s30700_s1 + $0xf60] ss:$16 sps:$4 sm:$0xff]   ;;  %v21115_v36 = vld [vmem:[%s30700_s1 + $0x1084] ss:$16 sps:$4 sm:$0xff]  }
 0x3a4   : > { %v24834_v39 = vpop.f32.mrb[178].mxu1  ;;  %v21001_v27 = vld [vmem:[%s30700_s1 + $0xa28] ss:$16 sps:$4 sm:$0xff]  }
 0x3a5   : > { %31172 = vst [vmem:[#allocation100_spill] sm:$0xff] %v24834_v39  ;;  %v3649_v25 = vpop.f32.mrb[179].mxu1 }
 0x3a6   : > { %v21010_v25 = vld [vmem:[%s30700_s1 + $0xf84] ss:$16 sps:$4 sm:$0xff]  }
 0x3a7   : > { %6518 = vmatmul.mubr.bf16.gmra.mrb[28].mxu1 %v20996_v60  ;;  %v21007_v60 = vld [vmem:[%s30700_s1 + $0xa48] ss:$16 sps:$4 sm:$0xff]  }
 0x3a8   : > { %6525 = vmatprep.mubr.bf16.mxu1 %v21004_v30  ;;  %v21011_v30 = vld [vmem:[%s30700_s1 + $0xa6c] ss:$16 sps:$4 sm:$0xff]  }
 0x3aa   : > { %5133 = vmatmul.mubr.bf16.gmra.mrb[196].mxu0 %v21001_v27  ;;  %v21008_v27 = vld [vmem:[%s30700_s1 + $0xf80] ss:$16 sps:$4 sm:$0xff]  }
 0x3ab   : > { %17793 = vmatprep.mubr.msk.bf16.mxu0 %vm1498_vm0, %v21005_v38  ;;  %v21016_v38 = vld [vmem:[%s30700_s1 + $0xfa4] ss:$16 sps:$4 sm:$0xff]  }
 0x3af   : > { %6526 = vmatmul.mubr.bf16.gmra.mrb[32].mxu1 %v21002_v57  ;;  %v21013_v57 = vld [vmem:[%s30700_s1 + $0xa68] ss:$16 sps:$4 sm:$0xff]  }
 0x3b0   : > { %6533 = vmatprep.mubr.bf16.mxu1 %v21010_v25  ;;  %v21017_v25 = vld [vmem:[%s30700_s1 + $0xa8c] ss:$16 sps:$4 sm:$0xff]  }
 0x3b2   : > { %5141 = vmatmul.mubr.bf16.gmra.mrb[200].mxu0 %v21007_v60  ;;  %v21014_v60 = vld [vmem:[%s30700_s1 + $0xfa0] ss:$16 sps:$4 sm:$0xff]  }
 0x3b3   : > { %17794 = vmatprep.mubr.msk.bf16.mxu0 %vm1498_vm0, %v21011_v30  ;;  %v21022_v30 = vld [vmem:[%s30700_s1 + $0xfc4] ss:$16 sps:$4 sm:$0xff]  }
 0x3b7   : > { %6534 = vmatmul.mubr.bf16.gmra.mrb[36].mxu1 %v21008_v27  ;;  %v21019_v27 = vld [vmem:[%s30700_s1 + $0xa88] ss:$16 sps:$4 sm:$0xff]  }
 0x3b8   : > { %6541 = vmatprep.mubr.bf16.mxu1 %v21016_v38  ;;  %v21023_v38 = vld [vmem:[%s30700_s1 + $0xaac] ss:$16 sps:$4 sm:$0xff]  }
 0x3ba   : > { %5149 = vmatmul.mubr.bf16.gmra.mrb[204].mxu0 %v21013_v57  ;;  %v21020_v57 = vld [vmem:[%s30700_s1 + $0xfc0] ss:$16 sps:$4 sm:$0xff]  }
 0x3bb   : > { %17795 = vmatprep.mubr.msk.bf16.mxu0 %vm1498_vm0, %v21017_v25  ;;  %v21028_v25 = vld [vmem:[%s30700_s1 + $0xfe4] ss:$16 sps:$4 sm:$0xff]  }
 0x3bf   : > { %6542 = vmatmul.mubr.bf16.gmra.mrb[40].mxu1 %v21014_v60  ;;  %v21025_v60 = vld [vmem:[%s30700_s1 + $0xaa8] ss:$16 sps:$4 sm:$0xff]  }
 0x3c0   : > { %6549 = vmatprep.mubr.bf16.mxu1 %v21022_v30  ;;  %v21029_v30 = vld [vmem:[%s30700_s1 + $0xacc] ss:$16 sps:$4 sm:$0xff]  }
 0x3c2   : > { %5157 = vmatmul.mubr.bf16.gmra.mrb[208].mxu0 %v21019_v27  ;;  %v21026_v27 = vld [vmem:[%s30700_s1 + $0xfe0] ss:$16 sps:$4 sm:$0xff]  }
 0x3c3   : > { %17796 = vmatprep.mubr.msk.bf16.mxu0 %vm1498_vm0, %v21023_v38  ;;  %v21034_v38 = vld [vmem:[%s30700_s1 + $0xc0c] ss:$16 sps:$4 sm:$0xff]  }
 0x3c7   : > { %6550 = vmatmul.mubr.bf16.gmra.mrb[44].mxu1 %v21020_v57  ;;  %v21031_v57 = vld [vmem:[%s30700_s1 + $0xac8] ss:$16 sps:$4 sm:$0xff]  }
 0x3c8   : > { %6557 = vmatprep.mubr.bf16.mxu1 %v21028_v25  ;;  %v21035_v25 = vld [vmem:[%s30700_s1 + $0xaec] ss:$16 sps:$4 sm:$0xff]  }
 0x3ca   : > { %5165 = vmatmul.mubr.bf16.gmra.mrb[212].mxu0 %v21025_v60  ;;  %v21032_v60 = vld [vmem:[%s30700_s1 + $0xc08] ss:$16 sps:$4 sm:$0xff]  }
 0x3cb   : > { %17797 = vmatprep.mubr.msk.bf16.mxu0 %vm1498_vm0, %v21029_v30  ;;  %v21038_v30 = vld [vmem:[%s30700_s1 + $0xc2c] ss:$16 sps:$4 sm:$0xff]  }
 0x3cf   : > { %6558 = vmatmul.mubr.bf16.gmra.mrb[48].mxu1 %v21026_v27  ;;  %v21037_v27 = vld [vmem:[%s30700_s1 + $0xae8] ss:$16 sps:$4 sm:$0xff]  }
 0x3d0   : > { %17935 = vmatprep.mubr.msk.bf16.mxu1 %vm1498_vm0, %v21034_v38  ;;  %v21041_v38 = vld [vmem:[%s30700_s1 + $0xb0c] ss:$16 sps:$4 sm:$0xff]  }
 0x3d2   : > { %5173 = vmatmul.mubr.bf16.gmra.mrb[216].mxu0 %v21031_v57  ;;  %v21040_v57 = vld [vmem:[%s30700_s1 + $0xc28] ss:$16 sps:$4 sm:$0xff]  }
 0x3d3   : > { %17798 = vmatprep.mubr.msk.bf16.mxu0 %vm1498_vm0, %v21035_v25  ;;  %v21044_v25 = vld [vmem:[%s30700_s1 + $0xc4c] ss:$16 sps:$4 sm:$0xff]  }
 0x3d7   : > { %6599 = vmatmul.mubr.bf16.vlgmr.msra.gmra.mrb[180].mxu1 %v21032_v60  ;;  %v21047_v60 = vld [vmem:[%s30700_s1 + $0xb2c] ss:$16 sps:$4 sm:$0xff]  }
 0x3d8   : > { %17936 = vmatprep.mubr.msk.bf16.mxu1 %vm1498_vm0, %v21038_v30  ;;  %9482 = vmatpush1.bf16.msra.mxu1 %v24419_v24  ;;  %v21043_v24 = vld [vmem:[%s30700_s1 + $0xb08] ss:$16 sps:$4 sm:$0xff]   ;;  %v21050_v30 = vld [vmem:[%s30700_s1 + $0xc6c] ss:$16 sps:$4 sm:$0xff]  }
 0x3d9   : > { %9483 = vmatprep.subr.bf16.mxu1 %v31123_v28 }
 0x3da   : > { %5181 = vmatmul.mubr.bf16.gmra.mrb[220].mxu0 %v21037_v27  ;;  %v21053_v27 = vld [vmem:[%s30700_s1 + $0xb4c] ss:$16 sps:$4 sm:$0xff]  }
 0x3db   : > { %17799 = vmatprep.mubr.msk.bf16.mxu0 %vm1498_vm0, %v21041_v38  ;;  %v21056_v38 = vld [vmem:[%s30700_s1 + $0xc8c] ss:$16 sps:$4 sm:$0xff]  }
 0x3dc   : > { %9484 = vmatpush1.bf16.msra.mxu1 %v24437_v58  ;;  %v21046_v58 = vld [vmem:[%s30700_s1 + $0xc48] ss:$16 sps:$4 sm:$0xff]  }
 0x3dd   : > { %9485 = vmatprep.subr.bf16.mxu1 %v31123_v28 }
 0x3df   : > { %6607 = vmatmul.mubr.bf16.gmra.mrb[184].mxu1 %v21040_v57  ;;  %v21059_v57 = vld [vmem:[%s30700_s1 + $0xb6c] ss:$16 sps:$4 sm:$0xff]  }
 0x3e0   : > { %17937 = vmatprep.mubr.msk.bf16.mxu1 %vm1498_vm0, %v21044_v25  ;;  %9486 = vmatpush1.bf16.msra.mxu1 %v24450_v56  ;;  %v21049_v56 = vld [vmem:[%s30700_s1 + $0xb28] ss:$16 sps:$4 sm:$0xff]   ;;  %v21062_v25 = vld [vmem:[%s30700_s1 + $0xcac] ss:$16 sps:$4 sm:$0xff]  }
 0x3e1   : > { %9487 = vmatprep.subr.bf16.mxu1 %v31123_v28 }
 0x3e2   : > { %5189 = vmatmul.mubr.bf16.gmra.mrb[224].mxu0 %v21043_v24 }
 0x3e3   : > { %17800 = vmatprep.mubr.msk.bf16.mxu0 %vm1498_vm0, %v21047_v60  ;;  %v31174_v60 = vld [vmem:[#allocation27_spill] sm:$0xff] }
 0x3e4   : > { %9488 = vmatpush1.bf16.msra.mxu1 %v24468_v0  ;;  %v21052_v0 = vld [vmem:[%s30700_s1 + $0xc68] ss:$16 sps:$4 sm:$0xff]  }
 0x3e5   : > { %9489 = vmatprep.subr.bf16.mxu1 %v31123_v28 }
 0x3e7   : > { %6615 = vmatmul.mubr.bf16.gmra.mrb[188].mxu1 %v21046_v58 }
 0x3e8   : > { %17938 = vmatprep.mubr.msk.bf16.mxu1 %vm1498_vm0, %v21050_v30  ;;  %9490 = vmatpush1.bf16.msra.mxu1 %v24481_v15  ;;  %v21055_v15 = vld [vmem:[%s30700_s1 + $0xb48] ss:$16 sps:$4 sm:$0xff]  }
 0x3e9   : > { %9491 = vmatprep.subr.bf16.mxu1 %v31123_v28 }
 0x3ea   : > { %5197 = vmatmul.mubr.bf16.gmra.mrb[228].mxu0 %v21049_v56 }
 0x3eb   : > { %17801 = vmatprep.mubr.msk.bf16.mxu0 %vm1498_vm0, %v21053_v27  ;;  %v21061_v27 = vld [vmem:[%s30700_s1 + $0xb68] ss:$16 sps:$4 sm:$0xff]  }
 0x3ec   : > { %9492 = vmatpush1.bf16.msra.mxu1 %v24499_v2  ;;  %v21058_v2 = vld [vmem:[%s30700_s1 + $0xc88] ss:$16 sps:$4 sm:$0xff]  }
 0x3ed   : > { %9493 = vmatprep.subr.bf16.mxu1 %v31123_v28 }
 0x3ef   : > { %6623 = vmatmul.mubr.bf16.gmra.mrb[192].mxu1 %v21052_v0 }
 0x3f0   : > { %17939 = vmatprep.mubr.msk.bf16.mxu1 %vm1498_vm0, %v21056_v38  ;;  %9494 = vmatpush1.bf16.msra.mxu1 %v24512_v1  ;;  %v31175_v1 = vld [vmem:[#allocation38_spill] sm:$0xff] }
 0x3f1   : > { %9495 = vmatprep.subr.bf16.mxu1 %v31123_v28  ;;  %v31176_v58 = vmax.f32 %v31174_v60, %v31175_v1  ;;  %v21065_v38 = vld [vmem:[%s30700_s1 + $0xb8c] ss:$16 sps:$4 sm:$0xff]  }
 0x3f2   : > { %5205 = vmatmul.mubr.bf16.gmra.mrb[232].mxu0 %v21055_v15  ;;  %v31178_v15 = vld [vmem:[#allocation39_spill] sm:$0xff] }
 0x3f3   : > { %17802 = vmatprep.mubr.msk.bf16.mxu0 %vm1498_vm0, %v21059_v57 }
 0x3f4   : > { %9496 = vmatpush1.bf16.msra.mxu1 %v24530_v52  ;;  %v31177_v52 = vld [vmem:[#allocation28_spill] sm:$0xff] }
 0x3f5   : > { %v4998_v24 = vpop.f32.mrb[128].mxu0  ;;  %9497 = vmatprep.subr.bf16.mxu1 %v31123_v28  ;;  %v31179_v57 = vmax.f32 %v31177_v52, %v31178_v15 }
 0x3f6   : > { %v24995_v30 = vmax.f32 %v31176_v58, %v4998_v24  ;;  %v5000_v56 = vpop.f32.mrb[129].mxu0  ;;  %v21068_v24 = vld [vmem:[%s30700_s1 + $0xccc] ss:$16 sps:$4 sm:$0xff]  }
 0x3f7   : > { %6631 = vmatmul.mubr.bf16.gmra.mrb[196].mxu1 %v21058_v2  ;;  %v5001_v0 = vpop.f32.mrb[130].mxu0  ;;  %v21064_v2 = vld [vmem:[%s30700_s1 + $0xca8] ss:$16 sps:$4 sm:$0xff]  }
 0x3f8   : > { %v25006_v29 = vmax.f32 %v31179_v57, %v5001_v0  ;;  %v5003_v39 = vpop.f32.mrb[131].mxu0  ;;  %17940 = vmatprep.mubr.msk.bf16.mxu1 %vm1498_vm0, %v21062_v25  ;;  %9498 = vmatpush1.bf16.msra.mxu1 %v24543_v26  ;;  %v31180_v25 = vld [vmem:[#allocation29_spill] sm:$0xff]  ;;  %v31181_v26 = vld [vmem:[#allocation40_spill] sm:$0xff] }
 0x3f9   : > { %9499 = vmatprep.subr.bf16.mxu1 %v31123_v28  ;;  %v31182_v60 = vmax.f32 %v31180_v25, %v31181_v26  ;;  %v21067_v56 = vld [vmem:[%s30700_s1 + $0xb88] ss:$16 sps:$4 sm:$0xff]   ;;  %v21071_v0 = vld [vmem:[%s30700_s1 + $0xbac] ss:$16 sps:$4 sm:$0xff]  }
 0x3fa   : > { %5213 = vmatmul.mubr.bf16.gmra.mrb[236].mxu0 %v21061_v27 }
 0x3fb   : > { %17803 = vmatprep.mubr.msk.bf16.mxu0 %vm1498_vm0, %v21065_v38  ;;  %v31184_v38 = vld [vmem:[#allocation41_spill] sm:$0xff] }
 0x3fc   : > { %9500 = vmatpush1.bf16.msra.mxu1 %v24561_v32  ;;  %v31183_v32 = vld [vmem:[#allocation30_spill] sm:$0xff] }
 0x3fd   : > { %v5006_v39 = vpop.f32.mrb[132].mxu0  ;;  %9501 = vmatprep.subr.bf16.mxu1 %v31123_v28  ;;  %v31185_v52 = vmax.f32 %v31183_v32, %v31184_v38  ;;  %v31190_v32 = vld [vmem:[#allocation43_spill] sm:$0xff] }
 0x3fe   : > { %v25023_v1 = vmax.f32 %v31182_v60, %v5006_v39  ;;  %v5008_v58 = vpop.f32.mrb[133].mxu0  ;;  %v21074_v39 = vld [vmem:[%s30700_s1 + $0xcec] ss:$16 sps:$4 sm:$0xff]  }
 0x3ff   : > { %6639 = vmatmul.mubr.bf16.gmra.mrb[200].mxu1 %v21064_v2  ;;  %v5009_v27 = vpop.f32.mrb[134].mxu0  ;;  %v21070_v2 = vld [vmem:[%s30700_s1 + $0xcc8] ss:$16 sps:$4 sm:$0xff]  }
 0x400   : > { %v25034_v15 = vmax.f32 %v31185_v52, %v5009_v27  ;;  %v5011_v57 = vpop.f32.mrb[135].mxu0  ;;  %17941 = vmatprep.mubr.msk.bf16.mxu1 %vm1498_vm0, %v21068_v24  ;;  %9502 = vmatpush1.bf16.msra.mxu1 %v24574_v14  ;;  %v31186_v24 = vld [vmem:[#allocation31_spill] sm:$0xff]  ;;  %v31187_v14 = vld [vmem:[#allocation42_spill] sm:$0xff] }
 0x401   : > { %9503 = vmatprep.subr.bf16.mxu1 %v31123_v28  ;;  %v31188_v26 = vmax.f32 %v31186_v24, %v31187_v14 }
 0x402   : > { %5221 = vmatmul.mubr.bf16.gmra.mrb[240].mxu0 %v21067_v56  ;;  %v21073_v56 = vld [vmem:[%s30700_s1 + $0xba8] ss:$16 sps:$4 sm:$0xff]  }
 0x403   : > { %17804 = vmatprep.mubr.msk.bf16.mxu0 %vm1498_vm0, %v21071_v0  ;;  %v21077_v0 = vld [vmem:[%s30700_s1 + $0xbcc] ss:$16 sps:$4 sm:$0xff]  }
 0x404   : > { %9504 = vmatpush1.bf16.msra.mxu1 %v24592_v49  ;;  %v31189_v49 = vld [vmem:[#allocation32_spill] sm:$0xff] }
 0x405   : > { %v5014_v25 = vpop.f32.mrb[136].mxu0  ;;  %9505 = vmatprep.subr.bf16.mxu1 %v31123_v28  ;;  %v31191_v38 = vmax.f32 %v31189_v49, %v31190_v32  ;;  %v31196_v49 = vld [vmem:[#allocation45_spill] sm:$0xff] }
 0x406   : > { %v25051_v60 = vmax.f32 %v31188_v26, %v5014_v25  ;;  %v5016_v58 = vpop.f32.mrb[137].mxu0  ;;  %v21080_v25 = vld [vmem:[%s30700_s1 + $0xd0c] ss:$16 sps:$4 sm:$0xff]  }
 0x407   : > { %6647 = vmatmul.mubr.bf16.gmra.mrb[204].mxu1 %v21070_v2  ;;  %v5017_v27 = vpop.f32.mrb[138].mxu0  ;;  %v21076_v2 = vld [vmem:[%s30700_s1 + $0xce8] ss:$16 sps:$4 sm:$0xff]  }
 0x408   : > { %v25062_v52 = vmax.f32 %v31191_v38, %v5017_v27  ;;  %v5019_v57 = vpop.f32.mrb[139].mxu0  ;;  %17942 = vmatprep.mubr.msk.bf16.mxu1 %vm1498_vm0, %v21074_v39  ;;  %9506 = vmatpush1.bf16.msra.mxu1 %v24605_v12  ;;  %v31192_v39 = vld [vmem:[#allocation33_spill] sm:$0xff]  ;;  %v31193_v12 = vld [vmem:[#allocation44_spill] sm:$0xff] }
 0x409   : > { %9507 = vmatprep.subr.bf16.mxu1 %v31123_v28  ;;  %v31194_v14 = vmax.f32 %v31192_v39, %v31193_v12 }
 0x40a   : > { %5229 = vmatmul.mubr.bf16.gmra.mrb[244].mxu0 %v21073_v56  ;;  %v21079_v56 = vld [vmem:[%s30700_s1 + $0xbc8] ss:$16 sps:$4 sm:$0xff]  }
 0x40b   : > { %17805 = vmatprep.mubr.msk.bf16.mxu0 %vm1498_vm0, %v21077_v0  ;;  %v21083_v0 = vld [vmem:[%s30700_s1 + $0xbec] ss:$16 sps:$4 sm:$0xff]  }
 0x40c   : > { %9508 = vmatpush1.bf16.msra.mxu1 %v24623_v10  ;;  %v31195_v10 = vld [vmem:[#allocation34_spill] sm:$0xff] }
 0x40d   : > { %v5022_v24 = vpop.f32.mrb[140].mxu0  ;;  %9509 = vmatprep.subr.bf16.mxu1 %v31123_v28  ;;  %v31197_v32 = vmax.f32 %v31195_v10, %v31196_v49  ;;  %v31202_v10 = vld [vmem:[#allocation47_spill] sm:$0xff] }
 0x40e   : > { %v25079_v26 = vmax.f32 %v31194_v14, %v5022_v24  ;;  %v5024_v58 = vpop.f32.mrb[141].mxu0  ;;  %v21086_v24 = vld [vmem:[%s30700_s1 + $0xd2c] ss:$16 sps:$4 sm:$0xff]  }
 0x40f   : > { %6655 = vmatmul.mubr.bf16.gmra.mrb[208].mxu1 %v21076_v2  ;;  %v5025_v27 = vpop.f32.mrb[142].mxu0  ;;  %v21082_v2 = vld [vmem:[%s30700_s1 + $0xd08] ss:$16 sps:$4 sm:$0xff]  }
 0x410   : > { %v25090_v38 = vmax.f32 %v31197_v32, %v5025_v27  ;;  %v5027_v57 = vpop.f32.mrb[143].mxu0  ;;  %17943 = vmatprep.mubr.msk.bf16.mxu1 %vm1498_vm0, %v21080_v25  ;;  %9510 = vmatpush1.bf16.msra.mxu1 %v24636_v20  ;;  %v31198_v25 = vld [vmem:[#allocation35_spill] sm:$0xff]  ;;  %v31199_v20 = vld [vmem:[#allocation46_spill] sm:$0xff] }
 0x411   : > { %9511 = vmatprep.subr.bf16.mxu1 %v31123_v28  ;;  %v31200_v12 = vmax.f32 %v31198_v25, %v31199_v20  ;;  %v31204_v20 = vld [vmem:[#allocation49_spill] sm:$0xff] }
 0x412   : > { %5237 = vmatmul.mubr.bf16.gmra.mrb[248].mxu0 %v21079_v56  ;;  %v21085_v56 = vld [vmem:[%s30700_s1 + $0xbe8] ss:$16 sps:$4 sm:$0xff]  }
 0x413   : > { %17806 = vmatprep.mubr.msk.bf16.mxu0 %vm1498_vm0, %v21083_v0  ;;  %v21091_v0 = vld [vmem:[%s30700_s1 + $0x1004] ss:$16 sps:$4 sm:$0xff]  }
 0x414   : > { %9512 = vmatpush1.bf16.msra.mxu1 %v24654_v17  ;;  %v31201_v17 = vld [vmem:[#allocation36_spill] sm:$0xff] }
 0x415   : > { %v5030_v39 = vpop.f32.mrb[144].mxu0  ;;  %9770 = vmatprep.subr.bf16.mxu1 %v31123_v28  ;;  %v31203_v49 = vmax.f32 %v31201_v17, %v31202_v10  ;;  %v31206_v17 = vld [vmem:[#allocation37_spill] sm:$0xff]  ;;  %v31207_v10 = vld [vmem:[#allocation50_spill] sm:$0xff] }
 0x416   : > { %v25107_v14 = vmax.f32 %v31200_v12, %v5030_v39  ;;  %v5032_v58 = vpop.f32.mrb[145].mxu0  ;;  %v21088_v39 = vld [vmem:[%s30700_s1 + $0xd28] ss:$16 sps:$4 sm:$0xff]   ;;  %v31205_v12 = vmax.f32 %v23972_v40, %v31204_v20 }
 0x417   : > { %6663 = vmatmul.mubr.bf16.gmra.mrb[212].mxu1 %v21082_v2  ;;  %v5033_v27 = vpop.f32.mrb[146].mxu0  ;;  %v21092_v2 = vld [vmem:[%s30700_s1 + $0xd4c] ss:$16 sps:$4 sm:$0xff]   ;;  %v21094_v40 = vld [vmem:[%s30700_s1 + $0xd48] ss:$16 sps:$4 sm:$0xff]  }
 0x418   : > { %v25118_v32 = vmax.f32 %v31203_v49, %v5033_v27  ;;  %v5035_v57 = vpop.f32.mrb[147].mxu0  ;;  %17944 = vmatprep.mubr.msk.bf16.mxu1 %vm1498_vm0, %v21086_v24  ;;  %v21089_v24 = vld [vmem:[%s30700_s1 + $0x1000] ss:$16 sps:$4 sm:$0xff]   ;;  %v31208_v49 = vmax.f32 %v31206_v17, %v31207_v10 }
 0x419   : > { %v31209_v20 = vld [vmem:[#allocation53_spill] sm:$0xff] }
 0x41a   : > { %5245 = vmatmul.mubr.bf16.gmra.mrb[252].mxu0 %v21085_v56  ;;  %v25167_v17 = vld [vmem:[%s22624_s17 + $0x88] sm:$0xff]  }
 0x41b   : > { %7911 = vmatprep.mubr.bf16.mxu0 %v21091_v0  ;;  %v21097_v0 = vld [vmem:[%s30700_s1 + $0x1024] ss:$16 sps:$4 sm:$0xff]  }
 0x41d   : > { %v5038_v25 = vpop.f32.mrb[148].mxu0 }
 0x41e   : > { %v25130_v58 = vmax.f32 %v31205_v12, %v5038_v25  ;;  %v5040_v27 = vpop.f32.mrb[149].mxu0  ;;  %v21098_v25 = vld [vmem:[%s30700_s1 + $0xd6c] ss:$16 sps:$4 sm:$0xff]  }
 0x41f   : > { %6671 = vmatmul.mubr.bf16.gmra.mrb[216].mxu1 %v21088_v39  ;;  %v5041_v56 = vpop.f32.mrb[150].mxu0  ;;  %v25148_v39 = vld [vmem:[%s22624_s17 + $0x80] sm:$0xff]  }
 0x420   : > { %v25141_v57 = vmax.f32 %v31208_v49, %v5041_v56  ;;  %v5043_v61 = vpop.f32.mrb[151].mxu0  ;;  %17945 = vmatprep.mubr.msk.bf16.mxu1 %vm1498_vm0, %v21092_v2  ;;  %v31210_v2 = vmax.f32 %v23989_v42, %v31209_v20  ;;  %v31211_v42 = vld [vmem:[#allocation54_spill] sm:$0xff] }
 0x421   : > { %v31212_v10 = vmax.f32 %v23994_v16, %v31211_v42  ;;  %v25181_v20 = vld [vmem:[%s22624_s17 + $0x90] sm:$0xff]  }
 0x422   : > { %7912 = vmatmul.mubr.bf16.vlgmr.msra.gmra.mrb[0].mxu0 %v21089_v24  ;;  %v21095_v24 = vld [vmem:[%s30700_s1 + $0x1020] ss:$16 sps:$4 sm:$0xff]   ;;  %v21104_v16 = vld [vmem:[%s30700_s1 + $0xd8c] ss:$16 sps:$4 sm:$0xff]  }
 0x423   : > { %7919 = vmatprep.mubr.bf16.mxu0 %v21097_v0  ;;  %8169 = vmatpush1.bf16.msra.mxu0 %v25148_v39  ;;  %v21103_v0 = vld [vmem:[%s30700_s1 + $0x1044] ss:$16 sps:$4 sm:$0xff]  }
 0x424   : > { %8170 = vmatprep.subr.bf16.mxu0 %v31123_v28 }
 0x425   : > { %v5046_v61 = vpop.f32.mrb[152].mxu0 }
 0x426   : > { %v25158_v12 = vmax.f32 %v31210_v2, %v5046_v61  ;;  %v5048_v27 = vpop.f32.mrb[153].mxu0  ;;  %v31213_v2 = vld [vmem:[#allocation57_spill] sm:$0xff] }
 0x427   : > { %6679 = vmatmul.mubr.bf16.gmra.mrb[220].mxu1 %v21094_v40  ;;  %v5049_v56 = vpop.f32.mrb[154].mxu0  ;;  %8171 = vmatpush1.bf16.msra.mxu0 %v25167_v17  ;;  %v21100_v40 = vld [vmem:[%s30700_s1 + $0xd68] ss:$16 sps:$4 sm:$0xff]   ;;  %v31214_v27 = vmax.f32 %v24006_v23, %v31213_v2 }
 0x428   : > { %v25173_v49 = vmax.f32 %v31212_v10, %v5049_v56  ;;  %v5051_v61 = vpop.f32.mrb[155].mxu0  ;;  %17946 = vmatprep.mubr.msk.bf16.mxu1 %vm1498_vm0, %v21098_v25  ;;  %8172 = vmatprep.subr.bf16.mxu0 %v31123_v28  ;;  %v21109_v10 = vld [vmem:[%s30700_s1 + $0x1064] ss:$16 sps:$4 sm:$0xff]   ;;  %v31215_v23 = vld [vmem:[#allocation58_spill] sm:$0xff] }
 0x429   : > { %v25200_v61 = vld [vmem:[%s22624_s17 + $0x98] sm:$0xff]   ;;  %v31216_v2 = vmax.f32 %v24011_v4, %v31215_v23 }
 0x42a   : > { %7920 = vmatmul.mubr.bf16.gmra.mrb[4].mxu0 %v21095_v24  ;;  %v21110_v4 = vld [vmem:[%s30700_s1 + $0xdac] ss:$16 sps:$4 sm:$0xff]  }
 0x42b   : > { %7927 = vmatprep.mubr.bf16.mxu0 %v21103_v0  ;;  %8173 = vmatpush1.bf16.msra.mxu0 %v25181_v20  ;;  %v21101_v0 = vld [vmem:[%s30700_s1 + $0x1040] ss:$16 sps:$4 sm:$0xff]  }
 0x42c   : > { %8174 = vmatprep.subr.bf16.mxu0 %v31123_v28 }
 0x42d   : > { %v5054_v25 = vpop.f32.mrb[156].mxu0 }
 0x42e   : > { %v25191_v24 = vmax.f32 %v31214_v27, %v5054_v25  ;;  %v5056_v56 = vpop.f32.mrb[157].mxu0 }
 0x42f   : > { %6687 = vmatmul.mubr.bf16.gmra.mrb[224].mxu1 %v21100_v40  ;;  %v5057_v42 = vpop.f32.mrb[158].mxu0  ;;  %8175 = vmatpush1.bf16.msra.mxu0 %v25200_v61  ;;  %v21106_v40 = vld [vmem:[%s30700_s1 + $0xd88] ss:$16 sps:$4 sm:$0xff]  }
 0x430   : > { %v25206_v25 = vmax.f32 %v31216_v2, %v5057_v42  ;;  %v5059_v27 = vpop.f32.mrb[159].mxu0  ;;  %17947 = vmatprep.mubr.msk.bf16.mxu1 %vm1498_vm0, %v21104_v16  ;;  %8176 = vmatprep.subr.bf16.mxu0 %v31123_v28  ;;  %v25214_v56 = vld [vmem:[%s22624_s17 + $0xa0] sm:$0xff]   ;;  %v31217_v42 = vld [vmem:[#allocation61_spill] sm:$0xff] }
 0x431   : > { %v31218_v23 = vmax.f32 %v24023_v62, %v31217_v42  ;;  %v31219_v62 = vld [vmem:[#allocation62_spill] sm:$0xff] }
 0x432   : > { %7928 = vmatmul.mubr.bf16.gmra.mrb[8].mxu0 %v21101_v0  ;;  %v31220_v42 = vmax.f32 %v24028_v47, %v31219_v62  ;;  %v21116_v47 = vld [vmem:[%s30700_s1 + $0xdcc] ss:$16 sps:$4 sm:$0xff]  }
 0x433   : > { %7935 = vmatprep.mubr.bf16.mxu0 %v21109_v10  ;;  %8177 = vmatpush1.bf16.msra.mxu0 %v25214_v56  ;;  %v21107_v10 = vld [vmem:[%s30700_s1 + $0x1060] ss:$16 sps:$4 sm:$0xff]  }
 0x434   : > { %8178 = vmatprep.subr.bf16.mxu0 %v31123_v28 }
 0x435   : > { %v5062_v16 = vpop.f32.mrb[160].mxu0 }
 0x436   : > { %v25224_v0 = vmax.f32 %v31218_v23, %v5062_v16  ;;  %v5064_v2 = vpop.f32.mrb[161].mxu0 }
 0x437   : > { %6695 = vmatmul.mubr.bf16.gmra.mrb[228].mxu1 %v21106_v40  ;;  %v5065_v27 = vpop.f32.mrb[162].mxu0  ;;  %8179 = vmatpush1.bf16.msra.mxu0 %v25233_v63  ;;  %v21112_v40 = vld [vmem:[%s30700_s1 + $0xda8] ss:$16 sps:$4 sm:$0xff]  }
 0x438   : > { %v25239_v16 = vmax.f32 %v31220_v42, %v5065_v27  ;;  %v5067_v23 = vpop.f32.mrb[163].mxu0  ;;  %17948 = vmatprep.mubr.msk.bf16.mxu1 %vm1498_vm0, %v21110_v4  ;;  %8180 = vmatprep.subr.bf16.mxu0 %v31123_v28  ;;  %v25247_v2 = vld [vmem:[%s22624_s17 + $0xb0] sm:$0xff]   ;;  %v31223_v27 = vmax.f32 %v24040_v41, %v24285_v51  ;;  %v31226_v41 = vmax.f32 %v24045_v9, %v24292_v48 }
 0x439   : > { %31222 = vst [vmem:[#allocation38_spill] sm:$0xff] %v25247_v2  ;;  %v21121_v23 = vld [vmem:[%s30700_s1 + $0x10a4] ss:$16 sps:$4 sm:$0xff]  }
 0x43a   : > { %31221 = vst [vmem:[#allocation27_spill] sm:$0xff] %v25239_v16  ;;  %7936 = vmatmul.mubr.bf16.gmra.mrb[12].mxu0 %v21107_v10  ;;  %v31229_v9 = vld [vmem:[#allocation65_spill] sm:$0xff] }
 0x43b   : > { %7943 = vmatprep.mubr.bf16.mxu0 %v21115_v36  ;;  %8181 = vmatpush1.bf16.msra.mxu0 %v25247_v2  ;;  %v21113_v36 = vld [vmem:[%s30700_s1 + $0x1080] ss:$16 sps:$4 sm:$0xff]  }
 0x43c   : > { %8182 = vmatprep.subr.bf16.mxu0 %v31123_v28  ;;  %v25266_v2 = vld [vmem:[%s22624_s17 + $0xb8] sm:$0xff]  }
 0x43d   : > { %v5070_v4 = vpop.f32.mrb[164].mxu0  ;;  %31225 = vst [vmem:[#allocation39_spill] sm:$0xff] %v25266_v2 }
 0x43e   : > { %v25257_v10 = vmax.f32 %v31223_v27, %v5070_v4  ;;  %v5072_v62 = vpop.f32.mrb[165].mxu0  ;;  %v31228_v27 = vld [vmem:[#allocation8_spill] sm:$0xff] }
 0x43f   : > { %6703 = vmatmul.mubr.bf16.gmra.mrb[232].mxu1 %v21112_v40  ;;  %v5073_v42 = vpop.f32.mrb[166].mxu0  ;;  %8183 = vmatpush1.bf16.msra.mxu0 %v25266_v2  ;;  %v21118_v40 = vld [vmem:[%s30700_s1 + $0xdc8] ss:$16 sps:$4 sm:$0xff]   ;;  %v21122_v62 = vld [vmem:[%s30700_s1 + $0xdec] ss:$16 sps:$4 sm:$0xff]  }
 0x440   : > { %31224 = vst [vmem:[#allocation28_spill] sm:$0xff] %v25257_v10  ;;  %v25272_v51 = vmax.f32 %v31226_v41, %v5073_v42  ;;  %v5075_v4 = vpop.f32.mrb[167].mxu0  ;;  %17949 = vmatprep.mubr.msk.bf16.mxu1 %vm1498_vm0, %v21116_v47  ;;  %8184 = vmatprep.subr.bf16.mxu0 %v31123_v28  ;;  %v31230_v47 = vmax.f32 %v24065_v54, %v31229_v9  ;;  %v21119_v41 = vld [vmem:[%s30700_s1 + $0x10a0] ss:$16 sps:$4 sm:$0xff]   ;;  %v21124_v54 = vld [vmem:[%s30700_s1 + $0xde8] ss:$16 sps:$4 sm:$0xff]  }
 0x441   : > { %v21127_v4 = vld [vmem:[%s30700_s1 + $0x10c4] ss:$16 sps:$4 sm:$0xff]  }
 0x442   : > { %31227 = vst [vmem:[#allocation29_spill] sm:$0xff] %v25272_v51  ;;  %7944 = vmatmul.mubr.bf16.gmra.mrb[16].mxu0 %v21113_v36  ;;  %v31235_v9 = vld [vmem:[#allocation67_spill] sm:$0xff] }
 0x443   : > { %7951 = vmatprep.mubr.bf16.mxu0 %v21121_v23  ;;  %8185 = vmatpush1.bf16.msra.mxu0 %v31228_v27  ;;  %v31232_v27 = vld [vmem:[#allocation66_spill] sm:$0xff] }
 0x444   : > { %11083 = vmatprep.subr.bf16.mxu0 %v31123_v28  ;;  %v31233_v51 = vmax.f32 %v24070_v34, %v31232_v27 }
 0x445   : > { %v5078_v48 = vpop.f32.mrb[168].mxu0 }
 0x446   : > { %v25287_v42 = vmax.f32 %v31230_v47, %v5078_v48  ;;  %v5080_v36 = vpop.f32.mrb[169].mxu0  ;;  %v31236_v47 = vmax.f32 %v24090_v50, %v31235_v9  ;;  %v21130_v50 = vld [vmem:[%s30700_s1 + $0xe08] ss:$16 sps:$4 sm:$0xff]  }
 0x447   : > { %6711 = vmatmul.mubr.bf16.gmra.mrb[236].mxu1 %v21118_v40  ;;  %v5081_v23 = vpop.f32.mrb[170].mxu0  ;;  %v21128_v40 = vld [vmem:[%s30700_s1 + $0xe0c] ss:$16 sps:$4 sm:$0xff]   ;;  %v31241_v9 = vld [vmem:[#allocation69_spill] sm:$0xff] }
 0x448   : > { %31231 = vst [vmem:[#allocation40_spill] sm:$0xff] %v25287_v42  ;;  %v25298_v2 = vmax.f32 %v31233_v51, %v5081_v23  ;;  %v5083_v10 = vpop.f32.mrb[171].mxu0  ;;  %17950 = vmatprep.mubr.msk.bf16.mxu1 %vm1498_vm0, %v21122_v62  ;;  %v21133_v62 = vld [vmem:[%s30700_s1 + $0x10e4] ss:$16 sps:$4 sm:$0xff]   ;;  %v31238_v36 = vld [vmem:[#allocation68_spill] sm:$0xff] }
 0x449   : > { %v21125_v10 = vld [vmem:[%s30700_s1 + $0x10c0] ss:$16 sps:$4 sm:$0xff]  }
 0x44a   : > { %31234 = vst [vmem:[#allocation30_spill] sm:$0xff] %v25298_v2  ;;  %7952 = vmatmul.mubr.bf16.gmra.mrb[20].mxu0 %v21119_v41  ;;  %v31239_v41 = vmax.f32 %v24095_v53, %v31238_v36  ;;  %v26141_v2 = vld [vmem:[%s22624_s17 + $0x48] sm:$0xff]  }
 0x44b   : > { %7959 = vmatprep.mubr.bf16.mxu0 %v21127_v4 }
 0x44d   : > { %v5086_v48 = vpop.f32.mrb[172].mxu0 }
 0x44e   : > { %v25310_v34 = vmax.f32 %v31236_v47, %v5086_v48  ;;  %v5088_v51 = vpop.f32.mrb[173].mxu0  ;;  %v31242_v47 = vmax.f32 %v24115_v21, %v31241_v9  ;;  %v21136_v21 = vld [vmem:[%s30700_s1 + $0xe28] ss:$16 sps:$4 sm:$0xff]  }
 0x44f   : > { %6719 = vmatmul.mubr.bf16.gmra.mrb[240].mxu1 %v21124_v54  ;;  %v5089_v27 = vpop.f32.mrb[174].mxu0  ;;  %v21134_v54 = vld [vmem:[%s30700_s1 + $0xe2c] ss:$16 sps:$4 sm:$0xff]   ;;  %v31247_v9 = vld [vmem:[#allocation71_spill] sm:$0xff] }
 0x450   : > { %31237 = vst [vmem:[#allocation41_spill] sm:$0xff] %v25310_v34  ;;  %v25321_v23 = vmax.f32 %v31239_v41, %v5089_v27  ;;  %v5091_v4 = vpop.f32.mrb[175].mxu0  ;;  %17951 = vmatprep.mubr.msk.bf16.mxu1 %vm1498_vm0, %v21128_v40  ;;  %v21131_v40 = vld [vmem:[%s30700_s1 + $0x10e0] ss:$16 sps:$4 sm:$0xff]   ;;  %v21139_v27 = vld [vmem:[%s30700_s1 + $0x1104] ss:$16 sps:$4 sm:$0xff]  }
 0x452   : > { %31240 = vst [vmem:[#allocation31_spill] sm:$0xff] %v25321_v23  ;;  %7960 = vmatmul.mubr.bf16.gmra.mrb[24].mxu0 %v21125_v10  ;;  %v26110_v23 = vld [vmem:[%s22624_s17 + $0x38] sm:$0xff]  }
 0x453   : > { %7967 = vmatprep.mubr.bf16.mxu0 %v21133_v62  ;;  %v31244_v62 = vld [vmem:[#allocation70_spill] sm:$0xff] }
 0x454   : > { %v31245_v36 = vmax.f32 %v24120_v6, %v31244_v62 }
 0x455   : > { %v5094_v48 = vpop.f32.mrb[176].mxu0 }
 0x456   : > { %v25333_v53 = vmax.f32 %v31242_v47, %v5094_v48  ;;  %v5096_v51 = vpop.f32.mrb[177].mxu0  ;;  %v31248_v47 = vmax.f32 %v24140_v45, %v31247_v9  ;;  %v21142_v45 = vld [vmem:[%s30700_s1 + $0xe48] ss:$16 sps:$4 sm:$0xff]  }
 0x457   : > { %6727 = vmatmul.mubr.bf16.gmra.mrb[244].mxu1 %v21130_v50  ;;  %v5097_v10 = vpop.f32.mrb[178].mxu0  ;;  %v21140_v50 = vld [vmem:[%s30700_s1 + $0xe4c] ss:$16 sps:$4 sm:$0xff]  }
 0x458   : > { %31243 = vst [vmem:[#allocation42_spill] sm:$0xff] %v25333_v53  ;;  %v25344_v41 = vmax.f32 %v31245_v36, %v5097_v10  ;;  %v5099_v4 = vpop.f32.mrb[179].mxu0  ;;  %17952 = vmatprep.mubr.msk.bf16.mxu1 %vm1498_vm0, %v21134_v54  ;;  %v21137_v54 = vld [vmem:[%s30700_s1 + $0x1100] ss:$16 sps:$4 sm:$0xff]   ;;  %v21145_v10 = vld [vmem:[%s30700_s1 + $0x1124] ss:$16 sps:$4 sm:$0xff]  }
 0x459   : > { %v21148_v4 = vld [vmem:[%s30700_s1 + $0xe6c] ss:$16 sps:$4 sm:$0xff]  }
 0x45a   : > { %31246 = vst [vmem:[#allocation32_spill] sm:$0xff] %v25344_v41  ;;  %7968 = vmatmul.mubr.bf16.gmra.mrb[28].mxu0 %v21131_v40  ;;  %v31253_v9 = vld [vmem:[#allocation72_spill] sm:$0xff] }
 0x45b   : > { %7975 = vmatprep.mubr.bf16.mxu0 %v21139_v27  ;;  %v31250_v27 = vmax.f32 %v24145_v55, %v24376_v3  ;;  %v26079_v41 = vld [vmem:[%s22624_s17 + $0x28] sm:$0xff]  }
 0x45d   : > { %v5102_v48 = vpop.f32.mrb[180].mxu0 }
 0x45e   : > { %v25356_v6 = vmax.f32 %v31248_v47, %v5102_v48  ;;  %v5104_v51 = vpop.f32.mrb[181].mxu0  ;;  %v31252_v48 = vld [vmem:[#allocation48_spill] sm:$0xff] }
 0x45f   : > { %6735 = vmatmul.mubr.bf16.gmra.mrb[248].mxu1 %v21136_v21  ;;  %v5105_v40 = vpop.f32.mrb[182].mxu0  ;;  %v31254_v47 = vmax.f32 %v31252_v48, %v31253_v9  ;;  %v31258_v48 = vld [vmem:[#allocation51_spill] sm:$0xff]  ;;  %v31259_v9 = vld [vmem:[#allocation73_spill] sm:$0xff] }
 0x460   : > { %31249 = vst [vmem:[#allocation43_spill] sm:$0xff] %v25356_v6  ;;  %v25367_v62 = vmax.f32 %v31250_v27, %v5105_v40  ;;  %v5107_v36 = vpop.f32.mrb[183].mxu0  ;;  %17953 = vmatprep.mubr.msk.bf16.mxu1 %vm1498_vm0, %v21140_v50  ;;  %v21143_v50 = vld [vmem:[%s30700_s1 + $0x1120] ss:$16 sps:$4 sm:$0xff]   ;;  %v31256_v40 = vmax.f32 %v24170_v35, %v24397_v11 }
 0x461   : > { %v21146_v36 = vld [vmem:[%s30700_s1 + $0xe68] ss:$16 sps:$4 sm:$0xff]  }
 0x462   : > { %31251 = vst [vmem:[#allocation33_spill] sm:$0xff] %v25367_v62  ;;  %7976 = vmatmul.mubr.bf16.gmra.mrb[32].mxu0 %v21137_v54  ;;  %v21151_v54 = vld [vmem:[%s30700_s1 + $0x1144] ss:$16 sps:$4 sm:$0xff]  }
 0x463   : > { %7983 = vmatprep.mubr.bf16.mxu0 %v21145_v10 }
 0x465   : > { %v5110_v21 = vpop.f32.mrb[184].mxu0 }
 0x466   : > { %v25379_v55 = vmax.f32 %v31254_v47, %v5110_v21  ;;  %v5112_v3 = vpop.f32.mrb[185].mxu0  ;;  %v31260_v47 = vmax.f32 %v31258_v48, %v31259_v9  ;;  %v31266_v9 = vld [vmem:[#allocation55_spill] sm:$0xff] }
 0x467   : > { %6743 = vmatmul.mubr.bf16.gmra.mrb[252].mxu1 %v21142_v45  ;;  %v5113_v51 = vpop.f32.mrb[186].mxu0  ;;  %v21154_v45 = vld [vmem:[%s30700_s1 + $0xe8c] ss:$16 sps:$4 sm:$0xff]  }
 0x468   : > { %31255 = vst [vmem:[#allocation44_spill] sm:$0xff] %v25379_v55  ;;  %v25390_v10 = vmax.f32 %v31256_v40, %v5113_v51  ;;  %v5115_v27 = vpop.f32.mrb[187].mxu0  ;;  %17954 = vmatprep.mubr.msk.bf16.mxu1 %vm1498_vm0, %v21148_v4  ;;  %v21149_v4 = vld [vmem:[%s30700_s1 + $0x1140] ss:$16 sps:$4 sm:$0xff]  }
 0x469   : > { %v31262_v51 = vld [vmem:[#allocation52_spill] sm:$0xff] }
 0x46a   : > { %31257 = vst [vmem:[#allocation34_spill] sm:$0xff] %v25390_v10  ;;  %7984 = vmatmul.mubr.bf16.gmra.mrb[36].mxu0 %v21143_v50  ;;  %v21157_v50 = vld [vmem:[%s30700_s1 + $0x1164] ss:$16 sps:$4 sm:$0xff]  }
 0x46b   : > { %7991 = vmatprep.mubr.bf16.mxu0 %v21151_v54  ;;  %v31263_v54 = vld [vmem:[#allocation74_spill] sm:$0xff] }
 0x46c   : > { %v31264_v40 = vmax.f32 %v31262_v51, %v31263_v54  ;;  %v31271_v54 = vld [vmem:[#allocation76_spill] sm:$0xff] }
 0x46d   : > { %v5118_v21 = vpop.f32.mrb[188].mxu0 }
 0x46e   : > { %v25402_v35 = vmax.f32 %v31260_v47, %v5118_v21  ;;  %v5120_v11 = vpop.f32.mrb[189].mxu0  ;;  %v21152_v21 = vld [vmem:[%s30700_s1 + $0xe88] ss:$16 sps:$4 sm:$0xff]  }
 0x46f   : > { %6751 = vmatmul.mubr.bf16.gmra.mrb[0].mxu1 %v21146_v36  ;;  %v5121_v3 = vpop.f32.mrb[190].mxu0  ;;  %v21160_v36 = vld [vmem:[%s30700_s1 + $0xeac] ss:$16 sps:$4 sm:$0xff]   ;;  %v31267_v47 = vld [vmem:[#allocation75_spill] sm:$0xff] }
 0x470   : > { %31261 = vst [vmem:[#allocation45_spill] sm:$0xff] %v25402_v35  ;;  %v25413_v27 = vmax.f32 %v31264_v40, %v5121_v3  ;;  %v5123_v10 = vpop.f32.mrb[191].mxu0  ;;  %17955 = vmatprep.mubr.msk.bf16.mxu1 %vm1498_vm0, %v21154_v45  ;;  %v31268_v11 = vmax.f32 %v31266_v9, %v31267_v47  ;;  %v31274_v47 = vld [vmem:[#allocation59_spill] sm:$0xff] }
 0x471   : > { %v21155_v10 = vld [vmem:[%s30700_s1 + $0x1160] ss:$16 sps:$4 sm:$0xff]  }
 0x472   : > { %31265 = vst [vmem:[#allocation35_spill] sm:$0xff] %v25413_v27  ;;  %7992 = vmatmul.mubr.bf16.gmra.mrb[40].mxu0 %v21149_v4  ;;  %v21163_v4 = vld [vmem:[%s30700_s1 + $0x1184] ss:$16 sps:$4 sm:$0xff]  }
 0x473   : > { %7999 = vmatprep.mubr.bf16.mxu0 %v21157_v50  ;;  %v31270_v50 = vld [vmem:[#allocation56_spill] sm:$0xff] }
 0x474   : > { %v31272_v40 = vmax.f32 %v31270_v50, %v31271_v54  ;;  %v31279_v54 = vld [vmem:[#allocation78_spill] sm:$0xff] }
 0x475   : > { %v5126_v48 = vpop.f32.mrb[192].mxu0 }
 0x476   : > { %v25425_v51 = vmax.f32 %v31268_v11, %v5126_v48  ;;  %v5128_v3 = vpop.f32.mrb[193].mxu0  ;;  %v21158_v48 = vld [vmem:[%s30700_s1 + $0xea8] ss:$16 sps:$4 sm:$0xff]  }
 0x477   : > { %6759 = vmatmul.mubr.bf16.gmra.mrb[4].mxu1 %v21152_v21  ;;  %v5129_v45 = vpop.f32.mrb[194].mxu0  ;;  %v21166_v21 = vld [vmem:[%s30700_s1 + $0xecc] ss:$16 sps:$4 sm:$0xff]   ;;  %v31275_v11 = vld [vmem:[#allocation77_spill] sm:$0xff] }
 0x478   : > { %31269 = vst [vmem:[#allocation46_spill] sm:$0xff] %v25425_v51  ;;  %v25436_v27 = vmax.f32 %v31272_v40, %v5129_v45  ;;  %v5131_v35 = vpop.f32.mrb[195].mxu0  ;;  %17956 = vmatprep.mubr.msk.bf16.mxu1 %vm1498_vm0, %v21160_v36  ;;  %v31276_v3 = vmax.f32 %v31274_v47, %v31275_v11  ;;  %v31282_v11 = vld [vmem:[#allocation63_spill] sm:$0xff] }
 0x479   : > { %v21161_v35 = vld [vmem:[%s30700_s1 + $0x1180] ss:$16 sps:$4 sm:$0xff]  }
 0x47a   : > { %31273 = vst [vmem:[#allocation36_spill] sm:$0xff] %v25436_v27  ;;  %8000 = vmatmul.mubr.bf16.gmra.mrb[44].mxu0 %v21155_v10  ;;  %v21169_v10 = vld [vmem:[%s30700_s1 + $0x11a4] ss:$16 sps:$4 sm:$0xff]  }
 0x47b   : > { %8007 = vmatprep.mubr.bf16.mxu0 %v21163_v4  ;;  %v31278_v4 = vld [vmem:[#allocation60_spill] sm:$0xff] }
 0x47c   : > { %v31280_v40 = vmax.f32 %v31278_v4, %v31279_v54  ;;  %v31287_v54 = vld [vmem:[#allocation80_spill] sm:$0xff] }
 0x47d   : > { %v5134_v9 = vpop.f32.mrb[196].mxu0 }
 0x47e   : > { %v25448_v50 = vmax.f32 %v31276_v3, %v5134_v9  ;;  %v5136_v45 = vpop.f32.mrb[197].mxu0  ;;  %v21164_v9 = vld [vmem:[%s30700_s1 + $0xec8] ss:$16 sps:$4 sm:$0xff]  }
 0x47f   : > { %6767 = vmatmul.mubr.bf16.gmra.mrb[8].mxu1 %v21158_v48  ;;  %v5137_v36 = vpop.f32.mrb[198].mxu0  ;;  %v21172_v48 = vld [vmem:[%s30700_s1 + $0xeec] ss:$16 sps:$4 sm:$0xff]   ;;  %v31283_v3 = vld [vmem:[#allocation79_spill] sm:$0xff] }
 0x480   : > { %31277 = vst [vmem:[#allocation47_spill] sm:$0xff] %v25448_v50  ;;  %v25459_v27 = vmax.f32 %v31280_v40, %v5137_v36  ;;  %v5139_v51 = vpop.f32.mrb[199].mxu0  ;;  %17957 = vmatprep.mubr.msk.bf16.mxu1 %vm1498_vm0, %v21166_v21  ;;  %v31284_v45 = vmax.f32 %v31282_v11, %v31283_v3  ;;  %v31290_v3 = vld [vmem:[#allocation9_spill] sm:$0xff] }
 0x481   : > { %v21167_v51 = vld [vmem:[%s30700_s1 + $0x11a0] ss:$16 sps:$4 sm:$0xff]  }
 0x482   : > { %31281 = vst [vmem:[#allocation49_spill] sm:$0xff] %v25459_v27  ;;  %8008 = vmatmul.mubr.bf16.gmra.mrb[48].mxu0 %v21161_v35  ;;  %v21175_v35 = vld [vmem:[%s30700_s1 + $0x11c4] ss:$16 sps:$4 sm:$0xff]  }
 0x483   : > { %8015 = vmatprep.mubr.bf16.mxu0 %v21169_v10  ;;  %v31286_v10 = vld [vmem:[#allocation64_spill] sm:$0xff] }
 0x484   : > { %v31288_v40 = vmax.f32 %v31286_v10, %v31287_v54  ;;  %v31295_v54 = vld [vmem:[#allocation82_spill] sm:$0xff] }
 0x485   : > { %v5142_v47 = vpop.f32.mrb[200].mxu0 }
 0x486   : > { %v25471_v4 = vmax.f32 %v31284_v45, %v5142_v47  ;;  %v5144_v36 = vpop.f32.mrb[201].mxu0  ;;  %v21170_v47 = vld [vmem:[%s30700_s1 + $0xee8] ss:$16 sps:$4 sm:$0xff]  }
 0x487   : > { %6775 = vmatmul.mubr.bf16.gmra.mrb[12].mxu1 %v21164_v9  ;;  %v5145_v21 = vpop.f32.mrb[202].mxu0  ;;  %v21178_v9 = vld [vmem:[%s30700_s1 + $0xf0c] ss:$16 sps:$4 sm:$0xff]   ;;  %v31291_v45 = vld [vmem:[#allocation81_spill] sm:$0xff] }
 0x488   : > { %31285 = vst [vmem:[#allocation37_spill] sm:$0xff] %v25471_v4  ;;  %v25482_v27 = vmax.f32 %v31288_v40, %v5145_v21  ;;  %v5147_v50 = vpop.f32.mrb[203].mxu0  ;;  %17958 = vmatprep.mubr.msk.bf16.mxu1 %vm1498_vm0, %v21172_v48  ;;  %v31292_v36 = vmax.f32 %v31290_v3, %v31291_v45  ;;  %v31298_v45 = vld [vmem:[#allocation11_spill] sm:$0xff] }
 0x489   : > { %v21173_v50 = vld [vmem:[%s30700_s1 + $0x11c0] ss:$16 sps:$4 sm:$0xff]  }
 0x48a   : > { %31289 = vst [vmem:[#allocation50_spill] sm:$0xff] %v25482_v27  ;;  %8016 = vmatmul.mubr.bf16.gmra.mrb[52].mxu0 %v21167_v51  ;;  %v21181_v51 = vld [vmem:[%s30700_s1 + $0x11e4] ss:$16 sps:$4 sm:$0xff]  }
 0x48b   : > { %8023 = vmatprep.mubr.bf16.mxu0 %v21175_v35  ;;  %v31294_v35 = vld [vmem:[#allocation10_spill] sm:$0xff] }
 0x48c   : > { %v31296_v40 = vmax.f32 %v31294_v35, %v31295_v54  ;;  %v31303_v54 = vld [vmem:[#allocation84_spill] sm:$0xff] }
 0x48d   : > { %v5150_v11 = vpop.f32.mrb[204].mxu0 }
 0x48e   : > { %v25494_v10 = vmax.f32 %v31292_v36, %v5150_v11  ;;  %v5152_v21 = vpop.f32.mrb[205].mxu0  ;;  %v21176_v11 = vld [vmem:[%s30700_s1 + $0xf08] ss:$16 sps:$4 sm:$0xff]  }
 0x48f   : > { %6783 = vmatmul.mubr.bf16.gmra.mrb[16].mxu1 %v21170_v47  ;;  %v5153_v48 = vpop.f32.mrb[206].mxu0  ;;  %v21184_v47 = vld [vmem:[%s30700_s1 + $0xf2c] ss:$16 sps:$4 sm:$0xff]   ;;  %v31299_v36 = vld [vmem:[#allocation83_spill] sm:$0xff] }
 0x490   : > { %31293 = vst [vmem:[#allocation53_spill] sm:$0xff] %v25494_v10  ;;  %v25505_v27 = vmax.f32 %v31296_v40, %v5153_v48  ;;  %v5155_v4 = vpop.f32.mrb[207].mxu0  ;;  %17959 = vmatprep.mubr.msk.bf16.mxu1 %vm1498_vm0, %v21178_v9  ;;  %v31300_v21 = vmax.f32 %v31298_v45, %v31299_v36  ;;  %v31306_v36 = vld [vmem:[#allocation13_spill] sm:$0xff] }
 0x491   : > { %v21179_v4 = vld [vmem:[%s30700_s1 + $0x11e0] ss:$16 sps:$4 sm:$0xff]  }
 0x492   : > { %31297 = vst [vmem:[#allocation54_spill] sm:$0xff] %v25505_v27  ;;  %8024 = vmatmul.mubr.bf16.gmra.mrb[56].mxu0 %v21173_v50  ;;  %v21187_v50 = vld [vmem:[%s30700_s1 + $0x1204] ss:$16 sps:$4 sm:$0xff]  }
 0x493   : > { %8031 = vmatprep.mubr.bf16.mxu0 %v21181_v51  ;;  %v31302_v51 = vld [vmem:[#allocation12_spill] sm:$0xff] }
 0x494   : > { %v31304_v40 = vmax.f32 %v31302_v51, %v31303_v54  ;;  %v31311_v54 = vld [vmem:[#allocation86_spill] sm:$0xff] }
 0x495   : > { %v5158_v3 = vpop.f32.mrb[208].mxu0 }
 0x496   : > { %v25517_v35 = vmax.f32 %v31300_v21, %v5158_v3  ;;  %v5160_v48 = vpop.f32.mrb[209].mxu0  ;;  %v21182_v3 = vld [vmem:[%s30700_s1 + $0xf28] ss:$16 sps:$4 sm:$0xff]  }
 0x497   : > { %6791 = vmatmul.mubr.bf16.gmra.mrb[20].mxu1 %v21176_v11  ;;  %v5161_v9 = vpop.f32.mrb[210].mxu0  ;;  %v21190_v11 = vld [vmem:[%s30700_s1 + $0xf4c] ss:$16 sps:$4 sm:$0xff]   ;;  %v31307_v21 = vld [vmem:[#allocation85_spill] sm:$0xff] }
 0x498   : > { %31301 = vst [vmem:[#allocation57_spill] sm:$0xff] %v25517_v35  ;;  %v25528_v27 = vmax.f32 %v31304_v40, %v5161_v9  ;;  %v5163_v10 = vpop.f32.mrb[211].mxu0  ;;  %17960 = vmatprep.mubr.msk.bf16.mxu1 %vm1498_vm0, %v21184_v47  ;;  %v31308_v48 = vmax.f32 %v31306_v36, %v31307_v21  ;;  %v31314_v21 = vld [vmem:[#allocation15_spill] sm:$0xff] }
 0x499   : > { %v21185_v10 = vld [vmem:[%s30700_s1 + $0x1200] ss:$16 sps:$4 sm:$0xff]  }
 0x49a   : > { %31305 = vst [vmem:[#allocation58_spill] sm:$0xff] %v25528_v27  ;;  %8032 = vmatmul.mubr.bf16.gmra.mrb[60].mxu0 %v21179_v4  ;;  %v21193_v4 = vld [vmem:[%s30700_s1 + $0x1224] ss:$16 sps:$4 sm:$0xff]  }
 0x49b   : > { %8039 = vmatprep.mubr.bf16.mxu0 %v21187_v50  ;;  %v31310_v50 = vld [vmem:[#allocation14_spill] sm:$0xff] }
 0x49c   : > { %v31312_v40 = vmax.f32 %v31310_v50, %v31311_v54  ;;  %v31319_v54 = vld [vmem:[#allocation88_spill] sm:$0xff] }
 0x49d   : > { %v5166_v45 = vpop.f32.mrb[212].mxu0 }
 0x49e   : > { %v25540_v51 = vmax.f32 %v31308_v48, %v5166_v45  ;;  %v5168_v9 = vpop.f32.mrb[213].mxu0  ;;  %v21188_v45 = vld [vmem:[%s30700_s1 + $0xf48] ss:$16 sps:$4 sm:$0xff]  }
 0x49f   : > { %6799 = vmatmul.mubr.bf16.gmra.mrb[24].mxu1 %v21182_v3  ;;  %v5169_v47 = vpop.f32.mrb[214].mxu0  ;;  %v21196_v3 = vld [vmem:[%s30700_s1 + $0xf6c] ss:$16 sps:$4 sm:$0xff]   ;;  %v31315_v48 = vld [vmem:[#allocation87_spill] sm:$0xff] }
 0x4a0   : > { %31309 = vst [vmem:[#allocation61_spill] sm:$0xff] %v25540_v51  ;;  %v25551_v27 = vmax.f32 %v31312_v40, %v5169_v47  ;;  %v5171_v35 = vpop.f32.mrb[215].mxu0  ;;  %17961 = vmatprep.mubr.msk.bf16.mxu1 %vm1498_vm0, %v21190_v11  ;;  %v31316_v9 = vmax.f32 %v31314_v21, %v31315_v48  ;;  %v21194_v48 = vld [vmem:[%s30700_s1 + $0xf68] ss:$16 sps:$4 sm:$0xff]  }
 0x4a1   : > { %v21191_v35 = vld [vmem:[%s30700_s1 + $0x1220] ss:$16 sps:$4 sm:$0xff]  }
 0x4a2   : > { %31313 = vst [vmem:[#allocation62_spill] sm:$0xff] %v25551_v27  ;;  %8040 = vmatmul.mubr.bf16.gmra.mrb[64].mxu0 %v21185_v10  ;;  %v21199_v10 = vld [vmem:[%s30700_s1 + $0x1244] ss:$16 sps:$4 sm:$0xff]  }
 0x4a3   : > { %8047 = vmatprep.mubr.bf16.mxu0 %v21193_v4  ;;  %v31318_v4 = vld [vmem:[#allocation16_spill] sm:$0xff] }
 0x4a4   : > { %v31320_v40 = vmax.f32 %v31318_v4, %v31319_v54  ;;  %v31325_v4 = vld [vmem:[#allocation89_spill] sm:$0xff] }
 0x4a5   : > { %v5174_v36 = vpop.f32.mrb[216].mxu0 }
 0x4a6   : > { %v25563_v50 = vmax.f32 %v31316_v9, %v5174_v36  ;;  %v5176_v47 = vpop.f32.mrb[217].mxu0 }
 0x4a7   : > { %6807 = vmatmul.mubr.bf16.gmra.mrb[28].mxu1 %v21188_v45  ;;  %v5177_v11 = vpop.f32.mrb[218].mxu0 }
 0x4a8   : > { %31317 = vst [vmem:[#allocation65_spill] sm:$0xff] %v25563_v50  ;;  %v25574_v27 = vmax.f32 %v31320_v40, %v5177_v11  ;;  %v5179_v51 = vpop.f32.mrb[219].mxu0  ;;  %17962 = vmatprep.mubr.msk.bf16.mxu1 %vm1498_vm0, %v21196_v3  ;;  %v31324_v11 = vld [vmem:[#allocation17_spill] sm:$0xff]  ;;  %v31328_v3 = vmax.f32 %v23684_v33, %v24666_v31  ;;  %v21208_v33 = vld [vmem:[%s30700_s1 + $0xfac] ss:$16 sps:$4 sm:$0xff]   ;;  %v31335_v31 = vmax.f32 %v23703_v46, %v24687_v8 }
 0x4a9   : > { %v21202_v51 = vld [vmem:[%s30700_s1 + $0xf8c] ss:$16 sps:$4 sm:$0xff]   ;;  %v31326_v54 = vmax.f32 %v31324_v11, %v31325_v4  ;;  %v21200_v4 = vld [vmem:[%s30700_s1 + $0xf88] ss:$16 sps:$4 sm:$0xff]   ;;  %v31342_v46 = vmax.f32 %v23731_v13, %v24708_v22  ;;  %v31349_v22 = vmax.f32 %v23760_v5, %v24729_v7  ;;  %v21226_v5 = vld [vmem:[%s30700_s1 + $0x1404] ss:$16 sps:$4 sm:$0xff]   ;;  %v31356_v7 = vmax.f32 %v23789_v44, %v24750_v43 }
 0x4aa   : > { %31321 = vst [vmem:[#allocation66_spill] sm:$0xff] %v25574_v27  ;;  %v25577_v36 = vpop.f32.mrb[180].mxu1  ;;  %8048 = vmatmul.mubr.bf16.gmra.mrb[68].mxu0 %v21191_v35  ;;  %v21214_v8 = vld [vmem:[%s30700_s1 + $0xfcc] ss:$16 sps:$4 sm:$0xff]   ;;  %v21232_v44 = vld [vmem:[%s30700_s1 + $0x1424] ss:$16 sps:$4 sm:$0xff]   ;;  %v31363_v43 = vmax.f32 %v23818_v37, %v24771_v19 }
 0x4ab   : > { %31322 = vst [vmem:[#allocation67_spill] sm:$0xff] %v25577_v36  ;;  %v6602_v45 = vpop.f32.mrb[181].mxu1  ;;  %8055 = vmatprep.mubr.bf16.mxu0 %v21199_v10  ;;  %v21197_v10 = vld [vmem:[%s30700_s1 + $0x1240] ss:$16 sps:$4 sm:$0xff]   ;;  %v21205_v36 = vld [vmem:[%s30700_s1 + $0x1264] ss:$16 sps:$4 sm:$0xff]  }
 0x4ac   : > { %v25584_v9 = vpop.f32.mrb[182].mxu1  ;;  %v21220_v13 = vld [vmem:[%s30700_s1 + $0xfec] ss:$16 sps:$4 sm:$0xff]   ;;  %v21238_v19 = vld [vmem:[%s30700_s1 + $0x1444] ss:$16 sps:$4 sm:$0xff]  }
 0x4ad   : > { %31323 = vst [vmem:[#allocation68_spill] sm:$0xff] %v25584_v9  ;;  %v5182_v47 = vpop.f32.mrb[220].mxu0  ;;  %v6605_v35 = vpop.f32.mrb[183].mxu1  ;;  %v26234_v50 = vld [vmem:[%s22624_s17 + $0x78] sm:$0xff]  }
 0x4ae   : > { %v25594_v40 = vmax.f32 %v31326_v54, %v5182_v47  ;;  %v5184_v45 = vpop.f32.mrb[221].mxu0 }
 0x4af   : > { %6815 = vmatmul.mubr.bf16.gmra.mrb[32].mxu1 %v21194_v48  ;;  %v5185_v21 = vpop.f32.mrb[222].mxu0 }
 0x4b0   : > { %31327 = vst [vmem:[#allocation69_spill] sm:$0xff] %v25594_v40  ;;  %v25605_v35 = vmax.f32 %v31328_v3, %v5185_v21  ;;  %v5187_v9 = vpop.f32.mrb[223].mxu0  ;;  %17963 = vmatprep.mubr.msk.bf16.mxu1 %vm1498_vm0, %v21202_v51  ;;  %v31331_v51 = vld [vmem:[#allocation18_spill] sm:$0xff] }
 0x4b1   : > { %v31332_v3 = vld [vmem:[#allocation90_spill] sm:$0xff] }
 0x4b2   : > { %v25608_v47 = vpop.f32.mrb[184].mxu1  ;;  %8056 = vmatmul.mubr.bf16.gmra.mrb[76].mxu0 %v21197_v10  ;;  %v31333_v45 = vmax.f32 %v31331_v51, %v31332_v3  ;;  %v21206_v3 = vld [vmem:[%s30700_s1 + $0xfa8] ss:$16 sps:$4 sm:$0xff]  }
 0x4b3   : > { %31329 = vst [vmem:[#allocation70_spill] sm:$0xff] %v25608_v47  ;;  %v6610_v48 = vpop.f32.mrb[185].mxu1  ;;  %8063 = vmatprep.mubr.bf16.mxu0 %v21205_v36  ;;  %v21203_v36 = vld [vmem:[%s30700_s1 + $0x1260] ss:$16 sps:$4 sm:$0xff]   ;;  %v21211_v47 = vld [vmem:[%s30700_s1 + $0x1284] ss:$16 sps:$4 sm:$0xff]  }
 0x4b4   : > { %v25615_v54 = vpop.f32.mrb[186].mxu1 }
 0x4b5   : > { %31330 = vst [vmem:[#allocation71_spill] sm:$0xff] %v25615_v54  ;;  %v5190_v21 = vpop.f32.mrb[224].mxu0  ;;  %v6613_v9 = vpop.f32.mrb[187].mxu1 }
 0x4b6   : > { %v25625_v10 = vmax.f32 %v31333_v45, %v5190_v21  ;;  %v5192_v48 = vpop.f32.mrb[225].mxu0 }
 0x4b7   : > { %6823 = vmatmul.mubr.bf16.gmra.mrb[36].mxu1 %v21200_v4  ;;  %v5193_v11 = vpop.f32.mrb[226].mxu0 }
 0x4b8   : > { %31334 = vst [vmem:[#allocation48_spill] sm:$0xff] %v25625_v10  ;;  %v25636_v9 = vmax.f32 %v31335_v31, %v5193_v11  ;;  %v5195_v54 = vpop.f32.mrb[227].mxu0  ;;  %17964 = vmatprep.mubr.msk.bf16.mxu1 %vm1498_vm0, %v21208_v33  ;;  %v31338_v33 = vld [vmem:[#allocation19_spill] sm:$0xff] }
 0x4b9   : > { %v31339_v31 = vld [vmem:[#allocation91_spill] sm:$0xff] }
 0x4ba   : > { %v25639_v21 = vpop.f32.mrb[188].mxu1  ;;  %8064 = vmatmul.mubr.bf16.gmra.mrb[72].mxu0 %v21203_v36  ;;  %v31340_v48 = vmax.f32 %v31338_v33, %v31339_v31  ;;  %v21212_v31 = vld [vmem:[%s30700_s1 + $0xfc8] ss:$16 sps:$4 sm:$0xff]  }
 0x4bb   : > { %31336 = vst [vmem:[#allocation72_spill] sm:$0xff] %v25639_v21  ;;  %v6618_v4 = vpop.f32.mrb[189].mxu1  ;;  %8071 = vmatprep.mubr.bf16.mxu0 %v21211_v47  ;;  %v21209_v47 = vld [vmem:[%s30700_s1 + $0x1280] ss:$16 sps:$4 sm:$0xff]   ;;  %v21217_v21 = vld [vmem:[%s30700_s1 + $0x12a4] ss:$16 sps:$4 sm:$0xff]  }
 0x4bc   : > { %v25646_v45 = vpop.f32.mrb[190].mxu1 }
 0x4bd   : > { %31337 = vst [vmem:[#allocation51_spill] sm:$0xff] %v25646_v45  ;;  %v5198_v11 = vpop.f32.mrb[228].mxu0  ;;  %v6621_v54 = vpop.f32.mrb[191].mxu1 }
 0x4be   : > { %v25656_v36 = vmax.f32 %v31340_v48, %v5198_v11  ;;  %v5200_v4 = vpop.f32.mrb[229].mxu0 }
 0x4bf   : > { %6831 = vmatmul.mubr.bf16.gmra.mrb[40].mxu1 %v21206_v3  ;;  %v5201_v51 = vpop.f32.mrb[230].mxu0 }
 0x4c0   : > { %31341 = vst [vmem:[#allocation73_spill] sm:$0xff] %v25656_v36  ;;  %v25667_v54 = vmax.f32 %v31342_v46, %v5201_v51  ;;  %v5203_v45 = vpop.f32.mrb[231].mxu0  ;;  %17965 = vmatprep.mubr.msk.bf16.mxu1 %vm1498_vm0, %v21214_v8  ;;  %v31345_v8 = vld [vmem:[#allocation20_spill] sm:$0xff] }
 0x4c1   : > { %v31346_v46 = vld [vmem:[#allocation92_spill] sm:$0xff] }
 0x4c2   : > { %v25670_v11 = vpop.f32.mrb[192].mxu1  ;;  %8072 = vmatmul.mubr.bf16.gmra.mrb[80].mxu0 %v21209_v47  ;;  %v31347_v4 = vmax.f32 %v31345_v8, %v31346_v46  ;;  %v21218_v46 = vld [vmem:[%s30700_s1 + $0xfe8] ss:$16 sps:$4 sm:$0xff]  }
 0x4c3   : > { %31343 = vst [vmem:[#allocation52_spill] sm:$0xff] %v25670_v11  ;;  %v6626_v3 = vpop.f32.mrb[193].mxu1  ;;  %8079 = vmatprep.mubr.bf16.mxu0 %v21217_v21  ;;  %v21215_v21 = vld [vmem:[%s30700_s1 + $0x12a0] ss:$16 sps:$4 sm:$0xff]   ;;  %v21223_v11 = vld [vmem:[%s30700_s1 + $0x12c4] ss:$16 sps:$4 sm:$0xff]  }
 0x4c4   : > { %v25677_v48 = vpop.f32.mrb[194].mxu1 }
 0x4c5   : > { %31344 = vst [vmem:[#allocation74_spill] sm:$0xff] %v25677_v48  ;;  %v5206_v51 = vpop.f32.mrb[232].mxu0  ;;  %v6629_v45 = vpop.f32.mrb[195].mxu1 }
 0x4c6   : > { %v25687_v47 = vmax.f32 %v31347_v4, %v5206_v51  ;;  %v5208_v3 = vpop.f32.mrb[233].mxu0 }
 0x4c7   : > { %6839 = vmatmul.mubr.bf16.gmra.mrb[44].mxu1 %v21212_v31  ;;  %v5209_v33 = vpop.f32.mrb[234].mxu0 }
 0x4c8   : > { %31348 = vst [vmem:[#allocation55_spill] sm:$0xff] %v25687_v47  ;;  %v25698_v45 = vmax.f32 %v31349_v22, %v5209_v33  ;;  %v5211_v48 = vpop.f32.mrb[235].mxu0  ;;  %17966 = vmatprep.mubr.msk.bf16.mxu1 %vm1498_vm0, %v21220_v13  ;;  %v31352_v13 = vld [vmem:[#allocation21_spill] sm:$0xff] }
 0x4c9   : > { %v31353_v22 = vld [vmem:[#allocation93_spill] sm:$0xff] }
 0x4ca   : > { %v25701_v51 = vpop.f32.mrb[196].mxu1  ;;  %8080 = vmatmul.mubr.bf16.gmra.mrb[84].mxu0 %v21215_v21  ;;  %v31354_v3 = vmax.f32 %v31352_v13, %v31353_v22 }
 0x4cb   : > { %31350 = vst [vmem:[#allocation75_spill] sm:$0xff] %v25701_v51  ;;  %v6634_v31 = vpop.f32.mrb[197].mxu1  ;;  %8087 = vmatprep.mubr.bf16.mxu0 %v21223_v11  ;;  %v21221_v11 = vld [vmem:[%s30700_s1 + $0x12c0] ss:$16 sps:$4 sm:$0xff]   ;;  %v21229_v51 = vld [vmem:[%s30700_s1 + $0x12e4] ss:$16 sps:$4 sm:$0xff]  }
 0x4cc   : > { %v25708_v4 = vpop.f32.mrb[198].mxu1 }
 0x4cd   : > { %31351 = vst [vmem:[#allocation56_spill] sm:$0xff] %v25708_v4  ;;  %v5214_v33 = vpop.f32.mrb[236].mxu0  ;;  %v6637_v48 = vpop.f32.mrb[199].mxu1 }
 0x4ce   : > { %v25718_v21 = vmax.f32 %v31354_v3, %v5214_v33  ;;  %v5216_v31 = vpop.f32.mrb[237].mxu0 }
 0x4cf   : > { %6847 = vmatmul.mubr.bf16.gmra.mrb[48].mxu1 %v21218_v46  ;;  %v5217_v8 = vpop.f32.mrb[238].mxu0  ;;  %v21224_v46 = vld [vmem:[%s30700_s1 + $0x1400] ss:$16 sps:$4 sm:$0xff]  }
 0x4d0   : > { %31355 = vst [vmem:[#allocation76_spill] sm:$0xff] %v25718_v21  ;;  %v25729_v48 = vmax.f32 %v31356_v7, %v5217_v8  ;;  %v5219_v4 = vpop.f32.mrb[239].mxu0  ;;  %9513 = vmatprep.mubr.bf16.mxu1 %v21226_v5  ;;  %v31359_v5 = vld [vmem:[#allocation22_spill] sm:$0xff] }
 0x4d1   : > { %v31360_v7 = vld [vmem:[#allocation94_spill] sm:$0xff] }
 0x4d2   : > { %v25731_v33 = vpop.f32.mrb[200].mxu1  ;;  %8088 = vmatmul.mubr.bf16.gmra.mrb[88].mxu0 %v21221_v11  ;;  %v31361_v31 = vmax.f32 %v31359_v5, %v31360_v7  ;;  %v21230_v7 = vld [vmem:[%s30700_s1 + $0x1420] ss:$16 sps:$4 sm:$0xff]  }
 0x4d3   : > { %31357 = vst [vmem:[#allocation59_spill] sm:$0xff] %v25731_v33  ;;  %v6642_v22 = vpop.f32.mrb[201].mxu1  ;;  %8095 = vmatprep.mubr.bf16.mxu0 %v21229_v51  ;;  %v21227_v51 = vld [vmem:[%s30700_s1 + $0x12e0] ss:$16 sps:$4 sm:$0xff]   ;;  %v21235_v33 = vld [vmem:[%s30700_s1 + $0x1304] ss:$16 sps:$4 sm:$0xff]  }
 0x4d4   : > { %v25738_v3 = vpop.f32.mrb[202].mxu1 }
 0x4d5   : > { %31358 = vst [vmem:[#allocation77_spill] sm:$0xff] %v25738_v3  ;;  %v5222_v8 = vpop.f32.mrb[240].mxu0  ;;  %v6645_v4 = vpop.f32.mrb[203].mxu1 }
 0x4d6   : > { %v25748_v11 = vmax.f32 %v31361_v31, %v5222_v8  ;;  %v5224_v22 = vpop.f32.mrb[241].mxu0 }
 0x4d7   : > { %9514 = vmatmul.mubr.bf16.vlgmr.msra.gmra.mrb[52].mxu1 %v21224_v46  ;;  %v5225_v13 = vpop.f32.mrb[242].mxu0 }
 0x4d8   : > { %31362 = vst [vmem:[#allocation60_spill] sm:$0xff] %v25748_v11  ;;  %v25759_v4 = vmax.f32 %v31363_v43, %v5225_v13  ;;  %v5227_v3 = vpop.f32.mrb[243].mxu0  ;;  %9521 = vmatprep.mubr.bf16.mxu1 %v21232_v44  ;;  %9771 = vmatpush1.bf16.msra.mxu1 %v25148_v39  ;;  %v31365_v44 = vld [vmem:[#allocation23_spill] sm:$0xff] }
 0x4d9   : > { %9772 = vmatprep.subr.bf16.mxu1 %v31123_v28  ;;  %v31366_v43 = vld [vmem:[#allocation95_spill] sm:$0xff] }
 0x4da   : > { %v25763_v8 = vpop.f32.mrb[204].mxu1  ;;  %8096 = vmatmul.mubr.bf16.gmra.mrb[92].mxu0 %v21227_v51  ;;  %v31367_v31 = vmax.f32 %v31365_v44, %v31366_v43  ;;  %v21233_v51 = vld [vmem:[%s30700_s1 + $0x1300] ss:$16 sps:$4 sm:$0xff]  }
 0x4db   : > { %v6650_v5 = vpop.f32.mrb[205].mxu1  ;;  %8103 = vmatprep.mubr.bf16.mxu0 %v21235_v33  ;;  %v21236_v43 = vld [vmem:[%s30700_s1 + $0x1440] ss:$16 sps:$4 sm:$0xff]  }
 0x4dc   : > { %v25770_v37 = vpop.f32.mrb[206].mxu1  ;;  %9773 = vmatpush1.bf16.msra.mxu1 %v25167_v17  ;;  %v21241_v17 = vld [vmem:[%s30700_s1 + $0x1324] ss:$16 sps:$4 sm:$0xff]  }
 0x4dd   : > { %31364 = vst [vmem:[#allocation78_spill] sm:$0xff] %v25770_v37  ;;  %v5230_v13 = vpop.f32.mrb[244].mxu0  ;;  %v6653_v3 = vpop.f32.mrb[207].mxu1  ;;  %9774 = vmatprep.subr.bf16.mxu1 %v31123_v28 }
 0x4de   : > { %v25782_v22 = vmax.f32 %v31367_v31, %v5230_v13  ;;  %v5232_v33 = vpop.f32.mrb[245].mxu0  ;;  %v31369_v3 = vld [vmem:[#allocation96_spill] sm:$0xff] }
 0x4df   : > { %9522 = vmatmul.mubr.bf16.gmra.mrb[56].mxu1 %v21230_v7  ;;  %v5233_v5 = vpop.f32.mrb[246].mxu0  ;;  %v31370_v39 = vmax.f32 %v23840_v59, %v31369_v3  ;;  %v31372_v31 = vld [vmem:[#allocation24_spill] sm:$0xff]  ;;  %v31373_v33 = vld [vmem:[#allocation97_spill] sm:$0xff] }
 0x4e0   : > { %31368 = vst [vmem:[#allocation63_spill] sm:$0xff] %v25782_v22  ;;  %v5235_v37 = vpop.f32.mrb[247].mxu0  ;;  %9529 = vmatprep.mubr.bf16.mxu1 %v21238_v19  ;;  %9775 = vmatpush1.bf16.msra.mxu1 %v25181_v20  ;;  %v21244_v20 = vld [vmem:[%s30700_s1 + $0x1464] ss:$16 sps:$4 sm:$0xff]   ;;  %v21239_v3 = vld [vmem:[%s30700_s1 + $0x1320] ss:$16 sps:$4 sm:$0xff]  }
 0x4e1   : > { %v25793_v46 = vmax.f32 %v31370_v39, %v5233_v5  ;;  %9776 = vmatprep.subr.bf16.mxu1 %v31123_v28 }
 0x4e2   : > { %v25797_v13 = vpop.f32.mrb[208].mxu1  ;;  %8104 = vmatmul.mubr.bf16.gmra.mrb[96].mxu0 %v21233_v51  ;;  %v31374_v51 = vmax.f32 %v31372_v31, %v31373_v33  ;;  %v21242_v33 = vld [vmem:[%s30700_s1 + $0x1460] ss:$16 sps:$4 sm:$0xff]  }
 0x4e3   : > { %v6658_v44 = vpop.f32.mrb[209].mxu1  ;;  %8111 = vmatprep.mubr.bf16.mxu0 %v21241_v17 }
 0x4e4   : > { %v25804_v59 = vpop.f32.mrb[210].mxu1  ;;  %9777 = vmatpush1.bf16.msra.mxu1 %v25200_v61  ;;  %v21247_v61 = vld [vmem:[%s30700_s1 + $0x1344] ss:$16 sps:$4 sm:$0xff]  }
 0x4e5   : > { %31371 = vst [vmem:[#allocation79_spill] sm:$0xff] %v25804_v59  ;;  %v5238_v19 = vpop.f32.mrb[248].mxu0  ;;  %v6661_v39 = vpop.f32.mrb[211].mxu1  ;;  %9778 = vmatprep.subr.bf16.mxu1 %v31123_v28 }
 0x4e6   : > { %v25816_v5 = vmax.f32 %v31374_v51, %v5238_v19  ;;  %v5240_v17 = vpop.f32.mrb[249].mxu0  ;;  %v31376_v39 = vld [vmem:[#allocation98_spill] sm:$0xff]  ;;  %v31379_v51 = vld [vmem:[#allocation25_spill] sm:$0xff] }
 0x4e7   : > { %9530 = vmatmul.mubr.bf16.gmra.mrb[60].mxu1 %v21236_v43  ;;  %v5241_v44 = vpop.f32.mrb[250].mxu0  ;;  %v31377_v37 = vmax.f32 %v23859_v18, %v31376_v39  ;;  %v31380_v17 = vld [vmem:[#allocation99_spill] sm:$0xff] }
 0x4e8   : > { %31375 = vst [vmem:[#allocation64_spill] sm:$0xff] %v25816_v5  ;;  %v5243_v59 = vpop.f32.mrb[251].mxu0  ;;  %9537 = vmatprep.mubr.bf16.mxu1 %v21244_v20  ;;  %9779 = vmatpush1.bf16.msra.mxu1 %v25214_v56  ;;  %v21250_v56 = vld [vmem:[%s30700_s1 + $0x1484] ss:$16 sps:$4 sm:$0xff]   ;;  %v21245_v39 = vld [vmem:[%s30700_s1 + $0x1340] ss:$16 sps:$4 sm:$0xff]  }
 0x4e9   : > { %v25827_v7 = vmax.f32 %v31377_v37, %v5241_v44  ;;  %9780 = vmatprep.subr.bf16.mxu1 %v31123_v28  ;;  %v31382_v59 = vld [vmem:[#allocation26_spill] sm:$0xff] }
 0x4ea   : > { %v25831_v19 = vpop.f32.mrb[212].mxu1  ;;  %8112 = vmatmul.mubr.bf16.gmra.mrb[100].mxu0 %v21239_v3  ;;  %v31381_v3 = vmax.f32 %v31379_v51, %v31380_v17 }
 0x4eb   : > { %v6666_v31 = vpop.f32.mrb[213].mxu1  ;;  %8119 = vmatprep.mubr.bf16.mxu0 %v21247_v61 }
 0x4ec   : > { %v25838_v18 = vpop.f32.mrb[214].mxu1  ;;  %9781 = vmatpush1.bf16.msra.mxu1 %v25233_v63  ;;  %v21253_v63 = vld [vmem:[%s30700_s1 + $0x1364] ss:$16 sps:$4 sm:$0xff]  }
 0x4ed   : > { %31378 = vst [vmem:[#allocation80_spill] sm:$0xff] %v25838_v18  ;;  %v5246_v20 = vpop.f32.mrb[252].mxu0  ;;  %v6669_v37 = vpop.f32.mrb[215].mxu1  ;;  %9782 = vmatprep.subr.bf16.mxu1 %v31123_v28 }
 0x4ee   : > { %v25850_v44 = vmax.f32 %v31381_v3, %v5246_v20  ;;  %v5248_v61 = vpop.f32.mrb[253].mxu0  ;;  %v31383_v37 = vld [vmem:[#allocation100_spill] sm:$0xff]  ;;  %v31385_v20 = vld [vmem:[#allocation38_spill] sm:$0xff] }
 0x4ef   : > { %9538 = vmatmul.mubr.bf16.gmra.mrb[64].mxu1 %v21242_v33  ;;  %v5249_v31 = vpop.f32.mrb[254].mxu0  ;;  %v31384_v43 = vmax.f32 %v31382_v59, %v31383_v37  ;;  %v21248_v61 = vld [vmem:[%s30700_s1 + $0x1480] ss:$16 sps:$4 sm:$0xff]  }
 0x4f0   : > { %v5251_v16 = vpop.f32.mrb[255].mxu0  ;;  %9545 = vmatprep.mubr.bf16.mxu1 %v21250_v56  ;;  %9783 = vmatpush1.bf16.msra.mxu1 %v31385_v20  ;;  %v31389_v56 = vld [vmem:[#allocation39_spill] sm:$0xff]  ;;  %v31391_v20 = vld [vmem:[#allocation8_spill] sm:$0xff] }
 0x4f1   : > { %v25861_v18 = vmax.f32 %v31384_v43, %v5249_v31  ;;  %9784 = vmatprep.subr.bf16.mxu1 %v31123_v28  ;;  %v21256_v16 = vld [vmem:[%s30700_s1 + $0x14a4] ss:$16 sps:$4 sm:$0xff]   ;;  %v21251_v37 = vld [vmem:[%s30700_s1 + $0x1360] ss:$16 sps:$4 sm:$0xff]  }
 0x4f2   : > { %v25865_v51 = vpop.f32.mrb[216].mxu1  ;;  %8120 = vmatmul.mubr.bf16.gmra.mrb[104].mxu0 %v21245_v39 }
 0x4f3   : > { %31386 = vst [vmem:[#allocation9_spill] sm:$0xff] %v25865_v51  ;;  %v6674_v3 = vpop.f32.mrb[217].mxu1  ;;  %8127 = vmatprep.mubr.bf16.mxu0 %v21253_v63  ;;  %v21259_v63 = vld [vmem:[%s30700_s1 + $0x1384] ss:$16 sps:$4 sm:$0xff]  }
 0x4f4   : > { %v25872_v43 = vpop.f32.mrb[218].mxu1  ;;  %9785 = vmatpush1.bf16.msra.mxu1 %v31389_v56  ;;  %v21289_v56 = vld [vmem:[%s30700_s1 + $0x102c] ss:$16 sps:$4 sm:$0xff]  }
 0x4f5   : > { %31388 = vst [vmem:[#allocation81_spill] sm:$0xff] %v25872_v43  ;;  %v6677_v31 = vpop.f32.mrb[219].mxu1  ;;  %9786 = vmatprep.subr.bf16.mxu1 %v31123_v28  ;;  %v26172_v43 = vld [vmem:[%s22624_s17 + $0x58] sm:$0xff]   ;;  %v26203_v51 = vld [vmem:[%s22624_s17 + $0x68] sm:$0xff]  }
 0x4f7   : > { %9546 = vmatmul.mubr.bf16.gmra.mrb[68].mxu1 %v21248_v61  ;;  %v21254_v61 = vld [vmem:[%s30700_s1 + $0x14a0] ss:$16 sps:$4 sm:$0xff]  }
 0x4f8   : > { %9553 = vmatprep.mubr.bf16.mxu1 %v21256_v16  ;;  %9787 = vmatpush1.bf16.msra.mxu1 %v31391_v20  ;;  %v21262_v16 = vld [vmem:[%s30700_s1 + $0x14c4] ss:$16 sps:$4 sm:$0xff]  }
 0x4f9   : > { %12685 = vmatprep.subr.bf16.mxu1 %v31123_v28 }
 0x4fa   : > { %v25889_v3 = vpop.f32.mrb[220].mxu1  ;;  %8128 = vmatmul.mubr.bf16.gmra.mrb[108].mxu0 %v21251_v37  ;;  %v21257_v37 = vld [vmem:[%s30700_s1 + $0x1380] ss:$16 sps:$4 sm:$0xff]  }
 0x4fb   : > { %31392 = vst [vmem:[#allocation10_spill] sm:$0xff] %v25889_v3  ;;  %v6682_v31 = vpop.f32.mrb[221].mxu1  ;;  %8135 = vmatprep.mubr.bf16.mxu0 %v21259_v63 }
 0x4fc   : > { %v25896_v39 = vpop.f32.mrb[222].mxu1  ;;  %v21265_v31 = vld [vmem:[%s30700_s1 + $0x13a4] ss:$16 sps:$4 sm:$0xff]  }
 0x4fd   : > { %31393 = vst [vmem:[#allocation82_spill] sm:$0xff] %v25896_v39  ;;  %v6685_v20 = vpop.f32.mrb[223].mxu1 }
 0x4fe   : > { %v21260_v20 = vld [vmem:[%s30700_s1 + $0x14c0] ss:$16 sps:$4 sm:$0xff]  }
 0x4ff   : > { %9554 = vmatmul.mubr.bf16.gmra.mrb[72].mxu1 %v21254_v61  ;;  %v21268_v61 = vld [vmem:[%s30700_s1 + $0x14e4] ss:$16 sps:$4 sm:$0xff]  }
 0x500   : > { %9561 = vmatprep.mubr.bf16.mxu1 %v21262_v16 }
 0x502   : > { %v25909_v63 = vpop.f32.mrb[224].mxu1  ;;  %8136 = vmatmul.mubr.bf16.gmra.mrb[112].mxu0 %v21257_v37  ;;  %v21263_v37 = vld [vmem:[%s30700_s1 + $0x13a0] ss:$16 sps:$4 sm:$0xff]  }
 0x503   : > { %31394 = vst [vmem:[#allocation11_spill] sm:$0xff] %v25909_v63  ;;  %v6690_v3 = vpop.f32.mrb[225].mxu1  ;;  %8143 = vmatprep.mubr.bf16.mxu0 %v21265_v31 }
 0x504   : > { %v25916_v17 = vpop.f32.mrb[226].mxu1  ;;  %v21271_v3 = vld [vmem:[%s30700_s1 + $0x13c4] ss:$16 sps:$4 sm:$0xff]  }
 0x505   : > { %31395 = vst [vmem:[#allocation83_spill] sm:$0xff] %v25916_v17  ;;  %v6693_v39 = vpop.f32.mrb[227].mxu1 }
 0x506   : > { %v21266_v39 = vld [vmem:[%s30700_s1 + $0x14e0] ss:$16 sps:$4 sm:$0xff]  }
 0x507   : > { %9562 = vmatmul.mubr.bf16.gmra.mrb[76].mxu1 %v21260_v20  ;;  %v21274_v20 = vld [vmem:[%s30700_s1 + $0x1504] ss:$16 sps:$4 sm:$0xff]  }
 0x508   : > { %9569 = vmatprep.mubr.bf16.mxu1 %v21268_v61 }
 0x50a   : > { %v25929_v31 = vpop.f32.mrb[228].mxu1  ;;  %8144 = vmatmul.mubr.bf16.gmra.mrb[116].mxu0 %v21263_v37  ;;  %v21269_v37 = vld [vmem:[%s30700_s1 + $0x13c0] ss:$16 sps:$4 sm:$0xff]  }
 0x50b   : > { %31396 = vst [vmem:[#allocation12_spill] sm:$0xff] %v25929_v31  ;;  %v6698_v63 = vpop.f32.mrb[229].mxu1  ;;  %8151 = vmatprep.mubr.bf16.mxu0 %v21271_v3 }
 0x50c   : > { %v25936_v16 = vpop.f32.mrb[230].mxu1  ;;  %v21277_v63 = vld [vmem:[%s30700_s1 + $0x13e4] ss:$16 sps:$4 sm:$0xff]  }
 0x50d   : > { %31397 = vst [vmem:[#allocation84_spill] sm:$0xff] %v25936_v16  ;;  %v6701_v17 = vpop.f32.mrb[231].mxu1 }
 0x50e   : > { %v21272_v17 = vld [vmem:[%s30700_s1 + $0x1500] ss:$16 sps:$4 sm:$0xff]  }
 0x50f   : > { %9570 = vmatmul.mubr.bf16.gmra.mrb[80].mxu1 %v21266_v39  ;;  %v21280_v39 = vld [vmem:[%s30700_s1 + $0x1524] ss:$16 sps:$4 sm:$0xff]  }
 0x510   : > { %9577 = vmatprep.mubr.bf16.mxu1 %v21274_v20  ;;  %v26048_v20 = vld [vmem:[%s22624_s17 + $0x18] sm:$0xff]  }
 0x512   : > { %v25949_v3 = vpop.f32.mrb[232].mxu1  ;;  %8152 = vmatmul.mubr.bf16.gmra.mrb[120].mxu0 %v21269_v37  ;;  %v21275_v37 = vld [vmem:[%s30700_s1 + $0x13e0] ss:$16 sps:$4 sm:$0xff]  }
 0x513   : > { %31398 = vst [vmem:[#allocation13_spill] sm:$0xff] %v25949_v3  ;;  %v6706_v31 = vpop.f32.mrb[233].mxu1  ;;  %8159 = vmatprep.mubr.bf16.mxu0 %v21277_v63 }
 0x514   : > { %v25956_v61 = vpop.f32.mrb[234].mxu1  ;;  %v21283_v31 = vld [vmem:[%s30700_s1 + $0x100c] ss:$16 sps:$4 sm:$0xff]  }
 0x515   : > { %31399 = vst [vmem:[#allocation85_spill] sm:$0xff] %v25956_v61  ;;  %v6709_v16 = vpop.f32.mrb[235].mxu1 }
 0x516   : > { %v21278_v16 = vld [vmem:[%s30700_s1 + $0x1520] ss:$16 sps:$4 sm:$0xff]  }
 0x517   : > { %9578 = vmatmul.mubr.bf16.gmra.mrb[84].mxu1 %v21272_v17 }
 0x518   : > { %9585 = vmatprep.mubr.bf16.mxu1 %v21280_v39  ;;  %v21286_v39 = vld [vmem:[%s30700_s1 + $0x1544] ss:$16 sps:$4 sm:$0xff]  }
 0x51a   : > { %v25969_v63 = vpop.f32.mrb[236].mxu1  ;;  %8160 = vmatmul.mubr.bf16.gmra.mrb[124].mxu0 %v21275_v37 }
 0x51b   : > { %31400 = vst [vmem:[#allocation14_spill] sm:$0xff] %v25969_v63  ;;  %v6714_v3 = vpop.f32.mrb[237].mxu1  ;;  %18095 = vmatprep.mubr.msk.bf16.mxu0 %vm1498_vm0, %v21283_v31  ;;  %v26017_v63 = vld [vmem:[%s22624_s17 + $0x8] sm:$0xff]  }
 0x51c   : > { %v25977_v17 = vpop.f32.mrb[238].mxu1  ;;  %v21281_v3 = vld [vmem:[%s30700_s1 + $0x1008] ss:$16 sps:$4 sm:$0xff]  }
 0x51d   : > { %31401 = vst [vmem:[#allocation86_spill] sm:$0xff] %v25977_v17  ;;  %v6717_v61 = vpop.f32.mrb[239].mxu1 }
 0x51e   : > { %v21284_v61 = vld [vmem:[%s30700_s1 + $0x1540] ss:$16 sps:$4 sm:$0xff]  }
 0x51f   : > { %9586 = vmatmul.mubr.bf16.gmra.mrb[88].mxu1 %v21278_v16  ;;  %v25999_v16 = vld [vmem:[%s22624_s17] sm:$0xff]  }
 0x520   : > { %9593 = vmatprep.mubr.bf16.mxu1 %v21286_v39  ;;  %v21292_v39 = vld [vmem:[%s30700_s1 + $0x1564] ss:$16 sps:$4 sm:$0xff]  }
 0x522   : > { %v25990_v31 = vpop.f32.mrb[240].mxu1  ;;  %8201 = vmatmul.mubr.bf16.vlgmr.msra.gmra.mrb[0].mxu0 %v21281_v3 }
 0x523   : > { %31403 = vst [vmem:[#allocation15_spill] sm:$0xff] %v25990_v31  ;;  %v6722_v62 = vpop.f32.mrb[241].mxu1  ;;  %18096 = vmatprep.mubr.msk.bf16.mxu0 %vm1498_vm0, %v21289_v56  ;;  %11084 = vmatpush1.bf16.msra.mxu0 %v25999_v16  ;;  %v21287_v56 = vld [vmem:[%s30700_s1 + $0x1028] ss:$16 sps:$4 sm:$0xff]   ;;  %v21295_v31 = vld [vmem:[%s30700_s1 + $0x104c] ss:$16 sps:$4 sm:$0xff]  }
 0x524   : > { %v26002_v37 = vpop.f32.mrb[242].mxu1  ;;  %11085 = vmatprep.subr.bf16.mxu0 %v31123_v28  ;;  %v26030_v62 = vld [vmem:[%s22624_s17 + $0x10] sm:$0xff]  }
 0x525   : > { %31405 = vst [vmem:[#allocation87_spill] sm:$0xff] %v26002_v37  ;;  %v6725_v55 = vpop.f32.mrb[243].mxu1 }
 0x526   : > { %v21301_v55 = vld [vmem:[%s30700_s1 + $0x106c] ss:$16 sps:$4 sm:$0xff]  }
 0x527   : > { %9594 = vmatmul.mubr.bf16.gmra.mrb[92].mxu1 %v21284_v61  ;;  %11086 = vmatpush1.bf16.msra.mxu0 %v26017_v63  ;;  %v21290_v61 = vld [vmem:[%s30700_s1 + $0x1560] ss:$16 sps:$4 sm:$0xff]  }
 0x528   : > { %9601 = vmatprep.mubr.bf16.mxu1 %v21292_v39  ;;  %11087 = vmatprep.subr.bf16.mxu0 %v31123_v28 }
 0x52a   : > { %v26021_v17 = vpop.f32.mrb[244].mxu1  ;;  %8209 = vmatmul.mubr.bf16.gmra.mrb[4].mxu0 %v21287_v56  ;;  %v21298_v56 = vld [vmem:[%s30700_s1 + $0x1584] ss:$16 sps:$4 sm:$0xff]  }
 0x52b   : > { %31407 = vst [vmem:[#allocation16_spill] sm:$0xff] %v26021_v17  ;;  %v6730_v37 = vpop.f32.mrb[245].mxu1  ;;  %18097 = vmatprep.mubr.msk.bf16.mxu0 %vm1498_vm0, %v21295_v31  ;;  %11088 = vmatpush1.bf16.msra.mxu0 %v26030_v62  ;;  %v21293_v31 = vld [vmem:[%s30700_s1 + $0x1048] ss:$16 sps:$4 sm:$0xff]  }
 0x52c   : > { %v26033_v39 = vpop.f32.mrb[246].mxu1  ;;  %11089 = vmatprep.subr.bf16.mxu0 %v31123_v28  ;;  %v26061_v37 = vld [vmem:[%s22624_s17 + $0x20] sm:$0xff]  }
 0x52d   : > { %31409 = vst [vmem:[#allocation88_spill] sm:$0xff] %v26033_v39  ;;  %v6733_v17 = vpop.f32.mrb[247].mxu1 }
 0x52e   : > { %v21307_v17 = vld [vmem:[%s30700_s1 + $0x108c] ss:$16 sps:$4 sm:$0xff]  }
 0x52f   : > { %9602 = vmatmul.mubr.bf16.gmra.mrb[96].mxu1 %v21290_v61  ;;  %11090 = vmatpush1.bf16.msra.mxu0 %v26048_v20  ;;  %v21296_v61 = vld [vmem:[%s30700_s1 + $0x1580] ss:$16 sps:$4 sm:$0xff]  }
 0x530   : > { %9609 = vmatprep.mubr.bf16.mxu1 %v21298_v56  ;;  %11091 = vmatprep.subr.bf16.mxu0 %v31123_v28 }
 0x532   : > { %v26052_v6 = vpop.f32.mrb[248].mxu1  ;;  %8217 = vmatmul.mubr.bf16.gmra.mrb[8].mxu0 %v21293_v31  ;;  %v21304_v31 = vld [vmem:[%s30700_s1 + $0x15a4] ss:$16 sps:$4 sm:$0xff]  }
 0x533   : > { %31411 = vst [vmem:[#allocation17_spill] sm:$0xff] %v26052_v6  ;;  %v6738_v39 = vpop.f32.mrb[249].mxu1  ;;  %18098 = vmatprep.mubr.msk.bf16.mxu0 %vm1498_vm0, %v21301_v55  ;;  %11092 = vmatpush1.bf16.msra.mxu0 %v26061_v37  ;;  %v21299_v55 = vld [vmem:[%s30700_s1 + $0x1068] ss:$16 sps:$4 sm:$0xff]  }
 0x534   : > { %v26064_v56 = vpop.f32.mrb[250].mxu1  ;;  %11093 = vmatprep.subr.bf16.mxu0 %v31123_v28  ;;  %v26092_v39 = vld [vmem:[%s22624_s17 + $0x30] sm:$0xff]  }
 0x535   : > { %31413 = vst [vmem:[#allocation89_spill] sm:$0xff] %v26064_v56  ;;  %v6741_v6 = vpop.f32.mrb[251].mxu1 }
 0x536   : > { %v21313_v6 = vld [vmem:[%s30700_s1 + $0x10ac] ss:$16 sps:$4 sm:$0xff]  }
 0x537   : > { %9610 = vmatmul.mubr.bf16.gmra.mrb[100].mxu1 %v21296_v61  ;;  %11094 = vmatpush1.bf16.msra.mxu0 %v26079_v41  ;;  %v21302_v61 = vld [vmem:[%s30700_s1 + $0x15a0] ss:$16 sps:$4 sm:$0xff]  }
 0x538   : > { %9617 = vmatprep.mubr.bf16.mxu1 %v21304_v31  ;;  %11095 = vmatprep.subr.bf16.mxu0 %v31123_v28 }
 0x53a   : > { %v26083_v53 = vpop.f32.mrb[252].mxu1  ;;  %8225 = vmatmul.mubr.bf16.gmra.mrb[12].mxu0 %v21299_v55  ;;  %v21310_v55 = vld [vmem:[%s30700_s1 + $0x15c4] ss:$16 sps:$4 sm:$0xff]  }
 0x53b   : > { %31415 = vst [vmem:[#allocation18_spill] sm:$0xff] %v26083_v53  ;;  %v6746_v56 = vpop.f32.mrb[253].mxu1  ;;  %18099 = vmatprep.mubr.msk.bf16.mxu0 %vm1498_vm0, %v21307_v17  ;;  %11096 = vmatpush1.bf16.msra.mxu0 %v26092_v39  ;;  %v21305_v17 = vld [vmem:[%s30700_s1 + $0x1088] ss:$16 sps:$4 sm:$0xff]  }
 0x53c   : > { %v26095_v31 = vpop.f32.mrb[254].mxu1  ;;  %11097 = vmatprep.subr.bf16.mxu0 %v31123_v28  ;;  %v26123_v56 = vld [vmem:[%s22624_s17 + $0x40] sm:$0xff]  }
 0x53d   : > { %31417 = vst [vmem:[#allocation90_spill] sm:$0xff] %v26095_v31  ;;  %v6749_v53 = vpop.f32.mrb[255].mxu1 }
 0x53e   : > { %v21319_v53 = vld [vmem:[%s30700_s1 + $0x10cc] ss:$16 sps:$4 sm:$0xff]  }
 0x53f   : > { %9618 = vmatmul.mubr.bf16.gmra.mrb[104].mxu1 %v21302_v61  ;;  %11098 = vmatpush1.bf16.msra.mxu0 %v26110_v23  ;;  %v21308_v61 = vld [vmem:[%s30700_s1 + $0x15c0] ss:$16 sps:$4 sm:$0xff]  }
 0x540   : > { %9625 = vmatprep.mubr.bf16.mxu1 %v21310_v55  ;;  %11099 = vmatprep.subr.bf16.mxu0 %v31123_v28 }
 0x542   : > { %v26114_v34 = vpop.f32.mrb[0].mxu1  ;;  %8233 = vmatmul.mubr.bf16.gmra.mrb[16].mxu0 %v21305_v17  ;;  %v21316_v17 = vld [vmem:[%s30700_s1 + $0x15e4] ss:$16 sps:$4 sm:$0xff]  }
 0x543   : > { %31419 = vst [vmem:[#allocation19_spill] sm:$0xff] %v26114_v34  ;;  %v6754_v31 = vpop.f32.mrb[1].mxu1  ;;  %18100 = vmatprep.mubr.msk.bf16.mxu0 %vm1498_vm0, %v21313_v6  ;;  %11100 = vmatpush1.bf16.msra.mxu0 %v26123_v56  ;;  %v21311_v6 = vld [vmem:[%s30700_s1 + $0x10a8] ss:$16 sps:$4 sm:$0xff]  }
 0x544   : > { %v26126_v55 = vpop.f32.mrb[2].mxu1  ;;  %11101 = vmatprep.subr.bf16.mxu0 %v31123_v28  ;;  %v26154_v31 = vld [vmem:[%s22624_s17 + $0x50] sm:$0xff]  }
 0x545   : > { %31421 = vst [vmem:[#allocation91_spill] sm:$0xff] %v26126_v55  ;;  %v6757_v34 = vpop.f32.mrb[3].mxu1 }
 0x546   : > { %v21325_v34 = vld [vmem:[%s30700_s1 + $0x10ec] ss:$16 sps:$4 sm:$0xff]  }
 0x547   : > { %9626 = vmatmul.mubr.bf16.gmra.mrb[108].mxu1 %v21308_v61  ;;  %11102 = vmatpush1.bf16.msra.mxu0 %v26141_v2  ;;  %v21314_v61 = vld [vmem:[%s30700_s1 + $0x15e0] ss:$16 sps:$4 sm:$0xff]  }
 0x548   : > { %9633 = vmatprep.mubr.bf16.mxu1 %v21316_v17  ;;  %11103 = vmatprep.subr.bf16.mxu0 %v31123_v28 }
 0x54a   : > { %v26145_v42 = vpop.f32.mrb[4].mxu1  ;;  %8241 = vmatmul.mubr.bf16.gmra.mrb[20].mxu0 %v21311_v6  ;;  %v21322_v6 = vld [vmem:[%s30700_s1 + $0x1604] ss:$16 sps:$4 sm:$0xff]  }
 0x54b   : > { %31423 = vst [vmem:[#allocation20_spill] sm:$0xff] %v26145_v42  ;;  %v6762_v55 = vpop.f32.mrb[5].mxu1  ;;  %18101 = vmatprep.mubr.msk.bf16.mxu0 %vm1498_vm0, %v21319_v53  ;;  %11104 = vmatpush1.bf16.msra.mxu0 %v26154_v31  ;;  %v21317_v53 = vld [vmem:[%s30700_s1 + $0x10c8] ss:$16 sps:$4 sm:$0xff]  }
 0x54c   : > { %v26157_v17 = vpop.f32.mrb[6].mxu1  ;;  %11105 = vmatprep.subr.bf16.mxu0 %v31123_v28  ;;  %v26185_v55 = vld [vmem:[%s22624_s17 + $0x60] sm:$0xff]  }
 0x54d   : > { %31425 = vst [vmem:[#allocation92_spill] sm:$0xff] %v26157_v17  ;;  %v6765_v42 = vpop.f32.mrb[7].mxu1 }
 0x54e   : > { %v21331_v42 = vld [vmem:[%s30700_s1 + $0x110c] ss:$16 sps:$4 sm:$0xff]  }
 0x54f   : > { %9634 = vmatmul.mubr.bf16.gmra.mrb[112].mxu1 %v21314_v61  ;;  %11106 = vmatpush1.bf16.msra.mxu0 %v26172_v43  ;;  %v21320_v61 = vld [vmem:[%s30700_s1 + $0x1600] ss:$16 sps:$4 sm:$0xff]  }
 0x550   : > { %9641 = vmatprep.mubr.bf16.mxu1 %v21322_v6  ;;  %11107 = vmatprep.subr.bf16.mxu0 %v31123_v28 }
 0x552   : > { %v26176_v59 = vpop.f32.mrb[8].mxu1  ;;  %8249 = vmatmul.mubr.bf16.gmra.mrb[24].mxu0 %v21317_v53  ;;  %v21328_v53 = vld [vmem:[%s30700_s1 + $0x1624] ss:$16 sps:$4 sm:$0xff]  }
 0x553   : > { %31427 = vst [vmem:[#allocation21_spill] sm:$0xff] %v26176_v59  ;;  %v6770_v17 = vpop.f32.mrb[9].mxu1  ;;  %18102 = vmatprep.mubr.msk.bf16.mxu0 %vm1498_vm0, %v21325_v34  ;;  %11108 = vmatpush1.bf16.msra.mxu0 %v26185_v55  ;;  %v21323_v34 = vld [vmem:[%s30700_s1 + $0x10e8] ss:$16 sps:$4 sm:$0xff]  }
 0x554   : > { %v26188_v6 = vpop.f32.mrb[10].mxu1  ;;  %11109 = vmatprep.subr.bf16.mxu0 %v31123_v28 }
 0x555   : > { %31429 = vst [vmem:[#allocation93_spill] sm:$0xff] %v26188_v6  ;;  %v6773_v59 = vpop.f32.mrb[11].mxu1  ;;  %v26216_v6 = vld [vmem:[%s22624_s17 + $0x70] sm:$0xff]  }
 0x557   : > { %9642 = vmatmul.mubr.bf16.gmra.mrb[116].mxu1 %v21320_v61  ;;  %11110 = vmatpush1.bf16.msra.mxu0 %v26203_v51  ;;  %v21326_v61 = vld [vmem:[%s30700_s1 + $0x1620] ss:$16 sps:$4 sm:$0xff]  }
 0x558   : > { %9649 = vmatprep.mubr.bf16.mxu1 %v21328_v53  ;;  %11111 = vmatprep.subr.bf16.mxu0 %v31123_v28 }
 0x55a   : > { %v26207_v33 = vpop.f32.mrb[12].mxu1  ;;  %8257 = vmatmul.mubr.bf16.gmra.mrb[28].mxu0 %v21323_v34  ;;  %v21334_v34 = vld [vmem:[%s30700_s1 + $0x1644] ss:$16 sps:$4 sm:$0xff]  }
 0x55b   : > { %31431 = vst [vmem:[#allocation22_spill] sm:$0xff] %v26207_v33  ;;  %v6778_v3 = vpop.f32.mrb[13].mxu1  ;;  %18103 = vmatprep.mubr.msk.bf16.mxu0 %vm1498_vm0, %v21331_v42  ;;  %11112 = vmatpush1.bf16.msra.mxu0 %v26216_v6  ;;  %v21329_v42 = vld [vmem:[%s30700_s1 + $0x1108] ss:$16 sps:$4 sm:$0xff]   ;;  %v21337_v33 = vld [vmem:[%s30700_s1 + $0x112c] ss:$16 sps:$4 sm:$0xff]  }
 0x55c   : > { %v26219_v53 = vpop.f32.mrb[14].mxu1  ;;  %11113 = vmatprep.subr.bf16.mxu0 %v31123_v28 }
 0x55d   : > { %31432 = vst [vmem:[#allocation94_spill] sm:$0xff] %v26219_v53  ;;  %v6781_v59 = vpop.f32.mrb[15].mxu1 }
 0x55e   : > { %v21343_v59 = vld [vmem:[%s30700_s1 + $0x114c] ss:$16 sps:$4 sm:$0xff]  }
 0x55f   : > { %9650 = vmatmul.mubr.bf16.gmra.mrb[120].mxu1 %v21326_v61  ;;  %11114 = vmatpush1.bf16.msra.mxu0 %v26234_v50  ;;  %v21332_v61 = vld [vmem:[%s30700_s1 + $0x1640] ss:$16 sps:$4 sm:$0xff]  }
 0x560   : > { %9657 = vmatprep.mubr.bf16.mxu1 %v21334_v34  ;;  %11372 = vmatprep.subr.bf16.mxu0 %v31123_v28  ;;  %v21340_v34 = vld [vmem:[%s30700_s1 + $0x1664] ss:$16 sps:$4 sm:$0xff]  }
 0x562   : > { %v26238_v17 = vpop.f32.mrb[16].mxu1  ;;  %8265 = vmatmul.mubr.bf16.gmra.mrb[32].mxu0 %v21329_v42 }
 0x563   : > { %31433 = vst [vmem:[#allocation23_spill] sm:$0xff] %v26238_v17  ;;  %v6786_v3 = vpop.f32.mrb[17].mxu1  ;;  %18104 = vmatprep.mubr.msk.bf16.mxu0 %vm1498_vm0, %v21337_v33  ;;  %v21349_v17 = vld [vmem:[%s30700_s1 + $0x116c] ss:$16 sps:$4 sm:$0xff]  }
 0x564   : > { %v26246_v53 = vpop.f32.mrb[18].mxu1  ;;  %v21335_v3 = vld [vmem:[%s30700_s1 + $0x1128] ss:$16 sps:$4 sm:$0xff]  }
 0x565   : > { %v6789_v42 = vpop.f32.mrb[19].mxu1 }
 0x566   : > { %v21338_v42 = vld [vmem:[%s30700_s1 + $0x1660] ss:$16 sps:$4 sm:$0xff]  }
 0x567   : > { %9658 = vmatmul.mubr.bf16.gmra.mrb[124].mxu1 %v21332_v61  ;;  %v21346_v61 = vld [vmem:[%s30700_s1 + $0x1684] ss:$16 sps:$4 sm:$0xff]  }
 0x568   : > { %9665 = vmatprep.mubr.bf16.mxu1 %v21340_v34 }
 0x56a   : > { %v26259_v33 = vpop.f32.mrb[20].mxu1  ;;  %8273 = vmatmul.mubr.bf16.gmra.mrb[36].mxu0 %v21335_v3 }
 0x56b   : > { %31434 = vst [vmem:[#allocation95_spill] sm:$0xff] %v26259_v33  ;;  %v6794_v40 = vpop.f32.mrb[21].mxu1  ;;  %18105 = vmatprep.mubr.msk.bf16.mxu0 %vm1498_vm0, %v21343_v59  ;;  %v21355_v33 = vld [vmem:[%s30700_s1 + $0x118c] ss:$16 sps:$4 sm:$0xff]  }
 0x56c   : > { %v26267_v27 = vpop.f32.mrb[22].mxu1  ;;  %v21341_v40 = vld [vmem:[%s30700_s1 + $0x1148] ss:$16 sps:$4 sm:$0xff]  }
 0x56d   : > { %v6797_v3 = vpop.f32.mrb[23].mxu1 }
 0x56e   : > { %v21344_v3 = vld [vmem:[%s30700_s1 + $0x1680] ss:$16 sps:$4 sm:$0xff]  }
 0x56f   : > { %9666 = vmatmul.mubr.bf16.gmra.mrb[128].mxu1 %v21338_v42  ;;  %v21352_v42 = vld [vmem:[%s30700_s1 + $0x16a4] ss:$16 sps:$4 sm:$0xff]  }
 0x570   : > { %9673 = vmatprep.mubr.bf16.mxu1 %v21346_v61 }
 0x572   : > { %v26280_v59 = vpop.f32.mrb[24].mxu1  ;;  %8281 = vmatmul.mubr.bf16.gmra.mrb[40].mxu0 %v21341_v40 }
 0x573   : > { %31435 = vst [vmem:[#allocation96_spill] sm:$0xff] %v26280_v59  ;;  %v6802_v10 = vpop.f32.mrb[25].mxu1  ;;  %18106 = vmatprep.mubr.msk.bf16.mxu0 %vm1498_vm0, %v21349_v17  ;;  %v21361_v59 = vld [vmem:[%s30700_s1 + $0x11ac] ss:$16 sps:$4 sm:$0xff]  }
 0x574   : > { %v26288_v34 = vpop.f32.mrb[26].mxu1  ;;  %v21347_v10 = vld [vmem:[%s30700_s1 + $0x1168] ss:$16 sps:$4 sm:$0xff]  }
 0x575   : > { %v6805_v40 = vpop.f32.mrb[27].mxu1 }
 0x576   : > { %v21350_v40 = vld [vmem:[%s30700_s1 + $0x16a0] ss:$16 sps:$4 sm:$0xff]  }
 0x577   : > { %9674 = vmatmul.mubr.bf16.gmra.mrb[132].mxu1 %v21344_v3  ;;  %v21358_v3 = vld [vmem:[%s30700_s1 + $0x16c4] ss:$16 sps:$4 sm:$0xff]  }
 0x578   : > { %9681 = vmatprep.mubr.bf16.mxu1 %v21352_v42 }
 0x57a   : > { %v26301_v17 = vpop.f32.mrb[28].mxu1  ;;  %8289 = vmatmul.mubr.bf16.gmra.mrb[44].mxu0 %v21347_v10 }
 0x57b   : > { %31436 = vst [vmem:[#allocation24_spill] sm:$0xff] %v26301_v17  ;;  %v6810_v36 = vpop.f32.mrb[29].mxu1  ;;  %18107 = vmatprep.mubr.msk.bf16.mxu0 %vm1498_vm0, %v21355_v33  ;;  %v21367_v17 = vld [vmem:[%s30700_s1 + $0x11cc] ss:$16 sps:$4 sm:$0xff]  }
 0x57c   : > { %v26309_v61 = vpop.f32.mrb[30].mxu1  ;;  %v21353_v36 = vld [vmem:[%s30700_s1 + $0x1188] ss:$16 sps:$4 sm:$0xff]  }
 0x57d   : > { %v6813_v10 = vpop.f32.mrb[31].mxu1 }
 0x57e   : > { %v21356_v10 = vld [vmem:[%s30700_s1 + $0x16c0] ss:$16 sps:$4 sm:$0xff]  }
 0x57f   : > { %9682 = vmatmul.mubr.bf16.gmra.mrb[136].mxu1 %v21350_v40  ;;  %v21364_v40 = vld [vmem:[%s30700_s1 + $0x16e4] ss:$16 sps:$4 sm:$0xff]  }
 0x580   : > { %9689 = vmatprep.mubr.bf16.mxu1 %v21358_v3 }
 0x582   : > { %v26322_v33 = vpop.f32.mrb[32].mxu1  ;;  %8297 = vmatmul.mubr.bf16.gmra.mrb[48].mxu0 %v21353_v36 }
 0x583   : > { %31437 = vst [vmem:[#allocation97_spill] sm:$0xff] %v26322_v33  ;;  %v6818_v47 = vpop.f32.mrb[33].mxu1  ;;  %18108 = vmatprep.mubr.msk.bf16.mxu0 %vm1498_vm0, %v21361_v59  ;;  %v21373_v33 = vld [vmem:[%s30700_s1 + $0x11ec] ss:$16 sps:$4 sm:$0xff]  }
 0x584   : > { %v26330_v42 = vpop.f32.mrb[34].mxu1  ;;  %v21359_v47 = vld [vmem:[%s30700_s1 + $0x11a8] ss:$16 sps:$4 sm:$0xff]  }
 0x585   : > { %v6821_v36 = vpop.f32.mrb[35].mxu1 }
 0x586   : > { %v21362_v36 = vld [vmem:[%s30700_s1 + $0x16e0] ss:$16 sps:$4 sm:$0xff]  }
 0x587   : > { %9690 = vmatmul.mubr.bf16.gmra.mrb[140].mxu1 %v21356_v10  ;;  %v21370_v10 = vld [vmem:[%s30700_s1 + $0x1704] ss:$16 sps:$4 sm:$0xff]  }
 0x588   : > { %9697 = vmatprep.mubr.bf16.mxu1 %v21364_v40 }
 0x58a   : > { %v26343_v59 = vpop.f32.mrb[36].mxu1  ;;  %8305 = vmatmul.mubr.bf16.gmra.mrb[52].mxu0 %v21359_v47 }
 0x58b   : > { %31438 = vst [vmem:[#allocation98_spill] sm:$0xff] %v26343_v59  ;;  %v6826_v21 = vpop.f32.mrb[37].mxu1  ;;  %18109 = vmatprep.mubr.msk.bf16.mxu0 %vm1498_vm0, %v21367_v17  ;;  %v21379_v59 = vld [vmem:[%s30700_s1 + $0x120c] ss:$16 sps:$4 sm:$0xff]  }
 0x58c   : > { %v26351_v3 = vpop.f32.mrb[38].mxu1  ;;  %v21365_v21 = vld [vmem:[%s30700_s1 + $0x11c8] ss:$16 sps:$4 sm:$0xff]  }
 0x58d   : > { %v6829_v47 = vpop.f32.mrb[39].mxu1 }
 0x58e   : > { %v21368_v47 = vld [vmem:[%s30700_s1 + $0x1700] ss:$16 sps:$4 sm:$0xff]  }
 0x58f   : > { %9698 = vmatmul.mubr.bf16.gmra.mrb[144].mxu1 %v21362_v36  ;;  %v21376_v36 = vld [vmem:[%s30700_s1 + $0x1724] ss:$16 sps:$4 sm:$0xff]  }
 0x590   : > { %9705 = vmatprep.mubr.bf16.mxu1 %v21370_v10 }
 0x592   : > { %v26364_v17 = vpop.f32.mrb[40].mxu1  ;;  %8313 = vmatmul.mubr.bf16.gmra.mrb[56].mxu0 %v21365_v21 }
 0x593   : > { %31439 = vst [vmem:[#allocation25_spill] sm:$0xff] %v26364_v17  ;;  %v6834_v11 = vpop.f32.mrb[41].mxu1  ;;  %18110 = vmatprep.mubr.msk.bf16.mxu0 %vm1498_vm0, %v21373_v33  ;;  %v21385_v17 = vld [vmem:[%s30700_s1 + $0x122c] ss:$16 sps:$4 sm:$0xff]  }
 0x594   : > { %v26372_v40 = vpop.f32.mrb[42].mxu1  ;;  %v21371_v11 = vld [vmem:[%s30700_s1 + $0x11e8] ss:$16 sps:$4 sm:$0xff]  }
 0x595   : > { %v6837_v21 = vpop.f32.mrb[43].mxu1 }
 0x596   : > { %v21374_v21 = vld [vmem:[%s30700_s1 + $0x1720] ss:$16 sps:$4 sm:$0xff]  }
 0x597   : > { %9706 = vmatmul.mubr.bf16.gmra.mrb[148].mxu1 %v21368_v47  ;;  %v21382_v47 = vld [vmem:[%s30700_s1 + $0x1744] ss:$16 sps:$4 sm:$0xff]  }
 0x598   : > { %9713 = vmatprep.mubr.bf16.mxu1 %v21376_v36 }
 0x59a   : > { %v26385_v33 = vpop.f32.mrb[44].mxu1  ;;  %8321 = vmatmul.mubr.bf16.gmra.mrb[60].mxu0 %v21371_v11 }
 0x59b   : > { %31440 = vst [vmem:[#allocation99_spill] sm:$0xff] %v26385_v33  ;;  %v6842_v22 = vpop.f32.mrb[45].mxu1  ;;  %18111 = vmatprep.mubr.msk.bf16.mxu0 %vm1498_vm0, %v21379_v59  ;;  %v21391_v33 = vld [vmem:[%s30700_s1 + $0x124c] ss:$16 sps:$4 sm:$0xff]  }
 0x59c   : > { %v26393_v10 = vpop.f32.mrb[46].mxu1  ;;  %v21377_v22 = vld [vmem:[%s30700_s1 + $0x1208] ss:$16 sps:$4 sm:$0xff]  }
 0x59d   : > { %v6845_v11 = vpop.f32.mrb[47].mxu1 }
 0x59e   : > { %v21380_v11 = vld [vmem:[%s30700_s1 + $0x1740] ss:$16 sps:$4 sm:$0xff]  }
 0x59f   : > { %9714 = vmatmul.mubr.bf16.gmra.mrb[152].mxu1 %v21374_v21  ;;  %v21388_v21 = vld [vmem:[%s30700_s1 + $0x1764] ss:$16 sps:$4 sm:$0xff]  }
 0x5a0   : > { %9721 = vmatprep.mubr.bf16.mxu1 %v21382_v47 }
 0x5a2   : > { %v26406_v59 = vpop.f32.mrb[48].mxu1  ;;  %8329 = vmatmul.mubr.bf16.gmra.mrb[64].mxu0 %v21377_v22 }
 0x5a3   : > { %v6850_v5 = vpop.f32.mrb[49].mxu1  ;;  %18112 = vmatprep.mubr.msk.bf16.mxu0 %vm1498_vm0, %v21385_v17  ;;  %v21386_v17 = vld [vmem:[%s30700_s1 + $0x1760] ss:$16 sps:$4 sm:$0xff]  }
 0x5a4   : > { %v26414_v36 = vpop.f32.mrb[50].mxu1  ;;  %v21383_v5 = vld [vmem:[%s30700_s1 + $0x1228] ss:$16 sps:$4 sm:$0xff]  }
 0x5a5   : > { %v6853_v22 = vpop.f32.mrb[51].mxu1 }
 0x5a6   : > { %v21394_v22 = vld [vmem:[%s30700_s1 + $0x1784] ss:$16 sps:$4 sm:$0xff]  }
 0x5a7   : > { %9722 = vmatmul.mubr.bf16.gmra.mrb[156].mxu1 %v21380_v11  ;;  %v21389_v11 = vld [vmem:[%s30700_s1 + $0x1248] ss:$16 sps:$4 sm:$0xff]  }
 0x5a8   : > { %9729 = vmatprep.mubr.bf16.mxu1 %v21388_v21  ;;  %v21397_v21 = vld [vmem:[%s30700_s1 + $0x126c] ss:$16 sps:$4 sm:$0xff]  }
 0x5aa   : > { %8337 = vmatmul.mubr.bf16.gmra.mrb[68].mxu0 %v21383_v5  ;;  %v21392_v5 = vld [vmem:[%s30700_s1 + $0x1780] ss:$16 sps:$4 sm:$0xff]  }
 0x5ab   : > { %18113 = vmatprep.mubr.msk.bf16.mxu0 %vm1498_vm0, %v21391_v33  ;;  %v21400_v33 = vld [vmem:[%s30700_s1 + $0x17a4] ss:$16 sps:$4 sm:$0xff]  }
 0x5af   : > { %9730 = vmatmul.mubr.bf16.gmra.mrb[160].mxu1 %v21386_v17  ;;  %v21395_v17 = vld [vmem:[%s30700_s1 + $0x1268] ss:$16 sps:$4 sm:$0xff]  }
 0x5b0   : > { %9737 = vmatprep.mubr.bf16.mxu1 %v21394_v22  ;;  %v21403_v22 = vld [vmem:[%s30700_s1 + $0x128c] ss:$16 sps:$4 sm:$0xff]  }
 0x5b2   : > { %8345 = vmatmul.mubr.bf16.gmra.mrb[76].mxu0 %v21389_v11  ;;  %v21398_v11 = vld [vmem:[%s30700_s1 + $0x17a0] ss:$16 sps:$4 sm:$0xff]  }
 0x5b3   : > { %18114 = vmatprep.mubr.msk.bf16.mxu0 %vm1498_vm0, %v21397_v21  ;;  %v21406_v21 = vld [vmem:[%s30700_s1 + $0x17c4] ss:$16 sps:$4 sm:$0xff]  }
 0x5b7   : > { %9738 = vmatmul.mubr.bf16.gmra.mrb[164].mxu1 %v21392_v5  ;;  %v21401_v5 = vld [vmem:[%s30700_s1 + $0x1288] ss:$16 sps:$4 sm:$0xff]  }
 0x5b8   : > { %9745 = vmatprep.mubr.bf16.mxu1 %v21400_v33  ;;  %v21409_v33 = vld [vmem:[%s30700_s1 + $0x12ac] ss:$16 sps:$4 sm:$0xff]  }
 0x5ba   : > { %8353 = vmatmul.mubr.bf16.gmra.mrb[72].mxu0 %v21395_v17  ;;  %v21404_v17 = vld [vmem:[%s30700_s1 + $0x17c0] ss:$16 sps:$4 sm:$0xff]  }
 0x5bb   : > { %18115 = vmatprep.mubr.msk.bf16.mxu0 %vm1498_vm0, %v21403_v22  ;;  %v21412_v22 = vld [vmem:[%s30700_s1 + $0x17e4] ss:$16 sps:$4 sm:$0xff]  }
 0x5bf   : > { %9746 = vmatmul.mubr.bf16.gmra.mrb[168].mxu1 %v21398_v11  ;;  %v21407_v11 = vld [vmem:[%s30700_s1 + $0x12a8] ss:$16 sps:$4 sm:$0xff]  }
 0x5c0   : > { %9753 = vmatprep.mubr.bf16.mxu1 %v21406_v21  ;;  %v21415_v21 = vld [vmem:[%s30700_s1 + $0x12cc] ss:$16 sps:$4 sm:$0xff]  }
 0x5c2   : > { %8361 = vmatmul.mubr.bf16.gmra.mrb[80].mxu0 %v21401_v5  ;;  %v21410_v5 = vld [vmem:[%s30700_s1 + $0x17e0] ss:$16 sps:$4 sm:$0xff]  }
 0x5c3   : > { %18116 = vmatprep.mubr.msk.bf16.mxu0 %vm1498_vm0, %v21409_v33  ;;  %v21418_v33 = vld [vmem:[%s30700_s1 + $0x140c] ss:$16 sps:$4 sm:$0xff]  }
 0x5c7   : > { %9754 = vmatmul.mubr.bf16.gmra.mrb[172].mxu1 %v21404_v17  ;;  %v21413_v17 = vld [vmem:[%s30700_s1 + $0x12c8] ss:$16 sps:$4 sm:$0xff]  }
 0x5c8   : > { %9761 = vmatprep.mubr.bf16.mxu1 %v21412_v22  ;;  %v21421_v22 = vld [vmem:[%s30700_s1 + $0x12ec] ss:$16 sps:$4 sm:$0xff]  }
 0x5ca   : > { %8369 = vmatmul.mubr.bf16.gmra.mrb[84].mxu0 %v21407_v11  ;;  %v21416_v11 = vld [vmem:[%s30700_s1 + $0x1408] ss:$16 sps:$4 sm:$0xff]  }
 0x5cb   : > { %18117 = vmatprep.mubr.msk.bf16.mxu0 %vm1498_vm0, %v21415_v21  ;;  %v21424_v21 = vld [vmem:[%s30700_s1 + $0x142c] ss:$16 sps:$4 sm:$0xff]  }
 0x5cf   : > { %9762 = vmatmul.mubr.bf16.gmra.mrb[176].mxu1 %v21410_v5  ;;  %v21419_v5 = vld [vmem:[%s30700_s1 + $0x12e8] ss:$16 sps:$4 sm:$0xff]  }
 0x5d0   : > { %18255 = vmatprep.mubr.msk.bf16.mxu1 %vm1498_vm0, %v21418_v33  ;;  %v21427_v33 = vld [vmem:[%s30700_s1 + $0x130c] ss:$16 sps:$4 sm:$0xff]  }
 0x5d2   : > { %8377 = vmatmul.mubr.bf16.gmra.mrb[88].mxu0 %v21413_v17  ;;  %v21422_v17 = vld [vmem:[%s30700_s1 + $0x1428] ss:$16 sps:$4 sm:$0xff]  }
 0x5d3   : > { %18118 = vmatprep.mubr.msk.bf16.mxu0 %vm1498_vm0, %v21421_v22  ;;  %v21430_v22 = vld [vmem:[%s30700_s1 + $0x144c] ss:$16 sps:$4 sm:$0xff]  }
 0x5d7   : > { %9803 = vmatmul.mubr.bf16.vlgmr.msra.gmra.mrb[52].mxu1 %v21416_v11  ;;  %v21433_v11 = vld [vmem:[%s30700_s1 + $0x132c] ss:$16 sps:$4 sm:$0xff]  }
 0x5d8   : > { %18256 = vmatprep.mubr.msk.bf16.mxu1 %vm1498_vm0, %v21424_v21  ;;  %12686 = vmatpush1.bf16.msra.mxu1 %v25999_v16  ;;  %v21425_v16 = vld [vmem:[%s30700_s1 + $0x1308] ss:$16 sps:$4 sm:$0xff]   ;;  %v21436_v21 = vld [vmem:[%s30700_s1 + $0x146c] ss:$16 sps:$4 sm:$0xff]  }
 0x5d9   : > { %12687 = vmatprep.subr.bf16.mxu1 %v31123_v28 }
 0x5da   : > { %8385 = vmatmul.mubr.bf16.gmra.mrb[92].mxu0 %v21419_v5  ;;  %v21439_v5 = vld [vmem:[%s30700_s1 + $0x134c] ss:$16 sps:$4 sm:$0xff]  }
 0x5db   : > { %18119 = vmatprep.mubr.msk.bf16.mxu0 %vm1498_vm0, %v21427_v33  ;;  %v21442_v33 = vld [vmem:[%s30700_s1 + $0x148c] ss:$16 sps:$4 sm:$0xff]  }
 0x5dc   : > { %12688 = vmatpush1.bf16.msra.mxu1 %v26017_v63  ;;  %v21428_v63 = vld [vmem:[%s30700_s1 + $0x1448] ss:$16 sps:$4 sm:$0xff]  }
 0x5dd   : > { %12689 = vmatprep.subr.bf16.mxu1 %v31123_v28 }
 0x5df   : > { %9811 = vmatmul.mubr.bf16.gmra.mrb[56].mxu1 %v21422_v17  ;;  %v21445_v17 = vld [vmem:[%s30700_s1 + $0x136c] ss:$16 sps:$4 sm:$0xff]  }
 0x5e0   : > { %18257 = vmatprep.mubr.msk.bf16.mxu1 %vm1498_vm0, %v21430_v22  ;;  %12690 = vmatpush1.bf16.msra.mxu1 %v26030_v62  ;;  %v21431_v62 = vld [vmem:[%s30700_s1 + $0x1328] ss:$16 sps:$4 sm:$0xff]   ;;  %v21448_v22 = vld [vmem:[%s30700_s1 + $0x14ac] ss:$16 sps:$4 sm:$0xff]  }
 0x5e1   : > { %12691 = vmatprep.subr.bf16.mxu1 %v31123_v28 }
 0x5e2   : > { %8393 = vmatmul.mubr.bf16.gmra.mrb[96].mxu0 %v21425_v16 }
 0x5e3   : > { %18120 = vmatprep.mubr.msk.bf16.mxu0 %vm1498_vm0, %v21433_v11 }
 0x5e4   : > { %12692 = vmatpush1.bf16.msra.mxu1 %v26048_v20  ;;  %v21434_v20 = vld [vmem:[%s30700_s1 + $0x1468] ss:$16 sps:$4 sm:$0xff]  }
 0x5e5   : > { %12693 = vmatprep.subr.bf16.mxu1 %v31123_v28 }
 0x5e7   : > { %9819 = vmatmul.mubr.bf16.gmra.mrb[60].mxu1 %v21428_v63  ;;  %v31441_v63 = vld [vmem:[#allocation67_spill] sm:$0xff] }
 0x5e8   : > { %18258 = vmatprep.mubr.msk.bf16.mxu1 %vm1498_vm0, %v21436_v21  ;;  %12694 = vmatpush1.bf16.msra.mxu1 %v26061_v37  ;;  %v21437_v37 = vld [vmem:[%s30700_s1 + $0x1348] ss:$16 sps:$4 sm:$0xff]   ;;  %v31442_v21 = vmax.f32 %v24995_v30, %v31441_v63 }
 0x5e9   : > { %12695 = vmatprep.subr.bf16.mxu1 %v31123_v28  ;;  %v21446_v30 = vld [vmem:[%s30700_s1 + $0x14a8] ss:$16 sps:$4 sm:$0xff]  }
 0x5ea   : > { %8401 = vmatmul.mubr.bf16.gmra.mrb[100].mxu0 %v21431_v62 }
 0x5eb   : > { %18121 = vmatprep.mubr.msk.bf16.mxu0 %vm1498_vm0, %v21439_v5 }
 0x5ec   : > { %12696 = vmatpush1.bf16.msra.mxu1 %v26079_v41  ;;  %v21440_v41 = vld [vmem:[%s30700_s1 + $0x1488] ss:$16 sps:$4 sm:$0xff]  }
 0x5ed   : > { %12697 = vmatprep.subr.bf16.mxu1 %v31123_v28 }
 0x5ef   : > { %9827 = vmatmul.mubr.bf16.gmra.mrb[64].mxu1 %v21434_v20  ;;  %v21451_v20 = vld [vmem:[%s30700_s1 + $0x138c] ss:$16 sps:$4 sm:$0xff]  }
 0x5f0   : > { %18259 = vmatprep.mubr.msk.bf16.mxu1 %vm1498_vm0, %v21442_v33  ;;  %12698 = vmatpush1.bf16.msra.mxu1 %v26092_v39  ;;  %v21443_v39 = vld [vmem:[%s30700_s1 + $0x1368] ss:$16 sps:$4 sm:$0xff]  }
 0x5f1   : > { %12699 = vmatprep.subr.bf16.mxu1 %v31123_v28  ;;  %v31443_v33 = vld [vmem:[#allocation68_spill] sm:$0xff] }
 0x5f2   : > { %8409 = vmatmul.mubr.bf16.gmra.mrb[104].mxu0 %v21437_v37  ;;  %v31444_v37 = vmax.f32 %v25006_v29, %v31443_v33  ;;  %v21460_v33 = vld [vmem:[%s30700_s1 + $0x14ec] ss:$16 sps:$4 sm:$0xff]  }
 0x5f3   : > { %18122 = vmatprep.mubr.msk.bf16.mxu0 %vm1498_vm0, %v21445_v17 }
 0x5f4   : > { %12700 = vmatpush1.bf16.msra.mxu1 %v26110_v23 }
 0x5f5   : > { %v8202_v16 = vpop.f32.mrb[0].mxu0  ;;  %12701 = vmatprep.subr.bf16.mxu1 %v31123_v28 }
 0x5f6   : > { %v8204_v11 = vpop.f32.mrb[1].mxu0  ;;  %v26578_v62 = vmax.f32 %v31442_v21, %v8202_v16  ;;  %v31445_v16 = vld [vmem:[#allocation70_spill] sm:$0xff] }
 0x5f7   : > { %9835 = vmatmul.mubr.bf16.gmra.mrb[68].mxu1 %v21440_v41  ;;  %v8205_v5 = vpop.f32.mrb[2].mxu0  ;;  %v21454_v41 = vld [vmem:[%s30700_s1 + $0x14cc] ss:$16 sps:$4 sm:$0xff]   ;;  %v31446_v11 = vmax.f32 %v25023_v1, %v31445_v16  ;;  %v21452_v1 = vld [vmem:[%s30700_s1 + $0x14c8] ss:$16 sps:$4 sm:$0xff]  }
 0x5f8   : > { %v8207_v23 = vpop.f32.mrb[3].mxu0  ;;  %18260 = vmatprep.mubr.msk.bf16.mxu1 %vm1498_vm0, %v21448_v22  ;;  %12702 = vmatpush1.bf16.msra.mxu1 %v26123_v56  ;;  %v26588_v17 = vmax.f32 %v31444_v37, %v8205_v5  ;;  %v21449_v22 = vld [vmem:[%s30700_s1 + $0x1388] ss:$16 sps:$4 sm:$0xff]   ;;  %v21457_v21 = vld [vmem:[%s30700_s1 + $0x13ac] ss:$16 sps:$4 sm:$0xff]  }
 0x5f9   : > { %12703 = vmatprep.subr.bf16.mxu1 %v31123_v28  ;;  %v31447_v5 = vld [vmem:[#allocation71_spill] sm:$0xff] }
 0x5fa   : > { %8417 = vmatmul.mubr.bf16.gmra.mrb[108].mxu0 %v21443_v39  ;;  %v21455_v37 = vld [vmem:[%s30700_s1 + $0x13a8] ss:$16 sps:$4 sm:$0xff]  }
 0x5fb   : > { %18123 = vmatprep.mubr.msk.bf16.mxu0 %vm1498_vm0, %v21451_v20  ;;  %v31448_v20 = vmax.f32 %v25034_v15, %v31447_v5  ;;  %v31451_v16 = vld [vmem:[#allocation51_spill] sm:$0xff]  ;;  %v31453_v5 = vld [vmem:[#allocation52_spill] sm:$0xff] }
 0x5fc   : > { %12704 = vmatpush1.bf16.msra.mxu1 %v26141_v2 }
 0x5fd   : > { %v8210_v56 = vpop.f32.mrb[4].mxu0  ;;  %12705 = vmatprep.subr.bf16.mxu1 %v31123_v28 }
 0x5fe   : > { %v8212_v29 = vpop.f32.mrb[5].mxu0  ;;  %v26606_v39 = vmax.f32 %v31446_v11, %v8210_v56  ;;  %v31452_v11 = vmax.f32 %v25062_v52, %v31451_v16 }
 0x5ff   : > { %9843 = vmatmul.mubr.bf16.gmra.mrb[72].mxu1 %v21446_v30  ;;  %v8213_v63 = vpop.f32.mrb[6].mxu0  ;;  %v31449_v30 = vld [vmem:[#allocation72_spill] sm:$0xff] }
 0x600   : > { %v8215_v2 = vpop.f32.mrb[7].mxu0  ;;  %18261 = vmatprep.mubr.msk.bf16.mxu1 %vm1498_vm0, %v21454_v41  ;;  %12706 = vmatpush1.bf16.msra.mxu1 %v26154_v31  ;;  %v26616_v23 = vmax.f32 %v31448_v20, %v8213_v63  ;;  %v31450_v41 = vmax.f32 %v25051_v60, %v31449_v30  ;;  %v21458_v60 = vld [vmem:[%s30700_s1 + $0x14e8] ss:$16 sps:$4 sm:$0xff]   ;;  %v31454_v20 = vmax.f32 %v25079_v26, %v31453_v5 }
 0x601   : > { %12707 = vmatprep.subr.bf16.mxu1 %v31123_v28  ;;  %v21461_v2 = vld [vmem:[%s30700_s1 + $0x13c8] ss:$16 sps:$4 sm:$0xff]  }
 0x602   : > { %8425 = vmatmul.mubr.bf16.gmra.mrb[112].mxu0 %v21449_v22  ;;  %v21463_v22 = vld [vmem:[%s30700_s1 + $0x13cc] ss:$16 sps:$4 sm:$0xff]   ;;  %v21464_v26 = vld [vmem:[%s30700_s1 + $0x1508] ss:$16 sps:$4 sm:$0xff]  }
 0x603   : > { %18124 = vmatprep.mubr.msk.bf16.mxu0 %vm1498_vm0, %v21457_v21  ;;  %v21466_v21 = vld [vmem:[%s30700_s1 + $0x150c] ss:$16 sps:$4 sm:$0xff]  }
 0x604   : > { %12708 = vmatpush1.bf16.msra.mxu1 %v26172_v43 }
 0x605   : > { %v8218_v31 = vpop.f32.mrb[8].mxu0  ;;  %12709 = vmatprep.subr.bf16.mxu1 %v31123_v28 }
 0x606   : > { %v8220_v15 = vpop.f32.mrb[9].mxu0  ;;  %v26634_v56 = vmax.f32 %v31450_v41, %v8218_v31  ;;  %v21469_v31 = vld [vmem:[%s30700_s1 + $0x13ec] ss:$16 sps:$4 sm:$0xff]  }
 0x607   : > { %9851 = vmatmul.mubr.bf16.gmra.mrb[76].mxu1 %v21452_v1  ;;  %v8221_v29 = vpop.f32.mrb[10].mxu0  ;;  %v31455_v15 = vld [vmem:[#allocation74_spill] sm:$0xff] }
 0x608   : > { %v8223_v43 = vpop.f32.mrb[11].mxu0  ;;  %18262 = vmatprep.mubr.msk.bf16.mxu1 %vm1498_vm0, %v21460_v33  ;;  %12710 = vmatpush1.bf16.msra.mxu1 %v26185_v55  ;;  %v26644_v63 = vmax.f32 %v31452_v11, %v8221_v29  ;;  %v21472_v41 = vld [vmem:[%s30700_s1 + $0x152c] ss:$16 sps:$4 sm:$0xff]   ;;  %v21467_v29 = vld [vmem:[%s30700_s1 + $0x13e8] ss:$16 sps:$4 sm:$0xff]  }
 0x609   : > { %12711 = vmatprep.subr.bf16.mxu1 %v31123_v28 }
 0x60a   : > { %8433 = vmatmul.mubr.bf16.gmra.mrb[116].mxu0 %v21455_v37  ;;  %v31456_v37 = vmax.f32 %v25090_v38, %v31455_v15 }
 0x60b   : > { %18125 = vmatprep.mubr.msk.bf16.mxu0 %vm1498_vm0, %v21463_v22  ;;  %v31457_v22 = vld [vmem:[#allocation75_spill] sm:$0xff] }
 0x60c   : > { %12712 = vmatpush1.bf16.msra.mxu1 %v26203_v51  ;;  %v31458_v43 = vmax.f32 %v25107_v14, %v31457_v22  ;;  %v21470_v14 = vld [vmem:[%s30700_s1 + $0x1528] ss:$16 sps:$4 sm:$0xff]   ;;  %v21484_v22 = vld [vmem:[%s30700_s1 + $0x156c] ss:$16 sps:$4 sm:$0xff]  }
 0x60d   : > { %v8226_v55 = vpop.f32.mrb[12].mxu0  ;;  %12713 = vmatprep.subr.bf16.mxu1 %v31123_v28 }
 0x60e   : > { %v8228_v52 = vpop.f32.mrb[13].mxu0  ;;  %v26662_v1 = vmax.f32 %v31454_v20, %v8226_v55 }
 0x60f   : > { %9859 = vmatmul.mubr.bf16.gmra.mrb[80].mxu1 %v21458_v60  ;;  %v8229_v33 = vpop.f32.mrb[14].mxu0  ;;  %v21475_v60 = vld [vmem:[%s30700_s1 + $0x1804] ss:$16 sps:$4 sm:$0xff]  }
 0x610   : > { %v8231_v51 = vpop.f32.mrb[15].mxu0  ;;  %18263 = vmatprep.mubr.msk.bf16.mxu1 %vm1498_vm0, %v21466_v21  ;;  %12714 = vmatpush1.bf16.msra.mxu1 %v26216_v6  ;;  %v26672_v30 = vmax.f32 %v31456_v37, %v8229_v33  ;;  %v31459_v21 = vld [vmem:[#allocation56_spill] sm:$0xff]  ;;  %v21481_v37 = vld [vmem:[%s30700_s1 + $0x1824] ss:$16 sps:$4 sm:$0xff]  }
 0x611   : > { %12715 = vmatprep.subr.bf16.mxu1 %v31123_v28  ;;  %v31460_v55 = vmax.f32 %v25118_v32, %v31459_v21  ;;  %v21473_v33 = vld [vmem:[%s30700_s1 + $0x1800] ss:$16 sps:$4 sm:$0xff]  }
 0x612   : > { %8441 = vmatmul.mubr.bf16.gmra.mrb[120].mxu0 %v21461_v2  ;;  %v21478_v2 = vld [vmem:[%s30700_s1 + $0x154c] ss:$16 sps:$4 sm:$0xff]   ;;  %v31462_v32 = vld [vmem:[#allocation59_spill] sm:$0xff] }
 0x613   : > { %18126 = vmatprep.mubr.msk.bf16.mxu0 %vm1498_vm0, %v21469_v31  ;;  %v31463_v31 = vmax.f32 %v25130_v58, %v31462_v32  ;;  %v21476_v58 = vld [vmem:[%s30700_s1 + $0x1548] ss:$16 sps:$4 sm:$0xff]   ;;  %v21490_v32 = vld [vmem:[%s30700_s1 + $0x158c] ss:$16 sps:$4 sm:$0xff]  }
 0x614   : > { %12716 = vmatpush1.bf16.msra.mxu1 %v26234_v50 }
 0x615   : > { %v8234_v6 = vpop.f32.mrb[16].mxu0  ;;  %12974 = vmatprep.subr.bf16.mxu1 %v31123_v28 }
 0x616   : > { %v8236_v38 = vpop.f32.mrb[17].mxu0  ;;  %v26690_v16 = vmax.f32 %v31458_v43, %v8234_v6 }
 0x617   : > { %9867 = vmatmul.mubr.bf16.gmra.mrb[84].mxu1 %v21464_v26  ;;  %v8237_v11 = vpop.f32.mrb[18].mxu0 }
 0x618   : > { %v8239_v50 = vpop.f32.mrb[19].mxu0  ;;  %18264 = vmatprep.mubr.msk.bf16.mxu1 %vm1498_vm0, %v21472_v41  ;;  %v26699_v52 = vmax.f32 %v31460_v55, %v8237_v11  ;;  %v31464_v41 = vld [vmem:[#allocation77_spill] sm:$0xff] }
 0x619   : > { %v31465_v6 = vmax.f32 %v25141_v57, %v31464_v41  ;;  %v21479_v11 = vld [vmem:[%s30700_s1 + $0x1820] ss:$16 sps:$4 sm:$0xff]   ;;  %v21487_v55 = vld [vmem:[%s30700_s1 + $0x1844] ss:$16 sps:$4 sm:$0xff]  }
 0x61a   : > { %31461 = vst [vmem:[#allocation26_spill] sm:$0xff] %v26699_v52  ;;  %8449 = vmatmul.mubr.bf16.gmra.mrb[124].mxu0 %v21467_v29  ;;  %v26728_v29 = vld [vmem:[%s22624_s17 + $0x80] sm:$0xff]  }
 0x61b   : > { %11115 = vmatprep.mubr.bf16.mxu0 %v21475_v60  ;;  %v31466_v60 = vmax.f32 %v25158_v12, %v25763_v8 }
 0x61d   : > { %v8242_v5 = vpop.f32.mrb[20].mxu0 }
 0x61e   : > { %v8244_v20 = vpop.f32.mrb[21].mxu0  ;;  %v26713_v51 = vmax.f32 %v31463_v31, %v8242_v5  ;;  %v31467_v5 = vld [vmem:[#allocation78_spill] sm:$0xff] }
 0x61f   : > { %9875 = vmatmul.mubr.bf16.gmra.mrb[88].mxu1 %v21470_v14  ;;  %v8245_v15 = vpop.f32.mrb[22].mxu0  ;;  %v26747_v14 = vld [vmem:[%s22624_s17 + $0x88] sm:$0xff]   ;;  %v31468_v12 = vmax.f32 %v25173_v49, %v31467_v5 }
 0x620   : > { %v8247_v26 = vpop.f32.mrb[23].mxu0  ;;  %18265 = vmatprep.mubr.msk.bf16.mxu1 %vm1498_vm0, %v21478_v2  ;;  %v26722_v38 = vmax.f32 %v31465_v6, %v8245_v15  ;;  %v21482_v20 = vld [vmem:[%s30700_s1 + $0x1568] ss:$16 sps:$4 sm:$0xff]   ;;  %v21485_v15 = vld [vmem:[%s30700_s1 + $0x1840] ss:$16 sps:$4 sm:$0xff]  }
 0x621   : > { %v21493_v6 = vld [vmem:[%s30700_s1 + $0x1864] ss:$16 sps:$4 sm:$0xff]  }
 0x622   : > { %11116 = vmatmul.mubr.bf16.vlgmr.msra.gmra.mrb[128].mxu0 %v21473_v33  ;;  %v26761_v33 = vld [vmem:[%s22624_s17 + $0x90] sm:$0xff]  }
 0x623   : > { %11123 = vmatprep.mubr.bf16.mxu0 %v21481_v37  ;;  %11373 = vmatpush1.bf16.msra.mxu0 %v26728_v29  ;;  %v31469_v37 = vmax.f32 %v25191_v24, %v25797_v13 }
 0x624   : > { %11374 = vmatprep.subr.bf16.mxu0 %v31123_v28 }
 0x625   : > { %v8250_v57 = vpop.f32.mrb[24].mxu0 }
 0x626   : > { %v8252_v43 = vpop.f32.mrb[25].mxu0  ;;  %v26741_v50 = vmax.f32 %v31466_v60, %v8250_v57  ;;  %v31470_v57 = vld [vmem:[#allocation79_spill] sm:$0xff]  ;;  %v21496_v60 = vld [vmem:[%s30700_s1 + $0x15ac] ss:$16 sps:$4 sm:$0xff]  }
 0x627   : > { %9883 = vmatmul.mubr.bf16.gmra.mrb[92].mxu1 %v21476_v58  ;;  %v8253_v21 = vpop.f32.mrb[26].mxu0  ;;  %11375 = vmatpush1.bf16.msra.mxu0 %v26747_v14  ;;  %v26780_v58 = vld [vmem:[%s22624_s17 + $0x98] sm:$0xff]   ;;  %v31471_v24 = vmax.f32 %v25206_v25, %v31470_v57 }
 0x628   : > { %v8255_v2 = vpop.f32.mrb[27].mxu0  ;;  %18266 = vmatprep.mubr.msk.bf16.mxu1 %vm1498_vm0, %v21484_v22  ;;  %11376 = vmatprep.subr.bf16.mxu0 %v31123_v28  ;;  %v26755_v8 = vmax.f32 %v31468_v12, %v8253_v21  ;;  %v21488_v43 = vld [vmem:[%s30700_s1 + $0x1588] ss:$16 sps:$4 sm:$0xff]  }
 0x629   : > { %v31472_v2 = vmax.f32 %v25224_v0, %v25831_v19 }
 0x62a   : > { %11124 = vmatmul.mubr.bf16.gmra.mrb[132].mxu0 %v21479_v11  ;;  %v26794_v11 = vld [vmem:[%s22624_s17 + $0xa0] sm:$0xff]  }
 0x62b   : > { %11131 = vmatprep.mubr.bf16.mxu0 %v21487_v55  ;;  %11377 = vmatpush1.bf16.msra.mxu0 %v26761_v33  ;;  %v21491_v55 = vld [vmem:[%s30700_s1 + $0x1860] ss:$16 sps:$4 sm:$0xff]  }
 0x62c   : > { %11378 = vmatprep.subr.bf16.mxu0 %v31123_v28 }
 0x62d   : > { %v8258_v49 = vpop.f32.mrb[28].mxu0 }
 0x62e   : > { %v8260_v31 = vpop.f32.mrb[29].mxu0  ;;  %v26774_v26 = vmax.f32 %v31469_v37, %v8258_v49  ;;  %v21494_v37 = vld [vmem:[%s30700_s1 + $0x15a8] ss:$16 sps:$4 sm:$0xff]  }
 0x62f   : > { %9891 = vmatmul.mubr.bf16.gmra.mrb[96].mxu1 %v21482_v20  ;;  %v8261_v41 = vpop.f32.mrb[30].mxu0  ;;  %11379 = vmatpush1.bf16.msra.mxu0 %v26780_v58  ;;  %v21499_v20 = vld [vmem:[%s30700_s1 + $0x1884] ss:$16 sps:$4 sm:$0xff]  }
 0x630   : > { %v8263_v22 = vpop.f32.mrb[31].mxu0  ;;  %18267 = vmatprep.mubr.msk.bf16.mxu1 %vm1498_vm0, %v21490_v32  ;;  %11380 = vmatprep.subr.bf16.mxu0 %v31123_v28  ;;  %v26788_v13 = vmax.f32 %v31471_v24, %v8261_v41  ;;  %v26813_v32 = vld [vmem:[%s22624_s17 + $0xa8] sm:$0xff]   ;;  %v26827_v41 = vld [vmem:[%s22624_s17 + $0xb0] sm:$0xff]  }
 0x631   : > { %v31473_v31 = vld [vmem:[#allocation27_spill] sm:$0xff] }
 0x632   : > { %11132 = vmatmul.mubr.bf16.gmra.mrb[136].mxu0 %v21485_v15  ;;  %v31474_v15 = vld [vmem:[#allocation80_spill] sm:$0xff] }
 0x633   : > { %11139 = vmatprep.mubr.bf16.mxu0 %v21493_v6  ;;  %11381 = vmatpush1.bf16.msra.mxu0 %v26794_v11  ;;  %v31475_v0 = vmax.f32 %v31473_v31, %v31474_v15  ;;  %v21502_v6 = vld [vmem:[%s30700_s1 + $0x15cc] ss:$16 sps:$4 sm:$0xff]   ;;  %v21497_v24 = vld [vmem:[%s30700_s1 + $0x1880] ss:$16 sps:$4 sm:$0xff]  }
 0x634   : > { %11382 = vmatprep.subr.bf16.mxu0 %v31123_v28  ;;  %v31480_v31 = vld [vmem:[#allocation81_spill] sm:$0xff] }
 0x635   : > { %v8266_v25 = vpop.f32.mrb[32].mxu0 }
 0x636   : > { %v8268_v21 = vpop.f32.mrb[33].mxu0  ;;  %v26807_v5 = vmax.f32 %v31472_v2, %v8266_v25  ;;  %v21505_v2 = vld [vmem:[%s30700_s1 + $0x18a4] ss:$16 sps:$4 sm:$0xff]  }
 0x637   : > { %9899 = vmatmul.mubr.bf16.gmra.mrb[100].mxu1 %v21488_v43  ;;  %v8269_v12 = vpop.f32.mrb[34].mxu0  ;;  %11383 = vmatpush1.bf16.msra.mxu0 %v26813_v32  ;;  %v31476_v43 = vld [vmem:[#allocation28_spill] sm:$0xff] }
 0x638   : > { %v8271_v49 = vpop.f32.mrb[35].mxu0  ;;  %18268 = vmatprep.mubr.msk.bf16.mxu1 %vm1498_vm0, %v21496_v60  ;;  %11384 = vmatprep.subr.bf16.mxu0 %v31123_v28  ;;  %v26821_v19 = vmax.f32 %v31475_v0, %v8269_v12  ;;  %v31477_v60 = vld [vmem:[#allocation9_spill] sm:$0xff] }
 0x639   : > { %v31478_v25 = vmax.f32 %v31476_v43, %v31477_v60  ;;  %v26846_v12 = vld [vmem:[%s22624_s17 + $0xb8] sm:$0xff]  }
 0x63a   : > { %11140 = vmatmul.mubr.bf16.gmra.mrb[140].mxu0 %v21491_v55  ;;  %v31479_v49 = vld [vmem:[#allocation29_spill] sm:$0xff] }
 0x63b   : > { %11147 = vmatprep.mubr.bf16.mxu0 %v21499_v20  ;;  %11385 = vmatpush1.bf16.msra.mxu0 %v26827_v41  ;;  %v31481_v15 = vmax.f32 %v31479_v49, %v31480_v31  ;;  %v21503_v60 = vld [vmem:[%s30700_s1 + $0x18a0] ss:$16 sps:$4 sm:$0xff]   ;;  %v21511_v49 = vld [vmem:[%s30700_s1 + $0x18c4] ss:$16 sps:$4 sm:$0xff]  }
 0x63c   : > { %11386 = vmatprep.subr.bf16.mxu0 %v31123_v28 }
 0x63d   : > { %v8274_v22 = vpop.f32.mrb[36].mxu0 }
 0x63e   : > { %v8276_v57 = vpop.f32.mrb[37].mxu0  ;;  %v26840_v21 = vmax.f32 %v31478_v25, %v8274_v22  ;;  %v31483_v22 = vld [vmem:[#allocation8_spill] sm:$0xff]  ;;  %v31485_v25 = vld [vmem:[#allocation10_spill] sm:$0xff] }
 0x63f   : > { %9907 = vmatmul.mubr.bf16.gmra.mrb[104].mxu1 %v21494_v37  ;;  %v8277_v55 = vpop.f32.mrb[38].mxu0  ;;  %11387 = vmatpush1.bf16.msra.mxu0 %v26846_v12  ;;  %v21500_v37 = vld [vmem:[%s30700_s1 + $0x15c8] ss:$16 sps:$4 sm:$0xff]   ;;  %v21508_v57 = vld [vmem:[%s30700_s1 + $0x15ec] ss:$16 sps:$4 sm:$0xff]  }
 0x640   : > { %v8279_v20 = vpop.f32.mrb[39].mxu0  ;;  %18269 = vmatprep.mubr.msk.bf16.mxu1 %vm1498_vm0, %v21502_v6  ;;  %11388 = vmatprep.subr.bf16.mxu0 %v31123_v28  ;;  %v26854_v0 = vmax.f32 %v31481_v15, %v8277_v55  ;;  %v31488_v15 = vld [vmem:[#allocation30_spill] sm:$0xff] }
 0x642   : > { %31482 = vst [vmem:[#allocation100_spill] sm:$0xff] %v26854_v0  ;;  %11148 = vmatmul.mubr.bf16.gmra.mrb[144].mxu0 %v21497_v24  ;;  %v31484_v24 = vld [vmem:[#allocation40_spill] sm:$0xff] }
 0x643   : > { %11155 = vmatprep.mubr.bf16.mxu0 %v21505_v2  ;;  %11389 = vmatpush1.bf16.msra.mxu0 %v31483_v22  ;;  %v31486_v55 = vmax.f32 %v31484_v24, %v31485_v25 }
 0x644   : > { %14287 = vmatprep.subr.bf16.mxu0 %v31123_v28 }
 0x645   : > { %v8282_v6 = vpop.f32.mrb[40].mxu0 }
 0x646   : > { %v8284_v43 = vpop.f32.mrb[41].mxu0  ;;  %v26870_v20 = vmax.f32 %v31486_v55, %v8282_v6  ;;  %v21506_v6 = vld [vmem:[%s30700_s1 + $0x15e8] ss:$16 sps:$4 sm:$0xff]  }
 0x647   : > { %9915 = vmatmul.mubr.bf16.gmra.mrb[108].mxu1 %v21500_v37  ;;  %v8285_v2 = vpop.f32.mrb[42].mxu0  ;;  %v31489_v43 = vld [vmem:[#allocation82_spill] sm:$0xff]  ;;  %v31492_v55 = vld [vmem:[#allocation41_spill] sm:$0xff] }
 0x648   : > { %31487 = vst [vmem:[#allocation38_spill] sm:$0xff] %v26870_v20  ;;  %v8287_v31 = vpop.f32.mrb[43].mxu0  ;;  %18270 = vmatprep.mubr.msk.bf16.mxu1 %vm1498_vm0, %v21508_v57  ;;  %v31490_v47 = vmax.f32 %v31488_v15, %v31489_v43  ;;  %v21514_v37 = vld [vmem:[%s30700_s1 + $0x160c] ss:$16 sps:$4 sm:$0xff]   ;;  %v21509_v57 = vld [vmem:[%s30700_s1 + $0x18c0] ss:$16 sps:$4 sm:$0xff]  }
 0x649   : > { %v31493_v31 = vld [vmem:[#allocation11_spill] sm:$0xff] }
 0x64a   : > { %v26879_v22 = vmax.f32 %v31490_v47, %v8285_v2  ;;  %11156 = vmatmul.mubr.bf16.gmra.mrb[148].mxu0 %v21503_v60  ;;  %v31494_v47 = vmax.f32 %v31492_v55, %v31493_v31  ;;  %v31496_v43 = vld [vmem:[#allocation31_spill] sm:$0xff] }
 0x64b   : > { %11163 = vmatprep.mubr.bf16.mxu0 %v21511_v49  ;;  %v21517_v49 = vld [vmem:[%s30700_s1 + $0x18e4] ss:$16 sps:$4 sm:$0xff]  }
 0x64c   : > { %31491 = vst [vmem:[#allocation39_spill] sm:$0xff] %v26879_v22 }
 0x64d   : > { %v8290_v24 = vpop.f32.mrb[44].mxu0 }
 0x64e   : > { %v8292_v25 = vpop.f32.mrb[45].mxu0  ;;  %v26893_v2 = vmax.f32 %v31494_v47, %v8290_v24  ;;  %v21512_v24 = vld [vmem:[%s30700_s1 + $0x1608] ss:$16 sps:$4 sm:$0xff]  }
 0x64f   : > { %9923 = vmatmul.mubr.bf16.gmra.mrb[112].mxu1 %v21506_v6  ;;  %v8293_v60 = vpop.f32.mrb[46].mxu0  ;;  %v31497_v25 = vld [vmem:[#allocation83_spill] sm:$0xff]  ;;  %v21520_v6 = vld [vmem:[%s30700_s1 + $0x162c] ss:$16 sps:$4 sm:$0xff]  }
 0x650   : > { %31495 = vst [vmem:[#allocation67_spill] sm:$0xff] %v26893_v2  ;;  %v8295_v15 = vpop.f32.mrb[47].mxu0  ;;  %18271 = vmatprep.mubr.msk.bf16.mxu1 %vm1498_vm0, %v21514_v37  ;;  %v31498_v22 = vmax.f32 %v31496_v43, %v31497_v25  ;;  %v21515_v37 = vld [vmem:[%s30700_s1 + $0x18e0] ss:$16 sps:$4 sm:$0xff]  }
 0x651   : > { %v31500_v47 = vld [vmem:[#allocation42_spill] sm:$0xff]  ;;  %v31501_v15 = vld [vmem:[#allocation12_spill] sm:$0xff] }
 0x652   : > { %v26902_v20 = vmax.f32 %v31498_v22, %v8293_v60  ;;  %11164 = vmatmul.mubr.bf16.gmra.mrb[152].mxu0 %v21509_v57  ;;  %v31502_v22 = vmax.f32 %v31500_v47, %v31501_v15  ;;  %v31504_v25 = vld [vmem:[#allocation32_spill] sm:$0xff] }
 0x653   : > { %11171 = vmatprep.mubr.bf16.mxu0 %v21517_v49  ;;  %v21523_v49 = vld [vmem:[%s30700_s1 + $0x1904] ss:$16 sps:$4 sm:$0xff]  }
 0x654   : > { %31499 = vst [vmem:[#allocation68_spill] sm:$0xff] %v26902_v20 }
 0x655   : > { %v8298_v55 = vpop.f32.mrb[48].mxu0 }
 0x656   : > { %v8300_v31 = vpop.f32.mrb[49].mxu0  ;;  %v26916_v60 = vmax.f32 %v31502_v22, %v8298_v55  ;;  %v21518_v55 = vld [vmem:[%s30700_s1 + $0x1628] ss:$16 sps:$4 sm:$0xff]  }
 0x657   : > { %9931 = vmatmul.mubr.bf16.gmra.mrb[116].mxu1 %v21512_v24  ;;  %v8301_v57 = vpop.f32.mrb[50].mxu0  ;;  %v31505_v31 = vld [vmem:[#allocation84_spill] sm:$0xff]  ;;  %v31508_v22 = vld [vmem:[#allocation43_spill] sm:$0xff] }
 0x658   : > { %31503 = vst [vmem:[#allocation70_spill] sm:$0xff] %v26916_v60  ;;  %v8303_v43 = vpop.f32.mrb[51].mxu0  ;;  %18272 = vmatprep.mubr.msk.bf16.mxu1 %vm1498_vm0, %v21520_v6  ;;  %v31506_v20 = vmax.f32 %v31504_v25, %v31505_v31  ;;  %v21526_v24 = vld [vmem:[%s30700_s1 + $0x164c] ss:$16 sps:$4 sm:$0xff]   ;;  %v21521_v6 = vld [vmem:[%s30700_s1 + $0x1900] ss:$16 sps:$4 sm:$0xff]  }
 0x659   : > { %v31509_v43 = vld [vmem:[#allocation13_spill] sm:$0xff] }
 0x65a   : > { %v26925_v2 = vmax.f32 %v31506_v20, %v8301_v57  ;;  %11172 = vmatmul.mubr.bf16.gmra.mrb[156].mxu0 %v21515_v37  ;;  %v31510_v20 = vmax.f32 %v31508_v22, %v31509_v43  ;;  %v31512_v31 = vld [vmem:[#allocation33_spill] sm:$0xff] }
 0x65b   : > { %11179 = vmatprep.mubr.bf16.mxu0 %v21523_v49  ;;  %v21529_v49 = vld [vmem:[%s30700_s1 + $0x1924] ss:$16 sps:$4 sm:$0xff]  }
 0x65c   : > { %31507 = vst [vmem:[#allocation71_spill] sm:$0xff] %v26925_v2 }
 0x65d   : > { %v8306_v47 = vpop.f32.mrb[52].mxu0 }
 0x65e   : > { %v8308_v15 = vpop.f32.mrb[53].mxu0  ;;  %v26939_v57 = vmax.f32 %v31510_v20, %v8306_v47  ;;  %v21524_v47 = vld [vmem:[%s30700_s1 + $0x1648] ss:$16 sps:$4 sm:$0xff]  }
 0x65f   : > { %9939 = vmatmul.mubr.bf16.gmra.mrb[120].mxu1 %v21518_v55  ;;  %v8309_v37 = vpop.f32.mrb[54].mxu0  ;;  %v31513_v15 = vld [vmem:[#allocation85_spill] sm:$0xff]  ;;  %v21532_v55 = vld [vmem:[%s30700_s1 + $0x166c] ss:$16 sps:$4 sm:$0xff]  }
 0x660   : > { %31511 = vst [vmem:[#allocation72_spill] sm:$0xff] %v26939_v57  ;;  %v8311_v25 = vpop.f32.mrb[55].mxu0  ;;  %18273 = vmatprep.mubr.msk.bf16.mxu1 %vm1498_vm0, %v21526_v24  ;;  %v31514_v2 = vmax.f32 %v31512_v31, %v31513_v15  ;;  %v21527_v24 = vld [vmem:[%s30700_s1 + $0x1920] ss:$16 sps:$4 sm:$0xff]  }
 0x661   : > { %v31516_v20 = vld [vmem:[#allocation44_spill] sm:$0xff]  ;;  %v31517_v25 = vld [vmem:[#allocation14_spill] sm:$0xff] }
 0x662   : > { %v26948_v60 = vmax.f32 %v31514_v2, %v8309_v37  ;;  %11180 = vmatmul.mubr.bf16.gmra.mrb[160].mxu0 %v21521_v6  ;;  %v31518_v2 = vmax.f32 %v31516_v20, %v31517_v25  ;;  %v31520_v15 = vld [vmem:[#allocation34_spill] sm:$0xff] }
 0x663   : > { %11187 = vmatprep.mubr.bf16.mxu0 %v21529_v49  ;;  %v21535_v49 = vld [vmem:[%s30700_s1 + $0x1944] ss:$16 sps:$4 sm:$0xff]  }
 0x664   : > { %31515 = vst [vmem:[#allocation51_spill] sm:$0xff] %v26948_v60 }
 0x665   : > { %v8314_v22 = vpop.f32.mrb[56].mxu0 }
 0x666   : > { %v8316_v43 = vpop.f32.mrb[57].mxu0  ;;  %v26962_v37 = vmax.f32 %v31518_v2, %v8314_v22  ;;  %v21530_v22 = vld [vmem:[%s30700_s1 + $0x1668] ss:$16 sps:$4 sm:$0xff]  }
 0x667   : > { %9947 = vmatmul.mubr.bf16.gmra.mrb[124].mxu1 %v21524_v47  ;;  %v8317_v6 = vpop.f32.mrb[58].mxu0  ;;  %v31521_v43 = vld [vmem:[#allocation86_spill] sm:$0xff]  ;;  %v31524_v2 = vld [vmem:[#allocation45_spill] sm:$0xff] }
 0x668   : > { %31519 = vst [vmem:[#allocation52_spill] sm:$0xff] %v26962_v37  ;;  %v8319_v31 = vpop.f32.mrb[59].mxu0  ;;  %18274 = vmatprep.mubr.msk.bf16.mxu1 %vm1498_vm0, %v21532_v55  ;;  %v31522_v60 = vmax.f32 %v31520_v15, %v31521_v43  ;;  %v21538_v47 = vld [vmem:[%s30700_s1 + $0x168c] ss:$16 sps:$4 sm:$0xff]   ;;  %v21533_v55 = vld [vmem:[%s30700_s1 + $0x1940] ss:$16 sps:$4 sm:$0xff]  }
 0x669   : > { %v31525_v31 = vld [vmem:[#allocation15_spill] sm:$0xff] }
 0x66a   : > { %v26971_v57 = vmax.f32 %v31522_v60, %v8317_v6  ;;  %11188 = vmatmul.mubr.bf16.gmra.mrb[164].mxu0 %v21527_v24  ;;  %v31526_v60 = vmax.f32 %v31524_v2, %v31525_v31  ;;  %v31528_v43 = vld [vmem:[#allocation35_spill] sm:$0xff] }
 0x66b   : > { %11195 = vmatprep.mubr.bf16.mxu0 %v21535_v49  ;;  %v21541_v49 = vld [vmem:[%s30700_s1 + $0x1964] ss:$16 sps:$4 sm:$0xff]  }
 0x66c   : > { %31523 = vst [vmem:[#allocation74_spill] sm:$0xff] %v26971_v57 }
 0x66d   : > { %v8322_v20 = vpop.f32.mrb[60].mxu0 }
 0x66e   : > { %v8324_v25 = vpop.f32.mrb[61].mxu0  ;;  %v26985_v6 = vmax.f32 %v31526_v60, %v8322_v20  ;;  %v21536_v20 = vld [vmem:[%s30700_s1 + $0x1688] ss:$16 sps:$4 sm:$0xff]  }
 0x66f   : > { %9955 = vmatmul.mubr.bf16.gmra.mrb[128].mxu1 %v21530_v22  ;;  %v8325_v24 = vpop.f32.mrb[62].mxu0  ;;  %v31529_v25 = vld [vmem:[#allocation87_spill] sm:$0xff]  ;;  %v21544_v22 = vld [vmem:[%s30700_s1 + $0x16ac] ss:$16 sps:$4 sm:$0xff]  }
 0x670   : > { %31527 = vst [vmem:[#allocation75_spill] sm:$0xff] %v26985_v6  ;;  %v8327_v15 = vpop.f32.mrb[63].mxu0  ;;  %18275 = vmatprep.mubr.msk.bf16.mxu1 %vm1498_vm0, %v21538_v47  ;;  %v31530_v57 = vmax.f32 %v31528_v43, %v31529_v25  ;;  %v21539_v47 = vld [vmem:[%s30700_s1 + $0x1960] ss:$16 sps:$4 sm:$0xff]  }
 0x671   : > { %v31532_v60 = vld [vmem:[#allocation46_spill] sm:$0xff]  ;;  %v31533_v15 = vld [vmem:[#allocation16_spill] sm:$0xff] }
 0x672   : > { %v26994_v37 = vmax.f32 %v31530_v57, %v8325_v24  ;;  %11196 = vmatmul.mubr.bf16.gmra.mrb[168].mxu0 %v21533_v55  ;;  %v31534_v57 = vmax.f32 %v31532_v60, %v31533_v15  ;;  %v31536_v25 = vld [vmem:[#allocation36_spill] sm:$0xff] }
 0x673   : > { %11203 = vmatprep.mubr.bf16.mxu0 %v21541_v49  ;;  %v21547_v49 = vld [vmem:[%s30700_s1 + $0x1984] ss:$16 sps:$4 sm:$0xff]  }
 0x674   : > { %31531 = vst [vmem:[#allocation56_spill] sm:$0xff] %v26994_v37 }
 0x675   : > { %v8330_v2 = vpop.f32.mrb[64].mxu0 }
 0x676   : > { %v8332_v31 = vpop.f32.mrb[65].mxu0  ;;  %v27008_v24 = vmax.f32 %v31534_v57, %v8330_v2  ;;  %v21542_v2 = vld [vmem:[%s30700_s1 + $0x16a8] ss:$16 sps:$4 sm:$0xff]  }
 0x677   : > { %9963 = vmatmul.mubr.bf16.gmra.mrb[132].mxu1 %v21536_v20  ;;  %v8333_v55 = vpop.f32.mrb[66].mxu0  ;;  %v31537_v31 = vld [vmem:[#allocation88_spill] sm:$0xff]  ;;  %v31540_v57 = vld [vmem:[#allocation47_spill] sm:$0xff] }
 0x678   : > { %31535 = vst [vmem:[#allocation59_spill] sm:$0xff] %v27008_v24  ;;  %v8335_v43 = vpop.f32.mrb[67].mxu0  ;;  %18276 = vmatprep.mubr.msk.bf16.mxu1 %vm1498_vm0, %v21544_v22  ;;  %v31538_v37 = vmax.f32 %v31536_v25, %v31537_v31  ;;  %v21550_v20 = vld [vmem:[%s30700_s1 + $0x16cc] ss:$16 sps:$4 sm:$0xff]   ;;  %v21545_v22 = vld [vmem:[%s30700_s1 + $0x1980] ss:$16 sps:$4 sm:$0xff]  }
 0x679   : > { %v31541_v43 = vld [vmem:[#allocation17_spill] sm:$0xff] }
 0x67a   : > { %v27017_v6 = vmax.f32 %v31538_v37, %v8333_v55  ;;  %11204 = vmatmul.mubr.bf16.gmra.mrb[172].mxu0 %v21539_v47  ;;  %v31542_v37 = vmax.f32 %v31540_v57, %v31541_v43  ;;  %v31544_v31 = vld [vmem:[#allocation49_spill] sm:$0xff] }
 0x67b   : > { %11211 = vmatprep.mubr.bf16.mxu0 %v21547_v49  ;;  %v21553_v49 = vld [vmem:[%s30700_s1 + $0x19a4] ss:$16 sps:$4 sm:$0xff]  }
 0x67c   : > { %31539 = vst [vmem:[#allocation77_spill] sm:$0xff] %v27017_v6 }
 0x67d   : > { %v8338_v60 = vpop.f32.mrb[68].mxu0 }
 0x67e   : > { %v8340_v15 = vpop.f32.mrb[69].mxu0  ;;  %v27031_v55 = vmax.f32 %v31542_v37, %v8338_v60  ;;  %v21548_v60 = vld [vmem:[%s30700_s1 + $0x16c8] ss:$16 sps:$4 sm:$0xff]  }
 0x67f   : > { %9971 = vmatmul.mubr.bf16.gmra.mrb[136].mxu1 %v21542_v2  ;;  %v8341_v47 = vpop.f32.mrb[70].mxu0  ;;  %v31545_v15 = vld [vmem:[#allocation89_spill] sm:$0xff]  ;;  %v21556_v2 = vld [vmem:[%s30700_s1 + $0x16ec] ss:$16 sps:$4 sm:$0xff]  }
 0x680   : > { %31543 = vst [vmem:[#allocation78_spill] sm:$0xff] %v27031_v55  ;;  %v8343_v25 = vpop.f32.mrb[71].mxu0  ;;  %18277 = vmatprep.mubr.msk.bf16.mxu1 %vm1498_vm0, %v21550_v20  ;;  %v31546_v6 = vmax.f32 %v31544_v31, %v31545_v15  ;;  %v21551_v20 = vld [vmem:[%s30700_s1 + $0x19a0] ss:$16 sps:$4 sm:$0xff]  }
 0x681   : > { %v31548_v37 = vld [vmem:[#allocation37_spill] sm:$0xff]  ;;  %v31549_v25 = vld [vmem:[#allocation18_spill] sm:$0xff] }
 0x682   : > { %v27040_v24 = vmax.f32 %v31546_v6, %v8341_v47  ;;  %11212 = vmatmul.mubr.bf16.gmra.mrb[176].mxu0 %v21545_v22  ;;  %v31550_v6 = vmax.f32 %v31548_v37, %v31549_v25  ;;  %v31552_v15 = vld [vmem:[#allocation50_spill] sm:$0xff] }
 0x683   : > { %11219 = vmatprep.mubr.bf16.mxu0 %v21553_v49  ;;  %v21559_v49 = vld [vmem:[%s30700_s1 + $0x19c4] ss:$16 sps:$4 sm:$0xff]  }
 0x684   : > { %31547 = vst [vmem:[#allocation79_spill] sm:$0xff] %v27040_v24 }
 0x685   : > { %v8346_v57 = vpop.f32.mrb[76].mxu0 }
 0x686   : > { %v8348_v43 = vpop.f32.mrb[77].mxu0  ;;  %v27054_v47 = vmax.f32 %v31550_v6, %v8346_v57  ;;  %v21554_v57 = vld [vmem:[%s30700_s1 + $0x16e8] ss:$16 sps:$4 sm:$0xff]  }
 0x687   : > { %9979 = vmatmul.mubr.bf16.gmra.mrb[140].mxu1 %v21548_v60  ;;  %v8349_v22 = vpop.f32.mrb[78].mxu0  ;;  %v31553_v43 = vld [vmem:[#allocation90_spill] sm:$0xff]  ;;  %v31556_v6 = vld [vmem:[#allocation53_spill] sm:$0xff] }
 0x688   : > { %31551 = vst [vmem:[#allocation27_spill] sm:$0xff] %v27054_v47  ;;  %v8351_v31 = vpop.f32.mrb[79].mxu0  ;;  %18278 = vmatprep.mubr.msk.bf16.mxu1 %vm1498_vm0, %v21556_v2  ;;  %v31554_v24 = vmax.f32 %v31552_v15, %v31553_v43  ;;  %v21562_v60 = vld [vmem:[%s30700_s1 + $0x170c] ss:$16 sps:$4 sm:$0xff]   ;;  %v21557_v2 = vld [vmem:[%s30700_s1 + $0x19c0] ss:$16 sps:$4 sm:$0xff]  }
 0x689   : > { %v31557_v31 = vld [vmem:[#allocation19_spill] sm:$0xff]  ;;  %v31560_v43 = vld [vmem:[#allocation54_spill] sm:$0xff] }
 0x68a   : > { %v27063_v55 = vmax.f32 %v31554_v24, %v8349_v22  ;;  %11220 = vmatmul.mubr.bf16.gmra.mrb[180].mxu0 %v21551_v20  ;;  %v31558_v24 = vmax.f32 %v31556_v6, %v31557_v31 }
 0x68b   : > { %11227 = vmatprep.mubr.bf16.mxu0 %v21559_v49  ;;  %v21565_v49 = vld [vmem:[%s30700_s1 + $0x19e4] ss:$16 sps:$4 sm:$0xff]  }
 0x68c   : > { %31555 = vst [vmem:[#allocation80_spill] sm:$0xff] %v27063_v55 }
 0x68d   : > { %v8354_v37 = vpop.f32.mrb[72].mxu0 }
 0x68e   : > { %v8356_v25 = vpop.f32.mrb[73].mxu0  ;;  %v27077_v22 = vmax.f32 %v31558_v24, %v8354_v37  ;;  %v21560_v37 = vld [vmem:[%s30700_s1 + $0x1708] ss:$16 sps:$4 sm:$0xff]  }
 0x68f   : > { %9987 = vmatmul.mubr.bf16.gmra.mrb[144].mxu1 %v21554_v57  ;;  %v8357_v20 = vpop.f32.mrb[74].mxu0  ;;  %v31561_v25 = vld [vmem:[#allocation91_spill] sm:$0xff]  ;;  %v21568_v57 = vld [vmem:[%s30700_s1 + $0x172c] ss:$16 sps:$4 sm:$0xff]   ;;  %v31564_v24 = vld [vmem:[#allocation57_spill] sm:$0xff] }
 0x690   : > { %31559 = vst [vmem:[#allocation28_spill] sm:$0xff] %v27077_v22  ;;  %v8359_v15 = vpop.f32.mrb[75].mxu0  ;;  %18279 = vmatprep.mubr.msk.bf16.mxu1 %vm1498_vm0, %v21562_v60  ;;  %v31562_v55 = vmax.f32 %v31560_v43, %v31561_v25  ;;  %v21563_v60 = vld [vmem:[%s30700_s1 + $0x19e0] ss:$16 sps:$4 sm:$0xff]  }
 0x691   : > { %v31565_v15 = vld [vmem:[#allocation20_spill] sm:$0xff]  ;;  %v31568_v25 = vld [vmem:[#allocation58_spill] sm:$0xff] }
 0x692   : > { %v27086_v47 = vmax.f32 %v31562_v55, %v8357_v20  ;;  %11228 = vmatmul.mubr.bf16.gmra.mrb[184].mxu0 %v21557_v2  ;;  %v31566_v55 = vmax.f32 %v31564_v24, %v31565_v15 }
 0x693   : > { %11235 = vmatprep.mubr.bf16.mxu0 %v21565_v49  ;;  %v21571_v49 = vld [vmem:[%s30700_s1 + $0x1a04] ss:$16 sps:$4 sm:$0xff]  }
 0x694   : > { %31563 = vst [vmem:[#allocation9_spill] sm:$0xff] %v27086_v47 }
 0x695   : > { %v8362_v6 = vpop.f32.mrb[80].mxu0 }
 0x696   : > { %v8364_v31 = vpop.f32.mrb[81].mxu0  ;;  %v27100_v20 = vmax.f32 %v31566_v55, %v8362_v6  ;;  %v21566_v6 = vld [vmem:[%s30700_s1 + $0x1728] ss:$16 sps:$4 sm:$0xff]  }
 0x697   : > { %9995 = vmatmul.mubr.bf16.gmra.mrb[148].mxu1 %v21560_v37  ;;  %v8365_v2 = vpop.f32.mrb[82].mxu0  ;;  %v31569_v31 = vld [vmem:[#allocation92_spill] sm:$0xff]  ;;  %v31572_v55 = vld [vmem:[#allocation61_spill] sm:$0xff] }
 0x698   : > { %31567 = vst [vmem:[#allocation29_spill] sm:$0xff] %v27100_v20  ;;  %v8367_v43 = vpop.f32.mrb[83].mxu0  ;;  %18280 = vmatprep.mubr.msk.bf16.mxu1 %vm1498_vm0, %v21568_v57  ;;  %v31570_v47 = vmax.f32 %v31568_v25, %v31569_v31  ;;  %v21574_v37 = vld [vmem:[%s30700_s1 + $0x174c] ss:$16 sps:$4 sm:$0xff]   ;;  %v21569_v57 = vld [vmem:[%s30700_s1 + $0x1a00] ss:$16 sps:$4 sm:$0xff]  }
 0x699   : > { %v31573_v43 = vld [vmem:[#allocation21_spill] sm:$0xff]  ;;  %v31576_v31 = vld [vmem:[#allocation62_spill] sm:$0xff] }
 0x69a   : > { %v27109_v22 = vmax.f32 %v31570_v47, %v8365_v2  ;;  %11236 = vmatmul.mubr.bf16.gmra.mrb[188].mxu0 %v21563_v60  ;;  %v31574_v47 = vmax.f32 %v31572_v55, %v31573_v43 }
 0x69b   : > { %11243 = vmatprep.mubr.bf16.mxu0 %v21571_v49  ;;  %v21577_v49 = vld [vmem:[%s30700_s1 + $0x1a24] ss:$16 sps:$4 sm:$0xff]  }
 0x69c   : > { %31571 = vst [vmem:[#allocation81_spill] sm:$0xff] %v27109_v22 }
 0x69d   : > { %v8370_v24 = vpop.f32.mrb[84].mxu0 }
 0x69e   : > { %v8372_v15 = vpop.f32.mrb[85].mxu0  ;;  %v27123_v2 = vmax.f32 %v31574_v47, %v8370_v24  ;;  %v21572_v24 = vld [vmem:[%s30700_s1 + $0x1748] ss:$16 sps:$4 sm:$0xff]  }
 0x69f   : > { %10003 = vmatmul.mubr.bf16.gmra.mrb[152].mxu1 %v21566_v6  ;;  %v8373_v60 = vpop.f32.mrb[86].mxu0  ;;  %v31577_v15 = vld [vmem:[#allocation93_spill] sm:$0xff]  ;;  %v21580_v6 = vld [vmem:[%s30700_s1 + $0x176c] ss:$16 sps:$4 sm:$0xff]  }
 0x6a0   : > { %31575 = vst [vmem:[#allocation40_spill] sm:$0xff] %v27123_v2  ;;  %v8375_v25 = vpop.f32.mrb[87].mxu0  ;;  %18281 = vmatprep.mubr.msk.bf16.mxu1 %vm1498_vm0, %v21574_v37  ;;  %v31578_v22 = vmax.f32 %v31576_v31, %v31577_v15  ;;  %v21575_v37 = vld [vmem:[%s30700_s1 + $0x1a20] ss:$16 sps:$4 sm:$0xff]  }
 0x6a1   : > { %v31580_v47 = vld [vmem:[#allocation65_spill] sm:$0xff]  ;;  %v31581_v25 = vld [vmem:[#allocation22_spill] sm:$0xff] }
 0x6a2   : > { %v27132_v20 = vmax.f32 %v31578_v22, %v8373_v60  ;;  %11244 = vmatmul.mubr.bf16.gmra.mrb[192].mxu0 %v21569_v57  ;;  %v31582_v22 = vmax.f32 %v31580_v47, %v31581_v25  ;;  %v31583_v15 = vld [vmem:[#allocation66_spill] sm:$0xff] }
 0x6a3   : > { %11251 = vmatprep.mubr.bf16.mxu0 %v21577_v49  ;;  %v21583_v49 = vld [vmem:[%s30700_s1 + $0x1a44] ss:$16 sps:$4 sm:$0xff]  }
 0x6a4   : > { %31579 = vst [vmem:[#allocation10_spill] sm:$0xff] %v27132_v20 }
 0x6a5   : > { %v8378_v55 = vpop.f32.mrb[88].mxu0 }
 0x6a6   : > { %v8380_v43 = vpop.f32.mrb[89].mxu0  ;;  %v27146_v60 = vmax.f32 %v31582_v22, %v8378_v55 }
 0x6a7   : > { %10011 = vmatmul.mubr.bf16.gmra.mrb[156].mxu1 %v21572_v24  ;;  %v8381_v57 = vpop.f32.mrb[90].mxu0  ;;  %v31584_v43 = vld [vmem:[#allocation94_spill] sm:$0xff] }
 0x6a8   : > { %v8383_v31 = vpop.f32.mrb[91].mxu0  ;;  %18282 = vmatprep.mubr.msk.bf16.mxu1 %vm1498_vm0, %v21580_v6  ;;  %v31585_v20 = vmax.f32 %v31583_v15, %v31584_v43  ;;  %v21578_v24 = vld [vmem:[%s30700_s1 + $0x1768] ss:$16 sps:$4 sm:$0xff]   ;;  %v21586_v6 = vld [vmem:[%s30700_s1 + $0x178c] ss:$16 sps:$4 sm:$0xff]  }
 0x6a9   : > { %v21581_v31 = vld [vmem:[%s30700_s1 + $0x1a40] ss:$16 sps:$4 sm:$0xff]  }
 0x6aa   : > { %v27155_v2 = vmax.f32 %v31585_v20, %v8381_v57  ;;  %v27157_v0 = vpop.f32.mrb[52].mxu1  ;;  %11252 = vmatmul.mubr.bf16.gmra.mrb[196].mxu0 %v21575_v37  ;;  %v31589_v15 = vld [vmem:[#allocation23_spill] sm:$0xff] }
 0x6ab   : > { %31586 = vst [vmem:[#allocation30_spill] sm:$0xff] %v27157_v0  ;;  %v9806_v47 = vpop.f32.mrb[53].mxu1  ;;  %11259 = vmatprep.mubr.bf16.mxu0 %v21583_v49  ;;  %v31588_v49 = vld [vmem:[#allocation69_spill] sm:$0xff] }
 0x6ac   : > { %v27164_v25 = vpop.f32.mrb[54].mxu1  ;;  %v31590_v43 = vmax.f32 %v31588_v49, %v31589_v15  ;;  %v21589_v0 = vld [vmem:[%s30700_s1 + $0x1a64] ss:$16 sps:$4 sm:$0xff]  }
 0x6ad   : > { %31587 = vst [vmem:[#allocation82_spill] sm:$0xff] %v27164_v25  ;;  %v8386_v20 = vpop.f32.mrb[92].mxu0  ;;  %v9809_v22 = vpop.f32.mrb[55].mxu1 }
 0x6ae   : > { %v8388_v57 = vpop.f32.mrb[93].mxu0  ;;  %v27177_v47 = vmax.f32 %v31590_v43, %v8386_v20  ;;  %v21587_v43 = vld [vmem:[%s30700_s1 + $0x1a60] ss:$16 sps:$4 sm:$0xff]  }
 0x6af   : > { %10019 = vmatmul.mubr.bf16.gmra.mrb[160].mxu1 %v21578_v24  ;;  %v8389_v55 = vpop.f32.mrb[94].mxu0  ;;  %v31591_v57 = vmax.f32 %v25605_v35, %v26246_v53  ;;  %v21584_v24 = vld [vmem:[%s30700_s1 + $0x1788] ss:$16 sps:$4 sm:$0xff]   ;;  %v21592_v35 = vld [vmem:[%s30700_s1 + $0x17ac] ss:$16 sps:$4 sm:$0xff]  }
 0x6b0   : > { %v8391_v22 = vpop.f32.mrb[95].mxu0  ;;  %18283 = vmatprep.mubr.msk.bf16.mxu1 %vm1498_vm0, %v21586_v6 }
 0x6b1   : > { %v27186_v37 = vmax.f32 %v31591_v57, %v8389_v55  ;;  %v31595_v22 = vld [vmem:[#allocation95_spill] sm:$0xff] }
 0x6b2   : > { %v27188_v25 = vpop.f32.mrb[56].mxu1  ;;  %11260 = vmatmul.mubr.bf16.gmra.mrb[200].mxu0 %v21581_v31 }
 0x6b3   : > { %31592 = vst [vmem:[#allocation41_spill] sm:$0xff] %v27188_v25  ;;  %v9814_v49 = vpop.f32.mrb[57].mxu1  ;;  %11267 = vmatprep.mubr.bf16.mxu0 %v21589_v0  ;;  %v31594_v0 = vld [vmem:[#allocation48_spill] sm:$0xff]  ;;  %v21595_v25 = vld [vmem:[%s30700_s1 + $0x1a84] ss:$16 sps:$4 sm:$0xff]  }
 0x6b4   : > { %v27195_v15 = vpop.f32.mrb[58].mxu1  ;;  %v31596_v57 = vmax.f32 %v31594_v0, %v31595_v22 }
 0x6b5   : > { %31593 = vst [vmem:[#allocation11_spill] sm:$0xff] %v27195_v15  ;;  %v8394_v53 = vpop.f32.mrb[96].mxu0  ;;  %v9817_v55 = vpop.f32.mrb[59].mxu1 }
 0x6b6   : > { %v8396_v31 = vpop.f32.mrb[97].mxu0  ;;  %v27208_v49 = vmax.f32 %v31596_v57, %v8394_v53  ;;  %v21593_v57 = vld [vmem:[%s30700_s1 + $0x1a80] ss:$16 sps:$4 sm:$0xff]  }
 0x6b7   : > { %10027 = vmatmul.mubr.bf16.gmra.mrb[164].mxu1 %v21584_v24  ;;  %v8397_v20 = vpop.f32.mrb[98].mxu0  ;;  %v31597_v31 = vmax.f32 %v25636_v9, %v26267_v27  ;;  %v21590_v24 = vld [vmem:[%s30700_s1 + $0x17a8] ss:$16 sps:$4 sm:$0xff]   ;;  %v21598_v27 = vld [vmem:[%s30700_s1 + $0x17cc] ss:$16 sps:$4 sm:$0xff]  }
 0x6b8   : > { %v8399_v55 = vpop.f32.mrb[99].mxu0  ;;  %18284 = vmatprep.mubr.msk.bf16.mxu1 %vm1498_vm0, %v21592_v35 }
 0x6b9   : > { %v27217_v6 = vmax.f32 %v31597_v31, %v8397_v20  ;;  %v31601_v55 = vld [vmem:[#allocation96_spill] sm:$0xff] }
 0x6ba   : > { %v27219_v15 = vpop.f32.mrb[60].mxu1  ;;  %11268 = vmatmul.mubr.bf16.gmra.mrb[204].mxu0 %v21587_v43 }
 0x6bb   : > { %31598 = vst [vmem:[#allocation31_spill] sm:$0xff] %v27219_v15  ;;  %v9822_v0 = vpop.f32.mrb[61].mxu1  ;;  %11275 = vmatprep.mubr.bf16.mxu0 %v21595_v25  ;;  %v31600_v25 = vld [vmem:[#allocation73_spill] sm:$0xff] }
 0x6bc   : > { %v27226_v22 = vpop.f32.mrb[62].mxu1  ;;  %v31602_v31 = vmax.f32 %v31600_v25, %v31601_v55  ;;  %v21601_v15 = vld [vmem:[%s30700_s1 + $0x1aa4] ss:$16 sps:$4 sm:$0xff]  }
 0x6bd   : > { %31599 = vst [vmem:[#allocation83_spill] sm:$0xff] %v27226_v22  ;;  %v8402_v9 = vpop.f32.mrb[100].mxu0  ;;  %v9825_v20 = vpop.f32.mrb[63].mxu1 }
 0x6be   : > { %v8404_v43 = vpop.f32.mrb[101].mxu0  ;;  %v27239_v0 = vmax.f32 %v31602_v31, %v8402_v9  ;;  %v21599_v31 = vld [vmem:[%s30700_s1 + $0x1aa0] ss:$16 sps:$4 sm:$0xff]  }
 0x6bf   : > { %10035 = vmatmul.mubr.bf16.gmra.mrb[168].mxu1 %v21590_v24  ;;  %v8405_v53 = vpop.f32.mrb[102].mxu0  ;;  %v31603_v43 = vmax.f32 %v25667_v54, %v26288_v34  ;;  %v21596_v24 = vld [vmem:[%s30700_s1 + $0x17c8] ss:$16 sps:$4 sm:$0xff]   ;;  %v21604_v54 = vld [vmem:[%s30700_s1 + $0x17ec] ss:$16 sps:$4 sm:$0xff]  }
 0x6c0   : > { %v8407_v20 = vpop.f32.mrb[103].mxu0  ;;  %18285 = vmatprep.mubr.msk.bf16.mxu1 %vm1498_vm0, %v21598_v27 }
 0x6c1   : > { %v27248_v35 = vmax.f32 %v31603_v43, %v8405_v53  ;;  %v31607_v20 = vld [vmem:[#allocation24_spill] sm:$0xff] }
 0x6c2   : > { %v27250_v22 = vpop.f32.mrb[64].mxu1  ;;  %11276 = vmatmul.mubr.bf16.gmra.mrb[208].mxu0 %v21593_v57 }
 0x6c3   : > { %31604 = vst [vmem:[#allocation42_spill] sm:$0xff] %v27250_v22  ;;  %v9830_v25 = vpop.f32.mrb[65].mxu1  ;;  %11283 = vmatprep.mubr.bf16.mxu0 %v21601_v15  ;;  %v31606_v15 = vld [vmem:[#allocation55_spill] sm:$0xff] }
 0x6c4   : > { %v27257_v55 = vpop.f32.mrb[66].mxu1  ;;  %v31608_v43 = vmax.f32 %v31606_v15, %v31607_v20  ;;  %v21607_v22 = vld [vmem:[%s30700_s1 + $0x1ac4] ss:$16 sps:$4 sm:$0xff]  }
 0x6c5   : > { %31605 = vst [vmem:[#allocation12_spill] sm:$0xff] %v27257_v55  ;;  %v8410_v34 = vpop.f32.mrb[104].mxu0  ;;  %v9833_v53 = vpop.f32.mrb[67].mxu1 }
 0x6c6   : > { %v8412_v57 = vpop.f32.mrb[105].mxu0  ;;  %v27270_v25 = vmax.f32 %v31608_v43, %v8410_v34  ;;  %v21605_v43 = vld [vmem:[%s30700_s1 + $0x1ac0] ss:$16 sps:$4 sm:$0xff]  }
 0x6c7   : > { %10043 = vmatmul.mubr.bf16.gmra.mrb[172].mxu1 %v21596_v24  ;;  %v8413_v9 = vpop.f32.mrb[106].mxu0  ;;  %v31609_v57 = vmax.f32 %v25698_v45, %v26309_v61  ;;  %v21602_v24 = vld [vmem:[%s30700_s1 + $0x17e8] ss:$16 sps:$4 sm:$0xff]   ;;  %v21610_v45 = vld [vmem:[%s30700_s1 + $0x1c04] ss:$16 sps:$4 sm:$0xff]  }
 0x6c8   : > { %v8415_v53 = vpop.f32.mrb[107].mxu0  ;;  %18286 = vmatprep.mubr.msk.bf16.mxu1 %vm1498_vm0, %v21604_v54 }
 0x6c9   : > { %v27279_v27 = vmax.f32 %v31609_v57, %v8413_v9  ;;  %v31613_v53 = vld [vmem:[#allocation97_spill] sm:$0xff] }
 0x6ca   : > { %v27281_v55 = vpop.f32.mrb[68].mxu1  ;;  %11284 = vmatmul.mubr.bf16.gmra.mrb[212].mxu0 %v21599_v31 }
 0x6cb   : > { %31610 = vst [vmem:[#allocation32_spill] sm:$0xff] %v27281_v55  ;;  %v9838_v15 = vpop.f32.mrb[69].mxu1  ;;  %11291 = vmatprep.mubr.bf16.mxu0 %v21607_v22  ;;  %v31612_v22 = vld [vmem:[#allocation76_spill] sm:$0xff]  ;;  %v21613_v55 = vld [vmem:[%s30700_s1 + $0x1ae4] ss:$16 sps:$4 sm:$0xff]  }
 0x6cc   : > { %v27288_v20 = vpop.f32.mrb[70].mxu1  ;;  %v31614_v57 = vmax.f32 %v31612_v22, %v31613_v53  ;;  %v31617_v53 = vld [vmem:[#allocation98_spill] sm:$0xff] }
 0x6cd   : > { %31611 = vst [vmem:[#allocation84_spill] sm:$0xff] %v27288_v20  ;;  %v8418_v61 = vpop.f32.mrb[108].mxu0  ;;  %v9841_v9 = vpop.f32.mrb[71].mxu1 }
 0x6ce   : > { %v8420_v31 = vpop.f32.mrb[109].mxu0  ;;  %v27301_v15 = vmax.f32 %v31614_v57, %v8418_v61  ;;  %v21619_v61 = vld [vmem:[%s30700_s1 + $0x1b04] ss:$16 sps:$4 sm:$0xff]  }
 0x6cf   : > { %10051 = vmatmul.mubr.bf16.gmra.mrb[176].mxu1 %v21602_v24  ;;  %v8421_v34 = vpop.f32.mrb[110].mxu0  ;;  %v31615_v31 = vmax.f32 %v25729_v48, %v26330_v42  ;;  %v21608_v24 = vld [vmem:[%s30700_s1 + $0x1c00] ss:$16 sps:$4 sm:$0xff]   ;;  %v21616_v48 = vld [vmem:[%s30700_s1 + $0x1c24] ss:$16 sps:$4 sm:$0xff]  }
 0x6d0   : > { %v8423_v9 = vpop.f32.mrb[111].mxu0  ;;  %12717 = vmatprep.mubr.bf16.mxu1 %v21610_v45 }
 0x6d1   : > { %v27309_v54 = vmax.f32 %v31615_v31, %v8421_v34 }
 0x6d2   : > { %v27311_v20 = vpop.f32.mrb[72].mxu1  ;;  %11292 = vmatmul.mubr.bf16.gmra.mrb[216].mxu0 %v21605_v43  ;;  %v21611_v43 = vld [vmem:[%s30700_s1 + $0x1ae0] ss:$16 sps:$4 sm:$0xff]  }
 0x6d3   : > { %v9846_v52 = vpop.f32.mrb[73].mxu1  ;;  %11299 = vmatprep.mubr.bf16.mxu0 %v21613_v55  ;;  %v31616_v55 = vld [vmem:[#allocation60_spill] sm:$0xff] }
 0x6d4   : > { %v27318_v22 = vpop.f32.mrb[74].mxu1  ;;  %v31618_v57 = vmax.f32 %v31616_v55, %v31617_v53 }
 0x6d5   : > { %v8426_v42 = vpop.f32.mrb[112].mxu0  ;;  %v9849_v34 = vpop.f32.mrb[75].mxu1 }
 0x6d6   : > { %v8428_v52 = vpop.f32.mrb[113].mxu0  ;;  %v27331_v9 = vmax.f32 %v31618_v57, %v8426_v42  ;;  %v21614_v42 = vld [vmem:[%s30700_s1 + $0x1c20] ss:$16 sps:$4 sm:$0xff]  }
 0x6d7   : > { %12718 = vmatmul.mubr.bf16.vlgmr.msra.gmra.mrb[180].mxu1 %v21608_v24  ;;  %v8429_v31 = vpop.f32.mrb[114].mxu0  ;;  %v31619_v52 = vmax.f32 %v25759_v4, %v26351_v3  ;;  %v21622_v4 = vld [vmem:[%s30700_s1 + $0x1c44] ss:$16 sps:$4 sm:$0xff]  }
 0x6d8   : > { %v8431_v34 = vpop.f32.mrb[115].mxu0  ;;  %12725 = vmatprep.mubr.bf16.mxu1 %v21616_v48  ;;  %12975 = vmatpush1.bf16.msra.mxu1 %v26728_v29 }
 0x6d9   : > { %v27340_v45 = vmax.f32 %v31619_v52, %v8429_v31  ;;  %12976 = vmatprep.subr.bf16.mxu1 %v31123_v28  ;;  %v31620_v31 = vld [vmem:[#allocation63_spill] sm:$0xff]  ;;  %v31621_v34 = vld [vmem:[#allocation25_spill] sm:$0xff] }
 0x6da   : > { %v27343_v55 = vpop.f32.mrb[76].mxu1  ;;  %11300 = vmatmul.mubr.bf16.gmra.mrb[220].mxu0 %v21611_v43  ;;  %v31622_v52 = vmax.f32 %v31620_v31, %v31621_v34 }
 0x6db   : > { %v9854_v24 = vpop.f32.mrb[77].mxu1  ;;  %11307 = vmatprep.mubr.bf16.mxu0 %v21619_v61  ;;  %v21617_v61 = vld [vmem:[%s30700_s1 + $0x1b00] ss:$16 sps:$4 sm:$0xff]  }
 0x6dc   : > { %v27350_v29 = vpop.f32.mrb[78].mxu1  ;;  %12977 = vmatpush1.bf16.msra.mxu1 %v26747_v14  ;;  %v21625_v14 = vld [vmem:[%s30700_s1 + $0x1b24] ss:$16 sps:$4 sm:$0xff]  }
 0x6dd   : > { %v8434_v3 = vpop.f32.mrb[116].mxu0  ;;  %v9857_v53 = vpop.f32.mrb[79].mxu1  ;;  %12978 = vmatprep.subr.bf16.mxu1 %v31123_v28 }
 0x6de   : > { %v8436_v57 = vpop.f32.mrb[117].mxu0  ;;  %v27365_v24 = vmax.f32 %v31622_v52, %v8434_v3  ;;  %v21620_v3 = vld [vmem:[%s30700_s1 + $0x1c40] ss:$16 sps:$4 sm:$0xff]  }
 0x6df   : > { %12726 = vmatmul.mubr.bf16.gmra.mrb[184].mxu1 %v21614_v42  ;;  %v8437_v48 = vpop.f32.mrb[118].mxu0  ;;  %v31624_v57 = vmax.f32 %v25793_v46, %v26372_v40  ;;  %v21628_v46 = vld [vmem:[%s30700_s1 + $0x1c64] ss:$16 sps:$4 sm:$0xff]   ;;  %v21623_v52 = vld [vmem:[%s30700_s1 + $0x1b20] ss:$16 sps:$4 sm:$0xff]  }
 0x6e0   : > { %31623 = vst [vmem:[#allocation43_spill] sm:$0xff] %v27365_v24  ;;  %v8439_v53 = vpop.f32.mrb[119].mxu0  ;;  %12733 = vmatprep.mubr.bf16.mxu1 %v21622_v4  ;;  %12979 = vmatpush1.bf16.msra.mxu1 %v26761_v33 }
 0x6e1   : > { %v27374_v43 = vmax.f32 %v31624_v57, %v8437_v48  ;;  %12980 = vmatprep.subr.bf16.mxu1 %v31123_v28  ;;  %v31627_v53 = vld [vmem:[#allocation99_spill] sm:$0xff] }
 0x6e2   : > { %v27377_v31 = vpop.f32.mrb[80].mxu1  ;;  %11308 = vmatmul.mubr.bf16.gmra.mrb[224].mxu0 %v21617_v61 }
 0x6e3   : > { %31625 = vst [vmem:[#allocation13_spill] sm:$0xff] %v27374_v43  ;;  %v9862_v42 = vpop.f32.mrb[81].mxu1  ;;  %11315 = vmatprep.mubr.bf16.mxu0 %v21625_v14  ;;  %v31626_v14 = vld [vmem:[#allocation64_spill] sm:$0xff] }
 0x6e4   : > { %v27384_v33 = vpop.f32.mrb[82].mxu1  ;;  %12981 = vmatpush1.bf16.msra.mxu1 %v26780_v58  ;;  %v31628_v57 = vmax.f32 %v31626_v14, %v31627_v53  ;;  %v21631_v58 = vld [vmem:[%s30700_s1 + $0x1b44] ss:$16 sps:$4 sm:$0xff]  }
 0x6e5   : > { %v8442_v40 = vpop.f32.mrb[120].mxu0  ;;  %v9865_v48 = vpop.f32.mrb[83].mxu1  ;;  %12982 = vmatprep.subr.bf16.mxu1 %v31123_v28 }
 0x6e6   : > { %v8444_v34 = vpop.f32.mrb[121].mxu0  ;;  %v27399_v42 = vmax.f32 %v31628_v57, %v8442_v40  ;;  %v21626_v40 = vld [vmem:[%s30700_s1 + $0x1c60] ss:$16 sps:$4 sm:$0xff]  }
 0x6e7   : > { %12734 = vmatmul.mubr.bf16.gmra.mrb[188].mxu1 %v21620_v3  ;;  %v8445_v4 = vpop.f32.mrb[122].mxu0  ;;  %v31630_v34 = vmax.f32 %v25827_v7, %v26393_v10  ;;  %v21634_v7 = vld [vmem:[%s30700_s1 + $0x1c84] ss:$16 sps:$4 sm:$0xff]   ;;  %v21629_v57 = vld [vmem:[%s30700_s1 + $0x1b40] ss:$16 sps:$4 sm:$0xff]  }
 0x6e8   : > { %31629 = vst [vmem:[#allocation33_spill] sm:$0xff] %v27399_v42  ;;  %v8447_v48 = vpop.f32.mrb[123].mxu0  ;;  %12741 = vmatprep.mubr.bf16.mxu1 %v21628_v46  ;;  %12983 = vmatpush1.bf16.msra.mxu1 %v26794_v11 }
 0x6e9   : > { %v27408_v61 = vmax.f32 %v31630_v34, %v8445_v4  ;;  %12984 = vmatprep.subr.bf16.mxu1 %v31123_v28 }
 0x6ea   : > { %v27411_v14 = vpop.f32.mrb[84].mxu1  ;;  %11316 = vmatmul.mubr.bf16.gmra.mrb[228].mxu0 %v21623_v52  ;;  %v31651_v52 = vld [vmem:[#allocation72_spill] sm:$0xff] }
 0x6eb   : > { %31631 = vst [vmem:[#allocation85_spill] sm:$0xff] %v27408_v61  ;;  %v9870_v3 = vpop.f32.mrb[85].mxu1  ;;  %11323 = vmatprep.mubr.bf16.mxu0 %v21631_v58  ;;  %v31632_v58 = vmax.f32 %v25850_v44, %v26406_v59 }
 0x6ec   : > { %v27418_v11 = vpop.f32.mrb[86].mxu1  ;;  %12985 = vmatpush1.bf16.msra.mxu1 %v26813_v32  ;;  %v21637_v32 = vld [vmem:[%s30700_s1 + $0x1b64] ss:$16 sps:$4 sm:$0xff]  }
 0x6ed   : > { %v8450_v10 = vpop.f32.mrb[124].mxu0  ;;  %v9873_v4 = vpop.f32.mrb[87].mxu1  ;;  %12986 = vmatprep.subr.bf16.mxu1 %v31123_v28 }
 0x6ee   : > { %v8452_v53 = vpop.f32.mrb[125].mxu0  ;;  %v27433_v48 = vmax.f32 %v31632_v58, %v8450_v10  ;;  %v31634_v4 = vmax.f32 %v25861_v18, %v26414_v36  ;;  %v21640_v18 = vld [vmem:[%s30700_s1 + $0x1ca4] ss:$16 sps:$4 sm:$0xff]   ;;  %v31636_v10 = vld [vmem:[#allocation100_spill] sm:$0xff] }
 0x6ef   : > { %12742 = vmatmul.mubr.bf16.gmra.mrb[192].mxu1 %v21626_v40  ;;  %v8453_v34 = vpop.f32.mrb[126].mxu0  ;;  %v21632_v40 = vld [vmem:[%s30700_s1 + $0x1c80] ss:$16 sps:$4 sm:$0xff]  }
 0x6f0   : > { %31633 = vst [vmem:[#allocation44_spill] sm:$0xff] %v27433_v48  ;;  %v8455_v3 = vpop.f32.mrb[127].mxu0  ;;  %12749 = vmatprep.mubr.bf16.mxu1 %v21634_v7  ;;  %12987 = vmatpush1.bf16.msra.mxu1 %v26827_v41  ;;  %v27442_v53 = vmax.f32 %v31634_v4, %v8453_v34  ;;  %v21635_v58 = vld [vmem:[%s30700_s1 + $0x1b60] ss:$16 sps:$4 sm:$0xff]   ;;  %v21643_v34 = vld [vmem:[%s30700_s1 + $0x1b84] ss:$16 sps:$4 sm:$0xff]  }
 0x6f1   : > { %12988 = vmatprep.subr.bf16.mxu1 %v31123_v28  ;;  %v21638_v4 = vld [vmem:[%s30700_s1 + $0x1ca0] ss:$16 sps:$4 sm:$0xff]  }
 0x6f2   : > { %31635 = vst [vmem:[#allocation14_spill] sm:$0xff] %v27442_v53  ;;  %v27445_v44 = vpop.f32.mrb[88].mxu1  ;;  %11324 = vmatmul.mubr.bf16.gmra.mrb[232].mxu0 %v21629_v57  ;;  %v31708_v48 = vld [vmem:[#allocation82_spill] sm:$0xff] }
 0x6f3   : > { %v9878_v59 = vpop.f32.mrb[89].mxu1  ;;  %11331 = vmatprep.mubr.bf16.mxu0 %v21637_v32  ;;  %v31637_v32 = vld [vmem:[#allocation8_spill] sm:$0xff]  ;;  %v31709_v61 = vmax.f32 %v26588_v17, %v31708_v48 }
 0x6f4   : > { %v27452_v41 = vpop.f32.mrb[90].mxu1  ;;  %12989 = vmatpush1.bf16.msra.mxu1 %v26846_v12  ;;  %v31639_v59 = vld [vmem:[#allocation38_spill] sm:$0xff] }
 0x6f5   : > { %v9881_v36 = vpop.f32.mrb[91].mxu1  ;;  %12990 = vmatprep.subr.bf16.mxu1 %v31123_v28  ;;  %v21833_v48 = vld [vmem:[%s30700_s1 + $0x1b88] ss:$16 sps:$4 sm:$0xff]  }
 0x6f7   : > { %12750 = vmatmul.mubr.bf16.gmra.mrb[196].mxu1 %v21632_v40 }
 0x6f8   : > { %12757 = vmatprep.mubr.bf16.mxu1 %v21640_v18  ;;  %12991 = vmatpush1.bf16.msra.mxu1 %v31637_v32  ;;  %v21646_v18 = vld [vmem:[%s30700_s1 + $0x1cc4] ss:$16 sps:$4 sm:$0xff]  }
 0x6fa   : > { %v27468_v3 = vpop.f32.mrb[92].mxu1  ;;  %11332 = vmatmul.mubr.bf16.gmra.mrb[236].mxu0 %v21635_v58  ;;  %v21641_v58 = vld [vmem:[%s30700_s1 + $0x1b80] ss:$16 sps:$4 sm:$0xff]  }
 0x6fb   : > { %31638 = vst [vmem:[#allocation34_spill] sm:$0xff] %v27468_v3  ;;  %v9886_v12 = vpop.f32.mrb[93].mxu1  ;;  %11339 = vmatprep.mubr.bf16.mxu0 %v21643_v34  ;;  %v21649_v34 = vld [vmem:[%s30700_s1 + $0x1ba4] ss:$16 sps:$4 sm:$0xff]   ;;  %v21674_v3 = vld [vmem:[%s30700_s1 + $0x1d60] ss:$16 sps:$4 sm:$0xff]  }
 0x6fc   : > { %v27475_v40 = vpop.f32.mrb[94].mxu1 }
 0x6fd   : > { %31640 = vst [vmem:[#allocation86_spill] sm:$0xff] %v27475_v40  ;;  %v9889_v57 = vpop.f32.mrb[95].mxu1 }
 0x6fe   : > { %v21644_v57 = vld [vmem:[%s30700_s1 + $0x1cc0] ss:$16 sps:$4 sm:$0xff]  }
 0x6ff   : > { %12758 = vmatmul.mubr.bf16.gmra.mrb[200].mxu1 %v21638_v4  ;;  %v21652_v4 = vld [vmem:[%s30700_s1 + $0x1ce4] ss:$16 sps:$4 sm:$0xff]  }
 0x700   : > { %12765 = vmatprep.mubr.bf16.mxu1 %v21646_v18 }
 0x702   : > { %v27488_v12 = vpop.f32.mrb[96].mxu1  ;;  %11340 = vmatmul.mubr.bf16.gmra.mrb[240].mxu0 %v21641_v58  ;;  %v21655_v58 = vld [vmem:[%s30700_s1 + $0x1bc4] ss:$16 sps:$4 sm:$0xff]  }
 0x703   : > { %31642 = vst [vmem:[#allocation45_spill] sm:$0xff] %v27488_v12  ;;  %v9894_v36 = vpop.f32.mrb[97].mxu1  ;;  %11347 = vmatprep.mubr.bf16.mxu0 %v21649_v34 }
 0x704   : > { %v27495_v40 = vpop.f32.mrb[98].mxu1  ;;  %v21647_v36 = vld [vmem:[%s30700_s1 + $0x1ba0] ss:$16 sps:$4 sm:$0xff]  }
 0x705   : > { %31644 = vst [vmem:[#allocation15_spill] sm:$0xff] %v27495_v40  ;;  %v9897_v7 = vpop.f32.mrb[99].mxu1 }
 0x706   : > { %v21650_v7 = vld [vmem:[%s30700_s1 + $0x1ce0] ss:$16 sps:$4 sm:$0xff]  }
 0x707   : > { %12766 = vmatmul.mubr.bf16.gmra.mrb[204].mxu1 %v21644_v57  ;;  %v21658_v57 = vld [vmem:[%s30700_s1 + $0x1d04] ss:$16 sps:$4 sm:$0xff]  }
 0x708   : > { %12773 = vmatprep.mubr.bf16.mxu1 %v21652_v4 }
 0x70a   : > { %v27508_v34 = vpop.f32.mrb[100].mxu1  ;;  %11348 = vmatmul.mubr.bf16.gmra.mrb[244].mxu0 %v21647_v36  ;;  %v21661_v36 = vld [vmem:[%s30700_s1 + $0x1be4] ss:$16 sps:$4 sm:$0xff]  }
 0x70b   : > { %31646 = vst [vmem:[#allocation35_spill] sm:$0xff] %v27508_v34  ;;  %v9902_v46 = vpop.f32.mrb[101].mxu1  ;;  %11355 = vmatprep.mubr.bf16.mxu0 %v21655_v58 }
 0x70c   : > { %v27515_v18 = vpop.f32.mrb[102].mxu1  ;;  %v21653_v46 = vld [vmem:[%s30700_s1 + $0x1bc0] ss:$16 sps:$4 sm:$0xff]  }
 0x70d   : > { %31648 = vst [vmem:[#allocation87_spill] sm:$0xff] %v27515_v18  ;;  %v9905_v12 = vpop.f32.mrb[103].mxu1 }
 0x70e   : > { %v21656_v12 = vld [vmem:[%s30700_s1 + $0x1d00] ss:$16 sps:$4 sm:$0xff]  }
 0x70f   : > { %12774 = vmatmul.mubr.bf16.gmra.mrb[208].mxu1 %v21650_v7  ;;  %v21664_v7 = vld [vmem:[%s30700_s1 + $0x1d24] ss:$16 sps:$4 sm:$0xff]  }
 0x710   : > { %12781 = vmatprep.mubr.bf16.mxu1 %v21658_v57 }
 0x712   : > { %v27528_v58 = vpop.f32.mrb[104].mxu1  ;;  %11356 = vmatmul.mubr.bf16.gmra.mrb[248].mxu0 %v21653_v46  ;;  %v21667_v46 = vld [vmem:[%s30700_s1 + $0x180c] ss:$16 sps:$4 sm:$0xff]  }
 0x713   : > { %31650 = vst [vmem:[#allocation46_spill] sm:$0xff] %v27528_v58  ;;  %v9910_v40 = vpop.f32.mrb[105].mxu1  ;;  %11363 = vmatprep.mubr.bf16.mxu0 %v21661_v36  ;;  %v21665_v58 = vld [vmem:[%s30700_s1 + $0x1808] ss:$16 sps:$4 sm:$0xff]  }
 0x714   : > { %v27535_v4 = vpop.f32.mrb[106].mxu1  ;;  %v21659_v40 = vld [vmem:[%s30700_s1 + $0x1be0] ss:$16 sps:$4 sm:$0xff]  }
 0x715   : > { %31652 = vst [vmem:[#allocation16_spill] sm:$0xff] %v27535_v4  ;;  %v9913_v34 = vpop.f32.mrb[107].mxu1 }
 0x716   : > { %v21662_v34 = vld [vmem:[%s30700_s1 + $0x1d20] ss:$16 sps:$4 sm:$0xff]  }
 0x717   : > { %12782 = vmatmul.mubr.bf16.gmra.mrb[212].mxu1 %v21656_v12 }
 0x718   : > { %12789 = vmatprep.mubr.bf16.mxu1 %v21664_v7  ;;  %v21670_v7 = vld [vmem:[%s30700_s1 + $0x1d44] ss:$16 sps:$4 sm:$0xff]  }
 0x71a   : > { %v27548_v36 = vpop.f32.mrb[108].mxu1  ;;  %11364 = vmatmul.mubr.bf16.gmra.mrb[252].mxu0 %v21659_v40 }
 0x71b   : > { %31654 = vst [vmem:[#allocation36_spill] sm:$0xff] %v27548_v36  ;;  %v9918_v18 = vpop.f32.mrb[109].mxu1  ;;  %18415 = vmatprep.mubr.msk.bf16.mxu0 %vm1498_vm0, %v21667_v46  ;;  %v21673_v46 = vld [vmem:[%s30700_s1 + $0x182c] ss:$16 sps:$4 sm:$0xff]  }
 0x71c   : > { %v27556_v12 = vpop.f32.mrb[110].mxu1  ;;  %v22311_v18 = vld [vmem:[%s22624_s17] sm:$0xff]  }
 0x71d   : > { %31656 = vst [vmem:[#allocation88_spill] sm:$0xff] %v27556_v12  ;;  %v9921_v57 = vpop.f32.mrb[111].mxu1  ;;  %v22312_v12 = vld [vmem:[%s22624_s17 + $0x8] sm:$0xff]  }
 0x71e   : > { %v21668_v57 = vld [vmem:[%s30700_s1 + $0x1d40] ss:$16 sps:$4 sm:$0xff]  }
 0x71f   : > { %12790 = vmatmul.mubr.bf16.gmra.mrb[216].mxu1 %v21662_v34  ;;  %v21680_v34 = vld [vmem:[%s30700_s1 + $0x1d80] ss:$16 sps:$4 sm:$0xff]  }
 0x720   : > { %12797 = vmatprep.mubr.bf16.mxu1 %v21670_v7  ;;  %v21676_v7 = vld [vmem:[%s30700_s1 + $0x1d64] ss:$16 sps:$4 sm:$0xff]  }
 0x722   : > { %v27569_v4 = vpop.f32.mrb[112].mxu1  ;;  %11405 = vmatmul.mubr.bf16.vlgmr.msra.gmra.mrb[128].mxu0 %v21665_v58 }
 0x723   : > { %31658 = vst [vmem:[#allocation47_spill] sm:$0xff] %v27569_v4  ;;  %v9926_v36 = vpop.f32.mrb[113].mxu1  ;;  %18416 = vmatprep.mubr.msk.bf16.mxu0 %vm1498_vm0, %v21673_v46  ;;  %14288 = vmatpush1.bf16.msra.mxu0 %v22311_v18  ;;  %v21671_v18 = vld [vmem:[%s30700_s1 + $0x1828] ss:$16 sps:$4 sm:$0xff]   ;;  %v21679_v46 = vld [vmem:[%s30700_s1 + $0x184c] ss:$16 sps:$4 sm:$0xff]  }
 0x724   : > { %v27578_v40 = vpop.f32.mrb[114].mxu1  ;;  %14289 = vmatprep.subr.bf16.mxu0 %v31123_v28  ;;  %v22314_v36 = vld [vmem:[%s22624_s17 + $0x18] sm:$0xff]  }
 0x725   : > { %31660 = vst [vmem:[#allocation17_spill] sm:$0xff] %v27578_v40  ;;  %v9929_v58 = vpop.f32.mrb[115].mxu1  ;;  %v21686_v40 = vld [vmem:[%s30700_s1 + $0x1da0] ss:$16 sps:$4 sm:$0xff]  }
 0x727   : > { %12798 = vmatmul.mubr.bf16.gmra.mrb[220].mxu1 %v21668_v57  ;;  %14290 = vmatpush1.bf16.msra.mxu0 %v22312_v12  ;;  %v22313_v57 = vld [vmem:[%s22624_s17 + $0x10] sm:$0xff]  }
 0x728   : > { %12805 = vmatprep.mubr.bf16.mxu1 %v21676_v7  ;;  %14291 = vmatprep.subr.bf16.mxu0 %v31123_v28  ;;  %v21682_v7 = vld [vmem:[%s30700_s1 + $0x1d84] ss:$16 sps:$4 sm:$0xff]  }
 0x72a   : > { %v27594_v4 = vpop.f32.mrb[116].mxu1  ;;  %11413 = vmatmul.mubr.bf16.gmra.mrb[132].mxu0 %v21671_v18 }
 0x72b   : > { %31662 = vst [vmem:[#allocation49_spill] sm:$0xff] %v27594_v4  ;;  %v9934_v58 = vpop.f32.mrb[117].mxu1  ;;  %18417 = vmatprep.mubr.msk.bf16.mxu0 %vm1498_vm0, %v21679_v46  ;;  %14292 = vmatpush1.bf16.msra.mxu0 %v22313_v57  ;;  %v21677_v46 = vld [vmem:[%s30700_s1 + $0x1848] ss:$16 sps:$4 sm:$0xff]   ;;  %v21685_v57 = vld [vmem:[%s30700_s1 + $0x186c] ss:$16 sps:$4 sm:$0xff]  }
 0x72c   : > { %v27603_v12 = vpop.f32.mrb[118].mxu1  ;;  %14293 = vmatprep.subr.bf16.mxu0 %v31123_v28  ;;  %v22316_v58 = vld [vmem:[%s22624_s17 + $0x28] sm:$0xff]  }
 0x72d   : > { %31664 = vst [vmem:[#allocation89_spill] sm:$0xff] %v27603_v12  ;;  %v9937_v18 = vpop.f32.mrb[119].mxu1  ;;  %v21692_v12 = vld [vmem:[%s30700_s1 + $0x1dc0] ss:$16 sps:$4 sm:$0xff]  }
 0x72f   : > { %12806 = vmatmul.mubr.bf16.gmra.mrb[224].mxu1 %v21674_v3  ;;  %14294 = vmatpush1.bf16.msra.mxu0 %v22314_v36  ;;  %v22315_v3 = vld [vmem:[%s22624_s17 + $0x20] sm:$0xff]  }
 0x730   : > { %12813 = vmatprep.mubr.bf16.mxu1 %v21682_v7  ;;  %14295 = vmatprep.subr.bf16.mxu0 %v31123_v28  ;;  %v21688_v7 = vld [vmem:[%s30700_s1 + $0x1da4] ss:$16 sps:$4 sm:$0xff]  }
 0x732   : > { %v27619_v4 = vpop.f32.mrb[120].mxu1  ;;  %11421 = vmatmul.mubr.bf16.gmra.mrb[136].mxu0 %v21677_v46 }
 0x733   : > { %31666 = vst [vmem:[#allocation37_spill] sm:$0xff] %v27619_v4  ;;  %v9942_v18 = vpop.f32.mrb[121].mxu1  ;;  %18418 = vmatprep.mubr.msk.bf16.mxu0 %vm1498_vm0, %v21685_v57  ;;  %14296 = vmatpush1.bf16.msra.mxu0 %v22315_v3  ;;  %v21683_v57 = vld [vmem:[%s30700_s1 + $0x1868] ss:$16 sps:$4 sm:$0xff]   ;;  %v21691_v3 = vld [vmem:[%s30700_s1 + $0x188c] ss:$16 sps:$4 sm:$0xff]  }
 0x734   : > { %v27628_v36 = vpop.f32.mrb[122].mxu1  ;;  %14297 = vmatprep.subr.bf16.mxu0 %v31123_v28  ;;  %v22318_v18 = vld [vmem:[%s22624_s17 + $0x38] sm:$0xff]  }
 0x735   : > { %31668 = vst [vmem:[#allocation18_spill] sm:$0xff] %v27628_v36  ;;  %v9945_v46 = vpop.f32.mrb[123].mxu1  ;;  %v21698_v36 = vld [vmem:[%s30700_s1 + $0x1de0] ss:$16 sps:$4 sm:$0xff]  }
 0x737   : > { %12814 = vmatmul.mubr.bf16.gmra.mrb[228].mxu1 %v21680_v34  ;;  %14298 = vmatpush1.bf16.msra.mxu0 %v22316_v58  ;;  %v22317_v34 = vld [vmem:[%s22624_s17 + $0x30] sm:$0xff]  }
 0x738   : > { %12821 = vmatprep.mubr.bf16.mxu1 %v21688_v7  ;;  %14299 = vmatprep.subr.bf16.mxu0 %v31123_v28  ;;  %v21694_v7 = vld [vmem:[%s30700_s1 + $0x1dc4] ss:$16 sps:$4 sm:$0xff]  }
 0x73a   : > { %v27644_v4 = vpop.f32.mrb[124].mxu1  ;;  %11429 = vmatmul.mubr.bf16.gmra.mrb[140].mxu0 %v21683_v57 }
 0x73b   : > { %31670 = vst [vmem:[#allocation50_spill] sm:$0xff] %v27644_v4  ;;  %v9950_v46 = vpop.f32.mrb[125].mxu1  ;;  %18419 = vmatprep.mubr.msk.bf16.mxu0 %vm1498_vm0, %v21691_v3  ;;  %14300 = vmatpush1.bf16.msra.mxu0 %v22317_v34  ;;  %v21689_v3 = vld [vmem:[%s30700_s1 + $0x1888] ss:$16 sps:$4 sm:$0xff]   ;;  %v21697_v34 = vld [vmem:[%s30700_s1 + $0x18ac] ss:$16 sps:$4 sm:$0xff]  }
 0x73c   : > { %v27653_v58 = vpop.f32.mrb[126].mxu1  ;;  %14301 = vmatprep.subr.bf16.mxu0 %v31123_v28  ;;  %v22320_v46 = vld [vmem:[%s22624_s17 + $0x48] sm:$0xff]  }
 0x73d   : > { %31672 = vst [vmem:[#allocation90_spill] sm:$0xff] %v27653_v58  ;;  %v9953_v57 = vpop.f32.mrb[127].mxu1  ;;  %v21704_v58 = vld [vmem:[%s30700_s1 + $0x1e00] ss:$16 sps:$4 sm:$0xff]  }
 0x73f   : > { %12822 = vmatmul.mubr.bf16.gmra.mrb[232].mxu1 %v21686_v40  ;;  %14302 = vmatpush1.bf16.msra.mxu0 %v22318_v18  ;;  %v22319_v40 = vld [vmem:[%s22624_s17 + $0x40] sm:$0xff]  }
 0x740   : > { %12829 = vmatprep.mubr.bf16.mxu1 %v21694_v7  ;;  %14303 = vmatprep.subr.bf16.mxu0 %v31123_v28  ;;  %v21700_v7 = vld [vmem:[%s30700_s1 + $0x1de4] ss:$16 sps:$4 sm:$0xff]  }
 0x742   : > { %v27669_v4 = vpop.f32.mrb[128].mxu1  ;;  %11437 = vmatmul.mubr.bf16.gmra.mrb[144].mxu0 %v21689_v3 }
 0x743   : > { %31674 = vst [vmem:[#allocation53_spill] sm:$0xff] %v27669_v4  ;;  %v9958_v57 = vpop.f32.mrb[129].mxu1  ;;  %18420 = vmatprep.mubr.msk.bf16.mxu0 %vm1498_vm0, %v21697_v34  ;;  %14304 = vmatpush1.bf16.msra.mxu0 %v22319_v40  ;;  %v21695_v34 = vld [vmem:[%s30700_s1 + $0x18a8] ss:$16 sps:$4 sm:$0xff]   ;;  %v21703_v40 = vld [vmem:[%s30700_s1 + $0x18cc] ss:$16 sps:$4 sm:$0xff]  }
 0x744   : > { %v27678_v18 = vpop.f32.mrb[130].mxu1  ;;  %14305 = vmatprep.subr.bf16.mxu0 %v31123_v28  ;;  %v22322_v57 = vld [vmem:[%s22624_s17 + $0x58] sm:$0xff]  }
 0x745   : > { %31676 = vst [vmem:[#allocation19_spill] sm:$0xff] %v27678_v18  ;;  %v9961_v3 = vpop.f32.mrb[131].mxu1  ;;  %v21710_v18 = vld [vmem:[%s30700_s1 + $0x1e20] ss:$16 sps:$4 sm:$0xff]  }
 0x747   : > { %12830 = vmatmul.mubr.bf16.gmra.mrb[236].mxu1 %v21692_v12  ;;  %14306 = vmatpush1.bf16.msra.mxu0 %v22320_v46  ;;  %v22321_v12 = vld [vmem:[%s22624_s17 + $0x50] sm:$0xff]  }
 0x748   : > { %12837 = vmatprep.mubr.bf16.mxu1 %v21700_v7  ;;  %14307 = vmatprep.subr.bf16.mxu0 %v31123_v28  ;;  %v21706_v7 = vld [vmem:[%s30700_s1 + $0x1e04] ss:$16 sps:$4 sm:$0xff]  }
 0x74a   : > { %v27694_v4 = vpop.f32.mrb[132].mxu1  ;;  %11445 = vmatmul.mubr.bf16.gmra.mrb[148].mxu0 %v21695_v34 }
 0x74b   : > { %31678 = vst [vmem:[#allocation54_spill] sm:$0xff] %v27694_v4  ;;  %v9966_v3 = vpop.f32.mrb[133].mxu1  ;;  %18421 = vmatprep.mubr.msk.bf16.mxu0 %vm1498_vm0, %v21703_v40  ;;  %14308 = vmatpush1.bf16.msra.mxu0 %v22321_v12  ;;  %v21701_v40 = vld [vmem:[%s30700_s1 + $0x18c8] ss:$16 sps:$4 sm:$0xff]   ;;  %v21709_v12 = vld [vmem:[%s30700_s1 + $0x18ec] ss:$16 sps:$4 sm:$0xff]  }
 0x74c   : > { %v27703_v46 = vpop.f32.mrb[134].mxu1  ;;  %14309 = vmatprep.subr.bf16.mxu0 %v31123_v28  ;;  %v22324_v3 = vld [vmem:[%s22624_s17 + $0x68] sm:$0xff]  }
 0x74d   : > { %31680 = vst [vmem:[#allocation91_spill] sm:$0xff] %v27703_v46  ;;  %v9969_v34 = vpop.f32.mrb[135].mxu1  ;;  %v31683_v46 = vld [vmem:[#allocation40_spill] sm:$0xff] }
 0x74f   : > { %12838 = vmatmul.mubr.bf16.gmra.mrb[240].mxu1 %v21698_v36  ;;  %14310 = vmatpush1.bf16.msra.mxu0 %v22322_v57  ;;  %v22323_v36 = vld [vmem:[%s22624_s17 + $0x60] sm:$0xff]  }
 0x750   : > { %12845 = vmatprep.mubr.bf16.mxu1 %v21706_v7  ;;  %14311 = vmatprep.subr.bf16.mxu0 %v31123_v28  ;;  %v21712_v7 = vld [vmem:[%s30700_s1 + $0x1e24] ss:$16 sps:$4 sm:$0xff]  }
 0x752   : > { %v27719_v4 = vpop.f32.mrb[136].mxu1  ;;  %11453 = vmatmul.mubr.bf16.gmra.mrb[152].mxu0 %v21701_v40 }
 0x753   : > { %31682 = vst [vmem:[#allocation57_spill] sm:$0xff] %v27719_v4  ;;  %v9974_v34 = vpop.f32.mrb[137].mxu1  ;;  %18422 = vmatprep.mubr.msk.bf16.mxu0 %vm1498_vm0, %v21709_v12  ;;  %14312 = vmatpush1.bf16.msra.mxu0 %v22323_v36  ;;  %v21707_v12 = vld [vmem:[%s30700_s1 + $0x18e8] ss:$16 sps:$4 sm:$0xff]   ;;  %v21715_v36 = vld [vmem:[%s30700_s1 + $0x190c] ss:$16 sps:$4 sm:$0xff]  }
 0x754   : > { %v27728_v57 = vpop.f32.mrb[138].mxu1  ;;  %14313 = vmatprep.subr.bf16.mxu0 %v31123_v28  ;;  %v31685_v34 = vld [vmem:[#allocation10_spill] sm:$0xff] }
 0x755   : > { %31684 = vst [vmem:[#allocation20_spill] sm:$0xff] %v27728_v57  ;;  %v9977_v40 = vpop.f32.mrb[139].mxu1  ;;  %v22326_v57 = vld [vmem:[%s22624_s17 + $0x78] sm:$0xff]  }
 0x757   : > { %12846 = vmatmul.mubr.bf16.gmra.mrb[244].mxu1 %v21704_v58  ;;  %14314 = vmatpush1.bf16.msra.mxu0 %v22324_v3  ;;  %v22325_v58 = vld [vmem:[%s22624_s17 + $0x70] sm:$0xff]  }
 0x758   : > { %12853 = vmatprep.mubr.bf16.mxu1 %v21712_v7  ;;  %14315 = vmatprep.subr.bf16.mxu0 %v31123_v28  ;;  %v21718_v7 = vld [vmem:[%s30700_s1 + $0x1e44] ss:$16 sps:$4 sm:$0xff]  }
 0x75a   : > { %v27744_v4 = vpop.f32.mrb[140].mxu1  ;;  %11461 = vmatmul.mubr.bf16.gmra.mrb[156].mxu0 %v21707_v12 }
 0x75b   : > { %31686 = vst [vmem:[#allocation58_spill] sm:$0xff] %v27744_v4  ;;  %v9982_v40 = vpop.f32.mrb[141].mxu1  ;;  %18423 = vmatprep.mubr.msk.bf16.mxu0 %vm1498_vm0, %v21715_v36  ;;  %14316 = vmatpush1.bf16.msra.mxu0 %v22325_v58  ;;  %v21713_v36 = vld [vmem:[%s30700_s1 + $0x1908] ss:$16 sps:$4 sm:$0xff]   ;;  %v21721_v58 = vld [vmem:[%s30700_s1 + $0x192c] ss:$16 sps:$4 sm:$0xff]  }
 0x75c   : > { %v27753_v3 = vpop.f32.mrb[142].mxu1  ;;  %14317 = vmatprep.subr.bf16.mxu0 %v31123_v28  ;;  %v21716_v40 = vld [vmem:[%s30700_s1 + $0x1e40] ss:$16 sps:$4 sm:$0xff]  }
 0x75d   : > { %31687 = vst [vmem:[#allocation92_spill] sm:$0xff] %v27753_v3  ;;  %v9985_v12 = vpop.f32.mrb[143].mxu1 }
 0x75f   : > { %12854 = vmatmul.mubr.bf16.gmra.mrb[248].mxu1 %v21710_v18  ;;  %14318 = vmatpush1.bf16.msra.mxu0 %v22326_v57  ;;  %v21724_v57 = vld [vmem:[%s30700_s1 + $0x1e64] ss:$16 sps:$4 sm:$0xff]  }
 0x760   : > { %12861 = vmatprep.mubr.bf16.mxu1 %v21718_v7  ;;  %14576 = vmatprep.subr.bf16.mxu0 %v31123_v28 }
 0x762   : > { %v27769_v4 = vpop.f32.mrb[144].mxu1  ;;  %11469 = vmatmul.mubr.bf16.gmra.mrb[160].mxu0 %v21713_v36 }
 0x763   : > { %31688 = vst [vmem:[#allocation61_spill] sm:$0xff] %v27769_v4  ;;  %v9990_v12 = vpop.f32.mrb[145].mxu1  ;;  %18424 = vmatprep.mubr.msk.bf16.mxu0 %vm1498_vm0, %v21721_v58  ;;  %v21727_v58 = vld [vmem:[%s30700_s1 + $0x194c] ss:$16 sps:$4 sm:$0xff]  }
 0x764   : > { %v27777_v3 = vpop.f32.mrb[146].mxu1  ;;  %v21719_v12 = vld [vmem:[%s30700_s1 + $0x1928] ss:$16 sps:$4 sm:$0xff]  }
 0x765   : > { %31689 = vst [vmem:[#allocation21_spill] sm:$0xff] %v27777_v3  ;;  %v9993_v7 = vpop.f32.mrb[147].mxu1 }
 0x766   : > { %v21722_v7 = vld [vmem:[%s30700_s1 + $0x1e60] ss:$16 sps:$4 sm:$0xff]  }
 0x767   : > { %12862 = vmatmul.mubr.bf16.gmra.mrb[252].mxu1 %v21716_v40  ;;  %v21730_v40 = vld [vmem:[%s30700_s1 + $0x1e84] ss:$16 sps:$4 sm:$0xff]  }
 0x768   : > { %12869 = vmatprep.mubr.bf16.mxu1 %v21724_v57 }
 0x76a   : > { %v27790_v18 = vpop.f32.mrb[148].mxu1  ;;  %11477 = vmatmul.mubr.bf16.gmra.mrb[164].mxu0 %v21719_v12 }
 0x76b   : > { %31690 = vst [vmem:[#allocation62_spill] sm:$0xff] %v27790_v18  ;;  %v9998_v4 = vpop.f32.mrb[149].mxu1  ;;  %18425 = vmatprep.mubr.msk.bf16.mxu0 %vm1498_vm0, %v21727_v58  ;;  %v21733_v58 = vld [vmem:[%s30700_s1 + $0x196c] ss:$16 sps:$4 sm:$0xff]  }
 0x76c   : > { %v27798_v3 = vpop.f32.mrb[150].mxu1  ;;  %v21725_v4 = vld [vmem:[%s30700_s1 + $0x1948] ss:$16 sps:$4 sm:$0xff]  }
 0x76d   : > { %31691 = vst [vmem:[#allocation93_spill] sm:$0xff] %v27798_v3  ;;  %v10001_v57 = vpop.f32.mrb[151].mxu1 }
 0x76e   : > { %v21728_v57 = vld [vmem:[%s30700_s1 + $0x1e80] ss:$16 sps:$4 sm:$0xff]  }
 0x76f   : > { %12870 = vmatmul.mubr.bf16.gmra.mrb[0].mxu1 %v21722_v7  ;;  %v21736_v7 = vld [vmem:[%s30700_s1 + $0x1ea4] ss:$16 sps:$4 sm:$0xff]  }
 0x770   : > { %12877 = vmatprep.mubr.bf16.mxu1 %v21730_v40 }
 0x772   : > { %v27811_v36 = vpop.f32.mrb[152].mxu1  ;;  %11485 = vmatmul.mubr.bf16.gmra.mrb[168].mxu0 %v21725_v4 }
 0x773   : > { %31692 = vst [vmem:[#allocation65_spill] sm:$0xff] %v27811_v36  ;;  %v10006_v18 = vpop.f32.mrb[153].mxu1  ;;  %18426 = vmatprep.mubr.msk.bf16.mxu0 %vm1498_vm0, %v21733_v58  ;;  %v21739_v58 = vld [vmem:[%s30700_s1 + $0x198c] ss:$16 sps:$4 sm:$0xff]  }
 0x774   : > { %v27819_v3 = vpop.f32.mrb[154].mxu1  ;;  %v21731_v18 = vld [vmem:[%s30700_s1 + $0x1968] ss:$16 sps:$4 sm:$0xff]  }
 0x775   : > { %31693 = vst [vmem:[#allocation22_spill] sm:$0xff] %v27819_v3  ;;  %v10009_v40 = vpop.f32.mrb[155].mxu1 }
 0x776   : > { %v21734_v40 = vld [vmem:[%s30700_s1 + $0x1ea0] ss:$16 sps:$4 sm:$0xff]  }
 0x777   : > { %12878 = vmatmul.mubr.bf16.gmra.mrb[4].mxu1 %v21728_v57  ;;  %v21742_v57 = vld [vmem:[%s30700_s1 + $0x1ec4] ss:$16 sps:$4 sm:$0xff]  }
 0x778   : > { %12885 = vmatprep.mubr.bf16.mxu1 %v21736_v7 }
 0x77a   : > { %v27832_v12 = vpop.f32.mrb[156].mxu1  ;;  %11493 = vmatmul.mubr.bf16.gmra.mrb[172].mxu0 %v21731_v18 }
 0x77b   : > { %31694 = vst [vmem:[#allocation66_spill] sm:$0xff] %v27832_v12  ;;  %v10014_v36 = vpop.f32.mrb[157].mxu1  ;;  %18427 = vmatprep.mubr.msk.bf16.mxu0 %vm1498_vm0, %v21739_v58  ;;  %v21745_v58 = vld [vmem:[%s30700_s1 + $0x19ac] ss:$16 sps:$4 sm:$0xff]  }
 0x77c   : > { %v27840_v3 = vpop.f32.mrb[158].mxu1  ;;  %v21737_v36 = vld [vmem:[%s30700_s1 + $0x1988] ss:$16 sps:$4 sm:$0xff]  }
 0x77d   : > { %31695 = vst [vmem:[#allocation94_spill] sm:$0xff] %v27840_v3  ;;  %v10017_v7 = vpop.f32.mrb[159].mxu1 }
 0x77e   : > { %v21740_v7 = vld [vmem:[%s30700_s1 + $0x1ec0] ss:$16 sps:$4 sm:$0xff]  }
 0x77f   : > { %12886 = vmatmul.mubr.bf16.gmra.mrb[8].mxu1 %v21734_v40  ;;  %v21748_v40 = vld [vmem:[%s30700_s1 + $0x1ee4] ss:$16 sps:$4 sm:$0xff]  }
 0x780   : > { %12893 = vmatprep.mubr.bf16.mxu1 %v21742_v57 }
 0x782   : > { %v27853_v4 = vpop.f32.mrb[160].mxu1  ;;  %11501 = vmatmul.mubr.bf16.gmra.mrb[176].mxu0 %v21737_v36 }
 0x783   : > { %31696 = vst [vmem:[#allocation69_spill] sm:$0xff] %v27853_v4  ;;  %v10022_v12 = vpop.f32.mrb[161].mxu1  ;;  %18428 = vmatprep.mubr.msk.bf16.mxu0 %vm1498_vm0, %v21745_v58  ;;  %v21751_v58 = vld [vmem:[%s30700_s1 + $0x19cc] ss:$16 sps:$4 sm:$0xff]  }
 0x784   : > { %v27861_v3 = vpop.f32.mrb[162].mxu1  ;;  %v21743_v12 = vld [vmem:[%s30700_s1 + $0x19a8] ss:$16 sps:$4 sm:$0xff]  }
 0x785   : > { %31697 = vst [vmem:[#allocation23_spill] sm:$0xff] %v27861_v3  ;;  %v10025_v57 = vpop.f32.mrb[163].mxu1 }
 0x786   : > { %v21746_v57 = vld [vmem:[%s30700_s1 + $0x1ee0] ss:$16 sps:$4 sm:$0xff]  }
 0x787   : > { %12894 = vmatmul.mubr.bf16.gmra.mrb[12].mxu1 %v21740_v7  ;;  %v21754_v7 = vld [vmem:[%s30700_s1 + $0x1f04] ss:$16 sps:$4 sm:$0xff]  }
 0x788   : > { %12901 = vmatprep.mubr.bf16.mxu1 %v21748_v40 }
 0x78a   : > { %v27874_v18 = vpop.f32.mrb[164].mxu1  ;;  %11509 = vmatmul.mubr.bf16.gmra.mrb[180].mxu0 %v21743_v12 }
 0x78b   : > { %31698 = vst [vmem:[#allocation48_spill] sm:$0xff] %v27874_v18  ;;  %v10030_v4 = vpop.f32.mrb[165].mxu1  ;;  %18429 = vmatprep.mubr.msk.bf16.mxu0 %vm1498_vm0, %v21751_v58  ;;  %v21757_v58 = vld [vmem:[%s30700_s1 + $0x19ec] ss:$16 sps:$4 sm:$0xff]  }
 0x78c   : > { %v27882_v3 = vpop.f32.mrb[166].mxu1  ;;  %v21749_v4 = vld [vmem:[%s30700_s1 + $0x19c8] ss:$16 sps:$4 sm:$0xff]  }
 0x78d   : > { %31699 = vst [vmem:[#allocation95_spill] sm:$0xff] %v27882_v3  ;;  %v10033_v40 = vpop.f32.mrb[167].mxu1 }
 0x78e   : > { %v21752_v40 = vld [vmem:[%s30700_s1 + $0x1f00] ss:$16 sps:$4 sm:$0xff]  }
 0x78f   : > { %12902 = vmatmul.mubr.bf16.gmra.mrb[16].mxu1 %v21746_v57  ;;  %v21760_v57 = vld [vmem:[%s30700_s1 + $0x1f24] ss:$16 sps:$4 sm:$0xff]  }
 0x790   : > { %12909 = vmatprep.mubr.bf16.mxu1 %v21754_v7 }
 0x792   : > { %v27895_v36 = vpop.f32.mrb[168].mxu1  ;;  %11517 = vmatmul.mubr.bf16.gmra.mrb[184].mxu0 %v21749_v4 }
 0x793   : > { %31700 = vst [vmem:[#allocation73_spill] sm:$0xff] %v27895_v36  ;;  %v10038_v18 = vpop.f32.mrb[169].mxu1  ;;  %18430 = vmatprep.mubr.msk.bf16.mxu0 %vm1498_vm0, %v21757_v58  ;;  %v21763_v58 = vld [vmem:[%s30700_s1 + $0x1a0c] ss:$16 sps:$4 sm:$0xff]  }
 0x794   : > { %v27903_v3 = vpop.f32.mrb[170].mxu1  ;;  %v21755_v18 = vld [vmem:[%s30700_s1 + $0x19e8] ss:$16 sps:$4 sm:$0xff]  }
 0x795   : > { %31701 = vst [vmem:[#allocation96_spill] sm:$0xff] %v27903_v3  ;;  %v10041_v7 = vpop.f32.mrb[171].mxu1 }
 0x796   : > { %v21758_v7 = vld [vmem:[%s30700_s1 + $0x1f20] ss:$16 sps:$4 sm:$0xff]  }
 0x797   : > { %12910 = vmatmul.mubr.bf16.gmra.mrb[20].mxu1 %v21752_v40  ;;  %v21766_v40 = vld [vmem:[%s30700_s1 + $0x1f44] ss:$16 sps:$4 sm:$0xff]  }
 0x798   : > { %12917 = vmatprep.mubr.bf16.mxu1 %v21760_v57 }
 0x79a   : > { %v27916_v12 = vpop.f32.mrb[172].mxu1  ;;  %11525 = vmatmul.mubr.bf16.gmra.mrb[188].mxu0 %v21755_v18  ;;  %v21770_v18 = vld [vmem:[%s30700_s1 + $0x1f60] ss:$16 sps:$4 sm:$0xff]  }
 0x79b   : > { %31702 = vst [vmem:[#allocation55_spill] sm:$0xff] %v27916_v12  ;;  %v10046_v36 = vpop.f32.mrb[173].mxu1  ;;  %18431 = vmatprep.mubr.msk.bf16.mxu0 %vm1498_vm0, %v21763_v58  ;;  %v21769_v58 = vld [vmem:[%s30700_s1 + $0x1a2c] ss:$16 sps:$4 sm:$0xff]  }
 0x79c   : > { %v27924_v3 = vpop.f32.mrb[174].mxu1  ;;  %v21761_v36 = vld [vmem:[%s30700_s1 + $0x1a08] ss:$16 sps:$4 sm:$0xff]  }
 0x79d   : > { %31703 = vst [vmem:[#allocation24_spill] sm:$0xff] %v27924_v3  ;;  %v10049_v57 = vpop.f32.mrb[175].mxu1 }
 0x79e   : > { %v21764_v57 = vld [vmem:[%s30700_s1 + $0x1f40] ss:$16 sps:$4 sm:$0xff]  }
 0x79f   : > { %12918 = vmatmul.mubr.bf16.gmra.mrb[24].mxu1 %v21758_v7  ;;  %v21772_v7 = vld [vmem:[%s30700_s1 + $0x1f64] ss:$16 sps:$4 sm:$0xff]  }
 0x7a0   : > { %12925 = vmatprep.mubr.bf16.mxu1 %v21766_v40 }
 0x7a2   : > { %v27937_v4 = vpop.f32.mrb[176].mxu1  ;;  %11533 = vmatmul.mubr.bf16.gmra.mrb[192].mxu0 %v21761_v36 }
 0x7a3   : > { %31704 = vst [vmem:[#allocation76_spill] sm:$0xff] %v27937_v4  ;;  %v10054_v12 = vpop.f32.mrb[177].mxu1  ;;  %18432 = vmatprep.mubr.msk.bf16.mxu0 %vm1498_vm0, %v21769_v58  ;;  %v21775_v58 = vld [vmem:[%s30700_s1 + $0x1a4c] ss:$16 sps:$4 sm:$0xff]  }
 0x7a4   : > { %v27945_v3 = vpop.f32.mrb[178].mxu1  ;;  %v21767_v12 = vld [vmem:[%s30700_s1 + $0x1a28] ss:$16 sps:$4 sm:$0xff]  }
 0x7a5   : > { %31705 = vst [vmem:[#allocation97_spill] sm:$0xff] %v27945_v3  ;;  %v10057_v40 = vpop.f32.mrb[179].mxu1 }
 0x7a6   : > { %v21778_v40 = vld [vmem:[%s30700_s1 + $0x1f84] ss:$16 sps:$4 sm:$0xff]  }
 0x7a7   : > { %12926 = vmatmul.mubr.bf16.gmra.mrb[28].mxu1 %v21764_v57  ;;  %v21773_v57 = vld [vmem:[%s30700_s1 + $0x1a48] ss:$16 sps:$4 sm:$0xff]  }
 0x7a8   : > { %12933 = vmatprep.mubr.bf16.mxu1 %v21772_v7  ;;  %v21781_v7 = vld [vmem:[%s30700_s1 + $0x1a6c] ss:$16 sps:$4 sm:$0xff]  }
 0x7aa   : > { %11541 = vmatmul.mubr.bf16.gmra.mrb[196].mxu0 %v21767_v12  ;;  %v21776_v12 = vld [vmem:[%s30700_s1 + $0x1f80] ss:$16 sps:$4 sm:$0xff]  }
 0x7ab   : > { %18433 = vmatprep.mubr.msk.bf16.mxu0 %vm1498_vm0, %v21775_v58  ;;  %v21784_v58 = vld [vmem:[%s30700_s1 + $0x1fa4] ss:$16 sps:$4 sm:$0xff]  }
 0x7af   : > { %12934 = vmatmul.mubr.bf16.gmra.mrb[32].mxu1 %v21770_v18  ;;  %v21779_v18 = vld [vmem:[%s30700_s1 + $0x1a68] ss:$16 sps:$4 sm:$0xff]  }
 0x7b0   : > { %12941 = vmatprep.mubr.bf16.mxu1 %v21778_v40  ;;  %v21787_v40 = vld [vmem:[%s30700_s1 + $0x1a8c] ss:$16 sps:$4 sm:$0xff]  }
 0x7b2   : > { %11549 = vmatmul.mubr.bf16.gmra.mrb[200].mxu0 %v21773_v57  ;;  %v21782_v57 = vld [vmem:[%s30700_s1 + $0x1fa0] ss:$16 sps:$4 sm:$0xff]  }
 0x7b3   : > { %18434 = vmatprep.mubr.msk.bf16.mxu0 %vm1498_vm0, %v21781_v7  ;;  %v21790_v7 = vld [vmem:[%s30700_s1 + $0x1fc4] ss:$16 sps:$4 sm:$0xff]  }
 0x7b7   : > { %12942 = vmatmul.mubr.bf16.gmra.mrb[36].mxu1 %v21776_v12  ;;  %v21785_v12 = vld [vmem:[%s30700_s1 + $0x1a88] ss:$16 sps:$4 sm:$0xff]  }
 0x7b8   : > { %12949 = vmatprep.mubr.bf16.mxu1 %v21784_v58  ;;  %v21793_v58 = vld [vmem:[%s30700_s1 + $0x1aac] ss:$16 sps:$4 sm:$0xff]  }
 0x7ba   : > { %11557 = vmatmul.mubr.bf16.gmra.mrb[204].mxu0 %v21779_v18  ;;  %v21788_v18 = vld [vmem:[%s30700_s1 + $0x1fc0] ss:$16 sps:$4 sm:$0xff]  }
 0x7bb   : > { %18435 = vmatprep.mubr.msk.bf16.mxu0 %vm1498_vm0, %v21787_v40  ;;  %v21796_v40 = vld [vmem:[%s30700_s1 + $0x1fe4] ss:$16 sps:$4 sm:$0xff]  }
 0x7bf   : > { %12950 = vmatmul.mubr.bf16.gmra.mrb[40].mxu1 %v21782_v57  ;;  %v21791_v57 = vld [vmem:[%s30700_s1 + $0x1aa8] ss:$16 sps:$4 sm:$0xff]  }
 0x7c0   : > { %12957 = vmatprep.mubr.bf16.mxu1 %v21790_v7  ;;  %v21799_v7 = vld [vmem:[%s30700_s1 + $0x1acc] ss:$16 sps:$4 sm:$0xff]  }
 0x7c2   : > { %11565 = vmatmul.mubr.bf16.gmra.mrb[208].mxu0 %v21785_v12  ;;  %v21794_v12 = vld [vmem:[%s30700_s1 + $0x1fe0] ss:$16 sps:$4 sm:$0xff]  }
 0x7c3   : > { %18436 = vmatprep.mubr.msk.bf16.mxu0 %vm1498_vm0, %v21793_v58  ;;  %v21802_v58 = vld [vmem:[%s30700_s1 + $0x1c0c] ss:$16 sps:$4 sm:$0xff]  }
 0x7c7   : > { %12958 = vmatmul.mubr.bf16.gmra.mrb[44].mxu1 %v21788_v18  ;;  %v21797_v18 = vld [vmem:[%s30700_s1 + $0x1ac8] ss:$16 sps:$4 sm:$0xff]  }
 0x7c8   : > { %12965 = vmatprep.mubr.bf16.mxu1 %v21796_v40  ;;  %v21805_v40 = vld [vmem:[%s30700_s1 + $0x1aec] ss:$16 sps:$4 sm:$0xff]  }
 0x7ca   : > { %11573 = vmatmul.mubr.bf16.gmra.mrb[212].mxu0 %v21791_v57  ;;  %v21800_v57 = vld [vmem:[%s30700_s1 + $0x1c08] ss:$16 sps:$4 sm:$0xff]  }
 0x7cb   : > { %18437 = vmatprep.mubr.msk.bf16.mxu0 %vm1498_vm0, %v21799_v7  ;;  %v21808_v7 = vld [vmem:[%s30700_s1 + $0x1c2c] ss:$16 sps:$4 sm:$0xff]  }
 0x7cf   : > { %12966 = vmatmul.mubr.bf16.gmra.mrb[48].mxu1 %v21794_v12  ;;  %v21803_v12 = vld [vmem:[%s30700_s1 + $0x1ae8] ss:$16 sps:$4 sm:$0xff]  }
 0x7d0   : > { %18575 = vmatprep.mubr.msk.bf16.mxu1 %vm1498_vm0, %v21802_v58  ;;  %v21811_v58 = vld [vmem:[%s30700_s1 + $0x1b0c] ss:$16 sps:$4 sm:$0xff]  }
 0x7d2   : > { %11581 = vmatmul.mubr.bf16.gmra.mrb[216].mxu0 %v21797_v18  ;;  %v21806_v18 = vld [vmem:[%s30700_s1 + $0x1c28] ss:$16 sps:$4 sm:$0xff]  }
 0x7d3   : > { %18438 = vmatprep.mubr.msk.bf16.mxu0 %vm1498_vm0, %v21805_v40  ;;  %v21814_v40 = vld [vmem:[%s30700_s1 + $0x1c4c] ss:$16 sps:$4 sm:$0xff]  }
 0x7d7   : > { %13007 = vmatmul.mubr.bf16.vlgmr.msra.gmra.mrb[180].mxu1 %v21800_v57  ;;  %v21809_v57 = vld [vmem:[%s30700_s1 + $0x1b08] ss:$16 sps:$4 sm:$0xff]  }
 0x7d8   : > { %18576 = vmatprep.mubr.msk.bf16.mxu1 %vm1498_vm0, %v21808_v7  ;;  %v21817_v7 = vld [vmem:[%s30700_s1 + $0x1b2c] ss:$16 sps:$4 sm:$0xff]  }
 0x7da   : > { %11589 = vmatmul.mubr.bf16.gmra.mrb[220].mxu0 %v21803_v12  ;;  %v21812_v12 = vld [vmem:[%s30700_s1 + $0x1c48] ss:$16 sps:$4 sm:$0xff]  }
 0x7db   : > { %18439 = vmatprep.mubr.msk.bf16.mxu0 %vm1498_vm0, %v21811_v58  ;;  %v21820_v58 = vld [vmem:[%s30700_s1 + $0x1c6c] ss:$16 sps:$4 sm:$0xff]  }
 0x7df   : > { %13015 = vmatmul.mubr.bf16.gmra.mrb[184].mxu1 %v21806_v18  ;;  %v21815_v18 = vld [vmem:[%s30700_s1 + $0x1b28] ss:$16 sps:$4 sm:$0xff]  }
 0x7e0   : > { %18577 = vmatprep.mubr.msk.bf16.mxu1 %vm1498_vm0, %v21814_v40  ;;  %v21823_v40 = vld [vmem:[%s30700_s1 + $0x1b4c] ss:$16 sps:$4 sm:$0xff]  }
 0x7e2   : > { %11597 = vmatmul.mubr.bf16.gmra.mrb[224].mxu0 %v21809_v57  ;;  %v21818_v57 = vld [vmem:[%s30700_s1 + $0x1c68] ss:$16 sps:$4 sm:$0xff]  }
 0x7e3   : > { %18440 = vmatprep.mubr.msk.bf16.mxu0 %vm1498_vm0, %v21817_v7  ;;  %v21826_v7 = vld [vmem:[%s30700_s1 + $0x1c8c] ss:$16 sps:$4 sm:$0xff]  }
 0x7e7   : > { %13023 = vmatmul.mubr.bf16.gmra.mrb[188].mxu1 %v21812_v12  ;;  %v21821_v12 = vld [vmem:[%s30700_s1 + $0x1b48] ss:$16 sps:$4 sm:$0xff]  }
 0x7e8   : > { %18578 = vmatprep.mubr.msk.bf16.mxu1 %vm1498_vm0, %v21820_v58  ;;  %v21829_v58 = vld [vmem:[%s30700_s1 + $0x1b6c] ss:$16 sps:$4 sm:$0xff]  }
 0x7ea   : > { %11605 = vmatmul.mubr.bf16.gmra.mrb[228].mxu0 %v21815_v18  ;;  %v21824_v18 = vld [vmem:[%s30700_s1 + $0x1c88] ss:$16 sps:$4 sm:$0xff]  }
 0x7eb   : > { %18441 = vmatprep.mubr.msk.bf16.mxu0 %vm1498_vm0, %v21823_v40  ;;  %v21832_v40 = vld [vmem:[%s30700_s1 + $0x1cac] ss:$16 sps:$4 sm:$0xff]  }
 0x7ef   : > { %13031 = vmatmul.mubr.bf16.gmra.mrb[192].mxu1 %v21818_v57  ;;  %v31706_v57 = vld [vmem:[#allocation30_spill] sm:$0xff] }
 0x7f0   : > { %18579 = vmatprep.mubr.msk.bf16.mxu1 %vm1498_vm0, %v21826_v7  ;;  %v31707_v3 = vmax.f32 %v26578_v62, %v31706_v57  ;;  %v21827_v7 = vld [vmem:[%s30700_s1 + $0x1b68] ss:$16 sps:$4 sm:$0xff]  }
 0x7f1   : > { %v21830_v62 = vld [vmem:[%s30700_s1 + $0x1ca8] ss:$16 sps:$4 sm:$0xff]  }
 0x7f2   : > { %11613 = vmatmul.mubr.bf16.gmra.mrb[232].mxu0 %v21821_v12  ;;  %v31712_v57 = vld [vmem:[#allocation11_spill] sm:$0xff] }
 0x7f3   : > { %18442 = vmatprep.mubr.msk.bf16.mxu0 %vm1498_vm0, %v21829_v58  ;;  %v21835_v58 = vld [vmem:[%s30700_s1 + $0x1b8c] ss:$16 sps:$4 sm:$0xff]  }
 0x7f5   : > { %v11406_v36 = vpop.f32.mrb[128].mxu0 }
 0x7f6   : > { %v28090_v53 = vmax.f32 %v31707_v3, %v11406_v36  ;;  %v11408_v4 = vpop.f32.mrb[129].mxu0  ;;  %v21838_v3 = vld [vmem:[%s30700_s1 + $0x1ccc] ss:$16 sps:$4 sm:$0xff]   ;;  %v31710_v36 = vld [vmem:[#allocation41_spill] sm:$0xff] }
 0x7f7   : > { %13039 = vmatmul.mubr.bf16.gmra.mrb[196].mxu1 %v21824_v18  ;;  %v11409_v12 = vpop.f32.mrb[130].mxu0  ;;  %v31711_v17 = vmax.f32 %v26606_v39, %v31710_v36  ;;  %v21836_v39 = vld [vmem:[%s30700_s1 + $0x1cc8] ss:$16 sps:$4 sm:$0xff]  }
 0x7f8   : > { %v28101_v42 = vmax.f32 %v31709_v61, %v11409_v12  ;;  %v11411_v43 = vpop.f32.mrb[131].mxu0  ;;  %18580 = vmatprep.mubr.msk.bf16.mxu1 %vm1498_vm0, %v21832_v40  ;;  %v21841_v40 = vld [vmem:[%s30700_s1 + $0x1bac] ss:$16 sps:$4 sm:$0xff]   ;;  %v31714_v36 = vld [vmem:[#allocation31_spill] sm:$0xff] }
 0x7fa   : > { %11621 = vmatmul.mubr.bf16.gmra.mrb[236].mxu0 %v21827_v7  ;;  %v31713_v7 = vmax.f32 %v26616_v23, %v31712_v57  ;;  %v31715_v23 = vmax.f32 %v26634_v56, %v31714_v36  ;;  %v21842_v56 = vld [vmem:[%s30700_s1 + $0x1ce8] ss:$16 sps:$4 sm:$0xff]  }
 0x7fb   : > { %18443 = vmatprep.mubr.msk.bf16.mxu0 %vm1498_vm0, %v21835_v58  ;;  %v31718_v36 = vld [vmem:[#allocation42_spill] sm:$0xff] }
 0x7fd   : > { %v11414_v4 = vpop.f32.mrb[132].mxu0 }
 0x7fe   : > { %v28114_v61 = vmax.f32 %v31711_v17, %v11414_v4  ;;  %v11416_v43 = vpop.f32.mrb[133].mxu0 }
 0x7ff   : > { %13047 = vmatmul.mubr.bf16.gmra.mrb[200].mxu1 %v21830_v62  ;;  %v11417_v18 = vpop.f32.mrb[134].mxu0  ;;  %v21844_v62 = vld [vmem:[%s30700_s1 + $0x1cec] ss:$16 sps:$4 sm:$0xff]  }
 0x800   : > { %v28125_v12 = vmax.f32 %v31713_v7, %v11417_v18  ;;  %v11419_v58 = vpop.f32.mrb[135].mxu0  ;;  %18581 = vmatprep.mubr.msk.bf16.mxu1 %vm1498_vm0, %v21838_v3  ;;  %v21839_v3 = vld [vmem:[%s30700_s1 + $0x1ba8] ss:$16 sps:$4 sm:$0xff]   ;;  %v21847_v18 = vld [vmem:[%s30700_s1 + $0x1bcc] ss:$16 sps:$4 sm:$0xff]  }
 0x802   : > { %11629 = vmatmul.mubr.bf16.gmra.mrb[240].mxu0 %v21833_v48 }
 0x803   : > { %18444 = vmatprep.mubr.msk.bf16.mxu0 %vm1498_vm0, %v21841_v40  ;;  %v31716_v40 = vld [vmem:[#allocation83_spill] sm:$0xff] }
 0x804   : > { %v31717_v57 = vmax.f32 %v26644_v63, %v31716_v40  ;;  %v31719_v63 = vmax.f32 %v26662_v1, %v31718_v36  ;;  %v21848_v1 = vld [vmem:[%s30700_s1 + $0x1d08] ss:$16 sps:$4 sm:$0xff]  }
 0x805   : > { %v11422_v4 = vpop.f32.mrb[136].mxu0  ;;  %v31723_v36 = vld [vmem:[#allocation32_spill] sm:$0xff] }
 0x806   : > { %v28138_v17 = vmax.f32 %v31715_v23, %v11422_v4  ;;  %v11424_v43 = vpop.f32.mrb[137].mxu0 }
 0x807   : > { %13055 = vmatmul.mubr.bf16.gmra.mrb[204].mxu1 %v21836_v39  ;;  %v11425_v48 = vpop.f32.mrb[138].mxu0  ;;  %v21850_v39 = vld [vmem:[%s30700_s1 + $0x1d0c] ss:$16 sps:$4 sm:$0xff]  }
 0x808   : > { %v28149_v7 = vmax.f32 %v31717_v57, %v11425_v48  ;;  %v11427_v58 = vpop.f32.mrb[139].mxu0  ;;  %18582 = vmatprep.mubr.msk.bf16.mxu1 %vm1498_vm0, %v21844_v62  ;;  %v21845_v62 = vld [vmem:[%s30700_s1 + $0x1bc8] ss:$16 sps:$4 sm:$0xff]   ;;  %v21853_v48 = vld [vmem:[%s30700_s1 + $0x1bec] ss:$16 sps:$4 sm:$0xff]  }
 0x80a   : > { %11637 = vmatmul.mubr.bf16.gmra.mrb[244].mxu0 %v21839_v3 }
 0x80b   : > { %18445 = vmatprep.mubr.msk.bf16.mxu0 %vm1498_vm0, %v21847_v18  ;;  %v31720_v18 = vld [vmem:[#allocation12_spill] sm:$0xff] }
 0x80c   : > { %v31721_v40 = vmax.f32 %v26672_v30, %v31720_v18  ;;  %v31724_v30 = vmax.f32 %v26690_v16, %v31723_v36  ;;  %v31726_v18 = vld [vmem:[#allocation84_spill] sm:$0xff]  ;;  %v31729_v36 = vmax.f32 %v26713_v51, %v27311_v20 }
 0x80d   : > { %v11430_v4 = vpop.f32.mrb[140].mxu0  ;;  %v21854_v16 = vld [vmem:[%s30700_s1 + $0x1d28] ss:$16 sps:$4 sm:$0xff]  }
 0x80e   : > { %v28162_v23 = vmax.f32 %v31719_v63, %v11430_v4  ;;  %v11432_v43 = vpop.f32.mrb[141].mxu0  ;;  %v21860_v51 = vld [vmem:[%s30700_s1 + $0x1d48] ss:$16 sps:$4 sm:$0xff]  }
 0x80f   : > { %13063 = vmatmul.mubr.bf16.gmra.mrb[208].mxu1 %v21842_v56  ;;  %v11433_v3 = vpop.f32.mrb[142].mxu0  ;;  %v21856_v56 = vld [vmem:[%s30700_s1 + $0x1d2c] ss:$16 sps:$4 sm:$0xff]  }
 0x810   : > { %v28173_v57 = vmax.f32 %v31721_v40, %v11433_v3  ;;  %v11435_v58 = vpop.f32.mrb[143].mxu0  ;;  %18583 = vmatprep.mubr.msk.bf16.mxu1 %vm1498_vm0, %v21850_v39  ;;  %v21851_v39 = vld [vmem:[%s30700_s1 + $0x1be8] ss:$16 sps:$4 sm:$0xff]   ;;  %v21859_v3 = vld [vmem:[%s30700_s1 + $0x2004] ss:$16 sps:$4 sm:$0xff]  }
 0x811   : > { %v22327_v20 = vld [vmem:[%s22624_s17 + $0x80] sm:$0xff]  }
 0x812   : > { %31722 = vst [vmem:[#allocation60_spill] sm:$0xff] %v28173_v57  ;;  %11645 = vmatmul.mubr.bf16.gmra.mrb[248].mxu0 %v21845_v62 }
 0x813   : > { %18446 = vmatprep.mubr.msk.bf16.mxu0 %vm1498_vm0, %v21853_v48  ;;  %v31725_v48 = vld [vmem:[#allocation26_spill] sm:$0xff] }
 0x814   : > { %v31727_v40 = vmax.f32 %v31725_v48, %v31726_v18  ;;  %v21868_v18 = vld [vmem:[%s30700_s1 + $0x1d6c] ss:$16 sps:$4 sm:$0xff]  }
 0x815   : > { %v11438_v4 = vpop.f32.mrb[144].mxu0 }
 0x816   : > { %v28186_v63 = vmax.f32 %v31724_v30, %v11438_v4  ;;  %v11440_v43 = vpop.f32.mrb[145].mxu0 }
 0x817   : > { %13071 = vmatmul.mubr.bf16.gmra.mrb[212].mxu1 %v21848_v1  ;;  %v11441_v62 = vpop.f32.mrb[146].mxu0  ;;  %v21862_v1 = vld [vmem:[%s30700_s1 + $0x1d4c] ss:$16 sps:$4 sm:$0xff]  }
 0x818   : > { %v28197_v58 = vmax.f32 %v31727_v40, %v11441_v62  ;;  %v11443_v24 = vpop.f32.mrb[147].mxu0  ;;  %18584 = vmatprep.mubr.msk.bf16.mxu1 %vm1498_vm0, %v21856_v56  ;;  %v21857_v56 = vld [vmem:[%s30700_s1 + $0x2000] ss:$16 sps:$4 sm:$0xff]   ;;  %v31731_v62 = vmax.f32 %v26722_v38, %v27318_v22  ;;  %v31733_v22 = vmax.f32 %v26741_v50, %v27343_v55 }
 0x81a   : > { %31728 = vst [vmem:[#allocation98_spill] sm:$0xff] %v28197_v58  ;;  %11653 = vmatmul.mubr.bf16.gmra.mrb[252].mxu0 %v21851_v39  ;;  %v21865_v39 = vld [vmem:[%s30700_s1 + $0x2024] ss:$16 sps:$4 sm:$0xff]  }
 0x81b   : > { %14319 = vmatprep.mubr.bf16.mxu0 %v21859_v3 }
 0x81d   : > { %v11446_v4 = vpop.f32.mrb[148].mxu0 }
 0x81e   : > { %v28209_v30 = vmax.f32 %v31729_v36, %v11446_v4  ;;  %v11448_v24 = vpop.f32.mrb[149].mxu0  ;;  %v21871_v36 = vld [vmem:[%s30700_s1 + $0x2044] ss:$16 sps:$4 sm:$0xff]  }
 0x81f   : > { %13079 = vmatmul.mubr.bf16.gmra.mrb[216].mxu1 %v21854_v16  ;;  %v11449_v43 = vpop.f32.mrb[150].mxu0  ;;  %v22328_v24 = vld [vmem:[%s22624_s17 + $0x88] sm:$0xff]  }
 0x820   : > { %31730 = vst [vmem:[#allocation63_spill] sm:$0xff] %v28209_v30  ;;  %v28220_v3 = vmax.f32 %v31731_v62, %v11449_v43  ;;  %v11451_v48 = vpop.f32.mrb[151].mxu0  ;;  %18585 = vmatprep.mubr.msk.bf16.mxu1 %vm1498_vm0, %v21862_v1  ;;  %v21863_v1 = vld [vmem:[%s30700_s1 + $0x2020] ss:$16 sps:$4 sm:$0xff]   ;;  %v21866_v43 = vld [vmem:[%s30700_s1 + $0x1d68] ss:$16 sps:$4 sm:$0xff]   ;;  %v31737_v62 = vmax.f32 %v26774_v26, %v27377_v31 }
 0x821   : > { %v15743_v30 = vld [vmem:[%s30703_s4 + $0x70] sm:$0xff] }
 0x822   : > { %31732 = vst [vmem:[#allocation25_spill] sm:$0xff] %v28220_v3  ;;  %14320 = vmatmul.mubr.bf16.vlgmr.msra.gmra.mrb[0].mxu0 %v21857_v56  ;;  %v31735_v56 = vmax.f32 %v26755_v8, %v27350_v29  ;;  %v21874_v8 = vld [vmem:[%s30700_s1 + $0x1d8c] ss:$16 sps:$4 sm:$0xff]  }
 0x823   : > { %14327 = vmatprep.mubr.bf16.mxu0 %v21865_v39  ;;  %14577 = vmatpush1.bf16.msra.mxu0 %v22327_v20  ;;  %v22329_v39 = vld [vmem:[%s22624_s17 + $0x90] sm:$0xff]   ;;  %v15734_v3 = vld [vmem:[%s30703_s4 + $0x28] sm:$0xff] }
 0x824   : > { %14578 = vmatprep.subr.bf16.mxu0 %v31123_v28  ;;  %v21869_v20 = vld [vmem:[%s30700_s1 + $0x2040] ss:$16 sps:$4 sm:$0xff]  }
 0x825   : > { %v11454_v38 = vpop.f32.mrb[152].mxu0 }
 0x826   : > { %v28234_v40 = vmax.f32 %v31733_v22, %v11454_v38  ;;  %v11456_v16 = vpop.f32.mrb[153].mxu0  ;;  %v21877_v38 = vld [vmem:[%s30700_s1 + $0x2064] ss:$16 sps:$4 sm:$0xff]  }
 0x827   : > { %13087 = vmatmul.mubr.bf16.gmra.mrb[220].mxu1 %v21860_v51  ;;  %v11457_v4 = vpop.f32.mrb[154].mxu0  ;;  %14579 = vmatpush1.bf16.msra.mxu0 %v22328_v24  ;;  %v22330_v22 = vld [vmem:[%s22624_s17 + $0x98] sm:$0xff]   ;;  %v31739_v16 = vmax.f32 %v26788_v13, %v27384_v33 }
 0x828   : > { %31734 = vst [vmem:[#allocation64_spill] sm:$0xff] %v28234_v40  ;;  %v28246_v50 = vmax.f32 %v31735_v56, %v11457_v4  ;;  %v11459_v55 = vpop.f32.mrb[155].mxu0  ;;  %18586 = vmatprep.mubr.msk.bf16.mxu1 %vm1498_vm0, %v21868_v18  ;;  %14580 = vmatprep.subr.bf16.mxu0 %v31123_v28  ;;  %v22331_v4 = vld [vmem:[%s22624_s17 + $0xa0] sm:$0xff]  }
 0x829   : > { %v21880_v13 = vld [vmem:[%s30700_s1 + $0x1dac] ss:$16 sps:$4 sm:$0xff]   ;;  %v21875_v55 = vld [vmem:[%s30700_s1 + $0x2060] ss:$16 sps:$4 sm:$0xff]  }
 0x82a   : > { %31736 = vst [vmem:[#allocation99_spill] sm:$0xff] %v28246_v50  ;;  %14328 = vmatmul.mubr.bf16.gmra.mrb[4].mxu0 %v21863_v1  ;;  %v21872_v1 = vld [vmem:[%s30700_s1 + $0x1d88] ss:$16 sps:$4 sm:$0xff]  }
 0x82b   : > { %14335 = vmatprep.mubr.bf16.mxu0 %v21871_v36  ;;  %14581 = vmatpush1.bf16.msra.mxu0 %v22329_v39  ;;  %v31741_v36 = vmax.f32 %v26807_v5, %v27411_v14  ;;  %v31743_v5 = vmax.f32 %v26821_v19, %v27418_v11  ;;  %v15121_v19 = vld [vmem:[%s30701_s2] sm:$0xff]  ;;  %v21886_v11 = vld [vmem:[%s30700_s1 + $0x1dcc] ss:$16 sps:$4 sm:$0xff]  }
 0x82c   : > { %14582 = vmatprep.subr.bf16.mxu0 %v31123_v28  ;;  %15187 = vperm.xlu1 %20361, %v15121_v19  }
 0x82d   : > { %v11462_v29 = vpop.f32.mrb[156].mxu0 }
 0x82e   : > { %v28261_v48 = vmax.f32 %v31737_v62, %v11462_v29  ;;  %v11464_v51 = vpop.f32.mrb[157].mxu0  ;;  %v22332_v62 = vld [vmem:[%s22624_s17 + $0xa8] sm:$0xff]  }
 0x82f   : > { %13095 = vmatmul.mubr.bf16.gmra.mrb[224].mxu1 %v21866_v43  ;;  %v11465_v18 = vpop.f32.mrb[158].mxu0  ;;  %14583 = vmatpush1.bf16.msra.mxu0 %v22330_v22  ;;  %v15137_v43 = vld [vmem:[%s30701_s2 + $0x80] sm:$0xff]  ;;  %v15138_v51 = vld [vmem:[%s30701_s2 + $0x88] sm:$0xff]  ;;  %v31745_v22 = vmax.f32 %v26840_v21, %v27445_v44  ;;  %v31746_v44 = vmax.f32 %v31636_v10, %v27452_v41  ;;  %v15140_v41 = vld [vmem:[%s30701_s2 + $0x98] sm:$0xff] }
 0x830   : > { %31738 = vst [vmem:[#allocation100_spill] sm:$0xff] %v28261_v48  ;;  %v28273_v26 = vmax.f32 %v31739_v16, %v11465_v18  ;;  %v11467_v31 = vpop.f32.mrb[159].mxu0  ;;  %18587 = vmatprep.mubr.msk.bf16.mxu1 %vm1498_vm0, %v21874_v8  ;;  %14584 = vmatprep.subr.bf16.mxu0 %v31123_v28  ;;  %v21883_v8 = vld [vmem:[%s30700_s1 + $0x2084] ss:$16 sps:$4 sm:$0xff]   ;;  %v15122_v21 = vld [vmem:[%s30701_s2 + $0x8] sm:$0xff] }
 0x831   : > { %15267 = vperm.xlu0 %20360, %v15137_v43   ;;  %v22333_v18 = vld [vmem:[%s22624_s17 + $0xb0] sm:$0xff]   ;;  %15192 = vperm.xlu1 %20361, %v15122_v21  }
 0x832   : > { %31740 = vst [vmem:[#allocation8_spill] sm:$0xff] %v28273_v26  ;;  %14336 = vmatmul.mubr.bf16.gmra.mrb[8].mxu0 %v21869_v20  ;;  %v21878_v20 = vld [vmem:[%s30700_s1 + $0x1da8] ss:$16 sps:$4 sm:$0xff]   ;;  %v15123_v43 = vld [vmem:[%s30701_s2 + $0x10] sm:$0xff]  ;;  %v21892_v10 = vld [vmem:[%s30700_s1 + $0x1dec] ss:$16 sps:$4 sm:$0xff]  }
 0x833   : > { %14343 = vmatprep.mubr.bf16.mxu0 %v21877_v38  ;;  %14585 = vmatpush1.bf16.msra.mxu0 %v22331_v4  ;;  %v15139_v4 = vld [vmem:[%s30701_s2 + $0x90] sm:$0xff] }
 0x834   : > { %14586 = vmatprep.subr.bf16.mxu0 %v31123_v28 }
 0x835   : > { %v11470_v33 = vpop.f32.mrb[160].mxu0  ;;  %15272 = vperm.xlu0 %20360, %v15138_v51   ;;  %15282 = vperm.xlu1 %20361, %v15140_v41   ;;  %v21887_v51 = vld [vmem:[%s30700_s1 + $0x20a0] ss:$16 sps:$4 sm:$0xff]  }
 0x836   : > { %v28288_v24 = vmax.f32 %v31741_v36, %v11470_v33  ;;  %v11472_v56 = vpop.f32.mrb[161].mxu0  ;;  %v21889_v33 = vld [vmem:[%s30700_s1 + $0x20a4] ss:$16 sps:$4 sm:$0xff]   ;;  %v21893_v41 = vld [vmem:[%s30700_s1 + $0x20c0] ss:$16 sps:$4 sm:$0xff]  }
 0x837   : > { %13103 = vmatmul.mubr.bf16.gmra.mrb[228].mxu1 %v21872_v1  ;;  %v11473_v39 = vpop.f32.mrb[162].mxu0  ;;  %14587 = vmatpush1.bf16.msra.mxu0 %v22332_v62  ;;  %v21881_v1 = vld [vmem:[%s30700_s1 + $0x2080] ss:$16 sps:$4 sm:$0xff]  }
 0x838   : > { %31742 = vst [vmem:[#allocation38_spill] sm:$0xff] %v28288_v24  ;;  %v28302_v14 = vmax.f32 %v31743_v5, %v11473_v39  ;;  %v11475_v29 = vpop.f32.mrb[163].mxu0  ;;  %18588 = vmatprep.mubr.msk.bf16.mxu1 %vm1498_vm0, %v21880_v13  ;;  %14588 = vmatprep.subr.bf16.mxu0 %v31123_v28  ;;  %v21884_v39 = vld [vmem:[%s30700_s1 + $0x1dc8] ss:$16 sps:$4 sm:$0xff]  }
 0x839   : > { %15277 = vperm.xlu0 %20360, %v15139_v4   ;;  %v21890_v4 = vld [vmem:[%s30700_s1 + $0x1de8] ss:$16 sps:$4 sm:$0xff]  }
 0x83a   : > { %31744 = vst [vmem:[#allocation72_spill] sm:$0xff] %v28302_v14  ;;  %14344 = vmatmul.mubr.bf16.gmra.mrb[12].mxu0 %v21875_v55  ;;  %v22334_v55 = vld [vmem:[%s22624_s17 + $0xb8] sm:$0xff]  }
 0x83b   : > { %14351 = vmatprep.mubr.bf16.mxu0 %v21883_v8  ;;  %14589 = vmatpush1.bf16.msra.mxu0 %v22333_v18  ;;  %v31751_v18 = vld [vmem:[#allocation86_spill] sm:$0xff] }
 0x83c   : > { %14590 = vmatprep.subr.bf16.mxu0 %v31123_v28 }
 0x83d   : > { %v11478_v38 = vpop.f32.mrb[164].mxu0  ;;  %15197 = vperm.xlu0 %20360, %v15123_v43  }
 0x83e   : > { %v28324_v16 = vmax.f32 %v31745_v22, %v11478_v38  ;;  %v11480_v31 = vpop.f32.mrb[165].mxu0 }
 0x83f   : > { %13111 = vmatmul.mubr.bf16.gmra.mrb[232].mxu1 %v21878_v20  ;;  %v11481_v13 = vpop.f32.mrb[166].mxu0  ;;  %14591 = vmatpush1.bf16.msra.mxu0 %v22334_v55  ;;  %v15141_v20 = vld [vmem:[%s30701_s2 + $0xa0] sm:$0xff] }
 0x840   : > { %v28341_v36 = vmax.f32 %v31746_v44, %v11481_v13  ;;  %v11483_v56 = vpop.f32.mrb[167].mxu0  ;;  %18589 = vmatprep.mubr.msk.bf16.mxu1 %vm1498_vm0, %v21886_v11  ;;  %14592 = vmatprep.subr.bf16.mxu0 %v31123_v28  ;;  %v31747_v28 = vld [vmem:[#allocation34_spill] sm:$0xff]  ;;  %v31750_v11 = vld [vmem:[#allocation39_spill] sm:$0xff] }
 0x841   : > { %v31748_v5 = vmax.f32 %v31639_v59, %v31747_v28  ;;  %15287 = vperm.xlu0 %20360, %v15141_v20   ;;  %v15124_v59 = vld [vmem:[%s30701_s2 + $0x18] sm:$0xff]  ;;  %v31752_v38 = vmax.f32 %v31750_v11, %v31751_v18  ;;  %v15142_v13 = vld [vmem:[%s30701_s2 + $0xa8] sm:$0xff]  ;;  %v21901_v28 = vld [vmem:[%s30700_s1 + $0x20e4] ss:$16 sps:$4 sm:$0xff]  }
 0x842   : > { %14352 = vmatmul.mubr.bf16.gmra.mrb[16].mxu0 %v21881_v1  ;;  %15202 = vperm.xlu1 %20361, %v15124_v59   ;;  %v15125_v1 = vld [vmem:[%s30701_s2 + $0x20] sm:$0xff]  ;;  %v31755_v56 = vld [vmem:[#allocation45_spill] sm:$0xff] }
 0x843   : > { %14359 = vmatprep.mubr.bf16.mxu0 %v21889_v33  ;;  %14593 = vmatpush1.bf16.msra.mxu0 %v31637_v32  ;;  %v21895_v32 = vld [vmem:[%s30700_s1 + $0x20c4] ss:$16 sps:$4 sm:$0xff]   ;;  %v21898_v33 = vld [vmem:[%s30700_s1 + $0x1e0c] ss:$16 sps:$4 sm:$0xff]   ;;  %v21896_v11 = vld [vmem:[%s30700_s1 + $0x1e08] ss:$16 sps:$4 sm:$0xff]  }
 0x844   : > { %v31754_v44 = vld [vmem:[#allocation67_spill] sm:$0xff]  ;;  %v15127_v59 = vld [vmem:[%s30701_s2 + $0x30] sm:$0xff]  ;;  %v15144_v18 = vld [vmem:[%s30701_s2 + $0xb8] sm:$0xff] }
 0x845   : > { %v11486_v8 = vpop.f32.mrb[168].mxu0  ;;  %15207 = vperm.xlu0 %20360, %v15125_v1   ;;  %v31756_v55 = vmax.f32 %v31754_v44, %v31755_v56  ;;  %v31762_v1 = vld [vmem:[#allocation70_spill] sm:$0xff] }
 0x846   : > { %v28362_v29 = vmax.f32 %v31748_v5, %v11486_v8  ;;  %v11488_v62 = vpop.f32.mrb[169].mxu0  ;;  %15292 = vperm.xlu1 %20361, %v15142_v13   ;;  %v15126_v5 = vld [vmem:[%s30701_s2 + $0x28] sm:$0xff]  ;;  %v21899_v44 = vld [vmem:[%s30700_s1 + $0x20e0] ss:$16 sps:$4 sm:$0xff]  }
 0x847   : > { %13119 = vmatmul.mubr.bf16.gmra.mrb[236].mxu1 %v21884_v39  ;;  %v11489_v19 = vpop.f32.mrb[170].mxu0  ;;  %v31758_v62 = vld [vmem:[#allocation68_spill] sm:$0xff]  ;;  %v15145_v56 = vld [vmem:[%s30701_s2 + $0xc0] sm:$0xff] }
 0x848   : > { %31749 = vst [vmem:[#allocation40_spill] sm:$0xff] %v28362_v29  ;;  %v28379_v22 = vmax.f32 %v31752_v38, %v11489_v19  ;;  %v11491_v31 = vpop.f32.mrb[171].mxu0  ;;  %18590 = vmatprep.mubr.msk.bf16.mxu1 %vm1498_vm0, %v21892_v10  ;;  %v15143_v10 = vld [vmem:[%s30701_s2 + $0xb0] sm:$0xff]  ;;  %v21904_v38 = vld [vmem:[%s30700_s1 + $0x1e2c] ss:$16 sps:$4 sm:$0xff]  }
 0x849   : > { %15297 = vperm.xlu0 %20360, %v15143_v10   ;;  %v31766_v10 = vld [vmem:[#allocation71_spill] sm:$0xff] }
 0x84a   : > { %31753 = vst [vmem:[#allocation10_spill] sm:$0xff] %v28379_v22  ;;  %14360 = vmatmul.mubr.bf16.gmra.mrb[20].mxu0 %v21887_v51  ;;  %v31759_v51 = vld [vmem:[#allocation15_spill] sm:$0xff]  ;;  %15212 = vperm.xlu1 %20361, %v15126_v5   ;;  %v16633_v22 = vld [vmem:[%s30705_s6 + $0x10] sm:$0xff] }
 0x84b   : > { %14367 = vmatprep.mubr.bf16.mxu0 %v21895_v32  ;;  %v31760_v20 = vmax.f32 %v31758_v62, %v31759_v51  ;;  %v15129_v51 = vld [vmem:[%s30701_s2 + $0x40] sm:$0xff]  ;;  %v22028_v29 = vld [vmem:[%s30700_s1 + $0x2068] ss:$16 sps:$4 sm:$0xff]  }
 0x84d   : > { %v11494_v21 = vpop.f32.mrb[172].mxu0  ;;  %15217 = vperm.xlu0 %20360, %v15127_v59   ;;  %v21910_v59 = vld [vmem:[%s30700_s1 + $0x1e4c] ss:$16 sps:$4 sm:$0xff]  }
 0x84e   : > { %v28397_v43 = vmax.f32 %v31756_v55, %v11494_v21  ;;  %v11496_v39 = vpop.f32.mrb[173].mxu0  ;;  %15302 = vperm.xlu1 %20361, %v15144_v18   ;;  %v15128_v55 = vld [vmem:[%s30701_s2 + $0x38] sm:$0xff] }
 0x84f   : > { %13127 = vmatmul.mubr.bf16.gmra.mrb[240].mxu1 %v21890_v4  ;;  %v11497_v8 = vpop.f32.mrb[174].mxu0  ;;  %v31763_v4 = vld [vmem:[#allocation35_spill] sm:$0xff]  ;;  %v31770_v18 = vld [vmem:[#allocation46_spill] sm:$0xff] }
 0x850   : > { %31757 = vst [vmem:[#allocation30_spill] sm:$0xff] %v28397_v43  ;;  %v28414_v19 = vmax.f32 %v31760_v20, %v11497_v8  ;;  %v11499_v32 = vpop.f32.mrb[175].mxu0  ;;  %18591 = vmatprep.mubr.msk.bf16.mxu1 %vm1498_vm0, %v21898_v33  ;;  %v31764_v13 = vmax.f32 %v31762_v1, %v31763_v4  ;;  %v31767_v8 = vld [vmem:[#allocation87_spill] sm:$0xff] }
 0x851   : > { %15307 = vperm.xlu0 %20360, %v15145_v56   ;;  %v21902_v20 = vld [vmem:[%s30700_s1 + $0x1e28] ss:$16 sps:$4 sm:$0xff]   ;;  %v21905_v4 = vld [vmem:[%s30700_s1 + $0x2100] ss:$16 sps:$4 sm:$0xff]  }
 0x852   : > { %31761 = vst [vmem:[#allocation82_spill] sm:$0xff] %v28414_v19  ;;  %14368 = vmatmul.mubr.bf16.gmra.mrb[24].mxu0 %v21893_v41  ;;  %v21907_v41 = vld [vmem:[%s30700_s1 + $0x2104] ss:$16 sps:$4 sm:$0xff]   ;;  %15222 = vperm.xlu1 %20361, %v15128_v55   ;;  %v15146_v32 = vld [vmem:[%s30701_s2 + $0xc8] sm:$0xff] }
 0x853   : > { %14375 = vmatprep.mubr.bf16.mxu0 %v21901_v28  ;;  %v31768_v28 = vmax.f32 %v31766_v10, %v31767_v8  ;;  %v31773_v56 = vld [vmem:[#allocation51_spill] sm:$0xff]  ;;  %v31774_v55 = vld [vmem:[#allocation16_spill] sm:$0xff] }
 0x854   : > { %v15131_v8 = vld [vmem:[%s30701_s2 + $0x50] sm:$0xff]  ;;  %v16635_v19 = vld [vmem:[%s30705_s6 + $0x20] sm:$0xff]  ;;  %v16652_v43 = vld [vmem:[%s30705_s6 + $0xa8] sm:$0xff] }
 0x855   : > { %v11502_v31 = vpop.f32.mrb[176].mxu0  ;;  %15227 = vperm.xlu0 %20360, %v15129_v51   ;;  %v21916_v51 = vld [vmem:[%s30700_s1 + $0x1e6c] ss:$16 sps:$4 sm:$0xff]  }
 0x856   : > { %v28432_v33 = vmax.f32 %v31764_v13, %v11502_v31  ;;  %v11504_v21 = vpop.f32.mrb[177].mxu0  ;;  %15312 = vperm.xlu1 %20361, %v15146_v32   ;;  %v15147_v13 = vld [vmem:[%s30701_s2 + $0xd0] sm:$0xff] }
 0x857   : > { %13135 = vmatmul.mubr.bf16.gmra.mrb[244].mxu1 %v21896_v11  ;;  %v11505_v39 = vpop.f32.mrb[178].mxu0  ;;  %v15130_v21 = vld [vmem:[%s30701_s2 + $0x48] sm:$0xff] }
 0x858   : > { %31765 = vst [vmem:[#allocation41_spill] sm:$0xff] %v28432_v33  ;;  %v28449_v5 = vmax.f32 %v31768_v28, %v11505_v39  ;;  %v11507_v62 = vpop.f32.mrb[179].mxu0  ;;  %18592 = vmatprep.mubr.msk.bf16.mxu1 %vm1498_vm0, %v21904_v38  ;;  %v31771_v38 = vmax.f32 %v31651_v52, %v31770_v18  ;;  %v21913_v52 = vld [vmem:[%s30700_s1 + $0x2124] ss:$16 sps:$4 sm:$0xff]   ;;  %v31775_v39 = vmax.f32 %v31773_v56, %v31774_v55  ;;  %v21908_v28 = vld [vmem:[%s30700_s1 + $0x1e48] ss:$16 sps:$4 sm:$0xff]  }
 0x859   : > { %15317 = vperm.xlu0 %20360, %v15147_v13   ;;  %v15148_v62 = vld [vmem:[%s30701_s2 + $0xd8] sm:$0xff]  ;;  %v31777_v32 = vld [vmem:[#allocation52_spill] sm:$0xff] }
 0x85a   : > { %31769 = vst [vmem:[#allocation11_spill] sm:$0xff] %v28449_v5  ;;  %14376 = vmatmul.mubr.bf16.gmra.mrb[28].mxu0 %v21899_v44  ;;  %15232 = vperm.xlu1 %20361, %v15130_v21   ;;  %v15132_v13 = vld [vmem:[%s30701_s2 + $0x58] sm:$0xff]  ;;  %v31782_v56 = vld [vmem:[#allocation88_spill] sm:$0xff] }
 0x85b   : > { %14383 = vmatprep.mubr.bf16.mxu0 %v21907_v41  ;;  %v16637_v5 = vld [vmem:[%s30705_s6 + $0x30] sm:$0xff] }
 0x85d   : > { %v11510_v11 = vpop.f32.mrb[180].mxu0  ;;  %15237 = vperm.xlu0 %20360, %v15131_v8   ;;  %v15133_v8 = vld [vmem:[%s30701_s2 + $0x60] sm:$0xff] }
 0x85e   : > { %v28467_v31 = vmax.f32 %v31771_v38, %v11510_v11  ;;  %v11512_v1 = vpop.f32.mrb[181].mxu0  ;;  %15322 = vperm.xlu1 %20361, %v15148_v62   ;;  %v15150_v62 = vld [vmem:[%s30701_s2 + $0xe8] sm:$0xff] }
 0x85f   : > { %13143 = vmatmul.mubr.bf16.gmra.mrb[248].mxu1 %v21902_v20  ;;  %v11513_v44 = vpop.f32.mrb[182].mxu0  ;;  %v21911_v1 = vld [vmem:[%s30700_s1 + $0x2120] ss:$16 sps:$4 sm:$0xff]  }
 0x860   : > { %31772 = vst [vmem:[#allocation31_spill] sm:$0xff] %v28467_v31  ;;  %v28484_v41 = vmax.f32 %v31775_v39, %v11513_v44  ;;  %v11515_v10 = vpop.f32.mrb[183].mxu0  ;;  %18593 = vmatprep.mubr.msk.bf16.mxu1 %vm1498_vm0, %v21910_v59  ;;  %v31778_v59 = vld [vmem:[#allocation36_spill] sm:$0xff]  ;;  %v21919_v44 = vld [vmem:[%s30700_s1 + $0x2144] ss:$16 sps:$4 sm:$0xff]  }
 0x861   : > { %v31779_v11 = vmax.f32 %v31777_v32, %v31778_v59  ;;  %v31785_v32 = vld [vmem:[#allocation75_spill] sm:$0xff] }
 0x862   : > { %31776 = vst [vmem:[#allocation83_spill] sm:$0xff] %v28484_v41  ;;  %14384 = vmatmul.mubr.bf16.gmra.mrb[32].mxu0 %v21905_v4  ;;  %v15149_v4 = vld [vmem:[%s30701_s2 + $0xe0] sm:$0xff]  ;;  %15242 = vperm.xlu1 %20361, %v15132_v13   ;;  %v15151_v13 = vld [vmem:[%s30701_s2 + $0xf0] sm:$0xff] }
 0x863   : > { %14391 = vmatprep.mubr.bf16.mxu0 %v21913_v52  ;;  %15327 = vperm.xlu0 %20360, %v15149_v4   ;;  %v31781_v52 = vld [vmem:[#allocation74_spill] sm:$0xff]  ;;  %v31786_v59 = vld [vmem:[#allocation47_spill] sm:$0xff] }
 0x864   : > { %v31783_v55 = vmax.f32 %v31781_v52, %v31782_v56  ;;  %v21917_v4 = vld [vmem:[%s30700_s1 + $0x2140] ss:$16 sps:$4 sm:$0xff]   ;;  %v21925_v52 = vld [vmem:[%s30700_s1 + $0x2164] ss:$16 sps:$4 sm:$0xff]  }
 0x865   : > { %v11518_v20 = vpop.f32.mrb[184].mxu0  ;;  %v31789_v56 = vld [vmem:[#allocation56_spill] sm:$0xff]  ;;  %v16639_v31 = vld [vmem:[%s30705_s6 + $0x40] sm:$0xff] }
 0x866   : > { %v28502_v18 = vmax.f32 %v31779_v11, %v11518_v20  ;;  %v11520_v38 = vpop.f32.mrb[185].mxu0  ;;  %15332 = vperm.xlu1 %20361, %v15150_v62   ;;  %v31787_v11 = vmax.f32 %v31785_v32, %v31786_v59  ;;  %v15152_v32 = vld [vmem:[%s30701_s2 + $0xf8] sm:$0xff] }
 0x867   : > { %13151 = vmatmul.mubr.bf16.gmra.mrb[252].mxu1 %v21908_v28  ;;  %v11521_v21 = vpop.f32.mrb[186].mxu0  ;;  %v21914_v28 = vld [vmem:[%s30700_s1 + $0x1e68] ss:$16 sps:$4 sm:$0xff]   ;;  %15247 = vperm.xlu0 %20360, %v15133_v8   ;;  %v21928_v59 = vld [vmem:[%s30700_s1 + $0x1eac] ss:$16 sps:$4 sm:$0xff]  }
 0x868   : > { %31780 = vst [vmem:[#allocation42_spill] sm:$0xff] %v28502_v18  ;;  %v28519_v39 = vmax.f32 %v31783_v55, %v11521_v21  ;;  %v11523_v10 = vpop.f32.mrb[187].mxu0  ;;  %18594 = vmatprep.mubr.msk.bf16.mxu1 %vm1498_vm0, %v21916_v51  ;;  %v21922_v51 = vld [vmem:[%s30700_s1 + $0x1e8c] ss:$16 sps:$4 sm:$0xff]   ;;  %v31790_v55 = vld [vmem:[#allocation17_spill] sm:$0xff] }
 0x869   : > { %v15134_v21 = vld [vmem:[%s30701_s2 + $0x68] sm:$0xff]  ;;  %v31791_v10 = vmax.f32 %v31789_v56, %v31790_v55  ;;  %v15136_v56 = vld [vmem:[%s30701_s2 + $0x78] sm:$0xff] }
 0x86a   : > { %31784 = vst [vmem:[#allocation12_spill] sm:$0xff] %v28519_v39  ;;  %14392 = vmatmul.mubr.bf16.gmra.mrb[36].mxu0 %v21911_v1  ;;  %15252 = vperm.xlu1 %20361, %v15134_v21   ;;  %v16641_v39 = vld [vmem:[%s30705_s6 + $0x50] sm:$0xff] }
 0x86b   : > { %14399 = vmatprep.mubr.bf16.mxu0 %v21919_v44  ;;  %15337 = vperm.xlu0 %20360, %v15151_v13  }
 0x86d   : > { %v11526_v20 = vpop.f32.mrb[188].mxu0 }
 0x86e   : > { %v28537_v38 = vmax.f32 %v31787_v11, %v11526_v20  ;;  %v11528_v1 = vpop.f32.mrb[189].mxu0  ;;  %v15135_v20 = vld [vmem:[%s30701_s2 + $0x70] sm:$0xff]  ;;  %15342 = vperm.xlu1 %20361, %v15152_v32   ;;  %v15169_v11 = vld [vmem:[%s30701_s2 + $0x180] sm:$0xff] }
 0x86f   : > { %13159 = vmatmul.mubr.bf16.gmra.mrb[0].mxu1 %v21914_v28  ;;  %v11529_v44 = vpop.f32.mrb[190].mxu0  ;;  %v21920_v28 = vld [vmem:[%s30700_s1 + $0x1e88] ss:$16 sps:$4 sm:$0xff]   ;;  %15257 = vperm.xlu0 %20360, %v15135_v20  }
 0x870   : > { %31788 = vst [vmem:[#allocation32_spill] sm:$0xff] %v28537_v38  ;;  %v28554_v8 = vmax.f32 %v31791_v10, %v11529_v44  ;;  %v11531_v62 = vpop.f32.mrb[191].mxu0  ;;  %18595 = vmatprep.mubr.msk.bf16.mxu1 %vm1498_vm0, %v21922_v51  ;;  %v31793_v1 = vld [vmem:[#allocation59_spill] sm:$0xff]  ;;  %v31798_v20 = vld [vmem:[#allocation89_spill] sm:$0xff] }
 0x871   : > { %v21931_v10 = vld [vmem:[%s30700_s1 + $0x2184] ss:$16 sps:$4 sm:$0xff]  }
 0x872   : > { %31792 = vst [vmem:[#allocation26_spill] sm:$0xff] %v28554_v8  ;;  %14400 = vmatmul.mubr.bf16.gmra.mrb[40].mxu0 %v21917_v4  ;;  %v31794_v4 = vld [vmem:[#allocation49_spill] sm:$0xff]  ;;  %15262 = vperm.xlu1 %20361, %v15136_v56  }
 0x873   : > { %14407 = vmatprep.mubr.bf16.mxu0 %v21925_v52  ;;  %v31795_v13 = vmax.f32 %v31793_v1, %v31794_v4  ;;  %v21923_v52 = vld [vmem:[%s30700_s1 + $0x2160] ss:$16 sps:$4 sm:$0xff]   ;;  %15427 = vperm.xlu0 %20360, %v15169_v11   ;;  %v16662_v8 = vld [vmem:[%s30705_s6 + $0xf8] sm:$0xff] }
 0x874   : > { %v31797_v62 = vld [vmem:[#allocation77_spill] sm:$0xff]  ;;  %v15153_v4 = vld [vmem:[%s30701_s2 + $0x100] sm:$0xff] }
 0x875   : > { %v11534_v51 = vpop.f32.mrb[192].mxu0  ;;  %v31799_v32 = vmax.f32 %v31797_v62, %v31798_v20  ;;  %v31802_v56 = vld [vmem:[#allocation37_spill] sm:$0xff] }
 0x876   : > { %v28575_v21 = vmax.f32 %v31795_v13, %v11534_v51  ;;  %v11536_v44 = vpop.f32.mrb[193].mxu0  ;;  %v15170_v13 = vld [vmem:[%s30701_s2 + $0x188] sm:$0xff]  ;;  %v21929_v20 = vld [vmem:[%s30700_s1 + $0x2180] ss:$16 sps:$4 sm:$0xff]  }
 0x877   : > { %13167 = vmatmul.mubr.bf16.gmra.mrb[4].mxu1 %v21920_v28  ;;  %v11537_v55 = vpop.f32.mrb[194].mxu0  ;;  %v21926_v28 = vld [vmem:[%s30700_s1 + $0x1ea8] ss:$16 sps:$4 sm:$0xff]   ;;  %15347 = vperm.xlu0 %20360, %v15153_v4   ;;  %v15171_v44 = vld [vmem:[%s30701_s2 + $0x190] sm:$0xff] }
 0x878   : > { %31796 = vst [vmem:[#allocation84_spill] sm:$0xff] %v28575_v21  ;;  %v28589_v51 = vmax.f32 %v31799_v32, %v11537_v55  ;;  %v11539_v1 = vpop.f32.mrb[195].mxu0  ;;  %18596 = vmatprep.mubr.msk.bf16.mxu1 %vm1498_vm0, %v21928_v59  ;;  %v21934_v59 = vld [vmem:[%s30700_s1 + $0x1ecc] ss:$16 sps:$4 sm:$0xff]   ;;  %15432 = vperm.xlu1 %20361, %v15170_v13   ;;  %v21937_v4 = vld [vmem:[%s30700_s1 + $0x21a4] ss:$16 sps:$4 sm:$0xff]  }
 0x879   : > { %v15154_v32 = vld [vmem:[%s30701_s2 + $0x108] sm:$0xff] }
 0x87a   : > { %31800 = vst [vmem:[#allocation34_spill] sm:$0xff] %v28589_v51  ;;  %14408 = vmatmul.mubr.bf16.gmra.mrb[44].mxu0 %v21923_v52  ;;  %v31801_v52 = vld [vmem:[#allocation78_spill] sm:$0xff]  ;;  %v31805_v13 = vld [vmem:[#allocation79_spill] sm:$0xff] }
 0x87b   : > { %14415 = vmatprep.mubr.bf16.mxu0 %v21931_v10  ;;  %v31803_v55 = vmax.f32 %v31801_v52, %v31802_v56  ;;  %v31806_v51 = vld [vmem:[#allocation18_spill] sm:$0xff]  ;;  %15437 = vperm.xlu0 %20360, %v15171_v44  }
 0x87c   : > { %v31807_v52 = vmax.f32 %v31805_v13, %v31806_v51  ;;  %15352 = vperm.xlu1 %20361, %v15154_v32   ;;  %v15172_v51 = vld [vmem:[%s30701_s2 + $0x198] sm:$0xff] }
 0x87d   : > { %v11542_v11 = vpop.f32.mrb[196].mxu0  ;;  %v31810_v32 = vld [vmem:[#allocation50_spill] sm:$0xff] }
 0x87e   : > { %v28610_v10 = vmax.f32 %v31803_v55, %v11542_v11  ;;  %v11544_v62 = vpop.f32.mrb[197].mxu0  ;;  %v15155_v55 = vld [vmem:[%s30701_s2 + $0x110] sm:$0xff] }
 0x87f   : > { %13175 = vmatmul.mubr.bf16.gmra.mrb[8].mxu1 %v21926_v28  ;;  %v11545_v1 = vpop.f32.mrb[198].mxu0  ;;  %v21932_v28 = vld [vmem:[%s30700_s1 + $0x1ec8] ss:$16 sps:$4 sm:$0xff]   ;;  %15357 = vperm.xlu0 %20360, %v15155_v55   ;;  %v15173_v62 = vld [vmem:[%s30701_s2 + $0x1a0] sm:$0xff] }
 0x880   : > { %31804 = vst [vmem:[#allocation39_spill] sm:$0xff] %v28610_v10  ;;  %v28624_v11 = vmax.f32 %v31807_v52, %v11545_v1  ;;  %v11547_v56 = vpop.f32.mrb[199].mxu0  ;;  %18597 = vmatprep.mubr.msk.bf16.mxu1 %vm1498_vm0, %v21934_v59  ;;  %v21940_v59 = vld [vmem:[%s30700_s1 + $0x1eec] ss:$16 sps:$4 sm:$0xff]   ;;  %15442 = vperm.xlu1 %20361, %v15172_v51   ;;  %v21935_v52 = vld [vmem:[%s30700_s1 + $0x21a0] ss:$16 sps:$4 sm:$0xff]  }
 0x881   : > { %v15156_v56 = vld [vmem:[%s30701_s2 + $0x118] sm:$0xff]  ;;  %v21943_v51 = vld [vmem:[%s30700_s1 + $0x21c4] ss:$16 sps:$4 sm:$0xff]  }
 0x882   : > { %31808 = vst [vmem:[#allocation86_spill] sm:$0xff] %v28624_v11  ;;  %14416 = vmatmul.mubr.bf16.gmra.mrb[48].mxu0 %v21929_v20  ;;  %v31809_v20 = vld [vmem:[#allocation27_spill] sm:$0xff]  ;;  %v31813_v11 = vld [vmem:[#allocation80_spill] sm:$0xff]  ;;  %v31814_v10 = vld [vmem:[#allocation90_spill] sm:$0xff] }
 0x883   : > { %14423 = vmatprep.mubr.bf16.mxu0 %v21937_v4  ;;  %v31811_v1 = vmax.f32 %v31809_v20, %v31810_v32  ;;  %v31815_v20 = vmax.f32 %v31813_v11, %v31814_v10  ;;  %15447 = vperm.xlu0 %20360, %v15173_v62   ;;  %v15174_v10 = vld [vmem:[%s30701_s2 + $0x1a8] sm:$0xff]  ;;  %v15175_v62 = vld [vmem:[%s30701_s2 + $0x1b0] sm:$0xff] }
 0x884   : > { %15362 = vperm.xlu1 %20361, %v15156_v56   ;;  %v21946_v11 = vld [vmem:[%s30700_s1 + $0x1f0c] ss:$16 sps:$4 sm:$0xff]  }
 0x885   : > { %v11550_v44 = vpop.f32.mrb[200].mxu0 }
 0x886   : > { %v28645_v4 = vmax.f32 %v31811_v1, %v11550_v44  ;;  %v11552_v13 = vpop.f32.mrb[201].mxu0  ;;  %v15157_v1 = vld [vmem:[%s30701_s2 + $0x120] sm:$0xff] }
 0x887   : > { %13183 = vmatmul.mubr.bf16.gmra.mrb[12].mxu1 %v21932_v28  ;;  %v11553_v55 = vpop.f32.mrb[202].mxu0  ;;  %v21938_v28 = vld [vmem:[%s30700_s1 + $0x1ee8] ss:$16 sps:$4 sm:$0xff]   ;;  %15367 = vperm.xlu0 %20360, %v15157_v1  }
 0x888   : > { %31812 = vst [vmem:[#allocation67_spill] sm:$0xff] %v28645_v4  ;;  %v28659_v44 = vmax.f32 %v31815_v20, %v11553_v55  ;;  %v11555_v32 = vpop.f32.mrb[203].mxu0  ;;  %18598 = vmatprep.mubr.msk.bf16.mxu1 %vm1498_vm0, %v21940_v59  ;;  %15452 = vperm.xlu1 %20361, %v15174_v10   ;;  %v31817_v13 = vld [vmem:[#allocation28_spill] sm:$0xff]  ;;  %v21949_v10 = vld [vmem:[%s30700_s1 + $0x21e4] ss:$16 sps:$4 sm:$0xff]  }
 0x889   : > { %v21941_v20 = vld [vmem:[%s30700_s1 + $0x21c0] ss:$16 sps:$4 sm:$0xff]   ;;  %v15158_v32 = vld [vmem:[%s30701_s2 + $0x128] sm:$0xff] }
 0x88a   : > { %31816 = vst [vmem:[#allocation45_spill] sm:$0xff] %v28659_v44  ;;  %14424 = vmatmul.mubr.bf16.gmra.mrb[52].mxu0 %v21935_v52  ;;  %v31818_v52 = vld [vmem:[#allocation53_spill] sm:$0xff]  ;;  %v31822_v4 = vld [vmem:[#allocation19_spill] sm:$0xff] }
 0x88b   : > { %14431 = vmatprep.mubr.bf16.mxu0 %v21943_v51  ;;  %v31819_v56 = vmax.f32 %v31817_v13, %v31818_v52  ;;  %v31821_v44 = vld [vmem:[#allocation9_spill] sm:$0xff]  ;;  %15457 = vperm.xlu0 %20360, %v15175_v62   ;;  %v15177_v62 = vld [vmem:[%s30701_s2 + $0x1c0] sm:$0xff] }
 0x88c   : > { %v31823_v13 = vmax.f32 %v31821_v44, %v31822_v4  ;;  %15372 = vperm.xlu1 %20361, %v15158_v32   ;;  %v15176_v4 = vld [vmem:[%s30701_s2 + $0x1b8] sm:$0xff] }
 0x88d   : > { %v11558_v59 = vpop.f32.mrb[204].mxu0  ;;  %v21952_v44 = vld [vmem:[%s30700_s1 + $0x1f2c] ss:$16 sps:$4 sm:$0xff]  }
 0x88e   : > { %v28680_v55 = vmax.f32 %v31819_v56, %v11558_v59  ;;  %v11560_v51 = vpop.f32.mrb[205].mxu0  ;;  %v15159_v56 = vld [vmem:[%s30701_s2 + $0x130] sm:$0xff] }
 0x88f   : > { %13191 = vmatmul.mubr.bf16.gmra.mrb[16].mxu1 %v21938_v28  ;;  %v11561_v1 = vpop.f32.mrb[206].mxu0  ;;  %v21944_v28 = vld [vmem:[%s30700_s1 + $0x1f08] ss:$16 sps:$4 sm:$0xff]   ;;  %15377 = vperm.xlu0 %20360, %v15159_v56  }
 0x890   : > { %31820 = vst [vmem:[#allocation68_spill] sm:$0xff] %v28680_v55  ;;  %v28694_v59 = vmax.f32 %v31823_v13, %v11561_v1  ;;  %v11563_v52 = vpop.f32.mrb[207].mxu0  ;;  %18599 = vmatprep.mubr.msk.bf16.mxu1 %vm1498_vm0, %v21946_v11  ;;  %15462 = vperm.xlu1 %20361, %v15176_v4   ;;  %v31825_v51 = vld [vmem:[#allocation29_spill] sm:$0xff]  ;;  %v31829_v55 = vld [vmem:[#allocation91_spill] sm:$0xff] }
 0x891   : > { %v21947_v13 = vld [vmem:[%s30700_s1 + $0x21e0] ss:$16 sps:$4 sm:$0xff]   ;;  %v15160_v52 = vld [vmem:[%s30701_s2 + $0x138] sm:$0xff]  ;;  %v21955_v4 = vld [vmem:[%s30700_s1 + $0x2204] ss:$16 sps:$4 sm:$0xff]  }
 0x892   : > { %31824 = vst [vmem:[#allocation15_spill] sm:$0xff] %v28694_v59  ;;  %14432 = vmatmul.mubr.bf16.gmra.mrb[56].mxu0 %v21941_v20  ;;  %v31826_v20 = vld [vmem:[#allocation54_spill] sm:$0xff]  ;;  %v31828_v59 = vld [vmem:[#allocation81_spill] sm:$0xff] }
 0x893   : > { %14439 = vmatprep.mubr.bf16.mxu0 %v21949_v10  ;;  %v31827_v32 = vmax.f32 %v31825_v51, %v31826_v20  ;;  %v31830_v51 = vmax.f32 %v31828_v59, %v31829_v55  ;;  %15467 = vperm.xlu0 %20360, %v15177_v62   ;;  %v15178_v55 = vld [vmem:[%s30701_s2 + $0x1c8] sm:$0xff]  ;;  %v15179_v62 = vld [vmem:[%s30701_s2 + $0x1d0] sm:$0xff] }
 0x894   : > { %15382 = vperm.xlu1 %20361, %v15160_v52   ;;  %v21958_v59 = vld [vmem:[%s30700_s1 + $0x1f4c] ss:$16 sps:$4 sm:$0xff]  }
 0x895   : > { %v11566_v11 = vpop.f32.mrb[208].mxu0 }
 0x896   : > { %v28715_v1 = vmax.f32 %v31827_v32, %v11566_v11  ;;  %v11568_v10 = vpop.f32.mrb[209].mxu0  ;;  %v15161_v32 = vld [vmem:[%s30701_s2 + $0x140] sm:$0xff] }
 0x897   : > { %13199 = vmatmul.mubr.bf16.gmra.mrb[20].mxu1 %v21944_v28  ;;  %v11569_v56 = vpop.f32.mrb[210].mxu0  ;;  %v21950_v28 = vld [vmem:[%s30700_s1 + $0x1f28] ss:$16 sps:$4 sm:$0xff]   ;;  %15387 = vperm.xlu0 %20360, %v15161_v32   ;;  %v21961_v32 = vld [vmem:[%s30700_s1 + $0x2224] ss:$16 sps:$4 sm:$0xff]  }
 0x898   : > { %v28729_v11 = vmax.f32 %v31830_v51, %v11569_v56  ;;  %v11571_v20 = vpop.f32.mrb[211].mxu0  ;;  %18600 = vmatprep.mubr.msk.bf16.mxu1 %vm1498_vm0, %v21952_v44  ;;  %15472 = vperm.xlu1 %20361, %v15178_v55   ;;  %v31832_v10 = vld [vmem:[#allocation57_spill] sm:$0xff]  ;;  %v15162_v51 = vld [vmem:[%s30701_s2 + $0x148] sm:$0xff] }
 0x899   : > { %v31834_v55 = vld [vmem:[#allocation20_spill] sm:$0xff] }
 0x89a   : > { %31831 = vst [vmem:[#allocation70_spill] sm:$0xff] %v28729_v11  ;;  %14440 = vmatmul.mubr.bf16.gmra.mrb[60].mxu0 %v21947_v13  ;;  %v31833_v13 = vmax.f32 %v31683_v46, %v31832_v10  ;;  %v31835_v46 = vmax.f32 %v31685_v34, %v31834_v55  ;;  %v15180_v34 = vld [vmem:[%s30701_s2 + $0x1d8] sm:$0xff]  ;;  %v21959_v55 = vld [vmem:[%s30700_s1 + $0x2220] ss:$16 sps:$4 sm:$0xff]  }
 0x89b   : > { %14447 = vmatprep.mubr.bf16.mxu0 %v21955_v4  ;;  %v21953_v4 = vld [vmem:[%s30700_s1 + $0x2200] ss:$16 sps:$4 sm:$0xff]   ;;  %15477 = vperm.xlu0 %20360, %v15179_v62  }
 0x89c   : > { %15392 = vperm.xlu1 %20361, %v15162_v51  }
 0x89d   : > { %v11574_v44 = vpop.f32.mrb[212].mxu0 }
 0x89e   : > { %v28750_v52 = vmax.f32 %v31833_v13, %v11574_v44  ;;  %v11576_v56 = vpop.f32.mrb[213].mxu0  ;;  %v15163_v13 = vld [vmem:[%s30701_s2 + $0x150] sm:$0xff] }
 0x89f   : > { %13207 = vmatmul.mubr.bf16.gmra.mrb[24].mxu1 %v21950_v28  ;;  %v11577_v20 = vpop.f32.mrb[214].mxu0  ;;  %v21956_v28 = vld [vmem:[%s30700_s1 + $0x1f48] ss:$16 sps:$4 sm:$0xff]   ;;  %15397 = vperm.xlu0 %20360, %v15163_v13   ;;  %v15181_v56 = vld [vmem:[%s30701_s2 + $0x1e0] sm:$0xff] }
 0x8a0   : > { %v28764_v44 = vmax.f32 %v31835_v46, %v11577_v20  ;;  %v11579_v10 = vpop.f32.mrb[215].mxu0  ;;  %18601 = vmatprep.mubr.msk.bf16.mxu1 %vm1498_vm0, %v21958_v59  ;;  %v21964_v59 = vld [vmem:[%s30700_s1 + $0x1f6c] ss:$16 sps:$4 sm:$0xff]   ;;  %15482 = vperm.xlu1 %20361, %v15180_v34   ;;  %v21967_v13 = vld [vmem:[%s30700_s1 + $0x2244] ss:$16 sps:$4 sm:$0xff]  }
 0x8a1   : > { %v15164_v46 = vld [vmem:[%s30701_s2 + $0x158] sm:$0xff]  ;;  %v31839_v34 = vld [vmem:[#allocation92_spill] sm:$0xff] }
 0x8a2   : > { %31836 = vst [vmem:[#allocation35_spill] sm:$0xff] %v28764_v44  ;;  %14448 = vmatmul.mubr.bf16.gmra.mrb[64].mxu0 %v21953_v4  ;;  %v31837_v4 = vld [vmem:[#allocation58_spill] sm:$0xff] }
 0x8a3   : > { %14455 = vmatprep.mubr.bf16.mxu0 %v21961_v32  ;;  %v31838_v51 = vmax.f32 %v27146_v60, %v31837_v4  ;;  %v31840_v60 = vmax.f32 %v27155_v2, %v31839_v34  ;;  %15487 = vperm.xlu0 %20360, %v15181_v56   ;;  %v15165_v2 = vld [vmem:[%s30701_s2 + $0x160] sm:$0xff]  ;;  %v15183_v34 = vld [vmem:[%s30701_s2 + $0x1f0] sm:$0xff] }
 0x8a4   : > { %15402 = vperm.xlu1 %20361, %v15164_v46  }
 0x8a5   : > { %v11582_v62 = vpop.f32.mrb[216].mxu0 }
 0x8a6   : > { %v28785_v20 = vmax.f32 %v31838_v51, %v11582_v62  ;;  %v11584_v32 = vpop.f32.mrb[217].mxu0 }
 0x8a7   : > { %13215 = vmatmul.mubr.bf16.gmra.mrb[28].mxu1 %v21956_v28  ;;  %v11585_v10 = vpop.f32.mrb[218].mxu0  ;;  %v21962_v28 = vld [vmem:[%s30700_s1 + $0x1f68] ss:$16 sps:$4 sm:$0xff]   ;;  %15407 = vperm.xlu0 %20360, %v15165_v2   ;;  %v21965_v2 = vld [vmem:[%s30700_s1 + $0x2240] ss:$16 sps:$4 sm:$0xff]  }
 0x8a8   : > { %v28799_v62 = vmax.f32 %v31840_v60, %v11585_v10  ;;  %v11587_v4 = vpop.f32.mrb[219].mxu0  ;;  %18602 = vmatprep.mubr.msk.bf16.mxu1 %vm1498_vm0, %v21964_v59  ;;  %v15182_v10 = vld [vmem:[%s30701_s2 + $0x1e8] sm:$0xff]  ;;  %v21973_v60 = vld [vmem:[%s30700_s1 + $0x2264] ss:$16 sps:$4 sm:$0xff]  }
 0x8a9   : > { %15492 = vperm.xlu1 %20361, %v15182_v10   ;;  %v31844_v4 = vld [vmem:[#allocation61_spill] sm:$0xff]  ;;  %v15166_v10 = vld [vmem:[%s30701_s2 + $0x168] sm:$0xff] }
 0x8aa   : > { %31841 = vst [vmem:[#allocation71_spill] sm:$0xff] %v28799_v62  ;;  %v28802_v51 = vpop.f32.mrb[180].mxu1  ;;  %14456 = vmatmul.mubr.bf16.gmra.mrb[68].mxu0 %v21959_v55  ;;  %v21970_v55 = vld [vmem:[%s30700_s1 + $0x1f8c] ss:$16 sps:$4 sm:$0xff]  }
 0x8ab   : > { %31842 = vst [vmem:[#allocation87_spill] sm:$0xff] %v28802_v51  ;;  %v13010_v32 = vpop.f32.mrb[181].mxu1  ;;  %14463 = vmatprep.mubr.bf16.mxu0 %v21967_v13  ;;  %15497 = vperm.xlu0 %20360, %v15183_v34  }
 0x8ac   : > { %v28815_v56 = vpop.f32.mrb[182].mxu1  ;;  %v31845_v32 = vmax.f32 %v27177_v47, %v31844_v4 }
 0x8ad   : > { %31843 = vst [vmem:[#allocation46_spill] sm:$0xff] %v28815_v56  ;;  %v11590_v46 = vpop.f32.mrb[220].mxu0  ;;  %v13013_v13 = vpop.f32.mrb[183].mxu1  ;;  %v31846_v56 = vld [vmem:[#allocation21_spill] sm:$0xff]  ;;  %15412 = vperm.xlu1 %20361, %v15166_v10  }
 0x8ae   : > { %v28828_v59 = vmax.f32 %v31845_v32, %v11590_v46  ;;  %v11592_v51 = vpop.f32.mrb[221].mxu0  ;;  %v31847_v47 = vmax.f32 %v27186_v37, %v31846_v56  ;;  %v15167_v37 = vld [vmem:[%s30701_s2 + $0x170] sm:$0xff]  ;;  %v15184_v56 = vld [vmem:[%s30701_s2 + $0x1f8] sm:$0xff] }
 0x8af   : > { %13223 = vmatmul.mubr.bf16.gmra.mrb[32].mxu1 %v21962_v28  ;;  %v11593_v13 = vpop.f32.mrb[222].mxu0  ;;  %v21968_v28 = vld [vmem:[%s30700_s1 + $0x1f88] ss:$16 sps:$4 sm:$0xff]   ;;  %15417 = vperm.xlu0 %20360, %v15167_v37   ;;  %v21971_v37 = vld [vmem:[%s30700_s1 + $0x2260] ss:$16 sps:$4 sm:$0xff]  }
 0x8b0   : > { %v28842_v46 = vmax.f32 %v31847_v47, %v11593_v13  ;;  %v11595_v51 = vpop.f32.mrb[223].mxu0  ;;  %18603 = vmatprep.mubr.msk.bf16.mxu1 %vm1498_vm0, %v21970_v55  ;;  %v15729_v13 = vld [vmem:[%s30703_s4] sm:$0xff] }
 0x8b1   : > { %15502 = vperm.xlu1 %20361, %v15184_v56   ;;  %v31851_v51 = vld [vmem:[#allocation62_spill] sm:$0xff]  ;;  %v21979_v47 = vld [vmem:[%s30700_s1 + $0x2284] ss:$16 sps:$4 sm:$0xff]  }
 0x8b2   : > { %31848 = vst [vmem:[#allocation51_spill] sm:$0xff] %v28842_v46  ;;  %v28845_v4 = vpop.f32.mrb[184].mxu1  ;;  %14464 = vmatmul.mubr.bf16.gmra.mrb[76].mxu0 %v21965_v2  ;;  %v21976_v2 = vld [vmem:[%s30700_s1 + $0x1fac] ss:$16 sps:$4 sm:$0xff]  }
 0x8b3   : > { %31849 = vst [vmem:[#allocation16_spill] sm:$0xff] %v28845_v4  ;;  %v13018_v32 = vpop.f32.mrb[185].mxu1  ;;  %14471 = vmatprep.mubr.bf16.mxu0 %v21973_v60  ;;  %v15168_v56 = vld [vmem:[%s30701_s2 + $0x178] sm:$0xff]  ;;  %15763 = vperm.xlu0 %20360, %v15729_v13  }
 0x8b4   : > { %v28858_v34 = vpop.f32.mrb[186].mxu1  ;;  %v31852_v32 = vmax.f32 %v27208_v49, %v31851_v51 }
 0x8b5   : > { %31850 = vst [vmem:[#allocation52_spill] sm:$0xff] %v28858_v34  ;;  %v11598_v10 = vpop.f32.mrb[224].mxu0  ;;  %v13021_v60 = vpop.f32.mrb[187].mxu1  ;;  %v31853_v34 = vld [vmem:[#allocation93_spill] sm:$0xff]  ;;  %15422 = vperm.xlu1 %20361, %v15168_v56  }
 0x8b6   : > { %v28871_v55 = vmax.f32 %v31852_v32, %v11598_v10  ;;  %v11600_v4 = vpop.f32.mrb[225].mxu0  ;;  %v31854_v49 = vmax.f32 %v27217_v6, %v31853_v34  ;;  %v15737_v6 = vld [vmem:[%s30703_s4 + $0x40] sm:$0xff]  ;;  %v15730_v34 = vld [vmem:[%s30703_s4 + $0x8] sm:$0xff] }
 0x8b7   : > { %13231 = vmatmul.mubr.bf16.gmra.mrb[36].mxu1 %v21968_v28  ;;  %v11601_v60 = vpop.f32.mrb[226].mxu0  ;;  %v21974_v28 = vld [vmem:[%s30700_s1 + $0x1fa8] ss:$16 sps:$4 sm:$0xff]   ;;  %15803 = vperm.xlu0 %20360, %v15737_v6   ;;  %v21977_v6 = vld [vmem:[%s30700_s1 + $0x2280] ss:$16 sps:$4 sm:$0xff]  }
 0x8b8   : > { %v28885_v10 = vmax.f32 %v31854_v49, %v11601_v60  ;;  %v11603_v4 = vpop.f32.mrb[227].mxu0  ;;  %18604 = vmatprep.mubr.msk.bf16.mxu1 %vm1498_vm0, %v21976_v2  ;;  %v15745_v60 = vld [vmem:[%s30703_s4 + $0x80] sm:$0xff] }
 0x8b9   : > { %15768 = vperm.xlu1 %20361, %v15730_v34   ;;  %v31858_v4 = vld [vmem:[#allocation65_spill] sm:$0xff]  ;;  %v15738_v34 = vld [vmem:[%s30703_s4 + $0x48] sm:$0xff] }
 0x8ba   : > { %31855 = vst [vmem:[#allocation36_spill] sm:$0xff] %v28885_v10  ;;  %v28888_v51 = vpop.f32.mrb[188].mxu1  ;;  %14472 = vmatmul.mubr.bf16.gmra.mrb[72].mxu0 %v21971_v37  ;;  %v21982_v37 = vld [vmem:[%s30700_s1 + $0x1fcc] ss:$16 sps:$4 sm:$0xff]   ;;  %v21985_v49 = vld [vmem:[%s30700_s1 + $0x22a4] ss:$16 sps:$4 sm:$0xff]  }
 0x8bb   : > { %31856 = vst [vmem:[#allocation74_spill] sm:$0xff] %v28888_v51  ;;  %v13026_v32 = vpop.f32.mrb[189].mxu1  ;;  %14479 = vmatprep.mubr.bf16.mxu0 %v21979_v47  ;;  %15843 = vperm.xlu0 %20360, %v15745_v60  }
 0x8bc   : > { %v28901_v13 = vpop.f32.mrb[190].mxu1  ;;  %v31859_v32 = vmax.f32 %v27239_v0, %v31858_v4 }
 0x8bd   : > { %31857 = vst [vmem:[#allocation88_spill] sm:$0xff] %v28901_v13  ;;  %v11606_v56 = vpop.f32.mrb[228].mxu0  ;;  %v13029_v47 = vpop.f32.mrb[191].mxu1  ;;  %v31860_v13 = vld [vmem:[#allocation22_spill] sm:$0xff]  ;;  %15808 = vperm.xlu1 %20361, %v15738_v34  }
 0x8be   : > { %v28914_v2 = vmax.f32 %v31859_v32, %v11606_v56  ;;  %v11608_v51 = vpop.f32.mrb[229].mxu0  ;;  %v31861_v0 = vmax.f32 %v27248_v35, %v31860_v13  ;;  %v15753_v35 = vld [vmem:[%s30703_s4 + $0xc0] sm:$0xff]  ;;  %v15746_v13 = vld [vmem:[%s30703_s4 + $0x88] sm:$0xff] }
 0x8bf   : > { %13239 = vmatmul.mubr.bf16.gmra.mrb[40].mxu1 %v21974_v28  ;;  %v11609_v47 = vpop.f32.mrb[230].mxu0  ;;  %v21980_v28 = vld [vmem:[%s30700_s1 + $0x1fc8] ss:$16 sps:$4 sm:$0xff]   ;;  %15883 = vperm.xlu0 %20360, %v15753_v35   ;;  %v21983_v35 = vld [vmem:[%s30700_s1 + $0x22a0] ss:$16 sps:$4 sm:$0xff]  }
 0x8c0   : > { %v28928_v56 = vmax.f32 %v31861_v0, %v11609_v47  ;;  %v11611_v51 = vpop.f32.mrb[231].mxu0  ;;  %18605 = vmatprep.mubr.msk.bf16.mxu1 %vm1498_vm0, %v21982_v37  ;;  %v15731_v47 = vld [vmem:[%s30703_s4 + $0x10] sm:$0xff] }
 0x8c1   : > { %15848 = vperm.xlu1 %20361, %v15746_v13   ;;  %v31865_v51 = vld [vmem:[#allocation66_spill] sm:$0xff]  ;;  %v15754_v13 = vld [vmem:[%s30703_s4 + $0xc8] sm:$0xff]  ;;  %v21991_v0 = vld [vmem:[%s30700_s1 + $0x22c4] ss:$16 sps:$4 sm:$0xff]  }
 0x8c2   : > { %31862 = vst [vmem:[#allocation75_spill] sm:$0xff] %v28928_v56  ;;  %v28931_v4 = vpop.f32.mrb[192].mxu1  ;;  %14480 = vmatmul.mubr.bf16.gmra.mrb[80].mxu0 %v21977_v6  ;;  %v21988_v6 = vld [vmem:[%s30700_s1 + $0x1fec] ss:$16 sps:$4 sm:$0xff]  }
 0x8c3   : > { %31863 = vst [vmem:[#allocation47_spill] sm:$0xff] %v28931_v4  ;;  %v13034_v32 = vpop.f32.mrb[193].mxu1  ;;  %14487 = vmatprep.mubr.bf16.mxu0 %v21985_v49  ;;  %15773 = vperm.xlu0 %20360, %v15731_v47  }
 0x8c4   : > { %v28944_v60 = vpop.f32.mrb[194].mxu1  ;;  %v31866_v32 = vmax.f32 %v27270_v25, %v31865_v51 }
 0x8c5   : > { %31864 = vst [vmem:[#allocation56_spill] sm:$0xff] %v28944_v60  ;;  %v11614_v34 = vpop.f32.mrb[232].mxu0  ;;  %v13037_v49 = vpop.f32.mrb[195].mxu1  ;;  %v31867_v60 = vld [vmem:[#allocation94_spill] sm:$0xff]  ;;  %15888 = vperm.xlu1 %20361, %v15754_v13  }
 0x8c6   : > { %v28957_v37 = vmax.f32 %v31866_v32, %v11614_v34  ;;  %v11616_v4 = vpop.f32.mrb[233].mxu0  ;;  %v31868_v25 = vmax.f32 %v27279_v27, %v31867_v60  ;;  %v15739_v27 = vld [vmem:[%s30703_s4 + $0x50] sm:$0xff]  ;;  %v15732_v60 = vld [vmem:[%s30703_s4 + $0x18] sm:$0xff] }
 0x8c7   : > { %13247 = vmatmul.mubr.bf16.gmra.mrb[44].mxu1 %v21980_v28  ;;  %v11617_v49 = vpop.f32.mrb[234].mxu0  ;;  %v21986_v28 = vld [vmem:[%s30700_s1 + $0x1fe8] ss:$16 sps:$4 sm:$0xff]   ;;  %15813 = vperm.xlu0 %20360, %v15739_v27   ;;  %v21989_v27 = vld [vmem:[%s30700_s1 + $0x22c0] ss:$16 sps:$4 sm:$0xff]  }
 0x8c8   : > { %v28971_v34 = vmax.f32 %v31868_v25, %v11617_v49  ;;  %v11619_v4 = vpop.f32.mrb[235].mxu0  ;;  %18606 = vmatprep.mubr.msk.bf16.mxu1 %vm1498_vm0, %v21988_v6  ;;  %v31871_v25 = vld [vmem:[#allocation69_spill] sm:$0xff]  ;;  %v31873_v6 = vld [vmem:[#allocation23_spill] sm:$0xff] }
 0x8c9   : > { %15778 = vperm.xlu1 %20361, %v15732_v60   ;;  %v31872_v4 = vmax.f32 %v27301_v15, %v31871_v25  ;;  %v15740_v60 = vld [vmem:[%s30703_s4 + $0x58] sm:$0xff]  ;;  %v21994_v49 = vld [vmem:[%s30700_s1 + $0x22e4] ss:$16 sps:$4 sm:$0xff]   ;;  %v31874_v15 = vmax.f32 %v27309_v54, %v31873_v6 }
 0x8ca   : > { %31869 = vst [vmem:[#allocation17_spill] sm:$0xff] %v28971_v34  ;;  %v28974_v51 = vpop.f32.mrb[196].mxu1  ;;  %14488 = vmatmul.mubr.bf16.gmra.mrb[84].mxu0 %v21983_v35  ;;  %v21997_v54 = vld [vmem:[%s30700_s1 + $0x2304] ss:$16 sps:$4 sm:$0xff]  }
 0x8cb   : > { %v13042_v32 = vpop.f32.mrb[197].mxu1  ;;  %14495 = vmatprep.mubr.bf16.mxu0 %v21991_v0  ;;  %v15747_v0 = vld [vmem:[%s30703_s4 + $0x90] sm:$0xff] }
 0x8cc   : > { %v28987_v47 = vpop.f32.mrb[198].mxu1  ;;  %15853 = vperm.xlu0 %20360, %v15747_v0  }
 0x8cd   : > { %31870 = vst [vmem:[#allocation59_spill] sm:$0xff] %v28987_v47  ;;  %v11622_v35 = vpop.f32.mrb[236].mxu0  ;;  %v13045_v13 = vpop.f32.mrb[199].mxu1  ;;  %15818 = vperm.xlu1 %20361, %v15740_v60   ;;  %v15748_v47 = vld [vmem:[%s30703_s4 + $0x98] sm:$0xff] }
 0x8ce   : > { %v28997_v32 = vmax.f32 %v31872_v4, %v11622_v35  ;;  %v11624_v57 = vpop.f32.mrb[237].mxu0 }
 0x8cf   : > { %13255 = vmatmul.mubr.bf16.gmra.mrb[48].mxu1 %v21986_v28  ;;  %v11625_v13 = vpop.f32.mrb[238].mxu0  ;;  %v15755_v28 = vld [vmem:[%s30703_s4 + $0xd0] sm:$0xff] }
 0x8d0   : > { %v29011_v35 = vmax.f32 %v31874_v15, %v11625_v13  ;;  %v11627_v57 = vpop.f32.mrb[239].mxu0  ;;  %15893 = vperm.xlu0 %20360, %v15755_v28   ;;  %v31878_v13 = vld [vmem:[#allocation48_spill] sm:$0xff] }
 0x8d1   : > { %15858 = vperm.xlu1 %20361, %v15748_v47   ;;  %v31879_v15 = vmax.f32 %v27331_v9, %v31878_v13  ;;  %v21992_v28 = vld [vmem:[%s30700_s1 + $0x22e0] ss:$16 sps:$4 sm:$0xff]   ;;  %v15756_v47 = vld [vmem:[%s30703_s4 + $0xd8] sm:$0xff] }
 0x8d2   : > { %31875 = vst [vmem:[#allocation49_spill] sm:$0xff] %v29011_v35  ;;  %v29013_v25 = vpop.f32.mrb[200].mxu1  ;;  %14496 = vmatmul.mubr.bf16.gmra.mrb[88].mxu0 %v21989_v27  ;;  %v31880_v27 = vld [vmem:[#allocation95_spill] sm:$0xff] }
 0x8d3   : > { %31876 = vst [vmem:[#allocation77_spill] sm:$0xff] %v29013_v25  ;;  %v13050_v4 = vpop.f32.mrb[201].mxu1  ;;  %14503 = vmatprep.mubr.bf16.mxu0 %v21994_v49  ;;  %v15733_v49 = vld [vmem:[%s30703_s4 + $0x20] sm:$0xff] }
 0x8d4   : > { %v29023_v6 = vpop.f32.mrb[202].mxu1  ;;  %15783 = vperm.xlu0 %20360, %v15733_v49   ;;  %v29061_v49 = vpop.permute.xlu0 %15267 }
 0x8d5   : > { %31877 = vst [vmem:[#allocation89_spill] sm:$0xff] %v29023_v6  ;;  %v11630_v0 = vpop.f32.mrb[240].mxu0  ;;  %v13053_v60 = vpop.f32.mrb[203].mxu1  ;;  %v31881_v6 = vmax.f32 %v27340_v45, %v31880_v27  ;;  %15898 = vperm.xlu1 %20361, %v15756_v47   ;;  %31885 = vst [vmem:[#allocation18_spill] sm:$0xff] %v29061_v49  ;;  %v22000_v49 = vld [vmem:[%s30700_s1 + $0x2324] ss:$16 sps:$4 sm:$0xff]  }
 0x8d6   : > { %v29033_v57 = vmax.f32 %v31879_v15, %v11630_v0  ;;  %v11632_v4 = vpop.f32.mrb[241].mxu0  ;;  %v31889_v47 = vld [vmem:[#allocation13_spill] sm:$0xff] }
 0x8d7   : > { %v11633_v60 = vpop.f32.mrb[242].mxu0  ;;  %v15741_v4 = vld [vmem:[%s30703_s4 + $0x60] sm:$0xff] }
 0x8d8   : > { %v29047_v9 = vmax.f32 %v31881_v6, %v11633_v60  ;;  %v11635_v0 = vpop.f32.mrb[243].mxu0  ;;  %15823 = vperm.xlu0 %20360, %v15741_v4   ;;  %v31886_v60 = vld [vmem:[#allocation43_spill] sm:$0xff] }
 0x8d9   : > { %15788 = vperm.xlu1 %20361, %v15734_v3   ;;  %v31887_v0 = vld [vmem:[#allocation73_spill] sm:$0xff]  ;;  %v15742_v3 = vld [vmem:[%s30703_s4 + $0x68] sm:$0xff] }
 0x8da   : > { %31882 = vst [vmem:[#allocation78_spill] sm:$0xff] %v29047_v9  ;;  %v29049_v13 = vpop.f32.mrb[204].mxu1  ;;  %14504 = vmatmul.mubr.bf16.gmra.mrb[92].mxu0 %v21992_v28  ;;  %v21995_v4 = vld [vmem:[%s30700_s1 + $0x2300] ss:$16 sps:$4 sm:$0xff]  }
 0x8db   : > { %31883 = vst [vmem:[#allocation37_spill] sm:$0xff] %v29049_v13  ;;  %v13058_v15 = vpop.f32.mrb[205].mxu1  ;;  %14511 = vmatprep.mubr.bf16.mxu0 %v21997_v54  ;;  %v15749_v54 = vld [vmem:[%s30703_s4 + $0xa0] sm:$0xff] }
 0x8dc   : > { %v29059_v6 = vpop.f32.mrb[206].mxu1  ;;  %v31888_v15 = vmax.f32 %v31886_v60, %v31887_v0  ;;  %15863 = vperm.xlu0 %20360, %v15749_v54   ;;  %v15757_v13 = vld [vmem:[%s30703_s4 + $0xe0] sm:$0xff] }
 0x8dd   : > { %31884 = vst [vmem:[#allocation79_spill] sm:$0xff] %v29059_v6  ;;  %v11638_v27 = vpop.f32.mrb[244].mxu0  ;;  %v13061_v28 = vpop.f32.mrb[207].mxu1  ;;  %v31890_v6 = vld [vmem:[#allocation96_spill] sm:$0xff]  ;;  %15828 = vperm.xlu1 %20361, %v15742_v3  }
 0x8de   : > { %v29071_v25 = vmax.f32 %v31888_v15, %v11638_v27  ;;  %v11640_v45 = vpop.f32.mrb[245].mxu0  ;;  %v31891_v50 = vmax.f32 %v31889_v47, %v31890_v6  ;;  %v29089_v15 = vpop.permute.xlu0 %15272  ;;  %v15750_v6 = vld [vmem:[%s30703_s4 + $0xa8] sm:$0xff]  ;;  %v15735_v3 = vld [vmem:[%s30703_s4 + $0x30] sm:$0xff] }
 0x8df   : > { %v11641_v28 = vpop.f32.mrb[246].mxu0  ;;  %31894 = vst [vmem:[#allocation80_spill] sm:$0xff] %v29089_v15  ;;  %v29101_v47 = vpop.permute.xlu1 %15187 }
 0x8e0   : > { %v29085_v60 = vmax.f32 %v31891_v50, %v11641_v28  ;;  %v11643_v27 = vpop.f32.mrb[247].mxu0  ;;  %15903 = vperm.xlu0 %20360, %v15757_v13   ;;  %v21998_v13 = vld [vmem:[%s30700_s1 + $0x2320] ss:$16 sps:$4 sm:$0xff]  }
 0x8e1   : > { %15868 = vperm.xlu1 %20361, %v15750_v6   ;;  %v31896_v27 = vld [vmem:[#allocation33_spill] sm:$0xff]  ;;  %v15758_v6 = vld [vmem:[%s30703_s4 + $0xe8] sm:$0xff] }
 0x8e2   : > { %31892 = vst [vmem:[#allocation27_spill] sm:$0xff] %v29085_v60  ;;  %v29087_v45 = vpop.f32.mrb[208].mxu1  ;;  %14512 = vmatmul.mubr.bf16.gmra.mrb[96].mxu0 %v21995_v4  ;;  %v31900_v28 = vld [vmem:[#allocation85_spill] sm:$0xff] }
 0x8e3   : > { %31893 = vst [vmem:[#allocation50_spill] sm:$0xff] %v29087_v45  ;;  %v13066_v0 = vpop.f32.mrb[209].mxu1  ;;  %14519 = vmatprep.mubr.bf16.mxu0 %v22000_v49  ;;  %v22003_v45 = vld [vmem:[%s30700_s1 + $0x2344] ss:$16 sps:$4 sm:$0xff]   ;;  %v29131_v48 = vpop.permute.xlu1 %15192 }
 0x8e4   : > { %v29099_v54 = vpop.f32.mrb[210].mxu1  ;;  %v31897_v0 = vld [vmem:[#allocation55_spill] sm:$0xff]  ;;  %15793 = vperm.xlu0 %20360, %v15735_v3  }
 0x8e5   : > { %31895 = vst [vmem:[#allocation90_spill] sm:$0xff] %v29099_v54  ;;  %v11646_v4 = vpop.f32.mrb[248].mxu0  ;;  %v13069_v49 = vpop.f32.mrb[211].mxu1  ;;  %v31898_v15 = vmax.f32 %v31896_v27, %v31897_v0  ;;  %v31901_v54 = vld [vmem:[#allocation24_spill] sm:$0xff]  ;;  %15908 = vperm.xlu1 %20361, %v15758_v6   ;;  %v31911_v6 = vld [vmem:[#allocation14_spill] sm:$0xff] }
 0x8e6   : > { %v11648_v50 = vpop.f32.mrb[249].mxu0  ;;  %v31902_v26 = vmax.f32 %v31900_v28, %v31901_v54  ;;  %v22006_v54 = vld [vmem:[%s30700_s1 + $0x2364] ss:$16 sps:$4 sm:$0xff]  }
 0x8e7   : > { %v29111_v40 = vmax.f32 %v31898_v15, %v11646_v4  ;;  %v11649_v49 = vpop.f32.mrb[250].mxu0  ;;  %v29129_v4 = vpop.permute.xlu0 %15277 }
 0x8e8   : > { %v29125_v27 = vmax.f32 %v31902_v26, %v11649_v49  ;;  %v11651_v15 = vpop.f32.mrb[251].mxu0  ;;  %31905 = vst [vmem:[#allocation19_spill] sm:$0xff] %v29129_v4  ;;  %v15736_v26 = vld [vmem:[%s30703_s4 + $0x38] sm:$0xff]  ;;  %15833 = vperm.xlu0 %20360, %v15743_v30   ;;  %v31907_v49 = vld [vmem:[#allocation44_spill] sm:$0xff] }
 0x8e9   : > { %31899 = vst [vmem:[#allocation28_spill] sm:$0xff] %v29111_v40  ;;  %15798 = vperm.xlu1 %20361, %v15736_v26   ;;  %v31908_v15 = vld [vmem:[#allocation76_spill] sm:$0xff]  ;;  %v15744_v26 = vld [vmem:[%s30703_s4 + $0x78] sm:$0xff] }
 0x8ea   : > { %31903 = vst [vmem:[#allocation53_spill] sm:$0xff] %v29125_v27  ;;  %v29127_v50 = vpop.f32.mrb[212].mxu1  ;;  %14520 = vmatmul.mubr.bf16.gmra.mrb[100].mxu0 %v21998_v13  ;;  %v22001_v30 = vld [vmem:[%s30700_s1 + $0x2340] ss:$16 sps:$4 sm:$0xff]  }
 0x8eb   : > { %31904 = vst [vmem:[#allocation9_spill] sm:$0xff] %v29127_v50  ;;  %v13074_v0 = vpop.f32.mrb[213].mxu1  ;;  %14527 = vmatprep.mubr.bf16.mxu0 %v22003_v45  ;;  %v15751_v45 = vld [vmem:[%s30703_s4 + $0xb0] sm:$0xff]  ;;  %v16631_v50 = vld [vmem:[%s30705_s6] sm:$0xff] }
 0x8ec   : > { %v29141_v3 = vpop.f32.mrb[214].mxu1  ;;  %v31909_v0 = vmax.f32 %v31907_v49, %v31908_v15  ;;  %15873 = vperm.xlu0 %20360, %v15751_v45   ;;  %v29169_v15 = vpop.permute.xlu1 %15282 }
 0x8ed   : > { %31906 = vst [vmem:[#allocation29_spill] sm:$0xff] %v29141_v3  ;;  %v11654_v28 = vpop.f32.mrb[252].mxu0  ;;  %v13077_v13 = vpop.f32.mrb[215].mxu1  ;;  %v31912_v3 = vld [vmem:[#allocation97_spill] sm:$0xff]  ;;  %31915 = vst [vmem:[#allocation91_spill] sm:$0xff] %v29169_v15  ;;  %15838 = vperm.xlu1 %20361, %v15744_v26  }
 0x8ee   : > { %v29151_v4 = vmax.f32 %v31909_v0, %v11654_v28  ;;  %v11656_v58 = vpop.f32.mrb[253].mxu0  ;;  %v31913_v14 = vmax.f32 %v31911_v6, %v31912_v3  ;;  %v15752_v3 = vld [vmem:[%s30703_s4 + $0xb8] sm:$0xff] }
 0x8ef   : > { %v11657_v13 = vpop.f32.mrb[254].mxu0  ;;  %v29167_v58 = vpop.permute.xlu0 %15197 }
 0x8f0   : > { %31910 = vst [vmem:[#allocation54_spill] sm:$0xff] %v29151_v4  ;;  %v29165_v49 = vmax.f32 %v31913_v14, %v11657_v13  ;;  %v11659_v28 = vpop.f32.mrb[255].mxu0  ;;  %v15759_v14 = vld [vmem:[%s30703_s4 + $0xf0] sm:$0xff]  ;;  %v15760_v13 = vld [vmem:[%s30703_s4 + $0xf8] sm:$0xff] }
 0x8f1   : > { %15913 = vperm.xlu0 %20360, %v15759_v14   ;;  %15878 = vperm.xlu1 %20361, %v15752_v3   ;;  %v22009_v28 = vld [vmem:[%s30700_s1 + $0x2384] ss:$16 sps:$4 sm:$0xff]   ;;  %v29199_v14 = vpop.permute.xlu1 %15202 }
 0x8f2   : > { %31914 = vst [vmem:[#allocation81_spill] sm:$0xff] %v29165_v49  ;;  %v29171_v0 = vpop.f32.mrb[216].mxu1  ;;  %14528 = vmatmul.mubr.bf16.gmra.mrb[104].mxu0 %v22001_v30 }
 0x8f3   : > { %v13082_v24 = vpop.f32.mrb[217].mxu1  ;;  %14535 = vmatprep.mubr.bf16.mxu0 %v22006_v54  ;;  %v22004_v54 = vld [vmem:[%s30700_s1 + $0x2360] ss:$16 sps:$4 sm:$0xff]   ;;  %v29191_v26 = vpop.permute.xlu0 %15287 }
 0x8f4   : > { %v29181_v45 = vpop.f32.mrb[218].mxu1  ;;  %v16647_v24 = vld [vmem:[%s30705_s6 + $0x80] sm:$0xff]  ;;  %31917 = vst [vmem:[#allocation20_spill] sm:$0xff] %v29191_v26  ;;  %v16648_v26 = vld [vmem:[%s30705_s6 + $0x88] sm:$0xff] }
 0x8f5   : > { %31916 = vst [vmem:[#allocation57_spill] sm:$0xff] %v29181_v45  ;;  %v13085_v30 = vpop.f32.mrb[219].mxu1  ;;  %16745 = vperm.xlu0 %20360, %v16647_v24   ;;  %15918 = vperm.xlu1 %20361, %v15760_v13  }
 0x8f6   : > { %v29217_v30 = vpop.permute.xlu1 %15292 }
 0x8f7   : > { %v29213_v24 = vpop.permute.xlu0 %15207  ;;  %31920 = vst [vmem:[#allocation61_spill] sm:$0xff] %v29217_v30 }
 0x8f9   : > { %16665 = vperm.xlu0 %20360, %v16631_v50   ;;  %16750 = vperm.xlu1 %20361, %v16648_v26   ;;  %v22012_v50 = vld [vmem:[%s30700_s1 + $0x23a4] ss:$16 sps:$4 sm:$0xff]  }
 0x8fa   : > { %v29201_v3 = vpop.f32.mrb[220].mxu1  ;;  %14536 = vmatmul.mubr.bf16.gmra.mrb[108].mxu0 %v22004_v54  ;;  %v16634_v54 = vld [vmem:[%s30705_s6 + $0x18] sm:$0xff] }
 0x8fb   : > { %31918 = vst [vmem:[#allocation58_spill] sm:$0xff] %v29201_v3  ;;  %v13090_v6 = vpop.f32.mrb[221].mxu1  ;;  %14543 = vmatprep.mubr.bf16.mxu0 %v22009_v28  ;;  %v22007_v28 = vld [vmem:[%s30700_s1 + $0x2380] ss:$16 sps:$4 sm:$0xff]   ;;  %v16632_v3 = vld [vmem:[%s30705_s6 + $0x8] sm:$0xff]  ;;  %v29233_v26 = vpop.permute.xlu0 %15297 }
 0x8fc   : > { %v29211_v15 = vpop.f32.mrb[222].mxu1  ;;  %v16649_v6 = vld [vmem:[%s30705_s6 + $0x90] sm:$0xff]  ;;  %31922 = vst [vmem:[#allocation62_spill] sm:$0xff] %v29233_v26 }
 0x8fd   : > { %31919 = vst [vmem:[#allocation92_spill] sm:$0xff] %v29211_v15  ;;  %v13093_v13 = vpop.f32.mrb[223].mxu1  ;;  %16755 = vperm.xlu0 %20360, %v16649_v6   ;;  %16670 = vperm.xlu1 %20361, %v16632_v3   ;;  %v29237_v15 = vpop.permute.xlu1 %15212  ;;  %v16650_v3 = vld [vmem:[%s30705_s6 + $0x98] sm:$0xff] }
 0x901   : > { %16675 = vperm.xlu0 %20360, %v16633_v22   ;;  %16760 = vperm.xlu1 %20361, %v16650_v3   ;;  %v22015_v22 = vld [vmem:[%s30700_s1 + $0x23c4] ss:$16 sps:$4 sm:$0xff]  }
 0x902   : > { %v29231_v13 = vpop.f32.mrb[224].mxu1  ;;  %14544 = vmatmul.mubr.bf16.gmra.mrb[112].mxu0 %v22007_v28 }
 0x903   : > { %31921 = vst [vmem:[#allocation21_spill] sm:$0xff] %v29231_v13  ;;  %v13098_v30 = vpop.f32.mrb[225].mxu1  ;;  %14551 = vmatprep.mubr.bf16.mxu0 %v22012_v50  ;;  %v22010_v50 = vld [vmem:[%s30700_s1 + $0x23a0] ss:$16 sps:$4 sm:$0xff]   ;;  %v29261_v13 = vpop.permute.xlu0 %15217 }
 0x904   : > { %v29245_v6 = vpop.f32.mrb[226].mxu1  ;;  %v16651_v30 = vld [vmem:[%s30705_s6 + $0xa0] sm:$0xff] }
 0x905   : > { %31923 = vst [vmem:[#allocation93_spill] sm:$0xff] %v29245_v6  ;;  %v13101_v26 = vpop.f32.mrb[227].mxu1  ;;  %16765 = vperm.xlu0 %20360, %v16651_v30   ;;  %16680 = vperm.xlu1 %20361, %v16634_v54  }
 0x906   : > { %v29263_v26 = vpop.permute.xlu1 %15302 }
 0x907   : > { %31924 = vst [vmem:[#allocation65_spill] sm:$0xff] %v29263_v26  ;;  %v29285_v28 = vpop.permute.xlu0 %15307  ;;  %v16661_v26 = vld [vmem:[%s30705_s6 + $0xf0] sm:$0xff] }
 0x908   : > { %31927 = vst [vmem:[#allocation94_spill] sm:$0xff] %v29285_v28  ;;  %v16654_v28 = vld [vmem:[%s30705_s6 + $0xb8] sm:$0xff] }
 0x909   : > { %16685 = vperm.xlu0 %20360, %v16635_v19   ;;  %16770 = vperm.xlu1 %20361, %v16652_v43   ;;  %v22018_v19 = vld [vmem:[%s30700_s1 + $0x23e4] ss:$16 sps:$4 sm:$0xff]  }
 0x90a   : > { %v29265_v3 = vpop.f32.mrb[228].mxu1  ;;  %14552 = vmatmul.mubr.bf16.gmra.mrb[116].mxu0 %v22010_v50 }
 0x90b   : > { %31925 = vst [vmem:[#allocation22_spill] sm:$0xff] %v29265_v3  ;;  %v13106_v6 = vpop.f32.mrb[229].mxu1  ;;  %14559 = vmatprep.mubr.bf16.mxu0 %v22015_v22  ;;  %v22013_v22 = vld [vmem:[%s30700_s1 + $0x23c0] ss:$16 sps:$4 sm:$0xff]   ;;  %v16636_v3 = vld [vmem:[%s30705_s6 + $0x28] sm:$0xff] }
 0x90c   : > { %v29275_v30 = vpop.f32.mrb[230].mxu1  ;;  %v16653_v6 = vld [vmem:[%s30705_s6 + $0xb0] sm:$0xff] }
 0x90d   : > { %31926 = vst [vmem:[#allocation66_spill] sm:$0xff] %v29275_v30  ;;  %v13109_v50 = vpop.f32.mrb[231].mxu1  ;;  %16775 = vperm.xlu0 %20360, %v16653_v6   ;;  %16690 = vperm.xlu1 %20361, %v16636_v3   ;;  %v29307_v6 = vpop.permute.xlu0 %15227 }
 0x90e   : > { %v29293_v50 = vpop.permute.xlu1 %15222 }
 0x911   : > { %16695 = vperm.xlu0 %20360, %v16637_v5   ;;  %16780 = vperm.xlu1 %20361, %v16654_v28   ;;  %v22021_v5 = vld [vmem:[%s30700_s1 + $0x200c] ss:$16 sps:$4 sm:$0xff]   ;;  %v29327_v28 = vpop.permute.xlu0 %15317 }
 0x912   : > { %v29295_v43 = vpop.f32.mrb[232].mxu1  ;;  %14560 = vmatmul.mubr.bf16.gmra.mrb[120].mxu0 %v22013_v22  ;;  %v29311_v54 = vpop.permute.xlu1 %15312  ;;  %31932 = vst [vmem:[#allocation43_spill] sm:$0xff] %v29327_v28 }
 0x913   : > { %31928 = vst [vmem:[#allocation69_spill] sm:$0xff] %v29295_v43  ;;  %v13114_v30 = vpop.f32.mrb[233].mxu1  ;;  %14567 = vmatprep.mubr.bf16.mxu0 %v22018_v19  ;;  %31930 = vst [vmem:[#allocation48_spill] sm:$0xff] %v29311_v54  ;;  %v22016_v19 = vld [vmem:[%s30700_s1 + $0x23e0] ss:$16 sps:$4 sm:$0xff]   ;;  %v16638_v43 = vld [vmem:[%s30705_s6 + $0x38] sm:$0xff] }
 0x914   : > { %v29305_v33 = vpop.f32.mrb[234].mxu1  ;;  %v16655_v30 = vld [vmem:[%s30705_s6 + $0xc0] sm:$0xff] }
 0x915   : > { %31929 = vst [vmem:[#allocation23_spill] sm:$0xff] %v29305_v33  ;;  %v13117_v22 = vpop.f32.mrb[235].mxu1  ;;  %16785 = vperm.xlu0 %20360, %v16655_v30   ;;  %16700 = vperm.xlu1 %20361, %v16638_v43   ;;  %v16656_v43 = vld [vmem:[%s30705_s6 + $0xc8] sm:$0xff]  ;;  %v29356_v18 = vpop.permute.xlu0 %15237 }
 0x916   : > { %v29332_v41 = vpop.permute.xlu1 %15232 }
 0x919   : > { %16705 = vperm.xlu0 %20360, %v16639_v31   ;;  %16790 = vperm.xlu1 %20361, %v16656_v43   ;;  %v22024_v31 = vld [vmem:[%s30700_s1 + $0x202c] ss:$16 sps:$4 sm:$0xff]  }
 0x91a   : > { %v29325_v22 = vpop.f32.mrb[236].mxu1  ;;  %14568 = vmatmul.mubr.bf16.gmra.mrb[124].mxu0 %v22016_v19  ;;  %v29381_v19 = vpop.permute.xlu0 %15327 }
 0x91b   : > { %31931 = vst [vmem:[#allocation95_spill] sm:$0xff] %v29325_v22  ;;  %v13122_v33 = vpop.f32.mrb[237].mxu1  ;;  %18735 = vmatprep.mubr.msk.bf16.mxu0 %vm1498_vm0, %v22021_v5  ;;  %v22019_v5 = vld [vmem:[%s30700_s1 + $0x2008] ss:$16 sps:$4 sm:$0xff]   ;;  %31937 = vst [vmem:[#allocation55_spill] sm:$0xff] %v29381_v19 }
 0x91c   : > { %v29340_v30 = vpop.f32.mrb[238].mxu1  ;;  %v16657_v33 = vld [vmem:[%s30705_s6 + $0xd0] sm:$0xff]  ;;  %v16640_v22 = vld [vmem:[%s30705_s6 + $0x48] sm:$0xff] }
 0x91d   : > { %31933 = vst [vmem:[#allocation73_spill] sm:$0xff] %v29340_v30  ;;  %v13125_v3 = vpop.f32.mrb[239].mxu1  ;;  %16795 = vperm.xlu0 %20360, %v16657_v33   ;;  %16710 = vperm.xlu1 %20361, %v16640_v22   ;;  %v16658_v33 = vld [vmem:[%s30705_s6 + $0xd8] sm:$0xff] }
 0x91e   : > { %v29358_v3 = vpop.permute.xlu1 %15322 }
 0x91f   : > { %31934 = vst [vmem:[#allocation13_spill] sm:$0xff] %v29358_v3 }
 0x921   : > { %16715 = vperm.xlu0 %20360, %v16641_v39   ;;  %16800 = vperm.xlu1 %20361, %v16658_v33   ;;  %v22027_v39 = vld [vmem:[%s30700_s1 + $0x204c] ss:$16 sps:$4 sm:$0xff]   ;;  %v16643_v33 = vld [vmem:[%s30705_s6 + $0x60] sm:$0xff] }
 0x922   : > { %v29360_v43 = vpop.f32.mrb[240].mxu1  ;;  %14609 = vmatmul.mubr.bf16.vlgmr.msra.gmra.mrb[0].mxu0 %v22019_v5 }
 0x923   : > { %31935 = vst [vmem:[#allocation96_spill] sm:$0xff] %v29360_v43  ;;  %v13130_v30 = vpop.f32.mrb[241].mxu1  ;;  %18736 = vmatprep.mubr.msk.bf16.mxu0 %vm1498_vm0, %v22024_v31  ;;  %v22022_v31 = vld [vmem:[%s30700_s1 + $0x2028] ss:$16 sps:$4 sm:$0xff]  }
 0x924   : > { %v29371_v28 = vpop.f32.mrb[242].mxu1  ;;  %v16659_v30 = vld [vmem:[%s30705_s6 + $0xe0] sm:$0xff]  ;;  %v16642_v43 = vld [vmem:[%s30705_s6 + $0x58] sm:$0xff] }
 0x925   : > { %31936 = vst [vmem:[#allocation33_spill] sm:$0xff] %v29371_v28  ;;  %v13133_v5 = vpop.f32.mrb[243].mxu1  ;;  %16805 = vperm.xlu0 %20360, %v16659_v30   ;;  %16720 = vperm.xlu1 %20361, %v16642_v43   ;;  %v16660_v28 = vld [vmem:[%s30705_s6 + $0xe8] sm:$0xff]  ;;  %v29404_v43 = vpop.permute.xlu0 %15247 }
 0x926   : > { %v29389_v5 = vpop.permute.xlu1 %15242 }
 0x929   : > { %16725 = vperm.xlu0 %20360, %v16643_v33   ;;  %16810 = vperm.xlu1 %20361, %v16660_v28   ;;  %v22030_v33 = vld [vmem:[%s30700_s1 + $0x206c] ss:$16 sps:$4 sm:$0xff]   ;;  %v29427_v3 = vpop.permute.xlu0 %15337 }
 0x92a   : > { %v29394_v22 = vpop.f32.mrb[244].mxu1  ;;  %14617 = vmatmul.mubr.bf16.gmra.mrb[4].mxu0 %v22022_v31  ;;  %v29408_v31 = vpop.permute.xlu1 %15332  ;;  %31943 = vst [vmem:[#allocation14_spill] sm:$0xff] %v29427_v3  ;;  %v17209_v3 = vld [vmem:[#allocation3] sm:$0x1] }
 0x92b   : > { %31938 = vst [vmem:[#allocation85_spill] sm:$0xff] %v29394_v22  ;;  %v13138_v38 = vpop.f32.mrb[245].mxu1  ;;  %18737 = vmatprep.mubr.msk.bf16.mxu0 %vm1498_vm0, %v22027_v39  ;;  %31941 = vst [vmem:[#allocation44_spill] sm:$0xff] %v29408_v31  ;;  %v16644_v39 = vld [vmem:[%s30705_s6 + $0x68] sm:$0xff] }
 0x92c   : > { %v29402_v19 = vpop.f32.mrb[246].mxu1  ;;  %v22025_v38 = vld [vmem:[%s30700_s1 + $0x2048] ss:$16 sps:$4 sm:$0xff]  }
 0x92d   : > { %31939 = vst [vmem:[#allocation24_spill] sm:$0xff] %v29402_v19  ;;  %v13141_v54 = vpop.f32.mrb[247].mxu1  ;;  %16815 = vperm.xlu0 %20360, %v16661_v26   ;;  %16730 = vperm.xlu1 %20361, %v16644_v39   ;;  %v29450_v30 = vpop.permute.xlu0 %15257 }
 0x92e   : > { %v16645_v54 = vld [vmem:[%s30705_s6 + $0x70] sm:$0xff]  ;;  %v29435_v26 = vpop.permute.xlu1 %15252 }
 0x931   : > { %16735 = vperm.xlu0 %20360, %v16645_v54   ;;  %16820 = vperm.xlu1 %20361, %v16662_v8  }
 0x932   : > { %v29425_v28 = vpop.f32.mrb[248].mxu1  ;;  %14625 = vmatmul.mubr.bf16.gmra.mrb[8].mxu0 %v22025_v38  ;;  %v29452_v54 = vpop.permute.xlu1 %15342 }
 0x933   : > { %31942 = vst [vmem:[#allocation76_spill] sm:$0xff] %v29425_v28  ;;  %v13146_v22 = vpop.f32.mrb[249].mxu1  ;;  %18738 = vmatprep.mubr.msk.bf16.mxu0 %vm1498_vm0, %v22030_v33  ;;  %v22033_v33 = vld [vmem:[%s30700_s1 + $0x208c] ss:$16 sps:$4 sm:$0xff]   ;;  %v22034_v28 = vld [vmem:[%s30700_s1 + $0x20a8] ss:$16 sps:$4 sm:$0xff]  }
 0x934   : > { %v29437_v39 = vpop.f32.mrb[250].mxu1  ;;  %v16646_v22 = vld [vmem:[%s30705_s6 + $0x78] sm:$0xff] }
 0x935   : > { %31945 = vst [vmem:[#allocation97_spill] sm:$0xff] %v29437_v39  ;;  %v13149_v31 = vpop.f32.mrb[251].mxu1  ;;  %17212 = vperm.xlu0 %20360, %v17209_v3   ;;  %16740 = vperm.xlu1 %20361, %v16646_v22   ;;  %v22031_v3 = vld [vmem:[%s30700_s1 + $0x2088] ss:$16 sps:$4 sm:$0xff]  }
 0x93a   : > { %v29454_v8 = vpop.f32.mrb[252].mxu1  ;;  %14633 = vmatmul.mubr.bf16.gmra.mrb[12].mxu0 %v22028_v29  ;;  %v22036_v29 = vld [vmem:[%s30700_s1 + $0x20ac] ss:$16 sps:$4 sm:$0xff]  }
 0x93b   : > { %31947 = vst [vmem:[#allocation101_spill] sm:$0xff] %v29454_v8  ;;  %v13154_v39 = vpop.f32.mrb[253].mxu1  ;;  %18739 = vmatprep.mubr.msk.bf16.mxu0 %vm1498_vm0, %v22033_v33 }
 0x93c   : > { %v29459_v21 = vpop.f32.mrb[254].mxu1  ;;  %v31951_v39 = vld [vmem:[#allocation68_spill] sm:$0xff] }
 0x93d   : > { %31949 = vst [vmem:[#allocation102_spill] sm:$0xff] %v29459_v21  ;;  %v13157_v45 = vpop.f32.mrb[255].mxu1 }
 0x942   : > { %v29469_v22 = vpop.f32.mrb[0].mxu1  ;;  %14641 = vmatmul.mubr.bf16.gmra.mrb[16].mxu0 %v22031_v3  ;;  %v22039_v3 = vld [vmem:[%s30700_s1 + $0x20cc] ss:$16 sps:$4 sm:$0xff]  }
 0x943   : > { %v13162_v38 = vpop.f32.mrb[1].mxu1  ;;  %18740 = vmatprep.mubr.msk.bf16.mxu0 %vm1498_vm0, %v22036_v29 }
 0x944   : > { %v29474_v8 = vpop.f32.mrb[2].mxu1 }
 0x945   : > { %31952 = vst [vmem:[#allocation68_spill] sm:$0xff] %v29474_v8  ;;  %v13165_v21 = vpop.f32.mrb[3].mxu1  ;;  %v22037_v8 = vld [vmem:[%s30700_s1 + $0x20c8] ss:$16 sps:$4 sm:$0xff]  }
 0x94a   : > { %v29484_v31 = vpop.f32.mrb[4].mxu1  ;;  %14649 = vmatmul.mubr.bf16.gmra.mrb[20].mxu0 %v22034_v28  ;;  %v22042_v28 = vld [vmem:[%s30700_s1 + $0x20ec] ss:$16 sps:$4 sm:$0xff]  }
 0x94b   : > { %v13170_v29 = vpop.f32.mrb[5].mxu1  ;;  %18741 = vmatprep.mubr.msk.bf16.mxu0 %vm1498_vm0, %v22039_v3 }
 0x94c   : > { %v29489_v33 = vpop.f32.mrb[6].mxu1 }
 0x94d   : > { %31954 = vst [vmem:[#allocation103_spill] sm:$0xff] %v29489_v33  ;;  %v13173_v19 = vpop.f32.mrb[7].mxu1  ;;  %v22040_v33 = vld [vmem:[%s30700_s1 + $0x20e8] ss:$16 sps:$4 sm:$0xff]  }
 0x952   : > { %v29499_v45 = vpop.f32.mrb[8].mxu1  ;;  %14657 = vmatmul.mubr.bf16.gmra.mrb[24].mxu0 %v22037_v8  ;;  %v22045_v8 = vld [vmem:[%s30700_s1 + $0x210c] ss:$16 sps:$4 sm:$0xff]  }
 0x953   : > { %v13178_v29 = vpop.f32.mrb[9].mxu1  ;;  %18742 = vmatprep.mubr.msk.bf16.mxu0 %vm1498_vm0, %v22042_v28 }
 0x954   : > { %v29504_v38 = vpop.f32.mrb[10].mxu1 }
 0x955   : > { %31955 = vst [vmem:[#allocation104_spill] sm:$0xff] %v29504_v38  ;;  %v13181_v21 = vpop.f32.mrb[11].mxu1  ;;  %v22043_v38 = vld [vmem:[%s30700_s1 + $0x2108] ss:$16 sps:$4 sm:$0xff]  }
 0x95a   : > { %v29514_v11 = vpop.f32.mrb[12].mxu1  ;;  %14665 = vmatmul.mubr.bf16.gmra.mrb[28].mxu0 %v22040_v33  ;;  %v22048_v33 = vld [vmem:[%s30700_s1 + $0x212c] ss:$16 sps:$4 sm:$0xff]  }
 0x95b   : > { %v13186_v29 = vpop.f32.mrb[13].mxu1  ;;  %18743 = vmatprep.mubr.msk.bf16.mxu0 %vm1498_vm0, %v22045_v8 }
 0x95c   : > { %v29519_v3 = vpop.f32.mrb[14].mxu1 }
 0x95d   : > { %31956 = vst [vmem:[#allocation105_spill] sm:$0xff] %v29519_v3  ;;  %v13189_v19 = vpop.f32.mrb[15].mxu1  ;;  %v22046_v3 = vld [vmem:[%s30700_s1 + $0x2128] ss:$16 sps:$4 sm:$0xff]  }
 0x962   : > { %v29529_v44 = vpop.f32.mrb[16].mxu1  ;;  %14673 = vmatmul.mubr.bf16.gmra.mrb[32].mxu0 %v22043_v38  ;;  %v22051_v38 = vld [vmem:[%s30700_s1 + $0x214c] ss:$16 sps:$4 sm:$0xff]  }
 0x963   : > { %v13194_v29 = vpop.f32.mrb[17].mxu1  ;;  %18744 = vmatprep.mubr.msk.bf16.mxu0 %vm1498_vm0, %v22048_v33 }
 0x964   : > { %v29534_v28 = vpop.f32.mrb[18].mxu1 }
 0x965   : > { %31957 = vst [vmem:[#allocation106_spill] sm:$0xff] %v29534_v28  ;;  %v13197_v21 = vpop.f32.mrb[19].mxu1  ;;  %v22049_v28 = vld [vmem:[%s30700_s1 + $0x2148] ss:$16 sps:$4 sm:$0xff]  }
 0x96a   : > { %v29544_v62 = vpop.f32.mrb[20].mxu1  ;;  %14681 = vmatmul.mubr.bf16.gmra.mrb[36].mxu0 %v22046_v3  ;;  %v22054_v3 = vld [vmem:[%s30700_s1 + $0x216c] ss:$16 sps:$4 sm:$0xff]  }
 0x96b   : > { %v13202_v29 = vpop.f32.mrb[21].mxu1  ;;  %18745 = vmatprep.mubr.msk.bf16.mxu0 %vm1498_vm0, %v22051_v38 }
 0x96c   : > { %v29549_v8 = vpop.f32.mrb[22].mxu1 }
 0x96d   : > { %31958 = vst [vmem:[#allocation107_spill] sm:$0xff] %v29549_v8  ;;  %v13205_v19 = vpop.f32.mrb[23].mxu1  ;;  %v22052_v8 = vld [vmem:[%s30700_s1 + $0x2168] ss:$16 sps:$4 sm:$0xff]  }
 0x972   : > { %v29559_v46 = vpop.f32.mrb[24].mxu1  ;;  %14689 = vmatmul.mubr.bf16.gmra.mrb[40].mxu0 %v22049_v28  ;;  %v22057_v28 = vld [vmem:[%s30700_s1 + $0x218c] ss:$16 sps:$4 sm:$0xff]  }
 0x973   : > { %v13210_v29 = vpop.f32.mrb[25].mxu1  ;;  %18746 = vmatprep.mubr.msk.bf16.mxu0 %vm1498_vm0, %v22054_v3 }
 0x974   : > { %v29564_v33 = vpop.f32.mrb[26].mxu1 }
 0x975   : > { %31959 = vst [vmem:[#allocation108_spill] sm:$0xff] %v29564_v33  ;;  %v13213_v21 = vpop.f32.mrb[27].mxu1  ;;  %v22055_v33 = vld [vmem:[%s30700_s1 + $0x2188] ss:$16 sps:$4 sm:$0xff]  }
 0x97a   : > { %v29574_v10 = vpop.f32.mrb[28].mxu1  ;;  %14697 = vmatmul.mubr.bf16.gmra.mrb[44].mxu0 %v22052_v8  ;;  %v22060_v8 = vld [vmem:[%s30700_s1 + $0x21ac] ss:$16 sps:$4 sm:$0xff]  }
 0x97b   : > { %v13218_v29 = vpop.f32.mrb[29].mxu1  ;;  %18747 = vmatprep.mubr.msk.bf16.mxu0 %vm1498_vm0, %v22057_v28 }
 0x97c   : > { %v29579_v38 = vpop.f32.mrb[30].mxu1 }
 0x97d   : > { %31960 = vst [vmem:[#allocation109_spill] sm:$0xff] %v29579_v38  ;;  %v13221_v19 = vpop.f32.mrb[31].mxu1  ;;  %v22058_v38 = vld [vmem:[%s30700_s1 + $0x21a8] ss:$16 sps:$4 sm:$0xff]  }
 0x982   : > { %v29589_v56 = vpop.f32.mrb[32].mxu1  ;;  %14705 = vmatmul.mubr.bf16.gmra.mrb[48].mxu0 %v22055_v33  ;;  %v22063_v33 = vld [vmem:[%s30700_s1 + $0x21cc] ss:$16 sps:$4 sm:$0xff]  }
 0x983   : > { %v13226_v29 = vpop.f32.mrb[33].mxu1  ;;  %18748 = vmatprep.mubr.msk.bf16.mxu0 %vm1498_vm0, %v22060_v8 }
 0x984   : > { %v29594_v3 = vpop.f32.mrb[34].mxu1 }
 0x985   : > { %31961 = vst [vmem:[#allocation110_spill] sm:$0xff] %v29594_v3  ;;  %v13229_v21 = vpop.f32.mrb[35].mxu1  ;;  %v22061_v3 = vld [vmem:[%s30700_s1 + $0x21c8] ss:$16 sps:$4 sm:$0xff]  }
 0x98a   : > { %v29604_v34 = vpop.f32.mrb[36].mxu1  ;;  %14713 = vmatmul.mubr.bf16.gmra.mrb[52].mxu0 %v22058_v38  ;;  %v22066_v38 = vld [vmem:[%s30700_s1 + $0x21ec] ss:$16 sps:$4 sm:$0xff]  }
 0x98b   : > { %v13234_v29 = vpop.f32.mrb[37].mxu1  ;;  %18749 = vmatprep.mubr.msk.bf16.mxu0 %vm1498_vm0, %v22063_v33 }
 0x98c   : > { %v29609_v28 = vpop.f32.mrb[38].mxu1 }
 0x98d   : > { %31962 = vst [vmem:[#allocation111_spill] sm:$0xff] %v29609_v28  ;;  %v13237_v19 = vpop.f32.mrb[39].mxu1  ;;  %v22064_v28 = vld [vmem:[%s30700_s1 + $0x21e8] ss:$16 sps:$4 sm:$0xff]  }
 0x992   : > { %v29619_v35 = vpop.f32.mrb[40].mxu1  ;;  %14721 = vmatmul.mubr.bf16.gmra.mrb[56].mxu0 %v22061_v3  ;;  %v22069_v3 = vld [vmem:[%s30700_s1 + $0x220c] ss:$16 sps:$4 sm:$0xff]  }
 0x993   : > { %v13242_v29 = vpop.f32.mrb[41].mxu1  ;;  %18750 = vmatprep.mubr.msk.bf16.mxu0 %vm1498_vm0, %v22066_v38 }
 0x994   : > { %v29624_v8 = vpop.f32.mrb[42].mxu1 }
 0x995   : > { %31963 = vst [vmem:[#allocation112_spill] sm:$0xff] %v29624_v8  ;;  %v13245_v21 = vpop.f32.mrb[43].mxu1  ;;  %v22067_v8 = vld [vmem:[%s30700_s1 + $0x2208] ss:$16 sps:$4 sm:$0xff]  }
 0x99a   : > { %v29634_v9 = vpop.f32.mrb[44].mxu1  ;;  %14729 = vmatmul.mubr.bf16.gmra.mrb[60].mxu0 %v22064_v28  ;;  %v22072_v28 = vld [vmem:[%s30700_s1 + $0x222c] ss:$16 sps:$4 sm:$0xff]  }
 0x99b   : > { %31964 = vst [vmem:[#allocation113_spill] sm:$0xff] %v29634_v9  ;;  %v13250_v29 = vpop.f32.mrb[45].mxu1  ;;  %18751 = vmatprep.mubr.msk.bf16.mxu0 %vm1498_vm0, %v22069_v3 }
 0x99c   : > { %v29639_v33 = vpop.f32.mrb[46].mxu1 }
 0x99d   : > { %31965 = vst [vmem:[#allocation114_spill] sm:$0xff] %v29639_v33  ;;  %v13253_v19 = vpop.f32.mrb[47].mxu1  ;;  %v22070_v33 = vld [vmem:[%s30700_s1 + $0x2228] ss:$16 sps:$4 sm:$0xff]  }
 0x99e   : > { %v31968_v19 = vld [vmem:[#allocation87_spill] sm:$0xff] }
 0x99f   : > { %v31969_v3 = vmax.f32 %v28090_v53, %v31968_v19 }
 0x9a2   : > { %v29649_v60 = vpop.f32.mrb[48].mxu1  ;;  %14737 = vmatmul.mubr.bf16.gmra.mrb[64].mxu0 %v22067_v8  ;;  %v22075_v8 = vld [vmem:[%s30700_s1 + $0x224c] ss:$16 sps:$4 sm:$0xff]  }
 0x9a3   : > { %31966 = vst [vmem:[#allocation115_spill] sm:$0xff] %v29649_v60  ;;  %v13258_v29 = vpop.f32.mrb[49].mxu1  ;;  %18752 = vmatprep.mubr.msk.bf16.mxu0 %vm1498_vm0, %v22072_v28  ;;  %v22073_v28 = vld [vmem:[%s30700_s1 + $0x2248] ss:$16 sps:$4 sm:$0xff]   ;;  %v22105_v60 = vld [vmem:[%s30700_s1 + $0x238c] ss:$16 sps:$4 sm:$0xff]  }
 0x9a4   : > { %v29654_v38 = vpop.f32.mrb[50].mxu1  ;;  %v22078_v29 = vld [vmem:[%s30700_s1 + $0x226c] ss:$16 sps:$4 sm:$0xff]  }
 0x9a5   : > { %31967 = vst [vmem:[#allocation116_spill] sm:$0xff] %v29654_v38  ;;  %v13261_v21 = vpop.f32.mrb[51].mxu1 }
 0x9a6   : > { %v22076_v21 = vld [vmem:[%s30700_s1 + $0x2268] ss:$16 sps:$4 sm:$0xff]  }
 0x9aa   : > { %14745 = vmatmul.mubr.bf16.gmra.mrb[68].mxu0 %v22070_v33  ;;  %v22081_v33 = vld [vmem:[%s30700_s1 + $0x228c] ss:$16 sps:$4 sm:$0xff]  }
 0x9ab   : > { %18753 = vmatprep.mubr.msk.bf16.mxu0 %vm1498_vm0, %v22075_v8  ;;  %v22079_v8 = vld [vmem:[%s30700_s1 + $0x2288] ss:$16 sps:$4 sm:$0xff]  }
 0x9b2   : > { %14753 = vmatmul.mubr.bf16.gmra.mrb[76].mxu0 %v22073_v28  ;;  %v22084_v28 = vld [vmem:[%s30700_s1 + $0x22ac] ss:$16 sps:$4 sm:$0xff]  }
 0x9b3   : > { %18754 = vmatprep.mubr.msk.bf16.mxu0 %vm1498_vm0, %v22078_v29  ;;  %v22082_v29 = vld [vmem:[%s30700_s1 + $0x22a8] ss:$16 sps:$4 sm:$0xff]  }
 0x9ba   : > { %14761 = vmatmul.mubr.bf16.gmra.mrb[72].mxu0 %v22076_v21  ;;  %v22087_v21 = vld [vmem:[%s30700_s1 + $0x22cc] ss:$16 sps:$4 sm:$0xff]  }
 0x9bb   : > { %18755 = vmatprep.mubr.msk.bf16.mxu0 %vm1498_vm0, %v22081_v33  ;;  %v22085_v33 = vld [vmem:[%s30700_s1 + $0x22c8] ss:$16 sps:$4 sm:$0xff]  }
 0x9c2   : > { %14769 = vmatmul.mubr.bf16.gmra.mrb[80].mxu0 %v22079_v8  ;;  %v22090_v8 = vld [vmem:[%s30700_s1 + $0x22ec] ss:$16 sps:$4 sm:$0xff]  }
 0x9c3   : > { %18756 = vmatprep.mubr.msk.bf16.mxu0 %vm1498_vm0, %v22084_v28  ;;  %v22088_v28 = vld [vmem:[%s30700_s1 + $0x22e8] ss:$16 sps:$4 sm:$0xff]  }
 0x9ca   : > { %14777 = vmatmul.mubr.bf16.gmra.mrb[84].mxu0 %v22082_v29  ;;  %v22093_v29 = vld [vmem:[%s30700_s1 + $0x230c] ss:$16 sps:$4 sm:$0xff]  }
 0x9cb   : > { %18757 = vmatprep.mubr.msk.bf16.mxu0 %vm1498_vm0, %v22087_v21  ;;  %v22091_v21 = vld [vmem:[%s30700_s1 + $0x2308] ss:$16 sps:$4 sm:$0xff]  }
 0x9d2   : > { %14785 = vmatmul.mubr.bf16.gmra.mrb[88].mxu0 %v22085_v33  ;;  %v22096_v33 = vld [vmem:[%s30700_s1 + $0x232c] ss:$16 sps:$4 sm:$0xff]  }
 0x9d3   : > { %18758 = vmatprep.mubr.msk.bf16.mxu0 %vm1498_vm0, %v22090_v8  ;;  %v22094_v8 = vld [vmem:[%s30700_s1 + $0x2328] ss:$16 sps:$4 sm:$0xff]  }
 0x9da   : > { %14793 = vmatmul.mubr.bf16.gmra.mrb[92].mxu0 %v22088_v28  ;;  %v22099_v28 = vld [vmem:[%s30700_s1 + $0x234c] ss:$16 sps:$4 sm:$0xff]  }
 0x9db   : > { %18759 = vmatprep.mubr.msk.bf16.mxu0 %vm1498_vm0, %v22093_v29  ;;  %v22097_v29 = vld [vmem:[%s30700_s1 + $0x2348] ss:$16 sps:$4 sm:$0xff]  }
 0x9e2   : > { %14801 = vmatmul.mubr.bf16.gmra.mrb[96].mxu0 %v22091_v21  ;;  %v22102_v21 = vld [vmem:[%s30700_s1 + $0x236c] ss:$16 sps:$4 sm:$0xff]  }
 0x9e3   : > { %18760 = vmatprep.mubr.msk.bf16.mxu0 %vm1498_vm0, %v22096_v33 }
 0x9ea   : > { %14809 = vmatmul.mubr.bf16.gmra.mrb[100].mxu0 %v22094_v8  ;;  %v22100_v8 = vld [vmem:[%s30700_s1 + $0x2368] ss:$16 sps:$4 sm:$0xff]  }
 0x9eb   : > { %18761 = vmatprep.mubr.msk.bf16.mxu0 %vm1498_vm0, %v22099_v28 }
 0x9f2   : > { %14817 = vmatmul.mubr.bf16.gmra.mrb[104].mxu0 %v22097_v29  ;;  %v31970_v29 = vld [vmem:[#allocation46_spill] sm:$0xff] }
 0x9f3   : > { %18762 = vmatprep.mubr.msk.bf16.mxu0 %vm1498_vm0, %v22102_v21  ;;  %v31971_v21 = vmax.f32 %v28101_v42, %v31970_v29 }
 0x9f5   : > { %v14610_v33 = vpop.f32.mrb[0].mxu0 }
 0x9f6   : > { %v14929_v38 = vmax.f32 %v31969_v3, %v14610_v33  ;;  %v14612_v49 = vpop.f32.mrb[1].mxu0 }
 0x9f7   : > { %v14613_v28 = vpop.f32.mrb[2].mxu0  ;;  %v22117_v49 = vld [vmem:[%s30702_s3 + $0x4] ss:$16 sps:$4 sm:$0xff]  }
 0x9f8   : > { %v15505_v4 = vadd.f32 %v29101_v47, %v14929_v38  ;;  %v14930_v27 = vmax.f32 %v31971_v21, %v14613_v28  ;;  %v14615_v9 = vpop.f32.mrb[3].mxu0  ;;  %16273 = vmatprep.mubr.bf16.mxu1 %v22117_v49  ;;  %v31972_v47 = vld [vmem:[#allocation16_spill] sm:$0xff] }
 0x9f9   : > { %v31973_v42 = vmax.f32 %v28114_v61, %v31972_v47 }
 0x9fa   : > { %v15506_v53 = vadd.f32 %v29131_v48, %v14930_v27  ;;  %14825 = vmatmul.mubr.bf16.gmra.mrb[108].mxu0 %v22100_v8  ;;  %v15569_v3 = vmax.f32 %v15505_v4, 0.0  ;;  %v22103_v48 = vld [vmem:[%s30700_s1 + $0x2388] ss:$16 sps:$4 sm:$0xff]  }
 0x9fb   : > { %18763 = vmatprep.mubr.msk.bf16.mxu0 %vm1498_vm0, %v22105_v60  ;;  %v22108_v60 = vld [vmem:[%s30700_s1 + $0x23ac] ss:$16 sps:$4 sm:$0xff]  }
 0x9fc   : > { %v15570_v19 = vmax.f32 %v15506_v53, 0.0  ;;  %v31974_v8 = vld [vmem:[#allocation52_spill] sm:$0xff] }
 0x9fd   : > { %v14618_v33 = vpop.f32.mrb[4].mxu0  ;;  %v31975_v28 = vmax.f32 %v28125_v12, %v31974_v8  ;;  %v22106_v12 = vld [vmem:[%s30700_s1 + $0x23a8] ss:$16 sps:$4 sm:$0xff]  }
 0x9fe   : > { %v29746_v40 = vpack.c.bf16 %v15570_v19, %v15569_v3  ;;  %v14931_v38 = vmax.f32 %v31973_v42, %v14618_v33  ;;  %v14620_v9 = vpop.f32.mrb[5].mxu0  ;;  %v31976_v33 = vld [vmem:[#allocation74_spill] sm:$0xff] }
 0x9ff   : > { %v14621_v27 = vpop.f32.mrb[6].mxu0  ;;  %v31977_v47 = vmax.f32 %v28138_v17, %v31976_v33 }
 0xa00   : > { %v15507_v4 = vadd.f32 %v29167_v58, %v14931_v38  ;;  %v14932_v29 = vmax.f32 %v31975_v28, %v14621_v27  ;;  %v14623_v21 = vpop.f32.mrb[7].mxu0 }
 0xa02   : > { %v15508_v61 = vadd.f32 %v29199_v14, %v14932_v29  ;;  %14833 = vmatmul.mubr.bf16.gmra.mrb[112].mxu0 %v22103_v48  ;;  %v15571_v53 = vmax.f32 %v15507_v4, 0.0  ;;  %v22111_v14 = vld [vmem:[%s30700_s1 + $0x23cc] ss:$16 sps:$4 sm:$0xff]  }
 0xa03   : > { %18764 = vmatprep.mubr.msk.bf16.mxu0 %vm1498_vm0, %v22108_v60  ;;  %v31978_v48 = vld [vmem:[#allocation88_spill] sm:$0xff] }
 0xa04   : > { %v15572_v49 = vmax.f32 %v15508_v61, 0.0  ;;  %v31979_v27 = vmax.f32 %v28149_v7, %v31978_v48  ;;  %v31980_v61 = vld [vmem:[#allocation47_spill] sm:$0xff] }
 0xa05   : > { %v14626_v3 = vpop.f32.mrb[8].mxu0  ;;  %v22109_v7 = vld [vmem:[%s30700_s1 + $0x23c8] ss:$16 sps:$4 sm:$0xff]  }
 0xa06   : > { %v29763_v19 = vpack.c.bf16 %v15572_v49, %v15571_v53  ;;  %v14933_v42 = vmax.f32 %v31977_v47, %v14626_v3  ;;  %v14628_v58 = vpop.f32.mrb[9].mxu0  ;;  %v31981_v53 = vmax.f32 %v28162_v23, %v31980_v61  ;;  %v31982_v47 = vld [vmem:[#allocation60_spill] sm:$0xff] }
 0xa07   : > { %v14629_v38 = vpop.f32.mrb[10].mxu0 }
 0xa08   : > { %v15509_v9 = vadd.f32 %v29213_v24, %v14933_v42  ;;  %v14934_v60 = vmax.f32 %v31979_v27, %v14629_v38  ;;  %v14631_v4 = vpop.f32.mrb[11].mxu0  ;;  %v31983_v42 = vld [vmem:[#allocation56_spill] sm:$0xff] }
 0xa09   : > { %v31984_v58 = vmax.f32 %v31982_v47, %v31983_v42 }
 0xa0a   : > { %v15510_v17 = vadd.f32 %v29237_v15, %v14934_v60  ;;  %14841 = vmatmul.mubr.bf16.gmra.mrb[116].mxu0 %v22106_v12  ;;  %v15573_v8 = vmax.f32 %v15509_v9, 0.0  ;;  %v22114_v15 = vld [vmem:[%s30700_s1 + $0x23ec] ss:$16 sps:$4 sm:$0xff]   ;;  %v31985_v60 = vmax.f32 %v28186_v63, %v28974_v51 }
 0xa0b   : > { %18765 = vmatprep.mubr.msk.bf16.mxu0 %vm1498_vm0, %v22111_v14 }
 0xa0c   : > { %v15574_v28 = vmax.f32 %v15510_v17, 0.0  ;;  %v22112_v17 = vld [vmem:[%s30700_s1 + $0x23e8] ss:$16 sps:$4 sm:$0xff]  }
 0xa0d   : > { %v14634_v29 = vpop.f32.mrb[12].mxu0 }
 0xa0e   : > { %v29780_v21 = vpack.c.bf16 %v15574_v28, %v15573_v8  ;;  %v14935_v49 = vmax.f32 %v31981_v53, %v14634_v29  ;;  %v14636_v24 = vpop.f32.mrb[13].mxu0  ;;  %v31986_v28 = vld [vmem:[#allocation98_spill] sm:$0xff]  ;;  %v31987_v29 = vld [vmem:[#allocation59_spill] sm:$0xff] }
 0xa0f   : > { %v14637_v3 = vpop.f32.mrb[14].mxu0  ;;  %v31988_v61 = vmax.f32 %v31986_v28, %v31987_v29 }
 0xa10   : > { %v15511_v33 = vadd.f32 %v29261_v13, %v14935_v49  ;;  %v14936_v12 = vmax.f32 %v31984_v58, %v14637_v3  ;;  %v14639_v38 = vpop.f32.mrb[15].mxu0 }
 0xa11   : > { %v31992_v38 = vld [vmem:[#allocation25_spill] sm:$0xff] }
 0xa12   : > { %v15512_v23 = vadd.f32 %v29293_v50, %v14936_v12  ;;  %14849 = vmatmul.mubr.bf16.gmra.mrb[120].mxu0 %v22109_v7  ;;  %v15575_v14 = vmax.f32 %v15511_v33, 0.0  ;;  %v31990_v33 = vld [vmem:[#allocation77_spill] sm:$0xff] }
 0xa13   : > { %18766 = vmatprep.mubr.msk.bf16.mxu0 %vm1498_vm0, %v22114_v15  ;;  %v31989_v15 = vld [vmem:[#allocation63_spill] sm:$0xff] }
 0xa14   : > { %v15576_v9 = vmax.f32 %v15512_v23, 0.0  ;;  %v31991_v47 = vmax.f32 %v31989_v15, %v31990_v33  ;;  %v31993_v23 = vld [vmem:[#allocation89_spill] sm:$0xff] }
 0xa15   : > { %v14642_v48 = vpop.f32.mrb[16].mxu0 }
 0xa16   : > { %v29797_v27 = vpack.c.bf16 %v15576_v9, %v15575_v14  ;;  %v14937_v4 = vmax.f32 %v31985_v60, %v14642_v48  ;;  %v14644_v13 = vpop.f32.mrb[17].mxu0  ;;  %v31994_v14 = vmax.f32 %v31992_v38, %v31993_v23 }
 0xa17   : > { %v14645_v8 = vpop.f32.mrb[18].mxu0 }
 0xa18   : > { %v15513_v50 = vadd.f32 %v29307_v6, %v14937_v4  ;;  %v14938_v53 = vmax.f32 %v31988_v61, %v14645_v8  ;;  %v14647_v49 = vpop.f32.mrb[19].mxu0  ;;  %v31995_v8 = vld [vmem:[#allocation64_spill] sm:$0xff] }
 0xa19   : > { %v31998_v49 = vld [vmem:[#allocation99_spill] sm:$0xff] }
 0xa1a   : > { %v15514_v24 = vadd.f32 %v29332_v41, %v14938_v53  ;;  %14857 = vmatmul.mubr.bf16.gmra.mrb[124].mxu0 %v22112_v17  ;;  %v15577_v7 = vmax.f32 %v15513_v50, 0.0  ;;  %v31996_v50 = vld [vmem:[#allocation37_spill] sm:$0xff] }
 0xa1b   : > { %v31997_v28 = vmax.f32 %v31995_v8, %v31996_v50 }
 0xa1c   : > { %v15578_v3 = vmax.f32 %v15514_v24, 0.0  ;;  %v31999_v24 = vld [vmem:[#allocation79_spill] sm:$0xff] }
 0xa1d   : > { %v14650_v63 = vpop.f32.mrb[20].mxu0 }
 0xa1e   : > { %v29810_v51 = vpack.c.bf16 %v15578_v3, %v15577_v7  ;;  %v14939_v42 = vmax.f32 %v31991_v47, %v14650_v63  ;;  %v14652_v58 = vpop.f32.mrb[21].mxu0  ;;  %v32000_v7 = vmax.f32 %v31998_v49, %v31999_v24 }
 0xa1f   : > { %v14653_v12 = vpop.f32.mrb[22].mxu0  ;;  %v32001_v58 = vld [vmem:[#allocation100_spill] sm:$0xff] }
 0xa20   : > { %v15515_v6 = vadd.f32 %v29356_v18, %v14939_v42  ;;  %v14940_v9 = vmax.f32 %v31994_v14, %v14653_v12  ;;  %v14655_v48 = vpop.f32.mrb[23].mxu0  ;;  %v32002_v12 = vld [vmem:[#allocation50_spill] sm:$0xff] }
 0xa21   : > { %v32005_v48 = vld [vmem:[#allocation90_spill] sm:$0xff] }
 0xa22   : > { %v15516_v41 = vadd.f32 %v29389_v5, %v14940_v9  ;;  %v15579_v60 = vmax.f32 %v15515_v6, 0.0  ;;  %v32003_v6 = vmax.f32 %v32001_v58, %v32002_v12  ;;  %v32004_v9 = vld [vmem:[#allocation8_spill] sm:$0xff] }
 0xa23   : > { %v32014_v58 = vld [vmem:[#allocation80_spill] sm:$0xff] }
 0xa24   : > { %v15580_v4 = vmax.f32 %v15516_v41, 0.0  ;;  %v32006_v41 = vmax.f32 %v32004_v9, %v32005_v48 }
 0xa25   : > { %v14658_v13 = vpop.f32.mrb[24].mxu0 }
 0xa26   : > { %v29820_v17 = vpack.c.bf16 %v15580_v4, %v15579_v60  ;;  %v14941_v29 = vmax.f32 %v31997_v28, %v14658_v13  ;;  %v14660_v61 = vpop.f32.mrb[25].mxu0  ;;  %v15263_v13 = vpop.permute.xlu1 %15262 }
 0xa27   : > { %v14661_v53 = vpop.f32.mrb[26].mxu0  ;;  %v32007_v61 = vld [vmem:[#allocation38_spill] sm:$0xff] }
 0xa28   : > { %v15517_v18 = vadd.f32 %v29404_v43, %v14941_v29  ;;  %v14942_v3 = vmax.f32 %v32000_v7, %v14661_v53  ;;  %v14663_v63 = vpop.f32.mrb[27].mxu0  ;;  %v32008_v53 = vld [vmem:[#allocation9_spill] sm:$0xff] }
 0xa29   : > { %v32011_v63 = vld [vmem:[#allocation72_spill] sm:$0xff] }
 0xa2a   : > { %v15518_v5 = vadd.f32 %v29435_v26, %v14942_v3  ;;  %v15581_v15 = vmax.f32 %v15517_v18, 0.0  ;;  %v32009_v18 = vmax.f32 %v32007_v61, %v32008_v53  ;;  %v32010_v3 = vld [vmem:[#allocation18_spill] sm:$0xff] }
 0xa2c   : > { %v15582_v33 = vmax.f32 %v15518_v5, 0.0  ;;  %v32012_v5 = vld [vmem:[#allocation29_spill] sm:$0xff] }
 0xa2d   : > { %v14666_v47 = vpop.f32.mrb[28].mxu0 }
 0xa2e   : > { %v29830_v42 = vpack.c.bf16 %v15582_v33, %v15581_v15  ;;  %v14943_v38 = vmax.f32 %v32003_v6, %v14666_v47  ;;  %v14668_v23 = vpop.f32.mrb[29].mxu0  ;;  %v32013_v15 = vmax.f32 %v32011_v63, %v32012_v5  ;;  %v32023_v5 = vld [vmem:[#allocation20_spill] sm:$0xff] }
 0xa2f   : > { %v14669_v14 = vpop.f32.mrb[30].mxu0 }
 0xa30   : > { %v15519_v43 = vadd.f32 %v29450_v30, %v14943_v38  ;;  %v14944_v60 = vmax.f32 %v32006_v41, %v14669_v14  ;;  %v14671_v4 = vpop.f32.mrb[31].mxu0  ;;  %v32015_v14 = vmax.f32 %v28324_v16, %v29171_v0  ;;  %v32020_v16 = vld [vmem:[#allocation40_spill] sm:$0xff]  ;;  %v32021_v0 = vld [vmem:[#allocation58_spill] sm:$0xff] }
 0xa32   : > { %v15520_v26 = vadd.f32 %v15263_v13, %v14944_v60  ;;  %v15583_v8 = vmax.f32 %v15519_v43, 0.0  ;;  %v32016_v60 = vld [vmem:[#allocation19_spill] sm:$0xff]  ;;  %v32017_v13 = vld [vmem:[#allocation57_spill] sm:$0xff] }
 0xa34   : > { %v15584_v50 = vmax.f32 %v15520_v26, 0.0  ;;  %v32018_v26 = vmax.f32 %v28341_v36, %v32017_v13  ;;  %v32024_v36 = vld [vmem:[#allocation10_spill] sm:$0xff] }
 0xa35   : > { %v14674_v28 = vpop.f32.mrb[32].mxu0 }
 0xa36   : > { %v29839_v29 = vpack.c.bf16 %v15584_v50, %v15583_v8  ;;  %v14945_v49 = vmax.f32 %v32009_v18, %v14674_v28  ;;  %v14676_v24 = vpop.f32.mrb[33].mxu0  ;;  %v32019_v28 = vld [vmem:[#allocation91_spill] sm:$0xff] }
 0xa37   : > { %v14677_v7 = vpop.f32.mrb[34].mxu0  ;;  %v32022_v24 = vmax.f32 %v32020_v16, %v32021_v0 }
 0xa38   : > { %v15521_v30 = vadd.f32 %v32010_v3, %v14945_v49  ;;  %v14946_v33 = vmax.f32 %v32013_v15, %v14677_v7  ;;  %v14679_v47 = vpop.f32.mrb[35].mxu0 }
 0xa3a   : > { %v15522_v12 = vadd.f32 %v32014_v58, %v14946_v33  ;;  %v15585_v6 = vmax.f32 %v15521_v30, 0.0  ;;  %v32025_v33 = vld [vmem:[#allocation92_spill] sm:$0xff] }
 0xa3b   : > { %v32026_v47 = vmax.f32 %v32024_v36, %v32025_v33  ;;  %v29881_v33 = vpop.permute.xlu1 %15432 }
 0xa3c   : > { %v15586_v38 = vmax.f32 %v15522_v12, 0.0 }
 0xa3d   : > { %v14682_v23 = vpop.f32.mrb[36].mxu0 }
 0xa3e   : > { %v14947_v43 = vmax.f32 %v32015_v14, %v14682_v23  ;;  %v14684_v9 = vpop.f32.mrb[37].mxu0  ;;  %v15705_v48 = vpack.c.bf16 %v15586_v38, %v15585_v6 }
 0xa3f   : > { %v14685_v41 = vpop.f32.mrb[38].mxu0  ;;  %v32029_v9 = vld [vmem:[#allocation21_spill] sm:$0xff] }
 0xa40   : > { %v15523_v4 = vadd.f32 %v32016_v60, %v14947_v43  ;;  %v14948_v8 = vmax.f32 %v32018_v26, %v14685_v41  ;;  %v14687_v50 = vpop.f32.mrb[39].mxu0  ;;  %18868 = vmatprep.subr.bf16.mxu1 %v15705_v48  ;;  %v32028_v43 = vld [vmem:[#allocation30_spill] sm:$0xff] }
 0xa41   : > { %18869 = vmatpush3.bf16.msra.mxu1 %v29746_v40  ;;  %v32027_v40 = vld [vmem:[#allocation61_spill] sm:$0xff]  ;;  %v32030_v48 = vmax.f32 %v32028_v43, %v32029_v9  ;;  %v32031_v26 = vld [vmem:[#allocation62_spill] sm:$0xff] }
 0xa42   : > { %v15524_v61 = vadd.f32 %v32019_v28, %v14948_v8  ;;  %v15587_v53 = vmax.f32 %v15523_v4, 0.0  ;;  %v32032_v50 = vld [vmem:[#allocation82_spill] sm:$0xff]  ;;  %v32033_v28 = vld [vmem:[#allocation93_spill] sm:$0xff] }
 0xa44   : > { %v15588_v18 = vmax.f32 %v15524_v61, 0.0  ;;  %v32034_v61 = vmax.f32 %v32032_v50, %v32033_v28 }
 0xa45   : > { %v14690_v49 = vpop.f32.mrb[40].mxu0 }
 0xa46   : > { %v14949_v7 = vmax.f32 %v32022_v24, %v14690_v49  ;;  %v14692_v3 = vpop.f32.mrb[41].mxu0  ;;  %v15706_v30 = vpack.c.bf16 %v15588_v18, %v15587_v53  ;;  %v29876_v24 = vpop.permute.xlu0 %15427 }
 0xa47   : > { %v14693_v63 = vpop.f32.mrb[42].mxu0  ;;  %v32036_v3 = vld [vmem:[#allocation41_spill] sm:$0xff] }
 0xa48   : > { %v15525_v15 = vadd.f32 %v32023_v5, %v14949_v7  ;;  %v14950_v58 = vmax.f32 %v32026_v47, %v14693_v63  ;;  %v14695_v12 = vpop.f32.mrb[43].mxu0  ;;  %18870 = vmatprep.subr.bf16.mxu1 %v15706_v30  ;;  %v32037_v30 = vld [vmem:[#allocation22_spill] sm:$0xff] }
 0xa49   : > { %18871 = vmatpush3.bf16.msra.mxu1 %v29763_v19  ;;  %v32035_v19 = vld [vmem:[#allocation65_spill] sm:$0xff]  ;;  %v32038_v63 = vmax.f32 %v32036_v3, %v32037_v30 }
 0xa4a   : > { %v15526_v6 = vadd.f32 %v32027_v40, %v14950_v58  ;;  %v15589_v38 = vmax.f32 %v15525_v15, 0.0  ;;  %v32039_v58 = vld [vmem:[#allocation94_spill] sm:$0xff]  ;;  %v32040_v40 = vld [vmem:[#allocation11_spill] sm:$0xff]  ;;  %v15348_v9 = vpop.permute.xlu0 %15347  ;;  %v32051_v30 = vld [vmem:[#allocation13_spill] sm:$0xff] }
 0xa4c   : > { %v15590_v23 = vmax.f32 %v15526_v6, 0.0 }
 0xa4d   : > { %v14698_v14 = vpop.f32.mrb[44].mxu0 }
 0xa4e   : > { %v14951_v41 = vmax.f32 %v32030_v48, %v14698_v14  ;;  %v14700_v60 = vpop.f32.mrb[45].mxu0  ;;  %v15707_v4 = vpack.c.bf16 %v15590_v23, %v15589_v38  ;;  %v32043_v14 = vld [vmem:[#allocation48_spill] sm:$0xff]  ;;  %v29896_v3 = vpop.permute.xlu0 %15437 }
 0xa4f   : > { %v14701_v13 = vpop.f32.mrb[46].mxu0  ;;  %v15353_v60 = vpop.permute.xlu1 %15352 }
 0xa50   : > { %v15527_v8 = vadd.f32 %v32031_v26, %v14951_v41  ;;  %v14952_v53 = vmax.f32 %v32034_v61, %v14701_v13  ;;  %v14703_v18 = vpop.f32.mrb[47].mxu0  ;;  %18872 = vmatprep.subr.bf16.mxu1 %v15707_v4  ;;  %v32044_v13 = vld [vmem:[#allocation31_spill] sm:$0xff]  ;;  %v32045_v26 = vld [vmem:[#allocation69_spill] sm:$0xff] }
 0xa51   : > { %18873 = vmatpush3.bf16.msra.mxu1 %v29780_v21  ;;  %v32041_v21 = vld [vmem:[#allocation66_spill] sm:$0xff]  ;;  %v32047_v18 = vld [vmem:[#allocation43_spill] sm:$0xff] }
 0xa52   : > { %v15528_v49 = vadd.f32 %v32035_v19, %v14952_v53  ;;  %v15591_v16 = vmax.f32 %v15527_v8, 0.0  ;;  %v32042_v6 = vmax.f32 %v32040_v40, %v32041_v21  ;;  %v32046_v8 = vmax.f32 %v32044_v13, %v32045_v26 }
 0xa54   : > { %v15592_v0 = vmax.f32 %v15528_v49, 0.0  ;;  %v32048_v49 = vld [vmem:[#allocation83_spill] sm:$0xff] }
 0xa55   : > { %v14706_v7 = vpop.f32.mrb[48].mxu0 }
 0xa56   : > { %v14953_v5 = vmax.f32 %v32038_v63, %v14706_v7  ;;  %v14708_v15 = vpop.f32.mrb[49].mxu0  ;;  %v15708_v36 = vpack.c.bf16 %v15592_v0, %v15591_v16  ;;  %v32049_v16 = vld [vmem:[#allocation23_spill] sm:$0xff] }
 0xa57   : > { %v14709_v47 = vpop.f32.mrb[50].mxu0  ;;  %v32050_v0 = vmax.f32 %v32048_v49, %v32049_v16  ;;  %v32060_v49 = vld [vmem:[#allocation32_spill] sm:$0xff] }
 0xa58   : > { %v15529_v12 = vadd.f32 %v32039_v58, %v14953_v5  ;;  %v14954_v38 = vmax.f32 %v32042_v6, %v14709_v47  ;;  %v14711_v23 = vpop.f32.mrb[51].mxu0  ;;  %18874 = vmatprep.subr.bf16.mxu1 %v15708_v36  ;;  %v29900_v5 = vpop.permute.xlu1 %15442  ;;  %v32052_v58 = vld [vmem:[#allocation42_spill] sm:$0xff]  ;;  %v32061_v16 = vld [vmem:[#allocation96_spill] sm:$0xff] }
 0xa59   : > { %18875 = vmatpush3.bf16.msra.mxu1 %v29797_v27  ;;  %v15358_v23 = vpop.permute.xlu0 %15357 }
 0xa5a   : > { %v15530_v43 = vadd.f32 %v32043_v14, %v14954_v38  ;;  %v15593_v48 = vmax.f32 %v15529_v12, 0.0  ;;  %v32053_v12 = vld [vmem:[#allocation95_spill] sm:$0xff] }
 0xa5b   : > { %v32054_v40 = vmax.f32 %v32052_v58, %v32053_v12  ;;  %v32064_v58 = vld [vmem:[#allocation26_spill] sm:$0xff] }
 0xa5c   : > { %v15594_v41 = vmax.f32 %v15530_v43, 0.0  ;;  %v32055_v43 = vld [vmem:[#allocation55_spill] sm:$0xff] }
 0xa5d   : > { %v14714_v4 = vpop.f32.mrb[52].mxu0 }
 0xa5e   : > { %v14955_v50 = vmax.f32 %v32046_v8, %v14714_v4  ;;  %v14716_v28 = vpop.f32.mrb[53].mxu0  ;;  %v15709_v61 = vpack.c.bf16 %v15594_v41, %v15593_v48  ;;  %v32056_v41 = vld [vmem:[#allocation12_spill] sm:$0xff]  ;;  %v32057_v4 = vld [vmem:[#allocation73_spill] sm:$0xff]  ;;  %v15363_v8 = vpop.permute.xlu1 %15362 }
 0xa5f   : > { %v14717_v53 = vpop.f32.mrb[54].mxu0 }
 0xa60   : > { %v15531_v19 = vadd.f32 %v32047_v18, %v14955_v50  ;;  %v14956_v27 = vmax.f32 %v32050_v0, %v14717_v53  ;;  %v14719_v7 = vpop.f32.mrb[55].mxu0  ;;  %18876 = vmatprep.subr.bf16.mxu1 %v15709_v61  ;;  %v32059_v50 = vld [vmem:[#allocation44_spill] sm:$0xff]  ;;  %v29911_v18 = vpop.permute.xlu0 %15447  ;;  %v32062_v0 = vmax.f32 %v32060_v49, %v32061_v16 }
 0xa61   : > { %18877 = vmatpush3.bf16.msra.mxu1 %v29810_v51  ;;  %v32058_v51 = vmax.f32 %v32056_v41, %v32057_v4  ;;  %v32067_v4 = vld [vmem:[#allocation84_spill] sm:$0xff] }
 0xa62   : > { %v15532_v63 = vadd.f32 %v32051_v30, %v14956_v27  ;;  %v15595_v15 = vmax.f32 %v15531_v19, 0.0  ;;  %v32071_v49 = vld [vmem:[#allocation24_spill] sm:$0xff] }
 0xa64   : > { %v15596_v36 = vmax.f32 %v15532_v63, 0.0  ;;  %v29916_v63 = vpop.permute.xlu1 %15452 }
 0xa65   : > { %v14722_v47 = vpop.f32.mrb[56].mxu0 }
 0xa66   : > { %v14957_v21 = vmax.f32 %v32054_v40, %v14722_v47  ;;  %v14724_v6 = vpop.f32.mrb[57].mxu0  ;;  %v15710_v38 = vpack.c.bf16 %v15596_v36, %v15595_v15  ;;  %v32063_v36 = vld [vmem:[#allocation14_spill] sm:$0xff] }
 0xa67   : > { %v14725_v14 = vpop.f32.mrb[58].mxu0 }
 0xa68   : > { %v15533_v48 = vadd.f32 %v32055_v43, %v14957_v21  ;;  %v14958_v13 = vmax.f32 %v32058_v51, %v14725_v14  ;;  %v14727_v26 = vpop.f32.mrb[59].mxu0  ;;  %18878 = vmatprep.subr.bf16.mxu1 %v15710_v38  ;;  %v15368_v38 = vpop.permute.xlu0 %15367  ;;  %v32068_v51 = vld [vmem:[#allocation85_spill] sm:$0xff] }
 0xa69   : > { %18879 = vmatpush3.bf16.msra.mxu1 %v29820_v17  ;;  %v32065_v17 = vld [vmem:[#allocation33_spill] sm:$0xff] }
 0xa6a   : > { %v15534_v28 = vadd.f32 %v32059_v50, %v14958_v13  ;;  %v15597_v61 = vmax.f32 %v15533_v48, 0.0  ;;  %v32066_v12 = vmax.f32 %v32064_v58, %v32065_v17  ;;  %v15373_v48 = vpop.permute.xlu1 %15372  ;;  %v32069_v13 = vmax.f32 %v32067_v4, %v32068_v51  ;;  %v32073_v17 = vld [vmem:[#allocation39_spill] sm:$0xff]  ;;  %v32077_v4 = vld [vmem:[#allocation97_spill] sm:$0xff] }
 0xa6c   : > { %v15598_v53 = vmax.f32 %v15534_v28, 0.0 }
 0xa6d   : > { %v14730_v19 = vpop.f32.mrb[60].mxu0 }
 0xa6e   : > { %v14959_v27 = vmax.f32 %v32062_v0, %v14730_v19  ;;  %v14732_v7 = vpop.f32.mrb[61].mxu0  ;;  %v15711_v30 = vpack.c.bf16 %v15598_v53, %v15597_v61  ;;  %v32070_v19 = vld [vmem:[#allocation34_spill] sm:$0xff] }
 0xa6f   : > { %v14733_v15 = vpop.f32.mrb[62].mxu0  ;;  %v32072_v16 = vmax.f32 %v32070_v19, %v32071_v49  ;;  %v22120_v7 = vld [vmem:[%s30702_s3 + $0x24] ss:$16 sps:$4 sm:$0xff]  }
 0xa70   : > { %v15535_v47 = vadd.f32 %v32063_v36, %v14959_v27  ;;  %v14960_v40 = vmax.f32 %v32066_v12, %v14733_v15  ;;  %v14735_v21 = vpop.f32.mrb[63].mxu0  ;;  %18880 = vmatprep.subr.bf16.mxu1 %v15711_v30  ;;  %v29933_v27 = vpop.permute.xlu0 %15457  ;;  %v32074_v12 = vld [vmem:[#allocation76_spill] sm:$0xff] }
 0xa71   : > { %18881 = vmatpush3.bf16.msra.mxu1 %v29830_v42 }
 0xa72   : > { %v15536_v6 = vadd.f32 %v29452_v54, %v14960_v40  ;;  %v15599_v14 = vmax.f32 %v15535_v47, 0.0  ;;  %v22115_v54 = vld [vmem:[%s30702_s3] ss:$16 sps:$4 sm:$0xff]   ;;  %v32075_v40 = vmax.f32 %v32073_v17, %v32074_v12 }
 0xa73   : > { %v32082_v17 = vld [vmem:[#allocation45_spill] sm:$0xff] }
 0xa74   : > { %v15600_v43 = vmax.f32 %v15536_v6, 0.0 }
 0xa75   : > { %v14738_v41 = vpop.f32.mrb[64].mxu0 }
 0xa76   : > { %v14961_v26 = vmax.f32 %v32069_v13, %v14738_v41  ;;  %v14740_v50 = vpop.f32.mrb[65].mxu0  ;;  %v15712_v28 = vpack.c.bf16 %v15600_v43, %v15599_v14  ;;  %v32076_v41 = vld [vmem:[#allocation86_spill] sm:$0xff] }
 0xa77   : > { %v14741_v61 = vpop.f32.mrb[66].mxu0 }
 0xa78   : > { %v15537_v53 = vadd.f32 %v15348_v9, %v14961_v26  ;;  %v14962_v0 = vmax.f32 %v32072_v16, %v14741_v61  ;;  %v14743_v42 = vpop.f32.mrb[67].mxu0  ;;  %18882 = vmatprep.subr.bf16.mxu1 %v15712_v28  ;;  %v29939_v9 = vpop.permute.xlu1 %15462  ;;  %v22118_v26 = vld [vmem:[%s30702_s3 + $0x20] ss:$16 sps:$4 sm:$0xff]   ;;  %v22123_v28 = vld [vmem:[%s30702_s3 + $0x44] ss:$16 sps:$4 sm:$0xff]  }
 0xa79   : > { %18883 = vmatpush3.bf16.msra.mxu1 %v29839_v29  ;;  %v15378_v29 = vpop.permute.xlu0 %15377  ;;  %v32080_v42 = vld [vmem:[#allocation101_spill] sm:$0xff] }
 0xa7a   : > { %v15538_v30 = vadd.f32 %v15353_v60, %v14962_v0  ;;  %v15601_v15 = vmax.f32 %v15537_v53, 0.0  ;;  %v32078_v60 = vmax.f32 %v32076_v41, %v32077_v4  ;;  %v32079_v0 = vld [vmem:[#allocation67_spill] sm:$0xff] }
 0xa7c   : > { %v15602_v36 = vmax.f32 %v15538_v30, 0.0  ;;  %16274 = vmatmul.mubr.bf16.vlgmr.msra.gmra.mrb[52].mxu1 %v22115_v54  ;;  %v15383_v50 = vpop.permute.xlu1 %15382  ;;  %v32081_v54 = vmax.f32 %v32079_v0, %v32080_v42  ;;  %v32087_v0 = vld [vmem:[#allocation68_spill] sm:$0xff] }
 0xa7d   : > { %v14746_v47 = vpop.f32.mrb[68].mxu0  ;;  %16281 = vmatprep.mubr.bf16.mxu1 %v22120_v7  ;;  %v29955_v49 = vpop.permute.xlu0 %15467 }
 0xa7e   : > { %v29941_v58 = vpack.c.bf16 %v15602_v36, %v15601_v15  ;;  %v14963_v21 = vmax.f32 %v32075_v40, %v14746_v47  ;;  %v14748_v6 = vpop.f32.mrb[69].mxu0 }
 0xa7f   : > { %v14749_v14 = vpop.f32.mrb[70].mxu0  ;;  %v22121_v6 = vld [vmem:[%s30702_s3 + $0x40] ss:$16 sps:$4 sm:$0xff]  }
 0xa80   : > { %v15539_v43 = vadd.f32 %v15358_v23, %v14963_v21  ;;  %v14964_v51 = vmax.f32 %v32078_v60, %v14749_v14  ;;  %v14751_v13 = vpop.f32.mrb[71].mxu0  ;;  %v29962_v15 = vpop.permute.xlu1 %15472  ;;  %v22126_v14 = vld [vmem:[%s30702_s3 + $0x64] ss:$16 sps:$4 sm:$0xff]  }
 0xa81   : > { %v15388_v41 = vpop.permute.xlu0 %15387 }
 0xa82   : > { %v15540_v61 = vadd.f32 %v15363_v8, %v14964_v51  ;;  %v15603_v53 = vmax.f32 %v15539_v43, 0.0  ;;  %v32083_v8 = vld [vmem:[#allocation102_spill] sm:$0xff] }
 0xa83   : > { %v32084_v12 = vmax.f32 %v32082_v17, %v32083_v8 }
 0xa84   : > { %v15604_v19 = vmax.f32 %v15540_v61, 0.0  ;;  %16282 = vmatmul.mubr.bf16.gmra.mrb[56].mxu1 %v22118_v26  ;;  %v15393_v51 = vpop.permute.xlu1 %15392  ;;  %v32085_v26 = vmax.f32 %v31951_v39, %v29469_v22 }
 0xa85   : > { %v14754_v23 = vpop.f32.mrb[76].mxu0  ;;  %16289 = vmatprep.mubr.bf16.mxu1 %v22123_v28 }
 0xa86   : > { %v29957_v16 = vpack.c.bf16 %v15604_v19, %v15603_v53  ;;  %v14965_v7 = vmax.f32 %v32081_v54, %v14754_v23  ;;  %v14756_v30 = vpop.f32.mrb[77].mxu0  ;;  %v32086_v23 = vld [vmem:[#allocation15_spill] sm:$0xff] }
 0xa87   : > { %v14757_v36 = vpop.f32.mrb[78].mxu0  ;;  %v32088_v42 = vmax.f32 %v32086_v23, %v32087_v0  ;;  %v29984_v30 = vpop.permute.xlu0 %15477 }
 0xa88   : > { %v15541_v47 = vadd.f32 %v15368_v38, %v14965_v7  ;;  %v14966_v40 = vmax.f32 %v32084_v12, %v14757_v36  ;;  %v14759_v21 = vpop.f32.mrb[79].mxu0  ;;  %v22124_v7 = vld [vmem:[%s30702_s3 + $0x60] ss:$16 sps:$4 sm:$0xff]   ;;  %v22129_v36 = vld [vmem:[%s30702_s3 + $0x84] ss:$16 sps:$4 sm:$0xff]   ;;  %v29989_v39 = vpop.permute.xlu1 %15482  ;;  %v32089_v12 = vmax.f32 %v28715_v1, %v29484_v31 }
 0xa8a   : > { %v15542_v43 = vadd.f32 %v15373_v48, %v14966_v40  ;;  %v15605_v4 = vmax.f32 %v15541_v47, 0.0 }
 0xa8c   : > { %v15606_v60 = vmax.f32 %v15542_v43, 0.0  ;;  %16290 = vmatmul.mubr.bf16.gmra.mrb[60].mxu1 %v22121_v6  ;;  %v15398_v6 = vpop.permute.xlu0 %15397 }
 0xa8d   : > { %v14762_v38 = vpop.f32.mrb[72].mxu0  ;;  %16297 = vmatprep.mubr.bf16.mxu1 %v22126_v14 }
 0xa8e   : > { %v29973_v13 = vpack.c.bf16 %v15606_v60, %v15605_v4  ;;  %v14967_v28 = vmax.f32 %v32085_v26, %v14762_v38  ;;  %v14764_v61 = vpop.f32.mrb[73].mxu0  ;;  %v32090_v4 = vld [vmem:[#allocation70_spill] sm:$0xff]  ;;  %v32091_v60 = vld [vmem:[#allocation103_spill] sm:$0xff] }
 0xa8f   : > { %v14765_v53 = vpop.f32.mrb[74].mxu0  ;;  %v15403_v61 = vpop.permute.xlu1 %15402 }
 0xa90   : > { %v15543_v19 = vadd.f32 %v15378_v29, %v14967_v28  ;;  %v14968_v48 = vmax.f32 %v32088_v42, %v14765_v53  ;;  %v14767_v54 = vpop.f32.mrb[75].mxu0  ;;  %v22127_v28 = vld [vmem:[%s30702_s3 + $0x80] ss:$16 sps:$4 sm:$0xff]   ;;  %v22132_v53 = vld [vmem:[%s30702_s3 + $0xa4] ss:$16 sps:$4 sm:$0xff]   ;;  %v30005_v23 = vpop.permute.xlu0 %15487  ;;  %v32093_v42 = vmax.f32 %v28750_v52, %v29499_v45 }
 0xa92   : > { %v15544_v22 = vadd.f32 %v15383_v50, %v14968_v48  ;;  %v15607_v47 = vmax.f32 %v15543_v19, 0.0  ;;  %v32092_v50 = vmax.f32 %v32090_v4, %v32091_v60 }
 0xa94   : > { %v15608_v29 = vmax.f32 %v15544_v22, 0.0  ;;  %16298 = vmatmul.mubr.bf16.gmra.mrb[64].mxu1 %v22124_v7  ;;  %v30012_v7 = vpop.permute.xlu1 %15492  ;;  %v15408_v45 = vpop.permute.xlu0 %15407 }
 0xa95   : > { %v14770_v17 = vpop.f32.mrb[80].mxu0  ;;  %16305 = vmatprep.mubr.bf16.mxu1 %v22129_v36 }
 0xa96   : > { %v29991_v8 = vpack.c.bf16 %v15608_v29, %v15607_v47  ;;  %v14969_v40 = vmax.f32 %v32089_v12, %v14770_v17  ;;  %v14772_v21 = vpop.f32.mrb[81].mxu0  ;;  %v32094_v47 = vld [vmem:[#allocation35_spill] sm:$0xff] }
 0xa97   : > { %v14773_v14 = vpop.f32.mrb[82].mxu0  ;;  %v22135_v21 = vld [vmem:[%s30702_s3 + $0xc4] ss:$16 sps:$4 sm:$0xff]  }
 0xa98   : > { %v15545_v43 = vadd.f32 %v15388_v41, %v14969_v40  ;;  %v14970_v38 = vmax.f32 %v32092_v50, %v14773_v14  ;;  %v14775_v26 = vpop.f32.mrb[83].mxu0  ;;  %v22130_v40 = vld [vmem:[%s30702_s3 + $0xa0] ss:$16 sps:$4 sm:$0xff]   ;;  %v15413_v4 = vpop.permute.xlu1 %15412  ;;  %v32097_v50 = vmax.f32 %v28785_v20, %v29514_v11 }
 0xa9a   : > { %v15546_v1 = vadd.f32 %v15393_v51, %v14970_v38  ;;  %v15609_v31 = vmax.f32 %v15545_v43, 0.0  ;;  %v32095_v51 = vld [vmem:[#allocation104_spill] sm:$0xff] }
 0xa9b   : > { %v32096_v29 = vmax.f32 %v32094_v47, %v32095_v51 }
 0xa9c   : > { %v15610_v19 = vmax.f32 %v15546_v1, 0.0  ;;  %16306 = vmatmul.mubr.bf16.gmra.mrb[68].mxu1 %v22127_v28  ;;  %v32098_v1 = vld [vmem:[#allocation71_spill] sm:$0xff]  ;;  %v30039_v20 = vpop.permute.xlu1 %15502 }
 0xa9d   : > { %v14778_v41 = vpop.f32.mrb[84].mxu0  ;;  %16313 = vmatprep.mubr.bf16.mxu1 %v22132_v53 }
 0xa9e   : > { %v30007_v0 = vpack.c.bf16 %v15610_v19, %v15609_v31  ;;  %v14971_v48 = vmax.f32 %v32093_v42, %v14778_v41  ;;  %v14780_v54 = vpop.f32.mrb[85].mxu0  ;;  %v32099_v31 = vld [vmem:[#allocation105_spill] sm:$0xff] }
 0xa9f   : > { %v14781_v36 = vpop.f32.mrb[86].mxu0  ;;  %v32100_v19 = vmax.f32 %v32098_v1, %v32099_v31  ;;  %v22133_v42 = vld [vmem:[%s30702_s3 + $0xc0] ss:$16 sps:$4 sm:$0xff]   ;;  %v22138_v54 = vld [vmem:[%s30702_s3 + $0xe4] ss:$16 sps:$4 sm:$0xff]   ;;  %v32105_v31 = vmax.f32 %v28871_v55, %v29544_v62 }
 0xaa0   : > { %v15547_v22 = vadd.f32 %v15398_v6, %v14971_v48  ;;  %v14972_v17 = vmax.f32 %v32096_v29, %v14781_v36  ;;  %v14783_v12 = vpop.f32.mrb[87].mxu0  ;;  %v30034_v48 = vpop.permute.xlu0 %15497  ;;  %v32101_v29 = vmax.f32 %v28828_v59, %v29529_v44 }
 0xaa2   : > { %v15548_v52 = vadd.f32 %v15403_v61, %v14972_v17  ;;  %v15611_v14 = vmax.f32 %v15547_v22, 0.0 }
 0xaa4   : > { %v15612_v43 = vmax.f32 %v15548_v52, 0.0  ;;  %16314 = vmatmul.mubr.bf16.gmra.mrb[72].mxu1 %v22130_v40  ;;  %v15418_v40 = vpop.permute.xlu0 %15417 }
 0xaa5   : > { %v14786_v6 = vpop.f32.mrb[88].mxu0  ;;  %16321 = vmatprep.mubr.bf16.mxu1 %v22135_v21 }
 0xaa6   : > { %v30023_v60 = vpack.c.bf16 %v15612_v43, %v15611_v14  ;;  %v14973_v38 = vmax.f32 %v32097_v50, %v14786_v6  ;;  %v14788_v26 = vpop.f32.mrb[89].mxu0  ;;  %v32103_v14 = vld [vmem:[#allocation106_spill] sm:$0xff] }
 0xaa7   : > { %v14789_v28 = vpop.f32.mrb[90].mxu0  ;;  %v22136_v50 = vld [vmem:[%s30702_s3 + $0xe0] ss:$16 sps:$4 sm:$0xff]   ;;  %v22141_v26 = vld [vmem:[%s30702_s3 + $0x104] ss:$16 sps:$4 sm:$0xff]  }
 0xaa8   : > { %v15549_v53 = vadd.f32 %v15408_v45, %v14973_v38  ;;  %v14974_v61 = vmax.f32 %v32100_v19, %v14789_v28  ;;  %v14791_v41 = vpop.f32.mrb[91].mxu0  ;;  %v32102_v45 = vld [vmem:[#allocation51_spill] sm:$0xff]  ;;  %v15423_v38 = vpop.permute.xlu1 %15422 }
 0xaa9   : > { %v32104_v43 = vmax.f32 %v32102_v45, %v32103_v14 }
 0xaaa   : > { %v15550_v11 = vadd.f32 %v15413_v4, %v14974_v61  ;;  %v15613_v36 = vmax.f32 %v15549_v53, 0.0 }
 0xaac   : > { %v15614_v22 = vmax.f32 %v15550_v11, 0.0  ;;  %16322 = vmatmul.mubr.bf16.gmra.mrb[76].mxu1 %v22133_v42  ;;  %v32107_v11 = vld [vmem:[#allocation107_spill] sm:$0xff] }
 0xaad   : > { %v14794_v47 = vpop.f32.mrb[92].mxu0  ;;  %16329 = vmatprep.mubr.bf16.mxu1 %v22138_v54  ;;  %v32106_v54 = vld [vmem:[#allocation36_spill] sm:$0xff] }
 0xaae   : > { %v30041_v51 = vpack.c.bf16 %v15614_v22, %v15613_v36  ;;  %v14975_v17 = vmax.f32 %v32101_v29, %v14794_v47  ;;  %v14796_v12 = vpop.f32.mrb[93].mxu0  ;;  %v32108_v36 = vmax.f32 %v32106_v54, %v32107_v11  ;;  %v22139_v29 = vld [vmem:[%s30702_s3 + $0x100] ss:$16 sps:$4 sm:$0xff]  }
 0xaaf   : > { %v14797_v21 = vpop.f32.mrb[94].mxu0 }
 0xab0   : > { %v15551_v52 = vadd.f32 %v15418_v40, %v14975_v17  ;;  %v14976_v4 = vmax.f32 %v32104_v43, %v14797_v21  ;;  %v14799_v6 = vpop.f32.mrb[95].mxu0  ;;  %v22144_v17 = vld [vmem:[%s30702_s3 + $0x124] ss:$16 sps:$4 sm:$0xff]  }
 0xab1   : > { %v32111_v6 = vld [vmem:[#allocation108_spill] sm:$0xff] }
 0xab2   : > { %v15552_v44 = vadd.f32 %v15423_v38, %v14976_v4  ;;  %v15615_v59 = vmax.f32 %v15551_v52, 0.0  ;;  %v32110_v4 = vld [vmem:[#allocation75_spill] sm:$0xff] }
 0xab4   : > { %v15616_v28 = vmax.f32 %v15552_v44, 0.0  ;;  %16330 = vmatmul.mubr.bf16.gmra.mrb[80].mxu1 %v22136_v50  ;;  %v32112_v50 = vmax.f32 %v32110_v4, %v32111_v6  ;;  %v32121_v4 = vmax.f32 %v29033_v57, %v29604_v34  ;;  %v22156_v34 = vld [vmem:[%s30702_s3 + $0x1a4] ss:$16 sps:$4 sm:$0xff]  }
 0xab5   : > { %v14802_v53 = vpop.f32.mrb[96].mxu0  ;;  %16337 = vmatprep.mubr.bf16.mxu1 %v22141_v26 }
 0xab6   : > { %v30055_v1 = vpack.c.bf16 %v15616_v28, %v15615_v59  ;;  %v14977_v19 = vmax.f32 %v32105_v31, %v14802_v53  ;;  %v14804_v61 = vpop.f32.mrb[97].mxu0  ;;  %v32113_v28 = vmax.f32 %v28957_v37, %v29574_v10  ;;  %v22150_v10 = vld [vmem:[%s30702_s3 + $0x164] ss:$16 sps:$4 sm:$0xff]  }
 0xab7   : > { %v14805_v41 = vpop.f32.mrb[98].mxu0 }
 0xab8   : > { %v15553_v42 = vadd.f32 %v29876_v24, %v14977_v19  ;;  %v14978_v22 = vmax.f32 %v32108_v36, %v14805_v41  ;;  %v14807_v47 = vpop.f32.mrb[99].mxu0  ;;  %v32109_v24 = vmax.f32 %v28914_v2, %v29559_v46  ;;  %v22147_v46 = vld [vmem:[%s30702_s3 + $0x144] ss:$16 sps:$4 sm:$0xff]  }
 0xab9   : > { %v32114_v41 = vld [vmem:[#allocation17_spill] sm:$0xff] }
 0xaba   : > { %v15554_v62 = vadd.f32 %v29881_v33, %v14978_v22  ;;  %v15617_v55 = vmax.f32 %v15553_v42, 0.0  ;;  %v22142_v33 = vld [vmem:[%s30702_s3 + $0x120] ss:$16 sps:$4 sm:$0xff]  }
 0xabb   : > { %v32115_v42 = vld [vmem:[#allocation109_spill] sm:$0xff] }
 0xabc   : > { %v15618_v12 = vmax.f32 %v15554_v62, 0.0  ;;  %16338 = vmatmul.mubr.bf16.gmra.mrb[84].mxu1 %v22139_v29  ;;  %v32116_v54 = vmax.f32 %v32114_v41, %v32115_v42  ;;  %v32117_v29 = vmax.f32 %v28997_v32, %v29589_v56  ;;  %v22153_v56 = vld [vmem:[%s30702_s3 + $0x184] ss:$16 sps:$4 sm:$0xff]   ;;  %v32127_v42 = vld [vmem:[#allocation112_spill] sm:$0xff] }
 0xabd   : > { %v14810_v40 = vpop.f32.mrb[100].mxu0  ;;  %16345 = vmatprep.mubr.bf16.mxu1 %v22144_v17  ;;  %v32126_v41 = vld [vmem:[#allocation27_spill] sm:$0xff] }
 0xabe   : > { %v14979_v21 = vmax.f32 %v32109_v24, %v14810_v40  ;;  %v14812_v52 = vpop.f32.mrb[101].mxu0  ;;  %v15721_v45 = vpack.c.bf16 %v15618_v12, %v15617_v55  ;;  %v32118_v40 = vld [vmem:[#allocation49_spill] sm:$0xff]  ;;  %v32119_v24 = vld [vmem:[#allocation110_spill] sm:$0xff] }
 0xabf   : > { %v14813_v14 = vpop.f32.mrb[102].mxu0 }
 0xac0   : > { %v15555_v43 = vadd.f32 %v29896_v3, %v14979_v21  ;;  %v14980_v38 = vmax.f32 %v32112_v50, %v14813_v14  ;;  %v14815_v26 = vpop.f32.mrb[103].mxu0  ;;  %18980 = vmatprep.subr.bf16.mxu1 %v15721_v45  ;;  %v32120_v21 = vmax.f32 %v32118_v40, %v32119_v24 }
 0xac1   : > { %18981 = vmatpush3.bf16.msra.mxu1 %v29941_v58 }
 0xac2   : > { %v15556_v2 = vadd.f32 %v29900_v5, %v14980_v38  ;;  %v15619_v44 = vmax.f32 %v15555_v43, 0.0  ;;  %v22145_v5 = vld [vmem:[%s30702_s3 + $0x140] ss:$16 sps:$4 sm:$0xff]  }
 0xac4   : > { %v15620_v3 = vmax.f32 %v15556_v2, 0.0  ;;  %16346 = vmatmul.mubr.bf16.gmra.mrb[88].mxu1 %v22142_v33  ;;  %v32122_v33 = vld [vmem:[#allocation78_spill] sm:$0xff] }
 0xac5   : > { %v14818_v59 = vpop.f32.mrb[104].mxu0  ;;  %16353 = vmatprep.mubr.bf16.mxu1 %v22147_v46  ;;  %v32123_v46 = vld [vmem:[#allocation111_spill] sm:$0xff] }
 0xac6   : > { %v14981_v53 = vmax.f32 %v32113_v28, %v14818_v59  ;;  %v14820_v31 = vpop.f32.mrb[105].mxu0  ;;  %v15722_v19 = vpack.c.bf16 %v15620_v3, %v15619_v44  ;;  %v32124_v2 = vmax.f32 %v32122_v33, %v32123_v46  ;;  %v22165_v46 = vld [vmem:[%s30702_s3 + $0xc] ss:$16 sps:$4 sm:$0xff]  }
 0xac7   : > { %v14821_v61 = vpop.f32.mrb[106].mxu0 }
 0xac8   : > { %v15557_v58 = vadd.f32 %v29911_v18, %v14981_v53  ;;  %v14982_v11 = vmax.f32 %v32116_v54, %v14821_v61  ;;  %v14823_v36 = vpop.f32.mrb[107].mxu0  ;;  %18982 = vmatprep.subr.bf16.mxu1 %v15722_v19  ;;  %v32125_v53 = vmax.f32 %v29071_v25, %v29619_v35  ;;  %v32128_v54 = vmax.f32 %v32126_v41, %v32127_v42  ;;  %v22159_v35 = vld [vmem:[%s30702_s3 + $0x1c4] ss:$16 sps:$4 sm:$0xff]   ;;  %v22189_v41 = vld [vmem:[%s30702_s3 + $0x10c] ss:$16 sps:$4 sm:$0xff]  }
 0xac9   : > { %18983 = vmatpush3.bf16.msra.mxu1 %v29957_v16  ;;  %v22187_v42 = vld [vmem:[%s30702_s3 + $0x108] ss:$16 sps:$4 sm:$0xff]  }
 0xaca   : > { %v15558_v37 = vadd.f32 %v29916_v63, %v14982_v11  ;;  %v15621_v22 = vmax.f32 %v15557_v58, 0.0  ;;  %v22148_v63 = vld [vmem:[%s30702_s3 + $0x160] ss:$16 sps:$4 sm:$0xff]  }
 0xacc   : > { %v15622_v18 = vmax.f32 %v15558_v37, 0.0  ;;  %16354 = vmatmul.mubr.bf16.gmra.mrb[92].mxu1 %v22145_v5  ;;  %v32129_v37 = vld [vmem:[#allocation28_spill] sm:$0xff] }
 0xacd   : > { %v14826_v47 = vpop.f32.mrb[108].mxu0  ;;  %16361 = vmatprep.mubr.bf16.mxu1 %v22150_v10 }
 0xace   : > { %v14983_v17 = vmax.f32 %v32117_v29, %v14826_v47  ;;  %v14828_v62 = vpop.f32.mrb[109].mxu0  ;;  %v15723_v55 = vpack.c.bf16 %v15622_v18, %v15621_v22  ;;  %v32130_v22 = vld [vmem:[#allocation113_spill] sm:$0xff] }
 0xacf   : > { %v14829_v12 = vpop.f32.mrb[110].mxu0  ;;  %v32131_v18 = vmax.f32 %v32129_v37, %v32130_v22  ;;  %v22201_v22 = vld [vmem:[%s30702_s3 + $0x18c] ss:$16 sps:$4 sm:$0xff]  }
 0xad0   : > { %v15559_v16 = vadd.f32 %v29933_v27, %v14983_v17  ;;  %v14984_v52 = vmax.f32 %v32120_v21, %v14829_v12  ;;  %v14831_v45 = vpop.f32.mrb[111].mxu0  ;;  %18984 = vmatprep.subr.bf16.mxu1 %v15723_v55  ;;  %v32132_v55 = vld [vmem:[#allocation53_spill] sm:$0xff]  ;;  %v32133_v12 = vld [vmem:[#allocation114_spill] sm:$0xff] }
 0xad1   : > { %18985 = vmatpush3.bf16.msra.mxu1 %v29973_v13  ;;  %v22162_v21 = vld [vmem:[%s30702_s3 + $0x1e4] ss:$16 sps:$4 sm:$0xff]  }
 0xad2   : > { %v15560_v32 = vadd.f32 %v29939_v9, %v14984_v52  ;;  %v15623_v14 = vmax.f32 %v15559_v16, 0.0  ;;  %v22151_v9 = vld [vmem:[%s30702_s3 + $0x180] ss:$16 sps:$4 sm:$0xff]   ;;  %v32134_v16 = vmax.f32 %v32132_v55, %v32133_v12  ;;  %v22204_v12 = vld [vmem:[%s30702_s3 + $0x1ac] ss:$16 sps:$4 sm:$0xff]  }
 0xad4   : > { %v15624_v27 = vmax.f32 %v15560_v32, 0.0  ;;  %16362 = vmatmul.mubr.bf16.gmra.mrb[96].mxu1 %v22148_v63  ;;  %v32136_v32 = vld [vmem:[#allocation115_spill] sm:$0xff] }
 0xad5   : > { %v14834_v43 = vpop.f32.mrb[112].mxu0  ;;  %16369 = vmatprep.mubr.bf16.mxu1 %v22153_v56  ;;  %v32135_v56 = vld [vmem:[#allocation54_spill] sm:$0xff] }
 0xad6   : > { %v14985_v6 = vmax.f32 %v32121_v4, %v14834_v43  ;;  %v14836_v50 = vpop.f32.mrb[113].mxu0  ;;  %v15724_v38 = vpack.c.bf16 %v15624_v27, %v15623_v14  ;;  %v32137_v14 = vmax.f32 %v32135_v56, %v32136_v32 }
 0xad7   : > { %v14837_v26 = vpop.f32.mrb[114].mxu0  ;;  %v32138_v50 = vld [vmem:[#allocation81_spill] sm:$0xff] }
 0xad8   : > { %v15561_v13 = vadd.f32 %v29955_v49, %v14985_v6  ;;  %v14986_v44 = vmax.f32 %v32124_v2, %v14837_v26  ;;  %v14839_v3 = vpop.f32.mrb[115].mxu0  ;;  %18986 = vmatprep.subr.bf16.mxu1 %v15724_v38  ;;  %v32139_v38 = vld [vmem:[#allocation116_spill] sm:$0xff] }
 0xad9   : > { %18987 = vmatpush3.bf16.msra.mxu1 %v29991_v8  ;;  %v32140_v26 = vmax.f32 %v32138_v50, %v32139_v38 }
 0xada   : > { %v15562_v57 = vadd.f32 %v29962_v15, %v14986_v44  ;;  %v15625_v59 = vmax.f32 %v15561_v13, 0.0  ;;  %v22154_v15 = vld [vmem:[%s30702_s3 + $0x1a0] ss:$16 sps:$4 sm:$0xff]  }
 0xadc   : > { %v15626_v49 = vmax.f32 %v15562_v57, 0.0  ;;  %16370 = vmatmul.mubr.bf16.gmra.mrb[100].mxu1 %v22151_v9  ;;  %v22163_v9 = vld [vmem:[%s30702_s3 + $0x8] ss:$16 sps:$4 sm:$0xff]   ;;  %v22174_v57 = vld [vmem:[%s30702_s3 + $0x6c] ss:$16 sps:$4 sm:$0xff]  }
 0xadd   : > { %v14842_v28 = vpop.f32.mrb[116].mxu0  ;;  %16377 = vmatprep.mubr.bf16.mxu1 %v22156_v34  ;;  %v22171_v34 = vld [vmem:[%s30702_s3 + $0x4c] ss:$16 sps:$4 sm:$0xff]  }
 0xade   : > { %v14987_v31 = vmax.f32 %v32125_v53, %v14842_v28  ;;  %v14844_v19 = vpop.f32.mrb[117].mxu0  ;;  %v15725_v61 = vpack.c.bf16 %v15626_v49, %v15625_v59  ;;  %v22172_v59 = vld [vmem:[%s30702_s3 + $0x68] ss:$16 sps:$4 sm:$0xff]   ;;  %v22177_v49 = vld [vmem:[%s30702_s3 + $0x8c] ss:$16 sps:$4 sm:$0xff]  }
 0xadf   : > { %v14845_v58 = vpop.f32.mrb[118].mxu0  ;;  %v22175_v28 = vld [vmem:[%s30702_s3 + $0x88] ss:$16 sps:$4 sm:$0xff]   ;;  %v22180_v53 = vld [vmem:[%s30702_s3 + $0xac] ss:$16 sps:$4 sm:$0xff]  }
 0xae0   : > { %v15563_v8 = vadd.f32 %v29984_v30, %v14987_v31  ;;  %v14988_v11 = vmax.f32 %v32128_v54, %v14845_v58  ;;  %v14847_v36 = vpop.f32.mrb[119].mxu0  ;;  %18988 = vmatprep.subr.bf16.mxu1 %v15725_v61  ;;  %v22178_v31 = vld [vmem:[%s30702_s3 + $0xa8] ss:$16 sps:$4 sm:$0xff]   ;;  %v22183_v19 = vld [vmem:[%s30702_s3 + $0xcc] ss:$16 sps:$4 sm:$0xff]  }
 0xae1   : > { %18989 = vmatpush3.bf16.msra.mxu1 %v30007_v0  ;;  %v22181_v61 = vld [vmem:[%s30702_s3 + $0xc8] ss:$16 sps:$4 sm:$0xff]   ;;  %v22186_v58 = vld [vmem:[%s30702_s3 + $0xec] ss:$16 sps:$4 sm:$0xff]  }
 0xae2   : > { %v15564_v25 = vadd.f32 %v29989_v39, %v14988_v11  ;;  %v15627_v5 = vmax.f32 %v15563_v8, 0.0  ;;  %v22157_v39 = vld [vmem:[%s30702_s3 + $0x1c0] ss:$16 sps:$4 sm:$0xff]   ;;  %v22184_v8 = vld [vmem:[%s30702_s3 + $0xe8] ss:$16 sps:$4 sm:$0xff]  }
 0xae3   : > { %v22192_v54 = vld [vmem:[%s30702_s3 + $0x12c] ss:$16 sps:$4 sm:$0xff]   ;;  %v22190_v11 = vld [vmem:[%s30702_s3 + $0x128] ss:$16 sps:$4 sm:$0xff]  }
 0xae4   : > { %v15628_v30 = vmax.f32 %v15564_v25, 0.0  ;;  %16378 = vmatmul.mubr.bf16.gmra.mrb[104].mxu1 %v22154_v15  ;;  %v22195_v36 = vld [vmem:[%s30702_s3 + $0x14c] ss:$16 sps:$4 sm:$0xff]   ;;  %v22193_v15 = vld [vmem:[%s30702_s3 + $0x148] ss:$16 sps:$4 sm:$0xff]  }
 0xae5   : > { %v14850_v10 = vpop.f32.mrb[120].mxu0  ;;  %16385 = vmatprep.mubr.bf16.mxu1 %v22159_v35  ;;  %v22198_v35 = vld [vmem:[%s30702_s3 + $0x16c] ss:$16 sps:$4 sm:$0xff]  }
 0xae6   : > { %v14989_v47 = vmax.f32 %v32131_v18, %v14850_v10  ;;  %v14852_v29 = vpop.f32.mrb[121].mxu0  ;;  %v15726_v17 = vpack.c.bf16 %v15628_v30, %v15627_v5  ;;  %v22196_v30 = vld [vmem:[%s30702_s3 + $0x168] ss:$16 sps:$4 sm:$0xff]  }
 0xae7   : > { %v14853_v62 = vpop.f32.mrb[122].mxu0 }
 0xae8   : > { %v15565_v0 = vadd.f32 %v30005_v23, %v14989_v47  ;;  %v14990_v40 = vmax.f32 %v32134_v16, %v14853_v62  ;;  %v14855_v24 = vpop.f32.mrb[123].mxu0  ;;  %18990 = vmatprep.subr.bf16.mxu1 %v15726_v17  ;;  %v22199_v62 = vld [vmem:[%s30702_s3 + $0x188] ss:$16 sps:$4 sm:$0xff]  }
 0xae9   : > { %18991 = vmatpush3.bf16.msra.mxu1 %v30023_v60 }
 0xaea   : > { %v15566_v52 = vadd.f32 %v30012_v7, %v14990_v40  ;;  %v15629_v45 = vmax.f32 %v15565_v0, 0.0  ;;  %v22160_v7 = vld [vmem:[%s30702_s3 + $0x1e0] ss:$16 sps:$4 sm:$0xff]  }
 0xaec   : > { %v15630_v23 = vmax.f32 %v15566_v52, 0.0  ;;  %16386 = vmatmul.mubr.bf16.gmra.mrb[108].mxu1 %v22157_v39 }
 0xaed   : > { %v14858_v63 = vpop.f32.mrb[124].mxu0  ;;  %16393 = vmatprep.mubr.bf16.mxu1 %v22162_v21  ;;  %v22202_v21 = vld [vmem:[%s30702_s3 + $0x1a8] ss:$16 sps:$4 sm:$0xff]  }
 0xaee   : > { %v14991_v27 = vmax.f32 %v32137_v14, %v14858_v63  ;;  %v14860_v43 = vpop.f32.mrb[125].mxu0  ;;  %v15727_v4 = vpack.c.bf16 %v15630_v23, %v15629_v45  ;;  %v22207_v23 = vld [vmem:[%s30702_s3 + $0x1cc] ss:$16 sps:$4 sm:$0xff]  }
 0xaef   : > { %v14861_v6 = vpop.f32.mrb[126].mxu0 }
 0xaf0   : > { %v15567_v60 = vadd.f32 %v30034_v48, %v14991_v27  ;;  %v14992_v13 = vmax.f32 %v32140_v26, %v14861_v6  ;;  %v14863_v33 = vpop.f32.mrb[127].mxu0  ;;  %18992 = vmatprep.subr.bf16.mxu1 %v15727_v4  ;;  %v22205_v27 = vld [vmem:[%s30702_s3 + $0x1c8] ss:$16 sps:$4 sm:$0xff]   ;;  %v22210_v6 = vld [vmem:[%s30702_s3 + $0x1ec] ss:$16 sps:$4 sm:$0xff]  }
 0xaf1   : > { %18993 = vmatpush3.bf16.msra.mxu1 %v30041_v51  ;;  %v22168_v51 = vld [vmem:[%s30702_s3 + $0x2c] ss:$16 sps:$4 sm:$0xff]  }
 0xaf2   : > { %v15568_v2 = vadd.f32 %v30039_v20, %v14992_v13  ;;  %v15631_v44 = vmax.f32 %v15567_v60, 0.0  ;;  %v22166_v20 = vld [vmem:[%s30702_s3 + $0x28] ss:$16 sps:$4 sm:$0xff]  }
 0xaf3   : > { %v22208_v13 = vld [vmem:[%s30702_s3 + $0x1e8] ss:$16 sps:$4 sm:$0xff]  }
 0xaf4   : > { %v15632_v48 = vmax.f32 %v15568_v2, 0.0  ;;  %16394 = vmatmul.mubr.bf16.gmra.mrb[112].mxu1 %v22160_v7 }
 0xaf5   : > { %16434 = vmatprep.mubr.bf16.mxu1 %v22165_v46 }
 0xaf6   : > { %v15728_v3 = vpack.c.bf16 %v15632_v48, %v15631_v44 }
 0xaf8   : > { %18994 = vmatprep.subr.bf16.mxu1 %v15728_v3 }
 0xaf9   : > { %18995 = vmatpush3.bf16.msra.mxu1 %v30055_v1  ;;  %v22169_v1 = vld [vmem:[%s30702_s3 + $0x48] ss:$16 sps:$4 sm:$0xff]  }
 0xafc   : > { %16435 = vmatmul.mubr.bf16.vlgmr.msra.gmra.mrb[116].mxu1 %v22163_v9 }
 0xafd   : > { %16442 = vmatprep.mubr.bf16.mxu1 %v22168_v51 }
 0xb04   : > { %16443 = vmatmul.mubr.bf16.gmra.mrb[120].mxu1 %v22166_v20 }
 0xb05   : > { %16450 = vmatprep.mubr.bf16.mxu1 %v22171_v34 }
 0xb0c   : > { %16451 = vmatmul.mubr.bf16.gmra.mrb[124].mxu1 %v22169_v1 }
 0xb0d   : > { %16458 = vmatprep.mubr.bf16.mxu1 %v22174_v57 }
 0xb14   : > { %16459 = vmatmul.mubr.bf16.gmra.mrb[128].mxu1 %v22172_v59 }
 0xb15   : > { %16466 = vmatprep.mubr.bf16.mxu1 %v22177_v49 }
 0xb1c   : > { %16467 = vmatmul.mubr.bf16.gmra.mrb[132].mxu1 %v22175_v28 }
 0xb1d   : > { %16474 = vmatprep.mubr.bf16.mxu1 %v22180_v53 }
 0xb24   : > { %16475 = vmatmul.mubr.bf16.gmra.mrb[136].mxu1 %v22178_v31 }
 0xb25   : > { %16482 = vmatprep.mubr.bf16.mxu1 %v22183_v19 }
 0xb2c   : > { %16483 = vmatmul.mubr.bf16.gmra.mrb[140].mxu1 %v22181_v61 }
 0xb2d   : > { %16490 = vmatprep.mubr.bf16.mxu1 %v22186_v58 }
 0xb34   : > { %16491 = vmatmul.mubr.bf16.gmra.mrb[144].mxu1 %v22184_v8 }
 0xb35   : > { %16498 = vmatprep.mubr.bf16.mxu1 %v22189_v41 }
 0xb3c   : > { %16499 = vmatmul.mubr.bf16.gmra.mrb[148].mxu1 %v22187_v42 }
 0xb3d   : > { %16506 = vmatprep.mubr.bf16.mxu1 %v22192_v54 }
 0xb44   : > { %16507 = vmatmul.mubr.bf16.gmra.mrb[152].mxu1 %v22190_v11 }
 0xb45   : > { %16514 = vmatprep.mubr.bf16.mxu1 %v22195_v36 }
 0xb4c   : > { %16515 = vmatmul.mubr.bf16.gmra.mrb[156].mxu1 %v22193_v15 }
 0xb4d   : > { %16522 = vmatprep.mubr.bf16.mxu1 %v22198_v35 }
 0xb4f   : > { %v18884_v25 = vpop.f32.mrb[52].mxu1 }
 0xb50   : > { %v18885_v5 = vpop.f32.mrb[53].mxu1 }
 0xb51   : > { %v30246_v10 = vadd.f32 %v18885_v5, %v18884_v25  ;;  %v18887_v37 = vpop.f32.mrb[54].mxu1 }
 0xb52   : > { %v18888_v18 = vpop.f32.mrb[55].mxu1 }
 0xb53   : > { %v30251_v47 = vadd.f32 %v18888_v18, %v18887_v37 }
 0xb54   : > { %16523 = vmatmul.mubr.bf16.gmra.mrb[160].mxu1 %v22196_v30 }
 0xb55   : > { %16530 = vmatprep.mubr.bf16.mxu1 %v22201_v22 }
 0xb57   : > { %v18890_v29 = vpop.f32.mrb[56].mxu1 }
 0xb58   : > { %v18891_v17 = vpop.f32.mrb[57].mxu1 }
 0xb59   : > { %v30256_v0 = vadd.f32 %v18891_v17, %v18890_v29  ;;  %v18893_v55 = vpop.f32.mrb[58].mxu1  ;;  %v15764_v29 = vpop.permute.xlu0 %15763 }
 0xb5a   : > { %v18894_v16 = vpop.f32.mrb[59].mxu1 }
 0xb5b   : > { %v30261_v40 = vadd.f32 %v18894_v16, %v18893_v55 }
 0xb5c   : > { %16531 = vmatmul.mubr.bf16.gmra.mrb[164].mxu1 %v22199_v62 }
 0xb5d   : > { %16538 = vmatprep.mubr.bf16.mxu1 %v22204_v12  ;;  %v15769_v12 = vpop.permute.xlu1 %15768 }
 0xb5f   : > { %v18896_v24 = vpop.f32.mrb[60].mxu1 }
 0xb60   : > { %v18897_v39 = vpop.f32.mrb[61].mxu1 }
 0xb61   : > { %v30266_v52 = vadd.f32 %v18897_v39, %v18896_v24  ;;  %v18899_v45 = vpop.f32.mrb[62].mxu1  ;;  %v30314_v39 = vpop.permute.xlu0 %15803 }
 0xb62   : > { %v18900_v63 = vpop.f32.mrb[63].mxu1 }
 0xb63   : > { %v30271_v56 = vadd.f32 %v18900_v63, %v18899_v45  ;;  %v30316_v45 = vpop.permute.xlu1 %15808 }
 0xb64   : > { %16539 = vmatmul.mubr.bf16.gmra.mrb[168].mxu1 %v22202_v21 }
 0xb65   : > { %16546 = vmatprep.mubr.bf16.mxu1 %v22207_v23 }
 0xb67   : > { %v18902_v32 = vpop.f32.mrb[64].mxu1 }
 0xb68   : > { %v18903_v14 = vpop.f32.mrb[65].mxu1 }
 0xb69   : > { %v30276_v43 = vadd.f32 %v18903_v14, %v18902_v32  ;;  %v18905_v4 = vpop.f32.mrb[66].mxu1 }
 0xb6a   : > { %v18906_v60 = vpop.f32.mrb[67].mxu1 }
 0xb6b   : > { %v30281_v50 = vadd.f32 %v18906_v60, %v18905_v4  ;;  %v30322_v4 = vpop.permute.xlu0 %15843 }
 0xb6c   : > { %16547 = vmatmul.mubr.bf16.gmra.mrb[172].mxu1 %v22205_v27 }
 0xb6d   : > { %16554 = vmatprep.mubr.bf16.mxu1 %v22210_v6  ;;  %v30324_v6 = vpop.permute.xlu1 %15848 }
 0xb6f   : > { %v18908_v38 = vpop.f32.mrb[68].mxu1 }
 0xb70   : > { %v18909_v26 = vpop.f32.mrb[69].mxu1 }
 0xb71   : > { %v30286_v33 = vadd.f32 %v18909_v26, %v18908_v38  ;;  %v18911_v7 = vpop.f32.mrb[70].mxu1 }
 0xb72   : > { %v18912_v46 = vpop.f32.mrb[71].mxu1 }
 0xb73   : > { %v30288_v2 = vadd.f32 %v18912_v46, %v18911_v7  ;;  %v30328_v7 = vpop.permute.xlu0 %15883 }
 0xb74   : > { %16555 = vmatmul.mubr.bf16.gmra.mrb[176].mxu1 %v22208_v13 }
 0xb77   : > { %v18914_v44 = vpop.f32.mrb[72].mxu1 }
 0xb78   : > { %v18915_v48 = vpop.f32.mrb[73].mxu1 }
 0xb79   : > { %v30290_v3 = vadd.f32 %v18915_v48, %v18914_v44  ;;  %v18917_v9 = vpop.f32.mrb[74].mxu1  ;;  %v30332_v48 = vpop.permute.xlu1 %15888 }
 0xb7a   : > { %v18918_v51 = vpop.f32.mrb[75].mxu1 }
 0xb7b   : > { %v30292_v20 = vadd.f32 %v18918_v51, %v18917_v9  ;;  %v15774_v51 = vpop.permute.xlu0 %15773 }
 0xb7f   : > { %v18920_v34 = vpop.f32.mrb[76].mxu1 }
 0xb80   : > { %v18921_v1 = vpop.f32.mrb[77].mxu1 }
 0xb81   : > { %v30294_v57 = vadd.f32 %v18921_v1, %v18920_v34  ;;  %v18923_v59 = vpop.f32.mrb[78].mxu1 }
 0xb82   : > { %v18924_v49 = vpop.f32.mrb[79].mxu1 }
 0xb83   : > { %v30296_v28 = vadd.f32 %v18924_v49, %v18923_v59  ;;  %v15779_v49 = vpop.permute.xlu1 %15778 }
 0xb87   : > { %v18926_v53 = vpop.f32.mrb[80].mxu1 }
 0xb88   : > { %v18927_v31 = vpop.f32.mrb[81].mxu1 }
 0xb89   : > { %v30298_v19 = vadd.f32 %v18927_v31, %v18926_v53  ;;  %v18929_v61 = vpop.f32.mrb[82].mxu1 }
 0xb8a   : > { %v18930_v58 = vpop.f32.mrb[83].mxu1 }
 0xb8b   : > { %v30300_v8 = vadd.f32 %v18930_v58, %v18929_v61  ;;  %v30338_v61 = vpop.permute.xlu0 %15813 }
 0xb8f   : > { %v18932_v41 = vpop.f32.mrb[84].mxu1 }
 0xb90   : > { %v18933_v42 = vpop.f32.mrb[85].mxu1 }
 0xb91   : > { %v30302_v54 = vadd.f32 %v18933_v42, %v18932_v41  ;;  %v18935_v11 = vpop.f32.mrb[86].mxu1  ;;  %v30340_v41 = vpop.permute.xlu1 %15818 }
 0xb92   : > { %v18936_v36 = vpop.f32.mrb[87].mxu1 }
 0xb93   : > { %v30304_v15 = vadd.f32 %v18936_v36, %v18935_v11 }
 0xb97   : > { %v18938_v35 = vpop.f32.mrb[88].mxu1 }
 0xb98   : > { %v18939_v25 = vpop.f32.mrb[89].mxu1 }
 0xb99   : > { %v30306_v5 = vadd.f32 %v18939_v25, %v18938_v35  ;;  %v18941_v30 = vpop.f32.mrb[90].mxu1 }
 0xb9a   : > { %v18942_v37 = vpop.f32.mrb[91].mxu1 }
 0xb9b   : > { %v30308_v22 = vadd.f32 %v18942_v37, %v18941_v30  ;;  %v30346_v30 = vpop.permute.xlu0 %15853  ;;  %v30348_v37 = vpop.permute.xlu1 %15858 }
 0xb9f   : > { %v18944_v18 = vpop.f32.mrb[92].mxu1 }
 0xba0   : > { %v18945_v17 = vpop.f32.mrb[93].mxu1 }
 0xba1   : > { %v30310_v62 = vadd.f32 %v18945_v17, %v18944_v18  ;;  %v18947_v55 = vpop.f32.mrb[94].mxu1 }
 0xba2   : > { %v18948_v16 = vpop.f32.mrb[95].mxu1 }
 0xba3   : > { %v30312_v24 = vadd.f32 %v18948_v16, %v18947_v55 }
 0xba7   : > { %v18950_v21 = vpop.f32.mrb[96].mxu1 }
 0xba8   : > { %v18951_v23 = vpop.f32.mrb[97].mxu1 }
 0xba9   : > { %v30318_v63 = vadd.f32 %v18951_v23, %v18950_v21  ;;  %v18953_v32 = vpop.f32.mrb[98].mxu1  ;;  %v30352_v21 = vpop.permute.xlu0 %15893 }
 0xbaa   : > { %v18954_v14 = vpop.f32.mrb[99].mxu1 }
 0xbab   : > { %v30320_v27 = vadd.f32 %v18954_v14, %v18953_v32  ;;  %v30356_v14 = vpop.permute.xlu1 %15898 }
 0xbaf   : > { %v18956_v60 = vpop.f32.mrb[100].mxu1 }
 0xbb0   : > { %v18957_v38 = vpop.f32.mrb[101].mxu1 }
 0xbb1   : > { %v30326_v26 = vadd.f32 %v18957_v38, %v18956_v60  ;;  %v18959_v13 = vpop.f32.mrb[102].mxu1  ;;  %v15784_v38 = vpop.permute.xlu0 %15783 }
 0xbb2   : > { %v18960_v46 = vpop.f32.mrb[103].mxu1 }
 0xbb3   : > { %v30330_v44 = vadd.f32 %v18960_v46, %v18959_v13  ;;  %v16276_v46 = vadd.f32 %v30246_v10, %v15764_v29  ;;  %v22211_v10 = vld [vmem:[%s30704_s5] sm:$0xff]   ;;  %v16284_v29 = vadd.f32 %v30256_v0, %v15774_v51  ;;  %v16292_v0 = vadd.f32 %v30266_v52, %v15784_v38 }
 0xbb4   : > { %19142 = vmatprep.mubr.msk.bf16.mxu1 %vm16903_vm2, %v22211_v10 }
 0xbb7   : > { %v18962_v9 = vpop.f32.mrb[104].mxu1 }
 0xbb8   : > { %v18963_v34 = vpop.f32.mrb[105].mxu1 }
 0xbb9   : > { %v30334_v1 = vadd.f32 %v18963_v34, %v18962_v9  ;;  %v18965_v59 = vpop.f32.mrb[106].mxu1 }
 0xbba   : > { %v18966_v53 = vpop.f32.mrb[107].mxu1 }
 0xbbb   : > { %v30336_v31 = vadd.f32 %v18966_v53, %v18965_v59  ;;  %v15789_v59 = vpop.permute.xlu1 %15788 }
 0xbbf   : > { %v18968_v58 = vpop.f32.mrb[108].mxu1 }
 0xbc0   : > { %v18969_v42 = vpop.f32.mrb[109].mxu1 }
 0xbc1   : > { %v30342_v11 = vadd.f32 %v18969_v42, %v18968_v58  ;;  %v18971_v36 = vpop.f32.mrb[110].mxu1  ;;  %v16279_v58 = vadd.f32 %v30251_v47, %v15769_v12 }
 0xbc2   : > { %v18972_v35 = vpop.f32.mrb[111].mxu1 }
 0xbc3   : > { %32141 = vst [vmem:[#allocation87_spill] sm:$0xff] %v30342_v11  ;;  %v30344_v25 = vadd.f32 %v18972_v35, %v18971_v36 }
 0xbc5   : > { %32142 = vst [vmem:[#allocation46_spill] sm:$0xff] %v30344_v25 }
 0xbc7   : > { %v18974_v18 = vpop.f32.mrb[112].mxu1 }
 0xbc8   : > { %v18975_v17 = vpop.f32.mrb[113].mxu1 }
 0xbc9   : > { %v30350_v55 = vadd.f32 %v18975_v17, %v18974_v18  ;;  %v18977_v16 = vpop.f32.mrb[114].mxu1  ;;  %v30364_v18 = vpop.permute.xlu0 %15823 }
 0xbca   : > { %v18978_v23 = vpop.f32.mrb[115].mxu1 }
 0xbcb   : > { %32143 = vst [vmem:[#allocation16_spill] sm:$0xff] %v30350_v55  ;;  %v30354_v32 = vadd.f32 %v18978_v23, %v18977_v16  ;;  %v30366_v16 = vpop.permute.xlu1 %15828 }
 0xbcd   : > { %32144 = vst [vmem:[#allocation52_spill] sm:$0xff] %v30354_v32 }
 0xbcf   : > { %v18996_v60 = vpop.f32.mrb[116].mxu1 }
 0xbd0   : > { %v18997_v13 = vpop.f32.mrb[117].mxu1 }
 0xbd1   : > { %v18998_v9 = vadd.f32 %v18997_v13, %v18996_v60  ;;  %v18999_v34 = vpop.f32.mrb[118].mxu1  ;;  %v16287_v13 = vadd.f32 %v30261_v40, %v15779_v49  ;;  %v16295_v40 = vadd.f32 %v30271_v56, %v15789_v59 }
 0xbd2   : > { %v19000_v53 = vpop.f32.mrb[119].mxu1 }
 0xbd3   : > { %v30360_v42 = vadd.f32 %v18998_v9, %v16276_v46  ;;  %v19001_v36 = vadd.f32 %v19000_v53, %v18999_v34  ;;  %v30376_v34 = vpop.permute.xlu0 %15863 }
 0xbd5   : > { %v30362_v35 = vadd.f32 %v19001_v36, %v16279_v58  ;;  %v30380_v58 = vpop.permute.xlu1 %15868 }
 0xbd7   : > { %v19002_v17 = vpop.f32.mrb[120].mxu1 }
 0xbd8   : > { %v19003_v23 = vpop.f32.mrb[121].mxu1 }
 0xbd9   : > { %v19004_v60 = vadd.f32 %v19003_v23, %v19002_v17  ;;  %v19005_v47 = vpop.f32.mrb[122].mxu1  ;;  %v30383_v23 = vpop.permute.xlu0 %15903 }
 0xbda   : > { %v19006_v12 = vpop.f32.mrb[123].mxu1 }
 0xbdb   : > { %v30374_v46 = vadd.f32 %v19004_v60, %v16284_v29  ;;  %v19007_v9 = vadd.f32 %v19006_v12, %v19005_v47  ;;  %v30388_v60 = vpop.permute.xlu1 %15908 }
 0xbdd   : > { %v30378_v53 = vadd.f32 %v19007_v9, %v16287_v13  ;;  %v15794_v13 = vpop.permute.xlu0 %15793 }
 0xbde   : > { %v16300_v55 = vadd.f32 %v30276_v43, %v15794_v13  ;;  %v16311_v43 = vadd.f32 %v30288_v2, %v30316_v45  ;;  %v16319_v2 = vadd.f32 %v30292_v20, %v30340_v41  ;;  %v16327_v20 = vadd.f32 %v30296_v28, %v30366_v16 }
 0xbdf   : > { %v19008_v36 = vpop.f32.mrb[124].mxu1  ;;  %v15799_v38 = vpop.permute.xlu1 %15798 }
 0xbe0   : > { %v19009_v32 = vpop.f32.mrb[125].mxu1  ;;  %v16303_v25 = vadd.f32 %v30281_v50, %v15799_v38 }
 0xbe1   : > { %v19010_v51 = vadd.f32 %v19009_v32, %v19008_v36  ;;  %v19011_v17 = vpop.f32.mrb[126].mxu1 }
 0xbe2   : > { %v19012_v10 = vpop.f32.mrb[127].mxu1 }
 0xbe3   : > { %v30386_v49 = vadd.f32 %v19010_v51, %v16292_v0  ;;  %v19013_v29 = vadd.f32 %v19012_v10, %v19011_v17  ;;  %v16308_v17 = vadd.f32 %v30286_v33, %v30314_v39  ;;  %v16316_v33 = vadd.f32 %v30290_v3, %v30338_v61 }
 0xbe4   : > { %v16324_v3 = vadd.f32 %v30294_v57, %v30364_v18 }
 0xbe5   : > { %v30390_v47 = vadd.f32 %v19013_v29, %v16295_v40 }
 0xbe7   : > { %v19014_v12 = vpop.f32.mrb[128].mxu1 }
 0xbe8   : > { %v19015_v9 = vpop.f32.mrb[129].mxu1 }
 0xbe9   : > { %v19016_v52 = vadd.f32 %v19015_v9, %v19014_v12  ;;  %v19017_v32 = vpop.f32.mrb[130].mxu1 }
 0xbea   : > { %v19018_v36 = vpop.f32.mrb[131].mxu1 }
 0xbeb   : > { %v30394_v11 = vadd.f32 %v19016_v52, %v16300_v55  ;;  %v19019_v56 = vadd.f32 %v19018_v36, %v19017_v32 }
 0xbed   : > { %v30396_v59 = vadd.f32 %v19019_v56, %v16303_v25 }
 0xbef   : > { %v19020_v0 = vpop.f32.mrb[132].mxu1 }
 0xbf0   : > { %v19021_v51 = vpop.f32.mrb[133].mxu1 }
 0xbf1   : > { %v19022_v10 = vadd.f32 %v19021_v51, %v19020_v0  ;;  %v19023_v40 = vpop.f32.mrb[134].mxu1 }
 0xbf2   : > { %v19024_v29 = vpop.f32.mrb[135].mxu1 }
 0xbf3   : > { %v30402_v12 = vadd.f32 %v19022_v10, %v16308_v17  ;;  %v19025_v13 = vadd.f32 %v19024_v29, %v19023_v40 }
 0xbf5   : > { %v16563_v50 = vmax.f32 %v30360_v42, %v30402_v12  ;;  %v30406_v55 = vadd.f32 %v19025_v13, %v16311_v43 }
 0xbf7   : > { %v16564_v25 = vmax.f32 %v30362_v35, %v30406_v55  ;;  %v19026_v9 = vpop.f32.mrb[136].mxu1  ;;  %v32145_v35 = vld [vmem:[#allocation87_spill] sm:$0xff] }
 0xbf8   : > { %v19027_v52 = vpop.f32.mrb[137].mxu1 }
 0xbf9   : > { %v19028_v39 = vadd.f32 %v19027_v52, %v19026_v9  ;;  %v19029_v32 = vpop.f32.mrb[138].mxu1 }
 0xbfa   : > { %v19030_v38 = vpop.f32.mrb[139].mxu1 }
 0xbfb   : > { %v30414_v45 = vadd.f32 %v19028_v39, %v16316_v33  ;;  %v19031_v36 = vadd.f32 %v19030_v38, %v19029_v32  ;;  %v15834_v39 = vpop.permute.xlu0 %15833 }
 0xbfc   : > { %v16332_v18 = vadd.f32 %v30298_v19, %v15834_v39  ;;  %v16340_v19 = vadd.f32 %v30302_v54, %v30322_v4  ;;  %v16351_v54 = vadd.f32 %v30308_v22, %v30348_v37 }
 0xbfd   : > { %v16565_v56 = vmax.f32 %v30374_v46, %v30414_v45  ;;  %v30418_v0 = vadd.f32 %v19031_v36, %v16319_v2  ;;  %v15839_v2 = vpop.permute.xlu1 %15838 }
 0xbfe   : > { %v16335_v16 = vadd.f32 %v30300_v8, %v15839_v2  ;;  %v16343_v8 = vadd.f32 %v30304_v15, %v30324_v6  ;;  %v16348_v2 = vadd.f32 %v30306_v5, %v30346_v30  ;;  %v16356_v15 = vadd.f32 %v30310_v62, %v30376_v34 }
 0xbff   : > { %v16566_v51 = vmax.f32 %v30378_v53, %v30418_v0  ;;  %v19032_v17 = vpop.f32.mrb[140].mxu1  ;;  %v16359_v5 = vadd.f32 %v30312_v24, %v30380_v58  ;;  %v15874_v37 = vpop.permute.xlu0 %15873 }
 0xc00   : > { %v19033_v10 = vpop.f32.mrb[141].mxu1 }
 0xc01   : > { %v19034_v61 = vadd.f32 %v19033_v10, %v19032_v17  ;;  %v19035_v40 = vpop.f32.mrb[142].mxu1 }
 0xc02   : > { %v19036_v29 = vpop.f32.mrb[143].mxu1 }
 0xc03   : > { %v30426_v41 = vadd.f32 %v19034_v61, %v16324_v3  ;;  %v19037_v43 = vadd.f32 %v19036_v29, %v19035_v40  ;;  %v15914_v0 = vpop.permute.xlu0 %15913 }
 0xc05   : > { %v16567_v13 = vmax.f32 %v30386_v49, %v30426_v41  ;;  %v30430_v9 = vadd.f32 %v19037_v43, %v16327_v20 }
 0xc07   : > { %v16568_v52 = vmax.f32 %v30390_v47, %v30430_v9  ;;  %v19038_v33 = vpop.f32.mrb[144].mxu1 }
 0xc08   : > { %v19039_v57 = vpop.f32.mrb[145].mxu1 }
 0xc09   : > { %v19040_v32 = vadd.f32 %v19039_v57, %v19038_v33  ;;  %v19041_v38 = vpop.f32.mrb[146].mxu1 }
 0xc0a   : > { %v19042_v28 = vpop.f32.mrb[147].mxu1 }
 0xc0b   : > { %v30436_v36 = vadd.f32 %v19040_v32, %v16332_v18  ;;  %v19043_v17 = vadd.f32 %v19042_v28, %v19041_v38 }
 0xc0d   : > { %v30440_v3 = vadd.f32 %v19043_v17, %v16335_v16 }
 0xc0f   : > { %v19044_v40 = vpop.f32.mrb[148].mxu1  ;;  %v32150_v47 = vmax.f32 %v30396_v59, %v30440_v3  ;;  %v22215_v59 = vld [vmem:[%s30704_s5 + $0x20] sm:$0xff]   ;;  %v22217_v3 = vld [vmem:[%s30704_s5 + $0x30] sm:$0xff]  }
 0xc10   : > { %v19045_v29 = vpop.f32.mrb[149].mxu1 }
 0xc11   : > { %v19046_v20 = vadd.f32 %v19045_v29, %v19044_v40  ;;  %v19047_v43 = vpop.f32.mrb[150].mxu1 }
 0xc12   : > { %v19048_v33 = vpop.f32.mrb[151].mxu1 }
 0xc13   : > { %v16501_v39 = vadd.f32 %v19046_v20, %v16340_v19  ;;  %v19049_v57 = vadd.f32 %v19048_v33, %v19047_v43 }
 0xc15   : > { %v16504_v18 = vadd.f32 %v19049_v57, %v16343_v8  ;;  %v16364_v57 = vadd.f32 %v30318_v63, %v15874_v37  ;;  %v16375_v63 = vadd.f32 %v30330_v44, %v30332_v48  ;;  %v16383_v48 = vadd.f32 %v30336_v31, %v30356_v14 }
 0xc16   : > { %v16388_v31 = vadd.f32 %v32145_v35, %v30383_v23 }
 0xc17   : > { %v19050_v32 = vpop.f32.mrb[152].mxu1 }
 0xc18   : > { %v19051_v38 = vpop.f32.mrb[153].mxu1 }
 0xc19   : > { %v19052_v28 = vadd.f32 %v19051_v38, %v19050_v32  ;;  %v19053_v16 = vpop.f32.mrb[154].mxu1 }
 0xc1a   : > { %v19054_v17 = vpop.f32.mrb[155].mxu1 }
 0xc1b   : > { %v16509_v4 = vadd.f32 %v19052_v28, %v16348_v2  ;;  %v19055_v40 = vadd.f32 %v19054_v17, %v19053_v16  ;;  %v15879_v2 = vpop.permute.xlu1 %15878  ;;  %v16372_v16 = vadd.f32 %v30326_v26, %v30328_v7  ;;  %v16380_v26 = vadd.f32 %v30334_v1, %v30352_v21 }
 0xc1c   : > { %v16367_v34 = vadd.f32 %v30320_v27, %v15879_v2 }
 0xc1d   : > { %v16512_v29 = vadd.f32 %v19055_v40, %v16351_v54 }
 0xc1f   : > { %v19056_v61 = vpop.f32.mrb[156].mxu1 }
 0xc20   : > { %v19057_v10 = vpop.f32.mrb[157].mxu1 }
 0xc21   : > { %v19058_v6 = vadd.f32 %v19057_v10, %v19056_v61  ;;  %v19059_v19 = vpop.f32.mrb[158].mxu1 }
 0xc22   : > { %v19060_v20 = vpop.f32.mrb[159].mxu1 }
 0xc23   : > { %v30456_v30 = vadd.f32 %v19058_v6, %v16356_v15  ;;  %v19061_v43 = vadd.f32 %v19060_v20, %v19059_v19 }
 0xc25   : > { %v30458_v33 = vadd.f32 %v19061_v43, %v16359_v5 }
 0xc27   : > { %v19062_v22 = vpop.f32.mrb[160].mxu1 }
 0xc28   : > { %v19063_v8 = vpop.f32.mrb[161].mxu1 }
 0xc29   : > { %v19064_v32 = vadd.f32 %v19063_v8, %v19062_v22  ;;  %v19065_v38 = vpop.f32.mrb[162].mxu1 }
 0xc2a   : > { %v19066_v62 = vpop.f32.mrb[163].mxu1 }
 0xc2b   : > { %v30462_v10 = vadd.f32 %v19064_v32, %v16364_v57  ;;  %v19067_v61 = vadd.f32 %v19066_v62, %v19065_v38 }
 0xc2d   : > { %v30464_v24 = vadd.f32 %v19067_v61, %v16367_v34 }
 0xc2f   : > { %v19068_v58 = vpop.f32.mrb[164].mxu1 }
 0xc30   : > { %v19069_v28 = vpop.f32.mrb[165].mxu1 }
 0xc31   : > { %v19070_v17 = vadd.f32 %v19069_v28, %v19068_v58  ;;  %v19071_v54 = vpop.f32.mrb[166].mxu1 }
 0xc32   : > { %v19072_v40 = vpop.f32.mrb[167].mxu1 }
 0xc33   : > { %v16533_v15 = vadd.f32 %v19070_v17, %v16372_v16  ;;  %v19073_v6 = vadd.f32 %v19072_v40, %v19071_v54  ;;  %v32147_v17 = vld [vmem:[#allocation16_spill] sm:$0xff] }
 0xc34   : > { %v16396_v54 = vadd.f32 %v32147_v17, %v15914_v0 }
 0xc35   : > { %v16571_v19 = vmax.f32 %v16501_v39, %v16533_v15  ;;  %v16536_v27 = vadd.f32 %v19073_v6, %v16375_v63  ;;  %v32148_v15 = vld [vmem:[#allocation52_spill] sm:$0xff] }
 0xc37   : > { %v16572_v20 = vmax.f32 %v16504_v18, %v16536_v27  ;;  %v19074_v5 = vpop.f32.mrb[168].mxu1  ;;  %v16579_v43 = vmax.f32 %v16563_v50, %v16571_v19 }
 0xc38   : > { %v19075_v22 = vpop.f32.mrb[169].mxu1 }
 0xc39   : > { %v19076_v7 = vadd.f32 %v19075_v22, %v19074_v5  ;;  %v19077_v37 = vpop.f32.mrb[170].mxu1  ;;  %v16580_v44 = vmax.f32 %v16564_v25, %v16572_v20  ;;  %v16587_v57 = vmax.f32 %v16579_v43, 0.0  ;;  %v32149_v22 = vmax.f32 %v30394_v11, %v30436_v36  ;;  %v22214_v11 = vld [vmem:[%s30704_s5 + $0x18] sm:$0xff]   ;;  %v22216_v36 = vld [vmem:[%s30704_s5 + $0x28] sm:$0xff]  }
 0xc3a   : > { %v19078_v39 = vpop.f32.mrb[171].mxu1 }
 0xc3b   : > { %v16541_v18 = vadd.f32 %v19076_v7, %v16380_v26  ;;  %v19079_v8 = vadd.f32 %v19078_v39, %v19077_v37  ;;  %v16588_v32 = vmax.f32 %v16580_v44, 0.0  ;;  %v22218_v44 = vld [vmem:[%s30704_s5 + $0x38] sm:$0xff]   ;;  %v22220_v39 = vld [vmem:[%s30704_s5 + $0x48] sm:$0xff]  }
 0xc3d   : > { %v16573_v42 = vmax.f32 %v16509_v4, %v16541_v18  ;;  %v16544_v12 = vadd.f32 %v19079_v8, %v16383_v48  ;;  %v16627_v50 = vpack.c.bf16 %v16588_v32, %v16587_v57  ;;  %v32146_v4 = vld [vmem:[#allocation46_spill] sm:$0xff]  ;;  %v22221_v18 = vld [vmem:[%s30704_s5 + $0x50] sm:$0xff]   ;;  %v22224_v32 = vld [vmem:[%s30704_s5 + $0x68] sm:$0xff]  }
 0xc3e   : > { %v22219_v48 = vld [vmem:[%s30704_s5 + $0x40] sm:$0xff]   ;;  %v22222_v8 = vld [vmem:[%s30704_s5 + $0x58] sm:$0xff]  }
 0xc3f   : > { %v16574_v38 = vmax.f32 %v16512_v29, %v16544_v12  ;;  %v19080_v2 = vpop.f32.mrb[172].mxu1  ;;  %19134 = vmatprep.subr.bf16.mxu1 %v16627_v50  ;;  %v16581_v1 = vmax.f32 %v16565_v56, %v16573_v42  ;;  %v16391_v29 = vadd.f32 %v32146_v4, %v30388_v60  ;;  %v15919_v60 = vpop.permute.xlu1 %15918  ;;  %v22223_v57 = vld [vmem:[%s30704_s5 + $0x60] sm:$0xff]   ;;  %v22225_v42 = vld [vmem:[%s30704_s5 + $0x70] sm:$0xff]   ;;  %v22226_v12 = vld [vmem:[%s30704_s5 + $0x78] sm:$0xff]  }
 0xc40   : > { %v19081_v21 = vpop.f32.mrb[173].mxu1  ;;  %19135 = vmatpush3.bf16.msra.mxu1 %v16627_v50  ;;  %v30568_v50 = vpop.permute.xlu0 %16745 }
 0xc41   : > { %v19082_v14 = vadd.f32 %v19081_v21, %v19080_v2  ;;  %v19083_v55 = vpop.f32.mrb[174].mxu1  ;;  %v16582_v25 = vmax.f32 %v16566_v51, %v16574_v38  ;;  %v16589_v58 = vmax.f32 %v16581_v1, 0.0  ;;  %v30575_v21 = vld [vmem:[%s30706_s7] sm:$0xff] }
 0xc42   : > { %v19084_v62 = vpop.f32.mrb[175].mxu1  ;;  %v18864_v35 = vcombine.high %v30575_v21, %v30575_v21 }
 0xc43   : > { %v16549_v34 = vadd.f32 %v19082_v14, %v16388_v31  ;;  %v19085_v61 = vadd.f32 %v19084_v62, %v19083_v55  ;;  %v16590_v46 = vmax.f32 %v16582_v25, 0.0  ;;  %v30570_v38 = vpop.permute.xlu1 %16750 }
 0xc44   : > { %v16666_v2 = vpop.permute.xlu0 %16665 }
 0xc45   : > { %v16575_v45 = vmax.f32 %v30456_v30, %v16549_v34  ;;  %v16552_v56 = vadd.f32 %v19085_v61, %v16391_v29  ;;  %v16628_v28 = vpack.c.bf16 %v16590_v46, %v16589_v58 }
 0xc47   : > { %v16576_v23 = vmax.f32 %v30458_v33, %v16552_v56  ;;  %v19086_v16 = vpop.f32.mrb[176].mxu1  ;;  %19136 = vmatprep.subr.bf16.mxu1 %v16628_v28  ;;  %v16583_v53 = vmax.f32 %v16567_v13, %v16575_v45  ;;  %v16399_v33 = vadd.f32 %v32148_v15, %v15919_v60  ;;  %v16671_v1 = vpop.permute.xlu1 %16670 }
 0xc48   : > { %v19087_v51 = vpop.f32.mrb[177].mxu1  ;;  %19137 = vmatpush3.bf16.msra.mxu1 %v16628_v28  ;;  %v30579_v31 = vpop.permute.xlu0 %16755 }
 0xc49   : > { %v19088_v40 = vadd.f32 %v19087_v51, %v19086_v16  ;;  %v19089_v63 = vpop.f32.mrb[178].mxu1  ;;  %v16584_v30 = vmax.f32 %v16568_v52, %v16576_v23  ;;  %v16591_v20 = vmax.f32 %v16583_v53, 0.0 }
 0xc4a   : > { %v19090_v6 = vpop.f32.mrb[179].mxu1 }
 0xc4b   : > { %v16557_v19 = vadd.f32 %v19088_v40, %v16396_v54  ;;  %v19091_v27 = vadd.f32 %v19090_v6, %v19089_v63  ;;  %v16592_v49 = vmax.f32 %v16584_v30, 0.0  ;;  %v30581_v14 = vpop.permute.xlu1 %16760 }
 0xc4c   : > { %v16676_v55 = vpop.permute.xlu0 %16675 }
 0xc4d   : > { %v16577_v41 = vmax.f32 %v30462_v10, %v16557_v19  ;;  %v16560_v13 = vadd.f32 %v19091_v27, %v16399_v33  ;;  %v16629_v5 = vpack.c.bf16 %v16592_v49, %v16591_v20  ;;  %v22212_v10 = vld [vmem:[%s30704_s5 + $0x8] sm:$0xff]  }
 0xc4f   : > { %v16578_v43 = vmax.f32 %v30464_v24, %v16560_v13  ;;  %19138 = vmatprep.subr.bf16.mxu1 %v16629_v5  ;;  %v16585_v26 = vmax.f32 %v32149_v22, %v16577_v41  ;;  %v22213_v24 = vld [vmem:[%s30704_s5 + $0x10] sm:$0xff]   ;;  %v16681_v25 = vpop.permute.xlu1 %16680 }
 0xc50   : > { %19139 = vmatpush3.bf16.msra.mxu1 %v16629_v5  ;;  %v30583_v4 = vpop.permute.xlu0 %16765 }
 0xc51   : > { %v16586_v9 = vmax.f32 %v32150_v47, %v16578_v43  ;;  %v16593_v52 = vmax.f32 %v16585_v26, 0.0 }
 0xc53   : > { %v16594_v7 = vmax.f32 %v16586_v9, 0.0  ;;  %v30585_v29 = vpop.permute.xlu1 %16770 }
 0xc54   : > { %v16686_v62 = vpop.permute.xlu0 %16685 }
 0xc55   : > { %v16630_v37 = vpack.c.bf16 %v16594_v7, %v16593_v52 }
 0xc57   : > { %19140 = vmatprep.subr.bf16.mxu1 %v16630_v37  ;;  %v16691_v34 = vpop.permute.xlu1 %16690 }
 0xc58   : > { %19141 = vmatpush3.bf16.msra.mxu1 %v16630_v37  ;;  %v30587_v61 = vpop.permute.xlu0 %16775 }
 0xc5b   : > { %19143 = vmatmul.mubr.msk.bf16.vlgmr.msra.gmra.mrb[180].mxu1 %vm16903_vm2, %v22212_v10  ;;  %v30589_v58 = vpop.permute.xlu1 %16780 }
 0xc5c   : > { %19146 = vmatprep.mubr.msk.bf16.mxu1 %vm16903_vm2, %v22213_v24  ;;  %v16696_v46 = vpop.permute.xlu0 %16695 }
 0xc5f   : > { %v16701_v45 = vpop.permute.xlu1 %16700 }
 0xc60   : > { %v30591_v56 = vpop.permute.xlu0 %16785 }
 0xc63   : > { %19147 = vmatmul.mubr.msk.bf16.gmra.mrb[184].mxu1 %vm16903_vm2, %v22214_v11  ;;  %v30593_v28 = vpop.permute.xlu1 %16790 }
 0xc64   : > { %19150 = vmatprep.mubr.msk.bf16.mxu1 %vm16903_vm2, %v22215_v59  ;;  %v16706_v23 = vpop.permute.xlu0 %16705 }
 0xc67   : > { %v16711_v16 = vpop.permute.xlu1 %16710 }
 0xc68   : > { %v30595_v53 = vpop.permute.xlu0 %16795 }
 0xc6b   : > { %19151 = vmatmul.mubr.msk.bf16.gmra.mrb[188].mxu1 %vm16903_vm2, %v22216_v36  ;;  %v30597_v0 = vpop.permute.xlu1 %16800 }
 0xc6c   : > { %19154 = vmatprep.mubr.msk.bf16.mxu1 %vm16903_vm2, %v22217_v3  ;;  %v16716_v51 = vpop.permute.xlu0 %16715 }
 0xc6f   : > { %v16721_v40 = vpop.permute.xlu1 %16720 }
 0xc70   : > { %v30599_v20 = vpop.permute.xlu0 %16805 }
 0xc73   : > { %19155 = vmatmul.mubr.msk.bf16.gmra.mrb[192].mxu1 %vm16903_vm2, %v22218_v44  ;;  %v30603_v5 = vpop.permute.xlu1 %16810 }
 0xc74   : > { %19158 = vmatprep.mubr.msk.bf16.mxu1 %vm16903_vm2, %v22219_v48  ;;  %v16726_v10 = vpop.permute.xlu0 %16725 }
 0xc77   : > { %v16731_v36 = vpop.permute.xlu1 %16730 }
 0xc7b   : > { %19159 = vmatmul.mubr.msk.bf16.gmra.mrb[196].mxu1 %vm16903_vm2, %v22220_v39 }
 0xc7c   : > { %19162 = vmatprep.mubr.msk.bf16.mxu1 %vm16903_vm2, %v22221_v18 }
 0xc83   : > { %19163 = vmatmul.mubr.msk.bf16.gmra.mrb[200].mxu1 %vm16903_vm2, %v22222_v8 }
 0xc84   : > { %19166 = vmatprep.mubr.msk.bf16.mxu1 %vm16903_vm2, %v22223_v57 }
 0xc8b   : > { %19167 = vmatmul.mubr.msk.bf16.gmra.mrb[204].mxu1 %vm16903_vm2, %v22224_v32  ;;  %v30611_v32 = vpop.permute.xlu0 %16815 }
 0xc8c   : > { %19170 = vmatprep.mubr.msk.bf16.mxu1 %vm16903_vm2, %v22225_v42 }
 0xc93   : > { %19171 = vmatmul.mubr.msk.bf16.gmra.mrb[208].mxu1 %vm16903_vm2, %v22226_v12 }
 0xc94   : > { %17201 = vmatprep.mubr.bf16.mxu1 %v18864_v35  ;;  %v30613_v35 = vpop.permute.xlu1 %16820 }
 0xd2e   : > { %v19144_v60 = vpop.f32.mrb[180].mxu1 }
 0xd2f   : > { %v16995_v17 = vadd.f32 %v19144_v60, %v16676_v55  ;;  %v16986_v54 = vpop.f32.mrb[181].mxu1  ;;  %v16736_v60 = vpop.permute.xlu0 %16735 }
 0xd30   : > { %v16987_v63 = vadd.f32 %v16986_v54, %v16666_v2  ;;  %v19145_v30 = vpop.f32.mrb[182].mxu1 }
 0xd31   : > { %v16998_v15 = vadd.f32 %v19145_v30, %v16681_v25  ;;  %v16989_v33 = vpop.f32.mrb[183].mxu1  ;;  %v17115_v19 = vmax.f32 %v16995_v17, 0.0  ;;  %v16741_v30 = vpop.permute.xlu1 %16740 }
 0xd32   : > { %v16990_v6 = vadd.f32 %v16989_v33, %v16671_v1  ;;  %v17113_v49 = vmax.f32 %v16987_v63, 0.0 }
 0xd33   : > { %v17116_v27 = vmax.f32 %v16998_v15, 0.0 }
 0xd34   : > { %v17114_v41 = vmax.f32 %v16990_v6, 0.0 }
 0xd35   : > { %v30601_v13 = vpack.c.bf16 %v17116_v27, %v17115_v19 }
 0xd36   : > { %v30605_v43 = vpack.c.bf16 %v17114_v41, %v17113_v49  ;;  %v19148_v22 = vpop.f32.mrb[184].mxu1 }
 0xd37   : > { %v17011_v26 = vadd.f32 %v19148_v22, %v16696_v46  ;;  %v17002_v47 = vpop.f32.mrb[185].mxu1 }
 0xd38   : > { %v17003_v9 = vadd.f32 %v17002_v47, %v16686_v62  ;;  %v19149_v52 = vpop.f32.mrb[186].mxu1 }
 0xd39   : > { %v17014_v7 = vadd.f32 %v19149_v52, %v16701_v45  ;;  %v17005_v37 = vpop.f32.mrb[187].mxu1  ;;  %v17119_v11 = vmax.f32 %v17011_v26, 0.0 }
 0xd3a   : > { %v17006_v24 = vadd.f32 %v17005_v37, %v16691_v34  ;;  %v17117_v3 = vmax.f32 %v17003_v9, 0.0 }
 0xd3b   : > { %v17120_v59 = vmax.f32 %v17014_v7, 0.0 }
 0xd3c   : > { %v17118_v44 = vmax.f32 %v17006_v24, 0.0 }
 0xd3d   : > { %v30607_v48 = vpack.c.bf16 %v17120_v59, %v17119_v11 }
 0xd3e   : > { %v30609_v39 = vpack.c.bf16 %v17118_v44, %v17117_v3  ;;  %v19152_v18 = vpop.f32.mrb[188].mxu1 }
 0xd3f   : > { %v17027_v8 = vadd.f32 %v19152_v18, %v16716_v51  ;;  %v17018_v57 = vpop.f32.mrb[189].mxu1 }
 0xd40   : > { %v17019_v42 = vadd.f32 %v17018_v57, %v16706_v23  ;;  %v19153_v12 = vpop.f32.mrb[190].mxu1 }
 0xd41   : > { %v17030_v2 = vadd.f32 %v19153_v12, %v16721_v40  ;;  %v17021_v1 = vpop.f32.mrb[191].mxu1  ;;  %v17123_v25 = vmax.f32 %v17027_v8, 0.0 }
 0xd42   : > { %v17022_v55 = vadd.f32 %v17021_v1, %v16711_v16  ;;  %v17121_v34 = vmax.f32 %v17019_v42, 0.0 }
 0xd43   : > { %v17124_v62 = vmax.f32 %v17030_v2, 0.0 }
 0xd44   : > { %v17122_v46 = vmax.f32 %v17022_v55, 0.0 }
 0xd45   : > { %v30615_v45 = vpack.c.bf16 %v17124_v62, %v17123_v25 }
 0xd46   : > { %v30617_v17 = vpack.c.bf16 %v17122_v46, %v17121_v34  ;;  %v19156_v51 = vpop.f32.mrb[192].mxu1 }
 0xd47   : > { %v17043_v54 = vadd.f32 %v19156_v51, %v16736_v60  ;;  %v17034_v63 = vpop.f32.mrb[193].mxu1 }
 0xd48   : > { %v17035_v23 = vadd.f32 %v17034_v63, %v16726_v10  ;;  %v19157_v15 = vpop.f32.mrb[194].mxu1 }
 0xd49   : > { %v17046_v40 = vadd.f32 %v19157_v15, %v16741_v30  ;;  %v17037_v33 = vpop.f32.mrb[195].mxu1  ;;  %v17127_v19 = vmax.f32 %v17043_v54, 0.0 }
 0xd4a   : > { %v17038_v6 = vadd.f32 %v17037_v33, %v16731_v36  ;;  %v17125_v27 = vmax.f32 %v17035_v23, 0.0 }
 0xd4b   : > { %v17128_v16 = vmax.f32 %v17046_v40, 0.0 }
 0xd4c   : > { %v17126_v49 = vmax.f32 %v17038_v6, 0.0 }
 0xd4d   : > { %v30619_v41 = vpack.c.bf16 %v17128_v16, %v17127_v19 }
 0xd4e   : > { %v30621_v22 = vpack.c.bf16 %v17126_v49, %v17125_v27  ;;  %v19160_v26 = vpop.f32.mrb[196].mxu1 }
 0xd4f   : > { %v17059_v47 = vadd.f32 %v19160_v26, %v30579_v31  ;;  %v17050_v9 = vpop.f32.mrb[197].mxu1  ;;  %v17213_v26 = vpop.permute.xlu0 %17212 }
 0xd50   : > { %v17051_v52 = vadd.f32 %v17050_v9, %v30568_v50  ;;  %v19161_v7 = vpop.f32.mrb[198].mxu1 }
 0xd51   : > { %v17062_v37 = vadd.f32 %v19161_v7, %v30581_v14  ;;  %v17053_v10 = vpop.f32.mrb[199].mxu1  ;;  %v17131_v11 = vmax.f32 %v17059_v47, 0.0 }
 0xd52   : > { %v17054_v24 = vadd.f32 %v17053_v10, %v30570_v38  ;;  %v17129_v36 = vmax.f32 %v17051_v52, 0.0 }
 0xd53   : > { %v17132_v59 = vmax.f32 %v17062_v37, 0.0 }
 0xd54   : > { %v17130_v3 = vmax.f32 %v17054_v24, 0.0 }
 0xd55   : > { %v17155_v44 = vpack.c.bf16 %v17132_v59, %v17131_v11 }
 0xd56   : > { %v17154_v18 = vpack.c.bf16 %v17130_v3, %v17129_v36  ;;  %v19164_v8 = vpop.f32.mrb[200].mxu1 }
 0xd57   : > { %v17075_v57 = vadd.f32 %v19164_v8, %v30587_v61  ;;  %v17066_v42 = vpop.f32.mrb[201].mxu1 }
 0xd58   : > { %v17067_v31 = vadd.f32 %v17066_v42, %v30583_v4  ;;  %v19165_v12 = vpop.f32.mrb[202].mxu1  ;;  %19112 = vmatprep.subr.bf16.mxu1 %v17154_v18 }
 0xd59   : > { %v17078_v50 = vadd.f32 %v19165_v12, %v30589_v58  ;;  %v17069_v14 = vpop.f32.mrb[203].mxu1  ;;  %19113 = vmatpush3.bf16.msra.mxu1 %v30605_v43  ;;  %v17135_v2 = vmax.f32 %v17075_v57, 0.0 }
 0xd5a   : > { %v17070_v38 = vadd.f32 %v17069_v14, %v30585_v29  ;;  %19114 = vmatprep.subr.bf16.mxu1 %v17155_v44  ;;  %v17133_v55 = vmax.f32 %v17067_v31, 0.0 }
 0xd5b   : > { %v17136_v1 = vmax.f32 %v17078_v50, 0.0 }
 0xd5c   : > { %v17134_v25 = vmax.f32 %v17070_v38, 0.0 }
 0xd5d   : > { %v17157_v62 = vpack.c.bf16 %v17136_v1, %v17135_v2  ;;  %19115 = vmatpush3.bf16.msra.mxu1 %v30601_v13 }
 0xd5e   : > { %v17156_v61 = vpack.c.bf16 %v17134_v25, %v17133_v55  ;;  %v19168_v34 = vpop.f32.mrb[204].mxu1 }
 0xd5f   : > { %v17091_v4 = vadd.f32 %v19168_v34, %v30595_v53  ;;  %v17082_v46 = vpop.f32.mrb[205].mxu1 }
 0xd60   : > { %v17083_v58 = vadd.f32 %v17082_v46, %v30591_v56  ;;  %v19169_v60 = vpop.f32.mrb[206].mxu1  ;;  %19116 = vmatprep.subr.bf16.mxu1 %v17156_v61 }
 0xd61   : > { %v17094_v43 = vadd.f32 %v19169_v60, %v30597_v0  ;;  %v17085_v29 = vpop.f32.mrb[207].mxu1  ;;  %19117 = vmatpush3.bf16.msra.mxu1 %v30609_v39  ;;  %v17139_v54 = vmax.f32 %v17091_v4, 0.0 }
 0xd62   : > { %v17086_v51 = vadd.f32 %v17085_v29, %v30593_v28  ;;  %19118 = vmatprep.subr.bf16.mxu1 %v17157_v62  ;;  %v17137_v13 = vmax.f32 %v17083_v58, 0.0 }
 0xd63   : > { %v17140_v63 = vmax.f32 %v17094_v43, 0.0 }
 0xd64   : > { %v17138_v30 = vmax.f32 %v17086_v51, 0.0 }
 0xd65   : > { %v17159_v23 = vpack.c.bf16 %v17140_v63, %v17139_v54  ;;  %19119 = vmatpush3.bf16.msra.mxu1 %v30607_v48 }
 0xd66   : > { %v17158_v53 = vpack.c.bf16 %v17138_v30, %v17137_v13  ;;  %v19172_v15 = vpop.f32.mrb[208].mxu1 }
 0xd67   : > { %v17107_v56 = vadd.f32 %v19172_v15, %v30611_v32  ;;  %v17098_v40 = vpop.f32.mrb[209].mxu1 }
 0xd68   : > { %v17099_v0 = vadd.f32 %v17098_v40, %v30599_v20  ;;  %v19173_v33 = vpop.f32.mrb[210].mxu1  ;;  %19120 = vmatprep.subr.bf16.mxu1 %v17158_v53  ;;  %v18863_v20 = vcombine.low %v30575_v21, %v30575_v21 }
 0xd69   : > { %v17110_v39 = vadd.f32 %v19173_v33, %v30613_v35  ;;  %v17101_v28 = vpop.f32.mrb[211].mxu1  ;;  %19121 = vmatpush3.bf16.msra.mxu1 %v30617_v17  ;;  %v17143_v19 = vmax.f32 %v17107_v56, 0.0 }
 0xd6a   : > { %v17102_v6 = vadd.f32 %v17101_v28, %v30603_v5  ;;  %19122 = vmatprep.subr.bf16.mxu1 %v17159_v23  ;;  %v17141_v48 = vmax.f32 %v17099_v0, 0.0  ;;  %v17215_v5 = vlaneseq }
 0xd6b   : > { %v17144_v16 = vmax.f32 %v17110_v39, 0.0 }
 0xd6c   : > { %v17142_v27 = vmax.f32 %v17102_v6, 0.0  ;;  %v17216_v35 = vshrl.u32 %v17215_v5, 7 }
 0xd6d   : > { %v17161_v49 = vpack.c.bf16 %v17144_v16, %v17143_v19  ;;  %19123 = vmatpush3.bf16.msra.mxu1 %v30615_v45 }
 0xd6e   : > { %v17160_v32 = vpack.c.bf16 %v17142_v27, %v17141_v48  ;;  %v17217_v17 = vsub.s32 0, %v17216_v35 }
 0xd70   : > { %19124 = vmatprep.subr.bf16.mxu1 %v17160_v32  ;;  %v17218_v9 = vrot.slane %v17213_v26, %v17217_v17 }
 0xd71   : > { %19125 = vmatpush3.bf16.msra.mxu1 %v30621_v22 }
 0xd72   : > { %19126 = vmatprep.subr.bf16.mxu1 %v17161_v49 }
 0xd75   : > { %19127 = vmatpush3.bf16.msra.mxu1 %v30619_v41 }
 0xd78   : > { %17202 = vmatmul.mubr.bf16.vlgmr.msra.gmra.mrb[212].mxu1 %v18863_v20 }
 0xe4b   : > { %v19128_v47 = vpop.f32.mrb[212].mxu1 }
 0xe4c   : > { %v19129_v45 = vpop.f32.mrb[213].mxu1 }
 0xe4d   : > { %v19130_v52 = vadd.f32 %v19129_v45, %v19128_v47  ;;  %v19131_v22 = vpop.f32.mrb[214].mxu1 }
 0xe4e   : > { %v19132_v7 = vpop.f32.mrb[215].mxu1 }
 0xe4f   : > { %v17219_v37 = vadd.f32 %v19130_v52, %v17218_v9 }
 0xe51   : > { %v17220_v10 = vmax.f32 %v17219_v37, 0.0 }
 0xe53   : > { %22229 = vtanh.f32 %v17220_v10 }
 0xe5d   : > { %v22230_v21 = vpop.eup %22229 }
 0xe5e   : > { %17222 = vst [vmem:[%s564_s18] sm:$0x1] %v22230_v21 }
 0xe5f   : > { %22348 = shalt.err (!%p22345_p5)
}
 0xe60   : > { %s22349_s29 = scalar_lea.hbm %s30655_s24, 16  ;;  %s22353_s15 = scalar_lea.hbm %s30708_s9, 32 }
 0xe61   : > { %p22350_p7 = scmp.ne.s32.totalorder %s30655_s24, %s22349_s29  ;;  %p22354_p12 = scmp.lt.u32.totalorder %s30655_s24, %s30708_s9 }
 0xe62   : > { %p22355_p13 = scmp.lt.u32.totalorder %s22353_s15, %s22349_s29  ;;  %p22357_p1 = scmp.lt.u32.totalorder %s22349_s29, %s30655_s24 }
 0xe63   : > { %p22351_p10 = pnand %p22350_p7, %p22492_p6 }
 0xe64   : > { %p22356_p0 = por %p22355_p13, %p22354_p12 }
 0xe65   : > { %p22352_p11 = pneg %p22351_p10 }
 0xe66   : > { %p22358_p2 = por %p22357_p1, %p22356_p0 }
 0xe68   : > { %p22359_p3 = pnand %p22358_p2, %p22352_p11 }
 0xe6a   : > { %22362 = shalt.err (!%p22359_p3)
}
 0xe6b   : > { %20320 = dma.vmem_to_hbm [thread:$0]  (%p22492_p6), %s30657_s22, 16, %s30655_s24, %s17224_s25  }
 0xe6c PF: > { %s17248_s23 = sand.u32 1, %s22385_s11   ;;  %p20323_p4 = pnand %p17299_p9, %p22496_p8 }
 0xe6d   : > { %s17249_s26 = scalar_lea.sflag [#allocation6], %s17248_s23 }
 0xe6e   : > { %22380 = dma.done.wait (!%p20323_p4), %s17249_s26, 16  }
 0xe6f   : > { %22382 = vsyncadd (!%p20323_p4), %s17249_s26, 4294967280  ;;  %p21_p5 = scmp.ge.s32.totalorder %s22477_s16, 4   ;;  %s32151_s11 = smov %s22389_s12 }
 0xe70   : > { %s32152_s12 = smov %s22393_s13  ;;  %s32153_s13 = smov %s22490_s19 }
 0xe71   : > { %s32154_s14 = smov %s22477_s16  ;;  %23 = sbr.rel (!%p21_p5) target bundleno = 6 (0x6), region = 137 }
 0xe78   :  { %17253 = vsyncpa [#allocation6], 1 }
 0xe79   :  { %17255 = vsyncpa [#allocation6 + $0x1], 1 }

</bundles_post_ra>
